<compile_context>
chip_gen: v7x
topology: tpu7x:2x2x1
jax: 0.10.0
libtpu: 0.0.40
codegen_flags: <defaults>
</compile_context>

<pallas_src>
import numpy as np
import jax
import jax.numpy as jnp
from jax.experimental import pallas as pl
from jax.experimental.pallas import tpu as pltpu

THRESH = 1.0


def _band_weights_flat(wt, win, block_lanes, parity_out):
    """(Cout, Cin, K, K) torch conv weight -> (K*block_lanes, win*Cout) matrix.

    Row index = dy*block_lanes + j_in*Cin + c, column = slot(j_out)*Cout + o, so
    (im2col-over-dy staged activations) @ R computes a stride-1 'same' conv as a
    SINGLE matmul.  W-boundary zero padding is encoded by the band clipping;
    block_lanes >= win*Cin keeps the staged LHS lane-tile aligned (extra lanes
    multiply zero rows).  If parity_out, output columns are ordered
    even-columns-first so a width-2 max pool along W is a max of the two halves.
    """
    wt = np.asarray(wt, np.float32)
    cout, cin, K, _ = wt.shape
    P = K // 2
    R = np.zeros((K * block_lanes, win * cout), np.float32)
    for dy in range(K):
        base = dy * block_lanes
        for jout in range(win):
            slot = ((jout % 2) * (win // 2) + (jout // 2)) if parity_out else jout
            for dx in range(K):
                jin = jout + dx - P
                if 0 <= jin < win:
                    R[base + jin * cin: base + (jin + 1) * cin,
                      slot * cout:(slot + 1) * cout] = wt[:, :, dy, dx].T
    return R


def _make_kernel(B, H, W, C1, C2, C3, lane2, lane3, beta, n_steps, n_pixels):
    Hh, Wh = H // 2, W // 2
    K2, K3 = 5, 7

    def lif(mem, cur):
        # snntorch Leaky, subtract reset: reset from previous mem, spike from new mem.
        rst = (mem > THRESH).astype(jnp.float32)
        mem = beta * mem + cur - rst          # THRESH == 1.0 -> no multiply needed
        spk = (mem > THRESH).astype(jnp.float32)
        return spk, mem

    def kernel(cur1_ref, r2_ref, b2_ref, r3_ref, b3_ref, wfc_ref, bfc_ref,
               spk_out_ref, mem_out_ref,
               pad1_ref, pad2_ref, st2_ref, st3_ref, wp_ref):

        def staged_conv(pad_ref, st_ref, r_ref, b_ref, K, hout, lane):
            # im2col over the row taps only: K lane-aligned copies into the
            # staging scratch, then ONE full-depth MXU matmul.
            off = 8 - K // 2
            for dy in range(K):
                st_ref[:, :, dy * lane:(dy + 1) * lane] = (
                    pad_ref[:, off + dy:off + dy + hout, :].astype(jnp.bfloat16))
            lhs = st_ref[...].reshape(B * hout, K * lane)
            return jnp.dot(lhs, r_ref[...],
                           preferred_element_type=jnp.float32) + b_ref[...]

        # Halo rows / padding lanes stay zero for the entire run.
        pad1_ref[...] = jnp.zeros_like(pad1_ref)
        pad2_ref[...] = jnp.zeros_like(pad2_ref)

        def step(t, carry):
            mem1, mem2, mem3, mem4 = carry

            # ---- lif1 on the cached (hoisted) lgn output ----------------------
            spk1, mem1 = lif(mem1, cur1_ref[...])
            pad1_ref[:, 8:8 + H, 0:W * C1] = spk1.reshape(B, H, W * C1)  # aligned

            # ---- v1_simple (5x5) as ONE matmul + fused 2x2/2 max pool ---------
            c2 = staged_conv(pad1_ref, st2_ref, r2_ref, b2_ref, K2, H, lane2)
            half = Wh * C2
            wp_ref[...] = jnp.maximum(c2[:, :half], c2[:, half:])       # W pool
            cur2 = jnp.maximum(wp_ref[pl.ds(0, B * Hh, stride=2), :],   # H pool
                               wp_ref[pl.ds(1, B * Hh, stride=2), :])

            spk2, mem2 = lif(mem2, cur2)
            pad2_ref[:, 8:8 + Hh, 0:half] = spk2.reshape(B, Hh, half)   # aligned rows

            # ---- v2 (7x7) as ONE matmul + AdaptiveMaxPool2d(1) -----------------
            c3 = staged_conv(pad2_ref, st3_ref, r3_ref, b3_ref, K3, Hh, lane3)
            g, width = c3, Wh * C3
            while width > C3:                       # lane-halving max tree over W
                width //= 2
                g = jnp.maximum(g[:, :width], g[:, width:2 * width])
            cur3 = jnp.max(g.reshape(B, Hh, C3), axis=1)                # max over H

            spk3, mem3 = lif(mem3, cur3)

            # ---- flatten + fc1 --------------------------------------------------
            cur4 = jnp.dot(spk3.astype(jnp.bfloat16), wfc_ref[...],
                           preferred_element_type=jnp.float32) + bfc_ref[...]
            spk4, mem4 = lif(mem4, cur4)

            spk_out_ref[t] = spk4
            mem_out_ref[t] = mem4
            return mem1, mem2, mem3, mem4

        init = (jnp.zeros((B * H, W * C1), jnp.float32),
                jnp.zeros((B * Hh, Wh * C2), jnp.float32),
                jnp.zeros((B, C3), jnp.float32),
                jnp.zeros((B, n_pixels), jnp.float32))

        if n_steps <= 16:
            # Fully unrolled at trace time (short fixed trip count -> LLO visibility).
            carry = init
            for t in range(n_steps):
                carry = step(t, carry)
        else:
            jax.lax.fori_loop(0, n_steps, step, init)

    return kernel


def snn_forward(x_nchw, params, *, beta, n_steps):
    B, cin, H, W = x_nchw.shape
    C1, C2, C3 = 16, 4, 8
    Hh, Wh = H // 2, W // 2
    assert H % 16 == 0 and W % 16 == 0 and (Wh & (Wh - 1)) == 0, \
        "demo assumes H,W multiples of 16 with power-of-two half-width"
    n_pixels = params["w_fc"].shape[0]
    K2, K3 = 5, 7

    ceil128 = lambda n: -(-n // 128) * 128
    lane2 = ceil128(W * C1)      # 256 : stage-2 per-tap lane block
    lane3 = ceil128(Wh * C2)     # 128 : stage-3 per-tap lane block (data in first Wh*C2 lanes)

    # ---- hoisted, loop-invariant lgn conv (x is constant across steps) ---------
    x = x_nchw.astype(jnp.float32)
    cur1 = jax.lax.conv_general_dilated(
        x, jnp.asarray(params["w_lgn"], jnp.float32),
        window_strides=(1, 1), padding="SAME",
        dimension_numbers=("NCHW", "OIHW", "NCHW"))
    cur1 = cur1 + jnp.asarray(params["b_lgn"], jnp.float32)[None, :, None, None]
    cur1_flat = jnp.transpose(cur1, (0, 2, 3, 1)).reshape(B * H, W * C1)

    # ---- host-side band-matrix prep (pure re-layout of torch-format weights) ---
    r2 = jnp.asarray(_band_weights_flat(params["w_v1"], W, lane2, True), jnp.bfloat16)
    r3 = jnp.asarray(_band_weights_flat(params["w_v2"], Wh, lane3, False), jnp.bfloat16)
    b2 = jnp.tile(jnp.asarray(params["b_v1"], jnp.float32), W)[None, :]
    b3 = jnp.tile(jnp.asarray(params["b_v2"], jnp.float32), Wh)[None, :]
    wfc = jnp.asarray(params["w_fc"], jnp.float32).T.astype(jnp.bfloat16)   # (8, n_pixels)
    bfc = jnp.asarray(params["b_fc"], jnp.float32)[None, :]

    kernel = _make_kernel(B, H, W, C1, C2, C3, lane2, lane3, beta, n_steps, n_pixels)

    return pl.pallas_call(
        kernel,
        out_shape=(jax.ShapeDtypeStruct((n_steps, B, n_pixels), jnp.float32),
                   jax.ShapeDtypeStruct((n_steps, B, n_pixels), jnp.float32)),
        scratch_shapes=[
            pltpu.VMEM((B, 8 + H + K2 // 2, lane2), jnp.float32),    # pad1: spk1 + H halo
            pltpu.VMEM((B, 8 + Hh + K3 // 2, lane3), jnp.float32),   # pad2: spk2 + H halo
            pltpu.VMEM((B, H, K2 * lane2), jnp.bfloat16),            # st2: im2col-over-dy LHS
            pltpu.VMEM((B, Hh, K3 * lane3), jnp.bfloat16),           # st3: im2col-over-dy LHS
            pltpu.VMEM((B * H, Wh * C2), jnp.float32),               # wp : W-pooled conv2
        ],
        compiler_params=pltpu.CompilerParams(vmem_limit_bytes=32 * 1024 * 1024),
    )(cur1_flat, r2, b2, r3, b3, wfc, bfc)


def init_params(key, n_inputs, n_pixels):
    """Deterministic synthetic parameters in the PyTorch layouts:
       conv weights (Cout, Cin, KH, KW), biases (Cout,), fc weight (out, in)."""
    ks = jax.random.split(key, 8)
    nrm = lambda k, s, sc: jax.random.normal(k, s, jnp.float32) * sc
    return dict(
        w_lgn=nrm(ks[0], (16, n_inputs, 3, 3), 0.25), b_lgn=nrm(ks[1], (16,), 0.1),
        w_v1=nrm(ks[2], (4, 16, 5, 5), 0.08),         b_v1=nrm(ks[3], (4,), 0.1),
        w_v2=nrm(ks[4], (8, 4, 7, 7), 0.08),          b_v2=nrm(ks[5], (8,), 0.1),
        w_fc=nrm(ks[6], (n_pixels, 8), 0.4),          b_fc=nrm(ks[7], (n_pixels,), 0.1),
    )


if __name__ == "__main__":
    B, n_inputs, H, W = 2, 4, 16, 16
    beta, n_steps, n_pixels = 0.9, 4, 32

    key = jax.random.PRNGKey(0)
    kx, kp = jax.random.split(key)
    x = jax.random.normal(kx, (B, n_inputs, H, W), jnp.float32)   # NCHW, like PyTorch
    params = init_params(kp, n_inputs, n_pixels)

    spk_rec, mem_rec = snn_forward(x, params, beta=beta, n_steps=n_steps)
    jax.block_until_ready((spk_rec, mem_rec))

    assert spk_rec.shape == (n_steps, B, n_pixels)
    assert mem_rec.shape == (n_steps, B, n_pixels)
    assert bool(jnp.all(jnp.isfinite(mem_rec)))
    assert bool(jnp.all((spk_rec == 0.0) | (spk_rec == 1.0)))
    print("KERNEL_OK")
</pallas_src>

<mosaic_0001>
module attributes {stable_mosaic.version = 11 : i64} {
  func.func @kernel(%arg0: memref<32x256xf32, #tpu.memory_space<vmem>>, %arg1: memref<1280x64xbf16, #tpu.memory_space<vmem>>, %arg2: memref<1x64xf32, #tpu.memory_space<vmem>>, %arg3: memref<896x64xbf16, #tpu.memory_space<vmem>>, %arg4: memref<1x64xf32, #tpu.memory_space<vmem>>, %arg5: memref<8x32xbf16, #tpu.memory_space<vmem>>, %arg6: memref<1x32xf32, #tpu.memory_space<vmem>>, %arg7: memref<4x2x32xf32, #tpu.memory_space<vmem>>, %arg8: memref<4x2x32xf32, #tpu.memory_space<vmem>>, %arg9: memref<2x26x256xf32, #tpu.memory_space<vmem>>, %arg10: memref<2x19x128xf32, #tpu.memory_space<vmem>>, %arg11: memref<2x16x1280xbf16, #tpu.memory_space<vmem>>, %arg12: memref<2x8x896xbf16, #tpu.memory_space<vmem>>, %arg13: memref<32x32xf32, #tpu.memory_space<vmem>>) attributes {dimension_semantics = [], scalar_prefetch = 0 : i64, scratch_operands = 5 : i64, tpu.core_type = #tpu.core_type<tc>} {
    %cst = arith.constant 0.000000e+00 : f32
    %0 = vector.broadcast %cst : f32 to vector<2x26x256xf32>
    %c0 = arith.constant 0 : index
    %c0_0 = arith.constant 0 : index
    %c0_1 = arith.constant 0 : index
    %1 = vector.load %arg9[%c0, %c0_0, %c0_1] : memref<2x26x256xf32, #tpu.memory_space<vmem>>, vector<2x26x256xf32>
    tpu.vector_store %arg9[%c0, %c0_0, %c0_1], %0 {strides = array<i32>} : memref<2x26x256xf32, #tpu.memory_space<vmem>>, vector<2x26x256xf32>,
    %cst_2 = arith.constant 0.000000e+00 : f32
    %2 = vector.broadcast %cst_2 : f32 to vector<2x19x128xf32>
    %c0_3 = arith.constant 0 : index
    %c0_4 = arith.constant 0 : index
    %c0_5 = arith.constant 0 : index
    %3 = vector.load %arg10[%c0_3, %c0_4, %c0_5] : memref<2x19x128xf32, #tpu.memory_space<vmem>>, vector<2x19x128xf32>
    tpu.vector_store %arg10[%c0_3, %c0_4, %c0_5], %2 {strides = array<i32>} : memref<2x19x128xf32, #tpu.memory_space<vmem>>, vector<2x19x128xf32>,
    %cst_6 = arith.constant 0.000000e+00 : f32
    %4 = vector.broadcast %cst_6 : f32 to vector<32x256xf32>
    %cst_7 = arith.constant 0.000000e+00 : f32
    %5 = vector.broadcast %cst_7 : f32 to vector<16x32xf32>
    %cst_8 = arith.constant 0.000000e+00 : f32
    %6 = vector.broadcast %cst_8 : f32 to vector<2x8xf32>
    %cst_9 = arith.constant 0.000000e+00 : f32
    %7 = vector.broadcast %cst_9 : f32 to vector<2x32xf32>
    %c0_10 = arith.constant 0 : index
    %c0_11 = arith.constant 0 : index
    %8 = vector.load %arg0[%c0_10, %c0_11] : memref<32x256xf32, #tpu.memory_space<vmem>>, vector<32x256xf32>
    %cst_12 = arith.constant 1.000000e+00 : f32
    %9 = vector.broadcast %cst_12 : f32 to vector<32x256xf32>
    %10 = arith.cmpf ogt, %4, %9 : vector<32x256xf32>
    %11 = arith.extui %10 : vector<32x256xi1> to vector<32x256xi32>
    %12 = arith.sitofp %11 : vector<32x256xi32> to vector<32x256xf32>
    %cst_13 = arith.constant 0.899999976 : f32
    %13 = vector.broadcast %cst_13 : f32 to vector<32x256xf32>
    %14 = arith.mulf %13, %4 : vector<32x256xf32>
    %15 = arith.addf %14, %8 : vector<32x256xf32>
    %16 = arith.subf %15, %12 : vector<32x256xf32>
    %cst_14 = arith.constant 1.000000e+00 : f32
    %17 = vector.broadcast %cst_14 : f32 to vector<32x256xf32>
    %18 = arith.cmpf ogt, %16, %17 : vector<32x256xf32>
    %19 = arith.extui %18 : vector<32x256xi1> to vector<32x256xi32>
    %20 = arith.sitofp %19 : vector<32x256xi32> to vector<32x256xf32>
    %21 = vector.shape_cast %20 : vector<32x256xf32> to vector<2x16x256xf32>
    %c0_15 = arith.constant 0 : index
    %c8 = arith.constant 8 : index
    %c0_16 = arith.constant 0 : index
    %22 = vector.load %arg9[%c0_15, %c8, %c0_16] : memref<2x26x256xf32, #tpu.memory_space<vmem>>, vector<2x16x256xf32>
    tpu.vector_store %arg9[%c0_15, %c8, %c0_16], %21 {strides = array<i32>} : memref<2x26x256xf32, #tpu.memory_space<vmem>>, vector<2x16x256xf32>,
    %c0_17 = arith.constant 0 : index
    %c6 = arith.constant 6 : index
    %c0_18 = arith.constant 0 : index
    %23 = vector.load %arg9[%c0_17, %c6, %c0_18] : memref<2x26x256xf32, #tpu.memory_space<vmem>>, vector<2x16x256xf32>
    %24 = arith.truncf %23 : vector<2x16x256xf32> to vector<2x16x256xbf16>
    %c0_19 = arith.constant 0 : index
    %c0_20 = arith.constant 0 : index
    %c0_21 = arith.constant 0 : index
    %25 = vector.load %arg11[%c0_19, %c0_20, %c0_21] : memref<2x16x1280xbf16, #tpu.memory_space<vmem>>, vector<2x16x256xbf16>
    tpu.vector_store %arg11[%c0_19, %c0_20, %c0_21], %24 {strides = array<i32>} : memref<2x16x1280xbf16, #tpu.memory_space<vmem>>, vector<2x16x256xbf16>,
    %c0_22 = arith.constant 0 : index
    %c7 = arith.constant 7 : index
    %c0_23 = arith.constant 0 : index
    %26 = vector.load %arg9[%c0_22, %c7, %c0_23] : memref<2x26x256xf32, #tpu.memory_space<vmem>>, vector<2x16x256xf32>
    %27 = arith.truncf %26 : vector<2x16x256xf32> to vector<2x16x256xbf16>
    %c0_24 = arith.constant 0 : index
    %c0_25 = arith.constant 0 : index
    %c256 = arith.constant 256 : index
    %28 = vector.load %arg11[%c0_24, %c0_25, %c256] : memref<2x16x1280xbf16, #tpu.memory_space<vmem>>, vector<2x16x256xbf16>
    tpu.vector_store %arg11[%c0_24, %c0_25, %c256], %27 {strides = array<i32>} : memref<2x16x1280xbf16, #tpu.memory_space<vmem>>, vector<2x16x256xbf16>,
    %c0_26 = arith.constant 0 : index
    %c8_27 = arith.constant 8 : index
    %c0_28 = arith.constant 0 : index
    %29 = vector.load %arg9[%c0_26, %c8_27, %c0_28] : memref<2x26x256xf32, #tpu.memory_space<vmem>>, vector<2x16x256xf32>
    %30 = arith.truncf %29 : vector<2x16x256xf32> to vector<2x16x256xbf16>
    %c0_29 = arith.constant 0 : index
    %c0_30 = arith.constant 0 : index
    %c512 = arith.constant 512 : index
    %31 = vector.load %arg11[%c0_29, %c0_30, %c512] : memref<2x16x1280xbf16, #tpu.memory_space<vmem>>, vector<2x16x256xbf16>
    tpu.vector_store %arg11[%c0_29, %c0_30, %c512], %30 {strides = array<i32>} : memref<2x16x1280xbf16, #tpu.memory_space<vmem>>, vector<2x16x256xbf16>,
    %c0_31 = arith.constant 0 : index
    %c9 = arith.constant 9 : index
    %c0_32 = arith.constant 0 : index
    %32 = vector.load %arg9[%c0_31, %c9, %c0_32] : memref<2x26x256xf32, #tpu.memory_space<vmem>>, vector<2x16x256xf32>
    %33 = arith.truncf %32 : vector<2x16x256xf32> to vector<2x16x256xbf16>
    %c0_33 = arith.constant 0 : index
    %c0_34 = arith.constant 0 : index
    %c768 = arith.constant 768 : index
    %34 = vector.load %arg11[%c0_33, %c0_34, %c768] : memref<2x16x1280xbf16, #tpu.memory_space<vmem>>, vector<2x16x256xbf16>
    tpu.vector_store %arg11[%c0_33, %c0_34, %c768], %33 {strides = array<i32>} : memref<2x16x1280xbf16, #tpu.memory_space<vmem>>, vector<2x16x256xbf16>,
    %c0_35 = arith.constant 0 : index
    %c10 = arith.constant 10 : index
    %c0_36 = arith.constant 0 : index
    %35 = vector.load %arg9[%c0_35, %c10, %c0_36] : memref<2x26x256xf32, #tpu.memory_space<vmem>>, vector<2x16x256xf32>
    %36 = arith.truncf %35 : vector<2x16x256xf32> to vector<2x16x256xbf16>
    %c0_37 = arith.constant 0 : index
    %c0_38 = arith.constant 0 : index
    %c1024 = arith.constant 1024 : index
    %37 = vector.load %arg11[%c0_37, %c0_38, %c1024] : memref<2x16x1280xbf16, #tpu.memory_space<vmem>>, vector<2x16x256xbf16>
    tpu.vector_store %arg11[%c0_37, %c0_38, %c1024], %36 {strides = array<i32>} : memref<2x16x1280xbf16, #tpu.memory_space<vmem>>, vector<2x16x256xbf16>,
    %c0_39 = arith.constant 0 : index
    %c0_40 = arith.constant 0 : index
    %c0_41 = arith.constant 0 : index
    %38 = vector.load %arg11[%c0_39, %c0_40, %c0_41] : memref<2x16x1280xbf16, #tpu.memory_space<vmem>>, vector<2x16x1280xbf16>
    %39 = vector.shape_cast %38 : vector<2x16x1280xbf16> to vector<32x1280xbf16>
    %c0_42 = arith.constant 0 : index
    %c0_43 = arith.constant 0 : index
    %40 = vector.load %arg1[%c0_42, %c0_43] : memref<1280x64xbf16, #tpu.memory_space<vmem>>, vector<1280x64xbf16>
    %cst_44 = arith.constant dense<0.000000e+00> : vector<32x64xf32>
    %41 = tpu.matmul %39, %40, %cst_44 {dimension_numbers = #tpu.dot_dimension_numbers<[1], [0], [0], [1], [0, 0, 1, 1], [], []>} : vector<32x1280xbf16>, vector<1280x64xbf16>, vector<32x64xf32> -> vector<32x64xf32>
    %c0_45 = arith.constant 0 : index
    %c0_46 = arith.constant 0 : index
    %42 = vector.load %arg2[%c0_45, %c0_46] : memref<1x64xf32, #tpu.memory_space<vmem>>, vector<1x64xf32>
    %43 = vector.broadcast %42 : vector<1x64xf32> to vector<32x64xf32>
    %44 = arith.addf %41, %43 : vector<32x64xf32>
    %45 = vector.extract_strided_slice %44 {offsets = [0, 0], sizes = [32, 32], strides = [1, 1]} : vector<32x64xf32> to vector<32x32xf32>
    %46 = vector.extract_strided_slice %44 {offsets = [0, 32], sizes = [32, 32], strides = [1, 1]} : vector<32x64xf32> to vector<32x32xf32>
    %47 = arith.maximumf %45, %46 : vector<32x32xf32>
    %c0_47 = arith.constant 0 : index
    %c0_48 = arith.constant 0 : index
    %48 = vector.load %arg13[%c0_47, %c0_48] : memref<32x32xf32, #tpu.memory_space<vmem>>, vector<32x32xf32>
    tpu.vector_store %arg13[%c0_47, %c0_48], %47 {strides = array<i32>} : memref<32x32xf32, #tpu.memory_space<vmem>>, vector<32x32xf32>,
    %c0_49 = arith.constant 0 : index
    %c0_50 = arith.constant 0 : index
    %49 = tpu.strided_load %arg13[%c0_49, %c0_50] {strides = array<i32: 2, 1>} : memref<32x32xf32, #tpu.memory_space<vmem>>, vector<16x32xf32>
    %c1 = arith.constant 1 : index
    %c0_51 = arith.constant 0 : index
    %50 = tpu.strided_load %arg13[%c1, %c0_51] {strides = array<i32: 2, 1>} : memref<32x32xf32, #tpu.memory_space<vmem>>, vector<16x32xf32>
    %51 = arith.maximumf %49, %50 : vector<16x32xf32>
    %cst_52 = arith.constant 1.000000e+00 : f32
    %52 = vector.broadcast %cst_52 : f32 to vector<16x32xf32>
    %53 = arith.cmpf ogt, %5, %52 : vector<16x32xf32>
    %54 = arith.extui %53 : vector<16x32xi1> to vector<16x32xi32>
    %55 = arith.sitofp %54 : vector<16x32xi32> to vector<16x32xf32>
    %cst_53 = arith.constant 0.899999976 : f32
    %56 = vector.broadcast %cst_53 : f32 to vector<16x32xf32>
    %57 = arith.mulf %56, %5 : vector<16x32xf32>
    %58 = arith.addf %57, %51 : vector<16x32xf32>
    %59 = arith.subf %58, %55 : vector<16x32xf32>
    %cst_54 = arith.constant 1.000000e+00 : f32
    %60 = vector.broadcast %cst_54 : f32 to vector<16x32xf32>
    %61 = arith.cmpf ogt, %59, %60 : vector<16x32xf32>
    %62 = arith.extui %61 : vector<16x32xi1> to vector<16x32xi32>
    %63 = arith.sitofp %62 : vector<16x32xi32> to vector<16x32xf32>
    %64 = vector.shape_cast %63 : vector<16x32xf32> to vector<2x8x32xf32>
    %c0_55 = arith.constant 0 : index
    %c8_56 = arith.constant 8 : index
    %c0_57 = arith.constant 0 : index
    %65 = vector.load %arg10[%c0_55, %c8_56, %c0_57] : memref<2x19x128xf32, #tpu.memory_space<vmem>>, vector<2x8x32xf32>
    tpu.vector_store %arg10[%c0_55, %c8_56, %c0_57], %64 {strides = array<i32>} : memref<2x19x128xf32, #tpu.memory_space<vmem>>, vector<2x8x32xf32>,
    %c0_58 = arith.constant 0 : index
    %c5 = arith.constant 5 : index
    %c0_59 = arith.constant 0 : index
    %66 = vector.load %arg10[%c0_58, %c5, %c0_59] : memref<2x19x128xf32, #tpu.memory_space<vmem>>, vector<2x8x128xf32>
    %67 = arith.truncf %66 : vector<2x8x128xf32> to vector<2x8x128xbf16>
    %c0_60 = arith.constant 0 : index
    %c0_61 = arith.constant 0 : index
    %c0_62 = arith.constant 0 : index
    %68 = vector.load %arg12[%c0_60, %c0_61, %c0_62] : memref<2x8x896xbf16, #tpu.memory_space<vmem>>, vector<2x8x128xbf16>
    tpu.vector_store %arg12[%c0_60, %c0_61, %c0_62], %67 {strides = array<i32>} : memref<2x8x896xbf16, #tpu.memory_space<vmem>>, vector<2x8x128xbf16>,
    %c0_63 = arith.constant 0 : index
    %c6_64 = arith.constant 6 : index
    %c0_65 = arith.constant 0 : index
    %69 = vector.load %arg10[%c0_63, %c6_64, %c0_65] : memref<2x19x128xf32, #tpu.memory_space<vmem>>, vector<2x8x128xf32>
    %70 = arith.truncf %69 : vector<2x8x128xf32> to vector<2x8x128xbf16>
    %c0_66 = arith.constant 0 : index
    %c0_67 = arith.constant 0 : index
    %c128 = arith.constant 128 : index
    %71 = vector.load %arg12[%c0_66, %c0_67, %c128] : memref<2x8x896xbf16, #tpu.memory_space<vmem>>, vector<2x8x128xbf16>
    tpu.vector_store %arg12[%c0_66, %c0_67, %c128], %70 {strides = array<i32>} : memref<2x8x896xbf16, #tpu.memory_space<vmem>>, vector<2x8x128xbf16>,
    %c0_68 = arith.constant 0 : index
    %c7_69 = arith.constant 7 : index
    %c0_70 = arith.constant 0 : index
    %72 = vector.load %arg10[%c0_68, %c7_69, %c0_70] : memref<2x19x128xf32, #tpu.memory_space<vmem>>, vector<2x8x128xf32>
    %73 = arith.truncf %72 : vector<2x8x128xf32> to vector<2x8x128xbf16>
    %c0_71 = arith.constant 0 : index
    %c0_72 = arith.constant 0 : index
    %c256_73 = arith.constant 256 : index
    %74 = vector.load %arg12[%c0_71, %c0_72, %c256_73] : memref<2x8x896xbf16, #tpu.memory_space<vmem>>, vector<2x8x128xbf16>
    tpu.vector_store %arg12[%c0_71, %c0_72, %c256_73], %73 {strides = array<i32>} : memref<2x8x896xbf16, #tpu.memory_space<vmem>>, vector<2x8x128xbf16>,
    %c0_74 = arith.constant 0 : index
    %c8_75 = arith.constant 8 : index
    %c0_76 = arith.constant 0 : index
    %75 = vector.load %arg10[%c0_74, %c8_75, %c0_76] : memref<2x19x128xf32, #tpu.memory_space<vmem>>, vector<2x8x128xf32>
    %76 = arith.truncf %75 : vector<2x8x128xf32> to vector<2x8x128xbf16>
    %c0_77 = arith.constant 0 : index
    %c0_78 = arith.constant 0 : index
    %c384 = arith.constant 384 : index
    %77 = vector.load %arg12[%c0_77, %c0_78, %c384] : memref<2x8x896xbf16, #tpu.memory_space<vmem>>, vector<2x8x128xbf16>
    tpu.vector_store %arg12[%c0_77, %c0_78, %c384], %76 {strides = array<i32>} : memref<2x8x896xbf16, #tpu.memory_space<vmem>>, vector<2x8x128xbf16>,
    %c0_79 = arith.constant 0 : index
    %c9_80 = arith.constant 9 : index
    %c0_81 = arith.constant 0 : index
    %78 = vector.load %arg10[%c0_79, %c9_80, %c0_81] : memref<2x19x128xf32, #tpu.memory_space<vmem>>, vector<2x8x128xf32>
    %79 = arith.truncf %78 : vector<2x8x128xf32> to vector<2x8x128xbf16>
    %c0_82 = arith.constant 0 : index
    %c0_83 = arith.constant 0 : index
    %c512_84 = arith.constant 512 : index
    %80 = vector.load %arg12[%c0_82, %c0_83, %c512_84] : memref<2x8x896xbf16, #tpu.memory_space<vmem>>, vector<2x8x128xbf16>
    tpu.vector_store %arg12[%c0_82, %c0_83, %c512_84], %79 {strides = array<i32>} : memref<2x8x896xbf16, #tpu.memory_space<vmem>>, vector<2x8x128xbf16>,
    %c0_85 = arith.constant 0 : index
    %c10_86 = arith.constant 10 : index
    %c0_87 = arith.constant 0 : index
    %81 = vector.load %arg10[%c0_85, %c10_86, %c0_87] : memref<2x19x128xf32, #tpu.memory_space<vmem>>, vector<2x8x128xf32>
    %82 = arith.truncf %81 : vector<2x8x128xf32> to vector<2x8x128xbf16>
    %c0_88 = arith.constant 0 : index
    %c0_89 = arith.constant 0 : index
    %c640 = arith.constant 640 : index
    %83 = vector.load %arg12[%c0_88, %c0_89, %c640] : memref<2x8x896xbf16, #tpu.memory_space<vmem>>, vector<2x8x128xbf16>
    tpu.vector_store %arg12[%c0_88, %c0_89, %c640], %82 {strides = array<i32>} : memref<2x8x896xbf16, #tpu.memory_space<vmem>>, vector<2x8x128xbf16>,
    %c0_90 = arith.constant 0 : index
    %c11 = arith.constant 11 : index
    %c0_91 = arith.constant 0 : index
    %84 = vector.load %arg10[%c0_90, %c11, %c0_91] : memref<2x19x128xf32, #tpu.memory_space<vmem>>, vector<2x8x128xf32>
    %85 = arith.truncf %84 : vector<2x8x128xf32> to vector<2x8x128xbf16>
    %c0_92 = arith.constant 0 : index
    %c0_93 = arith.constant 0 : index
    %c768_94 = arith.constant 768 : index
    %86 = vector.load %arg12[%c0_92, %c0_93, %c768_94] : memref<2x8x896xbf16, #tpu.memory_space<vmem>>, vector<2x8x128xbf16>
    tpu.vector_store %arg12[%c0_92, %c0_93, %c768_94], %85 {strides = array<i32>} : memref<2x8x896xbf16, #tpu.memory_space<vmem>>, vector<2x8x128xbf16>,
    %c0_95 = arith.constant 0 : index
    %c0_96 = arith.constant 0 : index
    %c0_97 = arith.constant 0 : index
    %87 = vector.load %arg12[%c0_95, %c0_96, %c0_97] : memref<2x8x896xbf16, #tpu.memory_space<vmem>>, vector<2x8x896xbf16>
    %88 = vector.shape_cast %87 : vector<2x8x896xbf16> to vector<16x896xbf16>
    %c0_98 = arith.constant 0 : index
    %c0_99 = arith.constant 0 : index
    %89 = vector.load %arg3[%c0_98, %c0_99] : memref<896x64xbf16, #tpu.memory_space<vmem>>, vector<896x64xbf16>
    %cst_100 = arith.constant dense<0.000000e+00> : vector<16x64xf32>
    %90 = tpu.matmul %88, %89, %cst_100 {dimension_numbers = #tpu.dot_dimension_numbers<[1], [0], [0], [1], [0, 0, 1, 1], [], []>} : vector<16x896xbf16>, vector<896x64xbf16>, vector<16x64xf32> -> vector<16x64xf32>
    %c0_101 = arith.constant 0 : index
    %c0_102 = arith.constant 0 : index
    %91 = vector.load %arg4[%c0_101, %c0_102] : memref<1x64xf32, #tpu.memory_space<vmem>>, vector<1x64xf32>
    %92 = vector.broadcast %91 : vector<1x64xf32> to vector<16x64xf32>
    %93 = arith.addf %90, %92 : vector<16x64xf32>
    %94 = vector.extract_strided_slice %93 {offsets = [0, 0], sizes = [16, 32], strides = [1, 1]} : vector<16x64xf32> to vector<16x32xf32>
    %95 = vector.extract_strided_slice %93 {offsets = [0, 32], sizes = [16, 32], strides = [1, 1]} : vector<16x64xf32> to vector<16x32xf32>
    %96 = arith.maximumf %94, %95 : vector<16x32xf32>
    %97 = vector.extract_strided_slice %96 {offsets = [0, 0], sizes = [16, 16], strides = [1, 1]} : vector<16x32xf32> to vector<16x16xf32>
    %98 = vector.extract_strided_slice %96 {offsets = [0, 16], sizes = [16, 16], strides = [1, 1]} : vector<16x32xf32> to vector<16x16xf32>
    %99 = arith.maximumf %97, %98 : vector<16x16xf32>
    %100 = vector.extract_strided_slice %99 {offsets = [0, 0], sizes = [16, 8], strides = [1, 1]} : vector<16x16xf32> to vector<16x8xf32>
    %101 = vector.extract_strided_slice %99 {offsets = [0, 8], sizes = [16, 8], strides = [1, 1]} : vector<16x16xf32> to vector<16x8xf32>
    %102 = arith.maximumf %100, %101 : vector<16x8xf32>
    %103 = vector.shape_cast %102 : vector<16x8xf32> to vector<2x8x8xf32>
    %cst_103 = arith.constant dense<0xFF800000> : vector<2x8xf32>
    %104 = vector.multi_reduction <maximumf>, %103, %cst_103 [1] : vector<2x8x8xf32> to vector<2x8xf32>
    %cst_104 = arith.constant 1.000000e+00 : f32
    %105 = vector.broadcast %cst_104 : f32 to vector<2x8xf32>
    %106 = arith.cmpf ogt, %6, %105 : vector<2x8xf32>
    %107 = arith.extui %106 : vector<2x8xi1> to vector<2x8xi32>
    %108 = arith.sitofp %107 : vector<2x8xi32> to vector<2x8xf32>
    %cst_105 = arith.constant 0.899999976 : f32
    %109 = vector.broadcast %cst_105 : f32 to vector<2x8xf32>
    %110 = arith.mulf %109, %6 : vector<2x8xf32>
    %111 = arith.addf %110, %104 : vector<2x8xf32>
    %112 = arith.subf %111, %108 : vector<2x8xf32>
    %cst_106 = arith.constant 1.000000e+00 : f32
    %113 = vector.broadcast %cst_106 : f32 to vector<2x8xf32>
    %114 = arith.cmpf ogt, %112, %113 : vector<2x8xf32>
    %115 = arith.extui %114 : vector<2x8xi1> to vector<2x8xi32>
    %116 = arith.sitofp %115 : vector<2x8xi32> to vector<2x8xf32>
    %117 = arith.truncf %116 : vector<2x8xf32> to vector<2x8xbf16>
    %c0_107 = arith.constant 0 : index
    %c0_108 = arith.constant 0 : index
    %118 = vector.load %arg5[%c0_107, %c0_108] : memref<8x32xbf16, #tpu.memory_space<vmem>>, vector<8x32xbf16>
    %cst_109 = arith.constant dense<0.000000e+00> : vector<2x32xf32>
    %119 = tpu.matmul %117, %118, %cst_109 {dimension_numbers = #tpu.dot_dimension_numbers<[1], [0], [0], [1], [0, 0, 1, 1], [], []>} : vector<2x8xbf16>, vector<8x32xbf16>, vector<2x32xf32> -> vector<2x32xf32>
    %c0_110 = arith.constant 0 : index
    %c0_111 = arith.constant 0 : index
    %120 = vector.load %arg6[%c0_110, %c0_111] : memref<1x32xf32, #tpu.memory_space<vmem>>, vector<1x32xf32>
    %121 = vector.broadcast %120 : vector<1x32xf32> to vector<2x32xf32>
    %122 = arith.addf %119, %121 : vector<2x32xf32>
    %cst_112 = arith.constant 1.000000e+00 : f32
    %123 = vector.broadcast %cst_112 : f32 to vector<2x32xf32>
    %124 = arith.cmpf ogt, %7, %123 : vector<2x32xf32>
    %125 = arith.extui %124 : vector<2x32xi1> to vector<2x32xi32>
    %126 = arith.sitofp %125 : vector<2x32xi32> to vector<2x32xf32>
    %cst_113 = arith.constant 0.899999976 : f32
    %127 = vector.broadcast %cst_113 : f32 to vector<2x32xf32>
    %128 = arith.mulf %127, %7 : vector<2x32xf32>
    %129 = arith.addf %128, %122 : vector<2x32xf32>
    %130 = arith.subf %129, %126 : vector<2x32xf32>
    %cst_114 = arith.constant 1.000000e+00 : f32
    %131 = vector.broadcast %cst_114 : f32 to vector<2x32xf32>
    %132 = arith.cmpf ogt, %130, %131 : vector<2x32xf32>
    %133 = arith.extui %132 : vector<2x32xi1> to vector<2x32xi32>
    %134 = arith.sitofp %133 : vector<2x32xi32> to vector<2x32xf32>
    %c0_115 = arith.constant 0 : index
    %c0_116 = arith.constant 0 : index
    %c0_117 = arith.constant 0 : index
    %135 = vector.load %arg7[%c0_115, %c0_116, %c0_117] : memref<4x2x32xf32, #tpu.memory_space<vmem>>, vector<1x2x32xf32>
    %136 = vector.shape_cast %135 : vector<1x2x32xf32> to vector<2x32xf32>
    %137 = vector.shape_cast %134 : vector<2x32xf32> to vector<1x2x32xf32>
    tpu.vector_store %arg7[%c0_115, %c0_116, %c0_117], %137 {strides = array<i32>} : memref<4x2x32xf32, #tpu.memory_space<vmem>>, vector<1x2x32xf32>,
    %c0_118 = arith.constant 0 : index
    %c0_119 = arith.constant 0 : index
    %c0_120 = arith.constant 0 : index
    %138 = vector.load %arg8[%c0_118, %c0_119, %c0_120] : memref<4x2x32xf32, #tpu.memory_space<vmem>>, vector<1x2x32xf32>
    %139 = vector.shape_cast %138 : vector<1x2x32xf32> to vector<2x32xf32>
    %140 = vector.shape_cast %130 : vector<2x32xf32> to vector<1x2x32xf32>
    tpu.vector_store %arg8[%c0_118, %c0_119, %c0_120], %140 {strides = array<i32>} : memref<4x2x32xf32, #tpu.memory_space<vmem>>, vector<1x2x32xf32>,
    %c0_121 = arith.constant 0 : index
    %c0_122 = arith.constant 0 : index
    %141 = vector.load %arg0[%c0_121, %c0_122] : memref<32x256xf32, #tpu.memory_space<vmem>>, vector<32x256xf32>
    %cst_123 = arith.constant 1.000000e+00 : f32
    %142 = vector.broadcast %cst_123 : f32 to vector<32x256xf32>
    %143 = arith.cmpf ogt, %16, %142 : vector<32x256xf32>
    %144 = arith.extui %143 : vector<32x256xi1> to vector<32x256xi32>
    %145 = arith.sitofp %144 : vector<32x256xi32> to vector<32x256xf32>
    %cst_124 = arith.constant 0.899999976 : f32
    %146 = vector.broadcast %cst_124 : f32 to vector<32x256xf32>
    %147 = arith.mulf %146, %16 : vector<32x256xf32>
    %148 = arith.addf %147, %141 : vector<32x256xf32>
    %149 = arith.subf %148, %145 : vector<32x256xf32>
    %cst_125 = arith.constant 1.000000e+00 : f32
    %150 = vector.broadcast %cst_125 : f32 to vector<32x256xf32>
    %151 = arith.cmpf ogt, %149, %150 : vector<32x256xf32>
    %152 = arith.extui %151 : vector<32x256xi1> to vector<32x256xi32>
    %153 = arith.sitofp %152 : vector<32x256xi32> to vector<32x256xf32>
    %154 = vector.shape_cast %153 : vector<32x256xf32> to vector<2x16x256xf32>
    %c0_126 = arith.constant 0 : index
    %c8_127 = arith.constant 8 : index
    %c0_128 = arith.constant 0 : index
    %155 = vector.load %arg9[%c0_126, %c8_127, %c0_128] : memref<2x26x256xf32, #tpu.memory_space<vmem>>, vector<2x16x256xf32>
    tpu.vector_store %arg9[%c0_126, %c8_127, %c0_128], %154 {strides = array<i32>} : memref<2x26x256xf32, #tpu.memory_space<vmem>>, vector<2x16x256xf32>,
    %c0_129 = arith.constant 0 : index
    %c6_130 = arith.constant 6 : index
    %c0_131 = arith.constant 0 : index
    %156 = vector.load %arg9[%c0_129, %c6_130, %c0_131] : memref<2x26x256xf32, #tpu.memory_space<vmem>>, vector<2x16x256xf32>
    %157 = arith.truncf %156 : vector<2x16x256xf32> to vector<2x16x256xbf16>
    %c0_132 = arith.constant 0 : index
    %c0_133 = arith.constant 0 : index
    %c0_134 = arith.constant 0 : index
    %158 = vector.load %arg11[%c0_132, %c0_133, %c0_134] : memref<2x16x1280xbf16, #tpu.memory_space<vmem>>, vector<2x16x256xbf16>
    tpu.vector_store %arg11[%c0_132, %c0_133, %c0_134], %157 {strides = array<i32>} : memref<2x16x1280xbf16, #tpu.memory_space<vmem>>, vector<2x16x256xbf16>,
    %c0_135 = arith.constant 0 : index
    %c7_136 = arith.constant 7 : index
    %c0_137 = arith.constant 0 : index
    %159 = vector.load %arg9[%c0_135, %c7_136, %c0_137] : memref<2x26x256xf32, #tpu.memory_space<vmem>>, vector<2x16x256xf32>
    %160 = arith.truncf %159 : vector<2x16x256xf32> to vector<2x16x256xbf16>
    %c0_138 = arith.constant 0 : index
    %c0_139 = arith.constant 0 : index
    %c256_140 = arith.constant 256 : index
    %161 = vector.load %arg11[%c0_138, %c0_139, %c256_140] : memref<2x16x1280xbf16, #tpu.memory_space<vmem>>, vector<2x16x256xbf16>
    tpu.vector_store %arg11[%c0_138, %c0_139, %c256_140], %160 {strides = array<i32>} : memref<2x16x1280xbf16, #tpu.memory_space<vmem>>, vector<2x16x256xbf16>,
    %c0_141 = arith.constant 0 : index
    %c8_142 = arith.constant 8 : index
    %c0_143 = arith.constant 0 : index
    %162 = vector.load %arg9[%c0_141, %c8_142, %c0_143] : memref<2x26x256xf32, #tpu.memory_space<vmem>>, vector<2x16x256xf32>
    %163 = arith.truncf %162 : vector<2x16x256xf32> to vector<2x16x256xbf16>
    %c0_144 = arith.constant 0 : index
    %c0_145 = arith.constant 0 : index
    %c512_146 = arith.constant 512 : index
    %164 = vector.load %arg11[%c0_144, %c0_145, %c512_146] : memref<2x16x1280xbf16, #tpu.memory_space<vmem>>, vector<2x16x256xbf16>
    tpu.vector_store %arg11[%c0_144, %c0_145, %c512_146], %163 {strides = array<i32>} : memref<2x16x1280xbf16, #tpu.memory_space<vmem>>, vector<2x16x256xbf16>,
    %c0_147 = arith.constant 0 : index
    %c9_148 = arith.constant 9 : index
    %c0_149 = arith.constant 0 : index
    %165 = vector.load %arg9[%c0_147, %c9_148, %c0_149] : memref<2x26x256xf32, #tpu.memory_space<vmem>>, vector<2x16x256xf32>
    %166 = arith.truncf %165 : vector<2x16x256xf32> to vector<2x16x256xbf16>
    %c0_150 = arith.constant 0 : index
    %c0_151 = arith.constant 0 : index
    %c768_152 = arith.constant 768 : index
    %167 = vector.load %arg11[%c0_150, %c0_151, %c768_152] : memref<2x16x1280xbf16, #tpu.memory_space<vmem>>, vector<2x16x256xbf16>
    tpu.vector_store %arg11[%c0_150, %c0_151, %c768_152], %166 {strides = array<i32>} : memref<2x16x1280xbf16, #tpu.memory_space<vmem>>, vector<2x16x256xbf16>,
    %c0_153 = arith.constant 0 : index
    %c10_154 = arith.constant 10 : index
    %c0_155 = arith.constant 0 : index
    %168 = vector.load %arg9[%c0_153, %c10_154, %c0_155] : memref<2x26x256xf32, #tpu.memory_space<vmem>>, vector<2x16x256xf32>
    %169 = arith.truncf %168 : vector<2x16x256xf32> to vector<2x16x256xbf16>
    %c0_156 = arith.constant 0 : index
    %c0_157 = arith.constant 0 : index
    %c1024_158 = arith.constant 1024 : index
    %170 = vector.load %arg11[%c0_156, %c0_157, %c1024_158] : memref<2x16x1280xbf16, #tpu.memory_space<vmem>>, vector<2x16x256xbf16>
    tpu.vector_store %arg11[%c0_156, %c0_157, %c1024_158], %169 {strides = array<i32>} : memref<2x16x1280xbf16, #tpu.memory_space<vmem>>, vector<2x16x256xbf16>,
    %c0_159 = arith.constant 0 : index
    %c0_160 = arith.constant 0 : index
    %c0_161 = arith.constant 0 : index
    %171 = vector.load %arg11[%c0_159, %c0_160, %c0_161] : memref<2x16x1280xbf16, #tpu.memory_space<vmem>>, vector<2x16x1280xbf16>
    %172 = vector.shape_cast %171 : vector<2x16x1280xbf16> to vector<32x1280xbf16>
    %c0_162 = arith.constant 0 : index
    %c0_163 = arith.constant 0 : index
    %173 = vector.load %arg1[%c0_162, %c0_163] : memref<1280x64xbf16, #tpu.memory_space<vmem>>, vector<1280x64xbf16>
    %cst_164 = arith.constant dense<0.000000e+00> : vector<32x64xf32>
    %174 = tpu.matmul %172, %173, %cst_164 {dimension_numbers = #tpu.dot_dimension_numbers<[1], [0], [0], [1], [0, 0, 1, 1], [], []>} : vector<32x1280xbf16>, vector<1280x64xbf16>, vector<32x64xf32> -> vector<32x64xf32>
    %c0_165 = arith.constant 0 : index
    %c0_166 = arith.constant 0 : index
    %175 = vector.load %arg2[%c0_165, %c0_166] : memref<1x64xf32, #tpu.memory_space<vmem>>, vector<1x64xf32>
    %176 = vector.broadcast %175 : vector<1x64xf32> to vector<32x64xf32>
    %177 = arith.addf %174, %176 : vector<32x64xf32>
    %178 = vector.extract_strided_slice %177 {offsets = [0, 0], sizes = [32, 32], strides = [1, 1]} : vector<32x64xf32> to vector<32x32xf32>
    %179 = vector.extract_strided_slice %177 {offsets = [0, 32], sizes = [32, 32], strides = [1, 1]} : vector<32x64xf32> to vector<32x32xf32>
    %180 = arith.maximumf %178, %179 : vector<32x32xf32>
    %c0_167 = arith.constant 0 : index
    %c0_168 = arith.constant 0 : index
    %181 = vector.load %arg13[%c0_167, %c0_168] : memref<32x32xf32, #tpu.memory_space<vmem>>, vector<32x32xf32>
    tpu.vector_store %arg13[%c0_167, %c0_168], %180 {strides = array<i32>} : memref<32x32xf32, #tpu.memory_space<vmem>>, vector<32x32xf32>,
    %c0_169 = arith.constant 0 : index
    %c0_170 = arith.constant 0 : index
    %182 = tpu.strided_load %arg13[%c0_169, %c0_170] {strides = array<i32: 2, 1>} : memref<32x32xf32, #tpu.memory_space<vmem>>, vector<16x32xf32>
    %c1_171 = arith.constant 1 : index
    %c0_172 = arith.constant 0 : index
    %183 = tpu.strided_load %arg13[%c1_171, %c0_172] {strides = array<i32: 2, 1>} : memref<32x32xf32, #tpu.memory_space<vmem>>, vector<16x32xf32>
    %184 = arith.maximumf %182, %183 : vector<16x32xf32>
    %cst_173 = arith.constant 1.000000e+00 : f32
    %185 = vector.broadcast %cst_173 : f32 to vector<16x32xf32>
    %186 = arith.cmpf ogt, %59, %185 : vector<16x32xf32>
    %187 = arith.extui %186 : vector<16x32xi1> to vector<16x32xi32>
    %188 = arith.sitofp %187 : vector<16x32xi32> to vector<16x32xf32>
    %cst_174 = arith.constant 0.899999976 : f32
    %189 = vector.broadcast %cst_174 : f32 to vector<16x32xf32>
    %190 = arith.mulf %189, %59 : vector<16x32xf32>
    %191 = arith.addf %190, %184 : vector<16x32xf32>
    %192 = arith.subf %191, %188 : vector<16x32xf32>
    %cst_175 = arith.constant 1.000000e+00 : f32
    %193 = vector.broadcast %cst_175 : f32 to vector<16x32xf32>
    %194 = arith.cmpf ogt, %192, %193 : vector<16x32xf32>
    %195 = arith.extui %194 : vector<16x32xi1> to vector<16x32xi32>
    %196 = arith.sitofp %195 : vector<16x32xi32> to vector<16x32xf32>
    %197 = vector.shape_cast %196 : vector<16x32xf32> to vector<2x8x32xf32>
    %c0_176 = arith.constant 0 : index
    %c8_177 = arith.constant 8 : index
    %c0_178 = arith.constant 0 : index
    %198 = vector.load %arg10[%c0_176, %c8_177, %c0_178] : memref<2x19x128xf32, #tpu.memory_space<vmem>>, vector<2x8x32xf32>
    tpu.vector_store %arg10[%c0_176, %c8_177, %c0_178], %197 {strides = array<i32>} : memref<2x19x128xf32, #tpu.memory_space<vmem>>, vector<2x8x32xf32>,
    %c0_179 = arith.constant 0 : index
    %c5_180 = arith.constant 5 : index
    %c0_181 = arith.constant 0 : index
    %199 = vector.load %arg10[%c0_179, %c5_180, %c0_181] : memref<2x19x128xf32, #tpu.memory_space<vmem>>, vector<2x8x128xf32>
    %200 = arith.truncf %199 : vector<2x8x128xf32> to vector<2x8x128xbf16>
    %c0_182 = arith.constant 0 : index
    %c0_183 = arith.constant 0 : index
    %c0_184 = arith.constant 0 : index
    %201 = vector.load %arg12[%c0_182, %c0_183, %c0_184] : memref<2x8x896xbf16, #tpu.memory_space<vmem>>, vector<2x8x128xbf16>
    tpu.vector_store %arg12[%c0_182, %c0_183, %c0_184], %200 {strides = array<i32>} : memref<2x8x896xbf16, #tpu.memory_space<vmem>>, vector<2x8x128xbf16>,
    %c0_185 = arith.constant 0 : index
    %c6_186 = arith.constant 6 : index
    %c0_187 = arith.constant 0 : index
    %202 = vector.load %arg10[%c0_185, %c6_186, %c0_187] : memref<2x19x128xf32, #tpu.memory_space<vmem>>, vector<2x8x128xf32>
    %203 = arith.truncf %202 : vector<2x8x128xf32> to vector<2x8x128xbf16>
    %c0_188 = arith.constant 0 : index
    %c0_189 = arith.constant 0 : index
    %c128_190 = arith.constant 128 : index
    %204 = vector.load %arg12[%c0_188, %c0_189, %c128_190] : memref<2x8x896xbf16, #tpu.memory_space<vmem>>, vector<2x8x128xbf16>
    tpu.vector_store %arg12[%c0_188, %c0_189, %c128_190], %203 {strides = array<i32>} : memref<2x8x896xbf16, #tpu.memory_space<vmem>>, vector<2x8x128xbf16>,
    %c0_191 = arith.constant 0 : index
    %c7_192 = arith.constant 7 : index
    %c0_193 = arith.constant 0 : index
    %205 = vector.load %arg10[%c0_191, %c7_192, %c0_193] : memref<2x19x128xf32, #tpu.memory_space<vmem>>, vector<2x8x128xf32>
    %206 = arith.truncf %205 : vector<2x8x128xf32> to vector<2x8x128xbf16>
    %c0_194 = arith.constant 0 : index
    %c0_195 = arith.constant 0 : index
    %c256_196 = arith.constant 256 : index
    %207 = vector.load %arg12[%c0_194, %c0_195, %c256_196] : memref<2x8x896xbf16, #tpu.memory_space<vmem>>, vector<2x8x128xbf16>
    tpu.vector_store %arg12[%c0_194, %c0_195, %c256_196], %206 {strides = array<i32>} : memref<2x8x896xbf16, #tpu.memory_space<vmem>>, vector<2x8x128xbf16>,
    %c0_197 = arith.constant 0 : index
    %c8_198 = arith.constant 8 : index
    %c0_199 = arith.constant 0 : index
    %208 = vector.load %arg10[%c0_197, %c8_198, %c0_199] : memref<2x19x128xf32, #tpu.memory_space<vmem>>, vector<2x8x128xf32>
    %209 = arith.truncf %208 : vector<2x8x128xf32> to vector<2x8x128xbf16>
    %c0_200 = arith.constant 0 : index
    %c0_201 = arith.constant 0 : index
    %c384_202 = arith.constant 384 : index
    %210 = vector.load %arg12[%c0_200, %c0_201, %c384_202] : memref<2x8x896xbf16, #tpu.memory_space<vmem>>, vector<2x8x128xbf16>
    tpu.vector_store %arg12[%c0_200, %c0_201, %c384_202], %209 {strides = array<i32>} : memref<2x8x896xbf16, #tpu.memory_space<vmem>>, vector<2x8x128xbf16>,
    %c0_203 = arith.constant 0 : index
    %c9_204 = arith.constant 9 : index
    %c0_205 = arith.constant 0 : index
    %211 = vector.load %arg10[%c0_203, %c9_204, %c0_205] : memref<2x19x128xf32, #tpu.memory_space<vmem>>, vector<2x8x128xf32>
    %212 = arith.truncf %211 : vector<2x8x128xf32> to vector<2x8x128xbf16>
    %c0_206 = arith.constant 0 : index
    %c0_207 = arith.constant 0 : index
    %c512_208 = arith.constant 512 : index
    %213 = vector.load %arg12[%c0_206, %c0_207, %c512_208] : memref<2x8x896xbf16, #tpu.memory_space<vmem>>, vector<2x8x128xbf16>
    tpu.vector_store %arg12[%c0_206, %c0_207, %c512_208], %212 {strides = array<i32>} : memref<2x8x896xbf16, #tpu.memory_space<vmem>>, vector<2x8x128xbf16>,
    %c0_209 = arith.constant 0 : index
    %c10_210 = arith.constant 10 : index
    %c0_211 = arith.constant 0 : index
    %214 = vector.load %arg10[%c0_209, %c10_210, %c0_211] : memref<2x19x128xf32, #tpu.memory_space<vmem>>, vector<2x8x128xf32>
    %215 = arith.truncf %214 : vector<2x8x128xf32> to vector<2x8x128xbf16>
    %c0_212 = arith.constant 0 : index
    %c0_213 = arith.constant 0 : index
    %c640_214 = arith.constant 640 : index
    %216 = vector.load %arg12[%c0_212, %c0_213, %c640_214] : memref<2x8x896xbf16, #tpu.memory_space<vmem>>, vector<2x8x128xbf16>
    tpu.vector_store %arg12[%c0_212, %c0_213, %c640_214], %215 {strides = array<i32>} : memref<2x8x896xbf16, #tpu.memory_space<vmem>>, vector<2x8x128xbf16>,
    %c0_215 = arith.constant 0 : index
    %c11_216 = arith.constant 11 : index
    %c0_217 = arith.constant 0 : index
    %217 = vector.load %arg10[%c0_215, %c11_216, %c0_217] : memref<2x19x128xf32, #tpu.memory_space<vmem>>, vector<2x8x128xf32>
    %218 = arith.truncf %217 : vector<2x8x128xf32> to vector<2x8x128xbf16>
    %c0_218 = arith.constant 0 : index
    %c0_219 = arith.constant 0 : index
    %c768_220 = arith.constant 768 : index
    %219 = vector.load %arg12[%c0_218, %c0_219, %c768_220] : memref<2x8x896xbf16, #tpu.memory_space<vmem>>, vector<2x8x128xbf16>
    tpu.vector_store %arg12[%c0_218, %c0_219, %c768_220], %218 {strides = array<i32>} : memref<2x8x896xbf16, #tpu.memory_space<vmem>>, vector<2x8x128xbf16>,
    %c0_221 = arith.constant 0 : index
    %c0_222 = arith.constant 0 : index
    %c0_223 = arith.constant 0 : index
    %220 = vector.load %arg12[%c0_221, %c0_222, %c0_223] : memref<2x8x896xbf16, #tpu.memory_space<vmem>>, vector<2x8x896xbf16>
    %221 = vector.shape_cast %220 : vector<2x8x896xbf16> to vector<16x896xbf16>
    %c0_224 = arith.constant 0 : index
    %c0_225 = arith.constant 0 : index
    %222 = vector.load %arg3[%c0_224, %c0_225] : memref<896x64xbf16, #tpu.memory_space<vmem>>, vector<896x64xbf16>
    %cst_226 = arith.constant dense<0.000000e+00> : vector<16x64xf32>
    %223 = tpu.matmul %221, %222, %cst_226 {dimension_numbers = #tpu.dot_dimension_numbers<[1], [0], [0], [1], [0, 0, 1, 1], [], []>} : vector<16x896xbf16>, vector<896x64xbf16>, vector<16x64xf32> -> vector<16x64xf32>
    %c0_227 = arith.constant 0 : index
    %c0_228 = arith.constant 0 : index
    %224 = vector.load %arg4[%c0_227, %c0_228] : memref<1x64xf32, #tpu.memory_space<vmem>>, vector<1x64xf32>
    %225 = vector.broadcast %224 : vector<1x64xf32> to vector<16x64xf32>
    %226 = arith.addf %223, %225 : vector<16x64xf32>
    %227 = vector.extract_strided_slice %226 {offsets = [0, 0], sizes = [16, 32], strides = [1, 1]} : vector<16x64xf32> to vector<16x32xf32>
    %228 = vector.extract_strided_slice %226 {offsets = [0, 32], sizes = [16, 32], strides = [1, 1]} : vector<16x64xf32> to vector<16x32xf32>
    %229 = arith.maximumf %227, %228 : vector<16x32xf32>
    %230 = vector.extract_strided_slice %229 {offsets = [0, 0], sizes = [16, 16], strides = [1, 1]} : vector<16x32xf32> to vector<16x16xf32>
    %231 = vector.extract_strided_slice %229 {offsets = [0, 16], sizes = [16, 16], strides = [1, 1]} : vector<16x32xf32> to vector<16x16xf32>
    %232 = arith.maximumf %230, %231 : vector<16x16xf32>
    %233 = vector.extract_strided_slice %232 {offsets = [0, 0], sizes = [16, 8], strides = [1, 1]} : vector<16x16xf32> to vector<16x8xf32>
    %234 = vector.extract_strided_slice %232 {offsets = [0, 8], sizes = [16, 8], strides = [1, 1]} : vector<16x16xf32> to vector<16x8xf32>
    %235 = arith.maximumf %233, %234 : vector<16x8xf32>
    %236 = vector.shape_cast %235 : vector<16x8xf32> to vector<2x8x8xf32>
    %cst_229 = arith.constant dense<0xFF800000> : vector<2x8xf32>
    %237 = vector.multi_reduction <maximumf>, %236, %cst_229 [1] : vector<2x8x8xf32> to vector<2x8xf32>
    %cst_230 = arith.constant 1.000000e+00 : f32
    %238 = vector.broadcast %cst_230 : f32 to vector<2x8xf32>
    %239 = arith.cmpf ogt, %112, %238 : vector<2x8xf32>
    %240 = arith.extui %239 : vector<2x8xi1> to vector<2x8xi32>
    %241 = arith.sitofp %240 : vector<2x8xi32> to vector<2x8xf32>
    %cst_231 = arith.constant 0.899999976 : f32
    %242 = vector.broadcast %cst_231 : f32 to vector<2x8xf32>
    %243 = arith.mulf %242, %112 : vector<2x8xf32>
    %244 = arith.addf %243, %237 : vector<2x8xf32>
    %245 = arith.subf %244, %241 : vector<2x8xf32>
    %cst_232 = arith.constant 1.000000e+00 : f32
    %246 = vector.broadcast %cst_232 : f32 to vector<2x8xf32>
    %247 = arith.cmpf ogt, %245, %246 : vector<2x8xf32>
    %248 = arith.extui %247 : vector<2x8xi1> to vector<2x8xi32>
    %249 = arith.sitofp %248 : vector<2x8xi32> to vector<2x8xf32>
    %250 = arith.truncf %249 : vector<2x8xf32> to vector<2x8xbf16>
    %c0_233 = arith.constant 0 : index
    %c0_234 = arith.constant 0 : index
    %251 = vector.load %arg5[%c0_233, %c0_234] : memref<8x32xbf16, #tpu.memory_space<vmem>>, vector<8x32xbf16>
    %cst_235 = arith.constant dense<0.000000e+00> : vector<2x32xf32>
    %252 = tpu.matmul %250, %251, %cst_235 {dimension_numbers = #tpu.dot_dimension_numbers<[1], [0], [0], [1], [0, 0, 1, 1], [], []>} : vector<2x8xbf16>, vector<8x32xbf16>, vector<2x32xf32> -> vector<2x32xf32>
    %c0_236 = arith.constant 0 : index
    %c0_237 = arith.constant 0 : index
    %253 = vector.load %arg6[%c0_236, %c0_237] : memref<1x32xf32, #tpu.memory_space<vmem>>, vector<1x32xf32>
    %254 = vector.broadcast %253 : vector<1x32xf32> to vector<2x32xf32>
    %255 = arith.addf %252, %254 : vector<2x32xf32>
    %cst_238 = arith.constant 1.000000e+00 : f32
    %256 = vector.broadcast %cst_238 : f32 to vector<2x32xf32>
    %257 = arith.cmpf ogt, %130, %256 : vector<2x32xf32>
    %258 = arith.extui %257 : vector<2x32xi1> to vector<2x32xi32>
    %259 = arith.sitofp %258 : vector<2x32xi32> to vector<2x32xf32>
    %cst_239 = arith.constant 0.899999976 : f32
    %260 = vector.broadcast %cst_239 : f32 to vector<2x32xf32>
    %261 = arith.mulf %260, %130 : vector<2x32xf32>
    %262 = arith.addf %261, %255 : vector<2x32xf32>
    %263 = arith.subf %262, %259 : vector<2x32xf32>
    %cst_240 = arith.constant 1.000000e+00 : f32
    %264 = vector.broadcast %cst_240 : f32 to vector<2x32xf32>
    %265 = arith.cmpf ogt, %263, %264 : vector<2x32xf32>
    %266 = arith.extui %265 : vector<2x32xi1> to vector<2x32xi32>
    %267 = arith.sitofp %266 : vector<2x32xi32> to vector<2x32xf32>
    %c1_241 = arith.constant 1 : index
    %c0_242 = arith.constant 0 : index
    %c0_243 = arith.constant 0 : index
    %268 = vector.load %arg7[%c1_241, %c0_242, %c0_243] : memref<4x2x32xf32, #tpu.memory_space<vmem>>, vector<1x2x32xf32>
    %269 = vector.shape_cast %268 : vector<1x2x32xf32> to vector<2x32xf32>
    %270 = vector.shape_cast %267 : vector<2x32xf32> to vector<1x2x32xf32>
    tpu.vector_store %arg7[%c1_241, %c0_242, %c0_243], %270 {strides = array<i32>} : memref<4x2x32xf32, #tpu.memory_space<vmem>>, vector<1x2x32xf32>,
    %c1_244 = arith.constant 1 : index
    %c0_245 = arith.constant 0 : index
    %c0_246 = arith.constant 0 : index
    %271 = vector.load %arg8[%c1_244, %c0_245, %c0_246] : memref<4x2x32xf32, #tpu.memory_space<vmem>>, vector<1x2x32xf32>
    %272 = vector.shape_cast %271 : vector<1x2x32xf32> to vector<2x32xf32>
    %273 = vector.shape_cast %263 : vector<2x32xf32> to vector<1x2x32xf32>
    tpu.vector_store %arg8[%c1_244, %c0_245, %c0_246], %273 {strides = array<i32>} : memref<4x2x32xf32, #tpu.memory_space<vmem>>, vector<1x2x32xf32>,
    %c0_247 = arith.constant 0 : index
    %c0_248 = arith.constant 0 : index
    %274 = vector.load %arg0[%c0_247, %c0_248] : memref<32x256xf32, #tpu.memory_space<vmem>>, vector<32x256xf32>
    %cst_249 = arith.constant 1.000000e+00 : f32
    %275 = vector.broadcast %cst_249 : f32 to vector<32x256xf32>
    %276 = arith.cmpf ogt, %149, %275 : vector<32x256xf32>
    %277 = arith.extui %276 : vector<32x256xi1> to vector<32x256xi32>
    %278 = arith.sitofp %277 : vector<32x256xi32> to vector<32x256xf32>
    %cst_250 = arith.constant 0.899999976 : f32
    %279 = vector.broadcast %cst_250 : f32 to vector<32x256xf32>
    %280 = arith.mulf %279, %149 : vector<32x256xf32>
    %281 = arith.addf %280, %274 : vector<32x256xf32>
    %282 = arith.subf %281, %278 : vector<32x256xf32>
    %cst_251 = arith.constant 1.000000e+00 : f32
    %283 = vector.broadcast %cst_251 : f32 to vector<32x256xf32>
    %284 = arith.cmpf ogt, %282, %283 : vector<32x256xf32>
    %285 = arith.extui %284 : vector<32x256xi1> to vector<32x256xi32>
    %286 = arith.sitofp %285 : vector<32x256xi32> to vector<32x256xf32>
    %287 = vector.shape_cast %286 : vector<32x256xf32> to vector<2x16x256xf32>
    %c0_252 = arith.constant 0 : index
    %c8_253 = arith.constant 8 : index
    %c0_254 = arith.constant 0 : index
    %288 = vector.load %arg9[%c0_252, %c8_253, %c0_254] : memref<2x26x256xf32, #tpu.memory_space<vmem>>, vector<2x16x256xf32>
    tpu.vector_store %arg9[%c0_252, %c8_253, %c0_254], %287 {strides = array<i32>} : memref<2x26x256xf32, #tpu.memory_space<vmem>>, vector<2x16x256xf32>,
    %c0_255 = arith.constant 0 : index
    %c6_256 = arith.constant 6 : index
    %c0_257 = arith.constant 0 : index
    %289 = vector.load %arg9[%c0_255, %c6_256, %c0_257] : memref<2x26x256xf32, #tpu.memory_space<vmem>>, vector<2x16x256xf32>
    %290 = arith.truncf %289 : vector<2x16x256xf32> to vector<2x16x256xbf16>
    %c0_258 = arith.constant 0 : index
    %c0_259 = arith.constant 0 : index
    %c0_260 = arith.constant 0 : index
    %291 = vector.load %arg11[%c0_258, %c0_259, %c0_260] : memref<2x16x1280xbf16, #tpu.memory_space<vmem>>, vector<2x16x256xbf16>
    tpu.vector_store %arg11[%c0_258, %c0_259, %c0_260], %290 {strides = array<i32>} : memref<2x16x1280xbf16, #tpu.memory_space<vmem>>, vector<2x16x256xbf16>,
    %c0_261 = arith.constant 0 : index
    %c7_262 = arith.constant 7 : index
    %c0_263 = arith.constant 0 : index
    %292 = vector.load %arg9[%c0_261, %c7_262, %c0_263] : memref<2x26x256xf32, #tpu.memory_space<vmem>>, vector<2x16x256xf32>
    %293 = arith.truncf %292 : vector<2x16x256xf32> to vector<2x16x256xbf16>
    %c0_264 = arith.constant 0 : index
    %c0_265 = arith.constant 0 : index
    %c256_266 = arith.constant 256 : index
    %294 = vector.load %arg11[%c0_264, %c0_265, %c256_266] : memref<2x16x1280xbf16, #tpu.memory_space<vmem>>, vector<2x16x256xbf16>
    tpu.vector_store %arg11[%c0_264, %c0_265, %c256_266], %293 {strides = array<i32>} : memref<2x16x1280xbf16, #tpu.memory_space<vmem>>, vector<2x16x256xbf16>,
    %c0_267 = arith.constant 0 : index
    %c8_268 = arith.constant 8 : index
    %c0_269 = arith.constant 0 : index
    %295 = vector.load %arg9[%c0_267, %c8_268, %c0_269] : memref<2x26x256xf32, #tpu.memory_space<vmem>>, vector<2x16x256xf32>
    %296 = arith.truncf %295 : vector<2x16x256xf32> to vector<2x16x256xbf16>
    %c0_270 = arith.constant 0 : index
    %c0_271 = arith.constant 0 : index
    %c512_272 = arith.constant 512 : index
    %297 = vector.load %arg11[%c0_270, %c0_271, %c512_272] : memref<2x16x1280xbf16, #tpu.memory_space<vmem>>, vector<2x16x256xbf16>
    tpu.vector_store %arg11[%c0_270, %c0_271, %c512_272], %296 {strides = array<i32>} : memref<2x16x1280xbf16, #tpu.memory_space<vmem>>, vector<2x16x256xbf16>,
    %c0_273 = arith.constant 0 : index
    %c9_274 = arith.constant 9 : index
    %c0_275 = arith.constant 0 : index
    %298 = vector.load %arg9[%c0_273, %c9_274, %c0_275] : memref<2x26x256xf32, #tpu.memory_space<vmem>>, vector<2x16x256xf32>
    %299 = arith.truncf %298 : vector<2x16x256xf32> to vector<2x16x256xbf16>
    %c0_276 = arith.constant 0 : index
    %c0_277 = arith.constant 0 : index
    %c768_278 = arith.constant 768 : index
    %300 = vector.load %arg11[%c0_276, %c0_277, %c768_278] : memref<2x16x1280xbf16, #tpu.memory_space<vmem>>, vector<2x16x256xbf16>
    tpu.vector_store %arg11[%c0_276, %c0_277, %c768_278], %299 {strides = array<i32>} : memref<2x16x1280xbf16, #tpu.memory_space<vmem>>, vector<2x16x256xbf16>,
    %c0_279 = arith.constant 0 : index
    %c10_280 = arith.constant 10 : index
    %c0_281 = arith.constant 0 : index
    %301 = vector.load %arg9[%c0_279, %c10_280, %c0_281] : memref<2x26x256xf32, #tpu.memory_space<vmem>>, vector<2x16x256xf32>
    %302 = arith.truncf %301 : vector<2x16x256xf32> to vector<2x16x256xbf16>
    %c0_282 = arith.constant 0 : index
    %c0_283 = arith.constant 0 : index
    %c1024_284 = arith.constant 1024 : index
    %303 = vector.load %arg11[%c0_282, %c0_283, %c1024_284] : memref<2x16x1280xbf16, #tpu.memory_space<vmem>>, vector<2x16x256xbf16>
    tpu.vector_store %arg11[%c0_282, %c0_283, %c1024_284], %302 {strides = array<i32>} : memref<2x16x1280xbf16, #tpu.memory_space<vmem>>, vector<2x16x256xbf16>,
    %c0_285 = arith.constant 0 : index
    %c0_286 = arith.constant 0 : index
    %c0_287 = arith.constant 0 : index
    %304 = vector.load %arg11[%c0_285, %c0_286, %c0_287] : memref<2x16x1280xbf16, #tpu.memory_space<vmem>>, vector<2x16x1280xbf16>
    %305 = vector.shape_cast %304 : vector<2x16x1280xbf16> to vector<32x1280xbf16>
    %c0_288 = arith.constant 0 : index
    %c0_289 = arith.constant 0 : index
    %306 = vector.load %arg1[%c0_288, %c0_289] : memref<1280x64xbf16, #tpu.memory_space<vmem>>, vector<1280x64xbf16>
    %cst_290 = arith.constant dense<0.000000e+00> : vector<32x64xf32>
    %307 = tpu.matmul %305, %306, %cst_290 {dimension_numbers = #tpu.dot_dimension_numbers<[1], [0], [0], [1], [0, 0, 1, 1], [], []>} : vector<32x1280xbf16>, vector<1280x64xbf16>, vector<32x64xf32> -> vector<32x64xf32>
    %c0_291 = arith.constant 0 : index
    %c0_292 = arith.constant 0 : index
    %308 = vector.load %arg2[%c0_291, %c0_292] : memref<1x64xf32, #tpu.memory_space<vmem>>, vector<1x64xf32>
    %309 = vector.broadcast %308 : vector<1x64xf32> to vector<32x64xf32>
    %310 = arith.addf %307, %309 : vector<32x64xf32>
    %311 = vector.extract_strided_slice %310 {offsets = [0, 0], sizes = [32, 32], strides = [1, 1]} : vector<32x64xf32> to vector<32x32xf32>
    %312 = vector.extract_strided_slice %310 {offsets = [0, 32], sizes = [32, 32], strides = [1, 1]} : vector<32x64xf32> to vector<32x32xf32>
    %313 = arith.maximumf %311, %312 : vector<32x32xf32>
    %c0_293 = arith.constant 0 : index
    %c0_294 = arith.constant 0 : index
    %314 = vector.load %arg13[%c0_293, %c0_294] : memref<32x32xf32, #tpu.memory_space<vmem>>, vector<32x32xf32>
    tpu.vector_store %arg13[%c0_293, %c0_294], %313 {strides = array<i32>} : memref<32x32xf32, #tpu.memory_space<vmem>>, vector<32x32xf32>,
    %c0_295 = arith.constant 0 : index
    %c0_296 = arith.constant 0 : index
    %315 = tpu.strided_load %arg13[%c0_295, %c0_296] {strides = array<i32: 2, 1>} : memref<32x32xf32, #tpu.memory_space<vmem>>, vector<16x32xf32>
    %c1_297 = arith.constant 1 : index
    %c0_298 = arith.constant 0 : index
    %316 = tpu.strided_load %arg13[%c1_297, %c0_298] {strides = array<i32: 2, 1>} : memref<32x32xf32, #tpu.memory_space<vmem>>, vector<16x32xf32>
    %317 = arith.maximumf %315, %316 : vector<16x32xf32>
    %cst_299 = arith.constant 1.000000e+00 : f32
    %318 = vector.broadcast %cst_299 : f32 to vector<16x32xf32>
    %319 = arith.cmpf ogt, %192, %318 : vector<16x32xf32>
    %320 = arith.extui %319 : vector<16x32xi1> to vector<16x32xi32>
    %321 = arith.sitofp %320 : vector<16x32xi32> to vector<16x32xf32>
    %cst_300 = arith.constant 0.899999976 : f32
    %322 = vector.broadcast %cst_300 : f32 to vector<16x32xf32>
    %323 = arith.mulf %322, %192 : vector<16x32xf32>
    %324 = arith.addf %323, %317 : vector<16x32xf32>
    %325 = arith.subf %324, %321 : vector<16x32xf32>
    %cst_301 = arith.constant 1.000000e+00 : f32
    %326 = vector.broadcast %cst_301 : f32 to vector<16x32xf32>
    %327 = arith.cmpf ogt, %325, %326 : vector<16x32xf32>
    %328 = arith.extui %327 : vector<16x32xi1> to vector<16x32xi32>
    %329 = arith.sitofp %328 : vector<16x32xi32> to vector<16x32xf32>
    %330 = vector.shape_cast %329 : vector<16x32xf32> to vector<2x8x32xf32>
    %c0_302 = arith.constant 0 : index
    %c8_303 = arith.constant 8 : index
    %c0_304 = arith.constant 0 : index
    %331 = vector.load %arg10[%c0_302, %c8_303, %c0_304] : memref<2x19x128xf32, #tpu.memory_space<vmem>>, vector<2x8x32xf32>
    tpu.vector_store %arg10[%c0_302, %c8_303, %c0_304], %330 {strides = array<i32>} : memref<2x19x128xf32, #tpu.memory_space<vmem>>, vector<2x8x32xf32>,
    %c0_305 = arith.constant 0 : index
    %c5_306 = arith.constant 5 : index
    %c0_307 = arith.constant 0 : index
    %332 = vector.load %arg10[%c0_305, %c5_306, %c0_307] : memref<2x19x128xf32, #tpu.memory_space<vmem>>, vector<2x8x128xf32>
    %333 = arith.truncf %332 : vector<2x8x128xf32> to vector<2x8x128xbf16>
    %c0_308 = arith.constant 0 : index
    %c0_309 = arith.constant 0 : index
    %c0_310 = arith.constant 0 : index
    %334 = vector.load %arg12[%c0_308, %c0_309, %c0_310] : memref<2x8x896xbf16, #tpu.memory_space<vmem>>, vector<2x8x128xbf16>
    tpu.vector_store %arg12[%c0_308, %c0_309, %c0_310], %333 {strides = array<i32>} : memref<2x8x896xbf16, #tpu.memory_space<vmem>>, vector<2x8x128xbf16>,
    %c0_311 = arith.constant 0 : index
    %c6_312 = arith.constant 6 : index
    %c0_313 = arith.constant 0 : index
    %335 = vector.load %arg10[%c0_311, %c6_312, %c0_313] : memref<2x19x128xf32, #tpu.memory_space<vmem>>, vector<2x8x128xf32>
    %336 = arith.truncf %335 : vector<2x8x128xf32> to vector<2x8x128xbf16>
    %c0_314 = arith.constant 0 : index
    %c0_315 = arith.constant 0 : index
    %c128_316 = arith.constant 128 : index
    %337 = vector.load %arg12[%c0_314, %c0_315, %c128_316] : memref<2x8x896xbf16, #tpu.memory_space<vmem>>, vector<2x8x128xbf16>
    tpu.vector_store %arg12[%c0_314, %c0_315, %c128_316], %336 {strides = array<i32>} : memref<2x8x896xbf16, #tpu.memory_space<vmem>>, vector<2x8x128xbf16>,
    %c0_317 = arith.constant 0 : index
    %c7_318 = arith.constant 7 : index
    %c0_319 = arith.constant 0 : index
    %338 = vector.load %arg10[%c0_317, %c7_318, %c0_319] : memref<2x19x128xf32, #tpu.memory_space<vmem>>, vector<2x8x128xf32>
    %339 = arith.truncf %338 : vector<2x8x128xf32> to vector<2x8x128xbf16>
    %c0_320 = arith.constant 0 : index
    %c0_321 = arith.constant 0 : index
    %c256_322 = arith.constant 256 : index
    %340 = vector.load %arg12[%c0_320, %c0_321, %c256_322] : memref<2x8x896xbf16, #tpu.memory_space<vmem>>, vector<2x8x128xbf16>
    tpu.vector_store %arg12[%c0_320, %c0_321, %c256_322], %339 {strides = array<i32>} : memref<2x8x896xbf16, #tpu.memory_space<vmem>>, vector<2x8x128xbf16>,
    %c0_323 = arith.constant 0 : index
    %c8_324 = arith.constant 8 : index
    %c0_325 = arith.constant 0 : index
    %341 = vector.load %arg10[%c0_323, %c8_324, %c0_325] : memref<2x19x128xf32, #tpu.memory_space<vmem>>, vector<2x8x128xf32>
    %342 = arith.truncf %341 : vector<2x8x128xf32> to vector<2x8x128xbf16>
    %c0_326 = arith.constant 0 : index
    %c0_327 = arith.constant 0 : index
    %c384_328 = arith.constant 384 : index
    %343 = vector.load %arg12[%c0_326, %c0_327, %c384_328] : memref<2x8x896xbf16, #tpu.memory_space<vmem>>, vector<2x8x128xbf16>
    tpu.vector_store %arg12[%c0_326, %c0_327, %c384_328], %342 {strides = array<i32>} : memref<2x8x896xbf16, #tpu.memory_space<vmem>>, vector<2x8x128xbf16>,
    %c0_329 = arith.constant 0 : index
    %c9_330 = arith.constant 9 : index
    %c0_331 = arith.constant 0 : index
    %344 = vector.load %arg10[%c0_329, %c9_330, %c0_331] : memref<2x19x128xf32, #tpu.memory_space<vmem>>, vector<2x8x128xf32>
    %345 = arith.truncf %344 : vector<2x8x128xf32> to vector<2x8x128xbf16>
    %c0_332 = arith.constant 0 : index
    %c0_333 = arith.constant 0 : index
    %c512_334 = arith.constant 512 : index
    %346 = vector.load %arg12[%c0_332, %c0_333, %c512_334] : memref<2x8x896xbf16, #tpu.memory_space<vmem>>, vector<2x8x128xbf16>
    tpu.vector_store %arg12[%c0_332, %c0_333, %c512_334], %345 {strides = array<i32>} : memref<2x8x896xbf16, #tpu.memory_space<vmem>>, vector<2x8x128xbf16>,
    %c0_335 = arith.constant 0 : index
    %c10_336 = arith.constant 10 : index
    %c0_337 = arith.constant 0 : index
    %347 = vector.load %arg10[%c0_335, %c10_336, %c0_337] : memref<2x19x128xf32, #tpu.memory_space<vmem>>, vector<2x8x128xf32>
    %348 = arith.truncf %347 : vector<2x8x128xf32> to vector<2x8x128xbf16>
    %c0_338 = arith.constant 0 : index
    %c0_339 = arith.constant 0 : index
    %c640_340 = arith.constant 640 : index
    %349 = vector.load %arg12[%c0_338, %c0_339, %c640_340] : memref<2x8x896xbf16, #tpu.memory_space<vmem>>, vector<2x8x128xbf16>
    tpu.vector_store %arg12[%c0_338, %c0_339, %c640_340], %348 {strides = array<i32>} : memref<2x8x896xbf16, #tpu.memory_space<vmem>>, vector<2x8x128xbf16>,
    %c0_341 = arith.constant 0 : index
    %c11_342 = arith.constant 11 : index
    %c0_343 = arith.constant 0 : index
    %350 = vector.load %arg10[%c0_341, %c11_342, %c0_343] : memref<2x19x128xf32, #tpu.memory_space<vmem>>, vector<2x8x128xf32>
    %351 = arith.truncf %350 : vector<2x8x128xf32> to vector<2x8x128xbf16>
    %c0_344 = arith.constant 0 : index
    %c0_345 = arith.constant 0 : index
    %c768_346 = arith.constant 768 : index
    %352 = vector.load %arg12[%c0_344, %c0_345, %c768_346] : memref<2x8x896xbf16, #tpu.memory_space<vmem>>, vector<2x8x128xbf16>
    tpu.vector_store %arg12[%c0_344, %c0_345, %c768_346], %351 {strides = array<i32>} : memref<2x8x896xbf16, #tpu.memory_space<vmem>>, vector<2x8x128xbf16>,
    %c0_347 = arith.constant 0 : index
    %c0_348 = arith.constant 0 : index
    %c0_349 = arith.constant 0 : index
    %353 = vector.load %arg12[%c0_347, %c0_348, %c0_349] : memref<2x8x896xbf16, #tpu.memory_space<vmem>>, vector<2x8x896xbf16>
    %354 = vector.shape_cast %353 : vector<2x8x896xbf16> to vector<16x896xbf16>
    %c0_350 = arith.constant 0 : index
    %c0_351 = arith.constant 0 : index
    %355 = vector.load %arg3[%c0_350, %c0_351] : memref<896x64xbf16, #tpu.memory_space<vmem>>, vector<896x64xbf16>
    %cst_352 = arith.constant dense<0.000000e+00> : vector<16x64xf32>
    %356 = tpu.matmul %354, %355, %cst_352 {dimension_numbers = #tpu.dot_dimension_numbers<[1], [0], [0], [1], [0, 0, 1, 1], [], []>} : vector<16x896xbf16>, vector<896x64xbf16>, vector<16x64xf32> -> vector<16x64xf32>
    %c0_353 = arith.constant 0 : index
    %c0_354 = arith.constant 0 : index
    %357 = vector.load %arg4[%c0_353, %c0_354] : memref<1x64xf32, #tpu.memory_space<vmem>>, vector<1x64xf32>
    %358 = vector.broadcast %357 : vector<1x64xf32> to vector<16x64xf32>
    %359 = arith.addf %356, %358 : vector<16x64xf32>
    %360 = vector.extract_strided_slice %359 {offsets = [0, 0], sizes = [16, 32], strides = [1, 1]} : vector<16x64xf32> to vector<16x32xf32>
    %361 = vector.extract_strided_slice %359 {offsets = [0, 32], sizes = [16, 32], strides = [1, 1]} : vector<16x64xf32> to vector<16x32xf32>
    %362 = arith.maximumf %360, %361 : vector<16x32xf32>
    %363 = vector.extract_strided_slice %362 {offsets = [0, 0], sizes = [16, 16], strides = [1, 1]} : vector<16x32xf32> to vector<16x16xf32>
    %364 = vector.extract_strided_slice %362 {offsets = [0, 16], sizes = [16, 16], strides = [1, 1]} : vector<16x32xf32> to vector<16x16xf32>
    %365 = arith.maximumf %363, %364 : vector<16x16xf32>
    %366 = vector.extract_strided_slice %365 {offsets = [0, 0], sizes = [16, 8], strides = [1, 1]} : vector<16x16xf32> to vector<16x8xf32>
    %367 = vector.extract_strided_slice %365 {offsets = [0, 8], sizes = [16, 8], strides = [1, 1]} : vector<16x16xf32> to vector<16x8xf32>
    %368 = arith.maximumf %366, %367 : vector<16x8xf32>
    %369 = vector.shape_cast %368 : vector<16x8xf32> to vector<2x8x8xf32>
    %cst_355 = arith.constant dense<0xFF800000> : vector<2x8xf32>
    %370 = vector.multi_reduction <maximumf>, %369, %cst_355 [1] : vector<2x8x8xf32> to vector<2x8xf32>
    %cst_356 = arith.constant 1.000000e+00 : f32
    %371 = vector.broadcast %cst_356 : f32 to vector<2x8xf32>
    %372 = arith.cmpf ogt, %245, %371 : vector<2x8xf32>
    %373 = arith.extui %372 : vector<2x8xi1> to vector<2x8xi32>
    %374 = arith.sitofp %373 : vector<2x8xi32> to vector<2x8xf32>
    %cst_357 = arith.constant 0.899999976 : f32
    %375 = vector.broadcast %cst_357 : f32 to vector<2x8xf32>
    %376 = arith.mulf %375, %245 : vector<2x8xf32>
    %377 = arith.addf %376, %370 : vector<2x8xf32>
    %378 = arith.subf %377, %374 : vector<2x8xf32>
    %cst_358 = arith.constant 1.000000e+00 : f32
    %379 = vector.broadcast %cst_358 : f32 to vector<2x8xf32>
    %380 = arith.cmpf ogt, %378, %379 : vector<2x8xf32>
    %381 = arith.extui %380 : vector<2x8xi1> to vector<2x8xi32>
    %382 = arith.sitofp %381 : vector<2x8xi32> to vector<2x8xf32>
    %383 = arith.truncf %382 : vector<2x8xf32> to vector<2x8xbf16>
    %c0_359 = arith.constant 0 : index
    %c0_360 = arith.constant 0 : index
    %384 = vector.load %arg5[%c0_359, %c0_360] : memref<8x32xbf16, #tpu.memory_space<vmem>>, vector<8x32xbf16>
    %cst_361 = arith.constant dense<0.000000e+00> : vector<2x32xf32>
    %385 = tpu.matmul %383, %384, %cst_361 {dimension_numbers = #tpu.dot_dimension_numbers<[1], [0], [0], [1], [0, 0, 1, 1], [], []>} : vector<2x8xbf16>, vector<8x32xbf16>, vector<2x32xf32> -> vector<2x32xf32>
    %c0_362 = arith.constant 0 : index
    %c0_363 = arith.constant 0 : index
    %386 = vector.load %arg6[%c0_362, %c0_363] : memref<1x32xf32, #tpu.memory_space<vmem>>, vector<1x32xf32>
    %387 = vector.broadcast %386 : vector<1x32xf32> to vector<2x32xf32>
    %388 = arith.addf %385, %387 : vector<2x32xf32>
    %cst_364 = arith.constant 1.000000e+00 : f32
    %389 = vector.broadcast %cst_364 : f32 to vector<2x32xf32>
    %390 = arith.cmpf ogt, %263, %389 : vector<2x32xf32>
    %391 = arith.extui %390 : vector<2x32xi1> to vector<2x32xi32>
    %392 = arith.sitofp %391 : vector<2x32xi32> to vector<2x32xf32>
    %cst_365 = arith.constant 0.899999976 : f32
    %393 = vector.broadcast %cst_365 : f32 to vector<2x32xf32>
    %394 = arith.mulf %393, %263 : vector<2x32xf32>
    %395 = arith.addf %394, %388 : vector<2x32xf32>
    %396 = arith.subf %395, %392 : vector<2x32xf32>
    %cst_366 = arith.constant 1.000000e+00 : f32
    %397 = vector.broadcast %cst_366 : f32 to vector<2x32xf32>
    %398 = arith.cmpf ogt, %396, %397 : vector<2x32xf32>
    %399 = arith.extui %398 : vector<2x32xi1> to vector<2x32xi32>
    %400 = arith.sitofp %399 : vector<2x32xi32> to vector<2x32xf32>
    %c2 = arith.constant 2 : index
    %c0_367 = arith.constant 0 : index
    %c0_368 = arith.constant 0 : index
    %401 = vector.load %arg7[%c2, %c0_367, %c0_368] : memref<4x2x32xf32, #tpu.memory_space<vmem>>, vector<1x2x32xf32>
    %402 = vector.shape_cast %401 : vector<1x2x32xf32> to vector<2x32xf32>
    %403 = vector.shape_cast %400 : vector<2x32xf32> to vector<1x2x32xf32>
    tpu.vector_store %arg7[%c2, %c0_367, %c0_368], %403 {strides = array<i32>} : memref<4x2x32xf32, #tpu.memory_space<vmem>>, vector<1x2x32xf32>,
    %c2_369 = arith.constant 2 : index
    %c0_370 = arith.constant 0 : index
    %c0_371 = arith.constant 0 : index
    %404 = vector.load %arg8[%c2_369, %c0_370, %c0_371] : memref<4x2x32xf32, #tpu.memory_space<vmem>>, vector<1x2x32xf32>
    %405 = vector.shape_cast %404 : vector<1x2x32xf32> to vector<2x32xf32>
    %406 = vector.shape_cast %396 : vector<2x32xf32> to vector<1x2x32xf32>
    tpu.vector_store %arg8[%c2_369, %c0_370, %c0_371], %406 {strides = array<i32>} : memref<4x2x32xf32, #tpu.memory_space<vmem>>, vector<1x2x32xf32>,
    %c0_372 = arith.constant 0 : index
    %c0_373 = arith.constant 0 : index
    %407 = vector.load %arg0[%c0_372, %c0_373] : memref<32x256xf32, #tpu.memory_space<vmem>>, vector<32x256xf32>
    %cst_374 = arith.constant 1.000000e+00 : f32
    %408 = vector.broadcast %cst_374 : f32 to vector<32x256xf32>
    %409 = arith.cmpf ogt, %282, %408 : vector<32x256xf32>
    %410 = arith.extui %409 : vector<32x256xi1> to vector<32x256xi32>
    %411 = arith.sitofp %410 : vector<32x256xi32> to vector<32x256xf32>
    %cst_375 = arith.constant 0.899999976 : f32
    %412 = vector.broadcast %cst_375 : f32 to vector<32x256xf32>
    %413 = arith.mulf %412, %282 : vector<32x256xf32>
    %414 = arith.addf %413, %407 : vector<32x256xf32>
    %415 = arith.subf %414, %411 : vector<32x256xf32>
    %cst_376 = arith.constant 1.000000e+00 : f32
    %416 = vector.broadcast %cst_376 : f32 to vector<32x256xf32>
    %417 = arith.cmpf ogt, %415, %416 : vector<32x256xf32>
    %418 = arith.extui %417 : vector<32x256xi1> to vector<32x256xi32>
    %419 = arith.sitofp %418 : vector<32x256xi32> to vector<32x256xf32>
    %420 = vector.shape_cast %419 : vector<32x256xf32> to vector<2x16x256xf32>
    %c0_377 = arith.constant 0 : index
    %c8_378 = arith.constant 8 : index
    %c0_379 = arith.constant 0 : index
    %421 = vector.load %arg9[%c0_377, %c8_378, %c0_379] : memref<2x26x256xf32, #tpu.memory_space<vmem>>, vector<2x16x256xf32>
    tpu.vector_store %arg9[%c0_377, %c8_378, %c0_379], %420 {strides = array<i32>} : memref<2x26x256xf32, #tpu.memory_space<vmem>>, vector<2x16x256xf32>,
    %c0_380 = arith.constant 0 : index
    %c6_381 = arith.constant 6 : index
    %c0_382 = arith.constant 0 : index
    %422 = vector.load %arg9[%c0_380, %c6_381, %c0_382] : memref<2x26x256xf32, #tpu.memory_space<vmem>>, vector<2x16x256xf32>
    %423 = arith.truncf %422 : vector<2x16x256xf32> to vector<2x16x256xbf16>
    %c0_383 = arith.constant 0 : index
    %c0_384 = arith.constant 0 : index
    %c0_385 = arith.constant 0 : index
    %424 = vector.load %arg11[%c0_383, %c0_384, %c0_385] : memref<2x16x1280xbf16, #tpu.memory_space<vmem>>, vector<2x16x256xbf16>
    tpu.vector_store %arg11[%c0_383, %c0_384, %c0_385], %423 {strides = array<i32>} : memref<2x16x1280xbf16, #tpu.memory_space<vmem>>, vector<2x16x256xbf16>,
    %c0_386 = arith.constant 0 : index
    %c7_387 = arith.constant 7 : index
    %c0_388 = arith.constant 0 : index
    %425 = vector.load %arg9[%c0_386, %c7_387, %c0_388] : memref<2x26x256xf32, #tpu.memory_space<vmem>>, vector<2x16x256xf32>
    %426 = arith.truncf %425 : vector<2x16x256xf32> to vector<2x16x256xbf16>
    %c0_389 = arith.constant 0 : index
    %c0_390 = arith.constant 0 : index
    %c256_391 = arith.constant 256 : index
    %427 = vector.load %arg11[%c0_389, %c0_390, %c256_391] : memref<2x16x1280xbf16, #tpu.memory_space<vmem>>, vector<2x16x256xbf16>
    tpu.vector_store %arg11[%c0_389, %c0_390, %c256_391], %426 {strides = array<i32>} : memref<2x16x1280xbf16, #tpu.memory_space<vmem>>, vector<2x16x256xbf16>,
    %c0_392 = arith.constant 0 : index
    %c8_393 = arith.constant 8 : index
    %c0_394 = arith.constant 0 : index
    %428 = vector.load %arg9[%c0_392, %c8_393, %c0_394] : memref<2x26x256xf32, #tpu.memory_space<vmem>>, vector<2x16x256xf32>
    %429 = arith.truncf %428 : vector<2x16x256xf32> to vector<2x16x256xbf16>
    %c0_395 = arith.constant 0 : index
    %c0_396 = arith.constant 0 : index
    %c512_397 = arith.constant 512 : index
    %430 = vector.load %arg11[%c0_395, %c0_396, %c512_397] : memref<2x16x1280xbf16, #tpu.memory_space<vmem>>, vector<2x16x256xbf16>
    tpu.vector_store %arg11[%c0_395, %c0_396, %c512_397], %429 {strides = array<i32>} : memref<2x16x1280xbf16, #tpu.memory_space<vmem>>, vector<2x16x256xbf16>,
    %c0_398 = arith.constant 0 : index
    %c9_399 = arith.constant 9 : index
    %c0_400 = arith.constant 0 : index
    %431 = vector.load %arg9[%c0_398, %c9_399, %c0_400] : memref<2x26x256xf32, #tpu.memory_space<vmem>>, vector<2x16x256xf32>
    %432 = arith.truncf %431 : vector<2x16x256xf32> to vector<2x16x256xbf16>
    %c0_401 = arith.constant 0 : index
    %c0_402 = arith.constant 0 : index
    %c768_403 = arith.constant 768 : index
    %433 = vector.load %arg11[%c0_401, %c0_402, %c768_403] : memref<2x16x1280xbf16, #tpu.memory_space<vmem>>, vector<2x16x256xbf16>
    tpu.vector_store %arg11[%c0_401, %c0_402, %c768_403], %432 {strides = array<i32>} : memref<2x16x1280xbf16, #tpu.memory_space<vmem>>, vector<2x16x256xbf16>,
    %c0_404 = arith.constant 0 : index
    %c10_405 = arith.constant 10 : index
    %c0_406 = arith.constant 0 : index
    %434 = vector.load %arg9[%c0_404, %c10_405, %c0_406] : memref<2x26x256xf32, #tpu.memory_space<vmem>>, vector<2x16x256xf32>
    %435 = arith.truncf %434 : vector<2x16x256xf32> to vector<2x16x256xbf16>
    %c0_407 = arith.constant 0 : index
    %c0_408 = arith.constant 0 : index
    %c1024_409 = arith.constant 1024 : index
    %436 = vector.load %arg11[%c0_407, %c0_408, %c1024_409] : memref<2x16x1280xbf16, #tpu.memory_space<vmem>>, vector<2x16x256xbf16>
    tpu.vector_store %arg11[%c0_407, %c0_408, %c1024_409], %435 {strides = array<i32>} : memref<2x16x1280xbf16, #tpu.memory_space<vmem>>, vector<2x16x256xbf16>,
    %c0_410 = arith.constant 0 : index
    %c0_411 = arith.constant 0 : index
    %c0_412 = arith.constant 0 : index
    %437 = vector.load %arg11[%c0_410, %c0_411, %c0_412] : memref<2x16x1280xbf16, #tpu.memory_space<vmem>>, vector<2x16x1280xbf16>
    %438 = vector.shape_cast %437 : vector<2x16x1280xbf16> to vector<32x1280xbf16>
    %c0_413 = arith.constant 0 : index
    %c0_414 = arith.constant 0 : index
    %439 = vector.load %arg1[%c0_413, %c0_414] : memref<1280x64xbf16, #tpu.memory_space<vmem>>, vector<1280x64xbf16>
    %cst_415 = arith.constant dense<0.000000e+00> : vector<32x64xf32>
    %440 = tpu.matmul %438, %439, %cst_415 {dimension_numbers = #tpu.dot_dimension_numbers<[1], [0], [0], [1], [0, 0, 1, 1], [], []>} : vector<32x1280xbf16>, vector<1280x64xbf16>, vector<32x64xf32> -> vector<32x64xf32>
    %c0_416 = arith.constant 0 : index
    %c0_417 = arith.constant 0 : index
    %441 = vector.load %arg2[%c0_416, %c0_417] : memref<1x64xf32, #tpu.memory_space<vmem>>, vector<1x64xf32>
    %442 = vector.broadcast %441 : vector<1x64xf32> to vector<32x64xf32>
    %443 = arith.addf %440, %442 : vector<32x64xf32>
    %444 = vector.extract_strided_slice %443 {offsets = [0, 0], sizes = [32, 32], strides = [1, 1]} : vector<32x64xf32> to vector<32x32xf32>
    %445 = vector.extract_strided_slice %443 {offsets = [0, 32], sizes = [32, 32], strides = [1, 1]} : vector<32x64xf32> to vector<32x32xf32>
    %446 = arith.maximumf %444, %445 : vector<32x32xf32>
    %c0_418 = arith.constant 0 : index
    %c0_419 = arith.constant 0 : index
    %447 = vector.load %arg13[%c0_418, %c0_419] : memref<32x32xf32, #tpu.memory_space<vmem>>, vector<32x32xf32>
    tpu.vector_store %arg13[%c0_418, %c0_419], %446 {strides = array<i32>} : memref<32x32xf32, #tpu.memory_space<vmem>>, vector<32x32xf32>,
    %c0_420 = arith.constant 0 : index
    %c0_421 = arith.constant 0 : index
    %448 = tpu.strided_load %arg13[%c0_420, %c0_421] {strides = array<i32: 2, 1>} : memref<32x32xf32, #tpu.memory_space<vmem>>, vector<16x32xf32>
    %c1_422 = arith.constant 1 : index
    %c0_423 = arith.constant 0 : index
    %449 = tpu.strided_load %arg13[%c1_422, %c0_423] {strides = array<i32: 2, 1>} : memref<32x32xf32, #tpu.memory_space<vmem>>, vector<16x32xf32>
    %450 = arith.maximumf %448, %449 : vector<16x32xf32>
    %cst_424 = arith.constant 1.000000e+00 : f32
    %451 = vector.broadcast %cst_424 : f32 to vector<16x32xf32>
    %452 = arith.cmpf ogt, %325, %451 : vector<16x32xf32>
    %453 = arith.extui %452 : vector<16x32xi1> to vector<16x32xi32>
    %454 = arith.sitofp %453 : vector<16x32xi32> to vector<16x32xf32>
    %cst_425 = arith.constant 0.899999976 : f32
    %455 = vector.broadcast %cst_425 : f32 to vector<16x32xf32>
    %456 = arith.mulf %455, %325 : vector<16x32xf32>
    %457 = arith.addf %456, %450 : vector<16x32xf32>
    %458 = arith.subf %457, %454 : vector<16x32xf32>
    %cst_426 = arith.constant 1.000000e+00 : f32
    %459 = vector.broadcast %cst_426 : f32 to vector<16x32xf32>
    %460 = arith.cmpf ogt, %458, %459 : vector<16x32xf32>
    %461 = arith.extui %460 : vector<16x32xi1> to vector<16x32xi32>
    %462 = arith.sitofp %461 : vector<16x32xi32> to vector<16x32xf32>
    %463 = vector.shape_cast %462 : vector<16x32xf32> to vector<2x8x32xf32>
    %c0_427 = arith.constant 0 : index
    %c8_428 = arith.constant 8 : index
    %c0_429 = arith.constant 0 : index
    %464 = vector.load %arg10[%c0_427, %c8_428, %c0_429] : memref<2x19x128xf32, #tpu.memory_space<vmem>>, vector<2x8x32xf32>
    tpu.vector_store %arg10[%c0_427, %c8_428, %c0_429], %463 {strides = array<i32>} : memref<2x19x128xf32, #tpu.memory_space<vmem>>, vector<2x8x32xf32>,
    %c0_430 = arith.constant 0 : index
    %c5_431 = arith.constant 5 : index
    %c0_432 = arith.constant 0 : index
    %465 = vector.load %arg10[%c0_430, %c5_431, %c0_432] : memref<2x19x128xf32, #tpu.memory_space<vmem>>, vector<2x8x128xf32>
    %466 = arith.truncf %465 : vector<2x8x128xf32> to vector<2x8x128xbf16>
    %c0_433 = arith.constant 0 : index
    %c0_434 = arith.constant 0 : index
    %c0_435 = arith.constant 0 : index
    %467 = vector.load %arg12[%c0_433, %c0_434, %c0_435] : memref<2x8x896xbf16, #tpu.memory_space<vmem>>, vector<2x8x128xbf16>
    tpu.vector_store %arg12[%c0_433, %c0_434, %c0_435], %466 {strides = array<i32>} : memref<2x8x896xbf16, #tpu.memory_space<vmem>>, vector<2x8x128xbf16>,
    %c0_436 = arith.constant 0 : index
    %c6_437 = arith.constant 6 : index
    %c0_438 = arith.constant 0 : index
    %468 = vector.load %arg10[%c0_436, %c6_437, %c0_438] : memref<2x19x128xf32, #tpu.memory_space<vmem>>, vector<2x8x128xf32>
    %469 = arith.truncf %468 : vector<2x8x128xf32> to vector<2x8x128xbf16>
    %c0_439 = arith.constant 0 : index
    %c0_440 = arith.constant 0 : index
    %c128_441 = arith.constant 128 : index
    %470 = vector.load %arg12[%c0_439, %c0_440, %c128_441] : memref<2x8x896xbf16, #tpu.memory_space<vmem>>, vector<2x8x128xbf16>
    tpu.vector_store %arg12[%c0_439, %c0_440, %c128_441], %469 {strides = array<i32>} : memref<2x8x896xbf16, #tpu.memory_space<vmem>>, vector<2x8x128xbf16>,
    %c0_442 = arith.constant 0 : index
    %c7_443 = arith.constant 7 : index
    %c0_444 = arith.constant 0 : index
    %471 = vector.load %arg10[%c0_442, %c7_443, %c0_444] : memref<2x19x128xf32, #tpu.memory_space<vmem>>, vector<2x8x128xf32>
    %472 = arith.truncf %471 : vector<2x8x128xf32> to vector<2x8x128xbf16>
    %c0_445 = arith.constant 0 : index
    %c0_446 = arith.constant 0 : index
    %c256_447 = arith.constant 256 : index
    %473 = vector.load %arg12[%c0_445, %c0_446, %c256_447] : memref<2x8x896xbf16, #tpu.memory_space<vmem>>, vector<2x8x128xbf16>
    tpu.vector_store %arg12[%c0_445, %c0_446, %c256_447], %472 {strides = array<i32>} : memref<2x8x896xbf16, #tpu.memory_space<vmem>>, vector<2x8x128xbf16>,
    %c0_448 = arith.constant 0 : index
    %c8_449 = arith.constant 8 : index
    %c0_450 = arith.constant 0 : index
    %474 = vector.load %arg10[%c0_448, %c8_449, %c0_450] : memref<2x19x128xf32, #tpu.memory_space<vmem>>, vector<2x8x128xf32>
    %475 = arith.truncf %474 : vector<2x8x128xf32> to vector<2x8x128xbf16>
    %c0_451 = arith.constant 0 : index
    %c0_452 = arith.constant 0 : index
    %c384_453 = arith.constant 384 : index
    %476 = vector.load %arg12[%c0_451, %c0_452, %c384_453] : memref<2x8x896xbf16, #tpu.memory_space<vmem>>, vector<2x8x128xbf16>
    tpu.vector_store %arg12[%c0_451, %c0_452, %c384_453], %475 {strides = array<i32>} : memref<2x8x896xbf16, #tpu.memory_space<vmem>>, vector<2x8x128xbf16>,
    %c0_454 = arith.constant 0 : index
    %c9_455 = arith.constant 9 : index
    %c0_456 = arith.constant 0 : index
    %477 = vector.load %arg10[%c0_454, %c9_455, %c0_456] : memref<2x19x128xf32, #tpu.memory_space<vmem>>, vector<2x8x128xf32>
    %478 = arith.truncf %477 : vector<2x8x128xf32> to vector<2x8x128xbf16>
    %c0_457 = arith.constant 0 : index
    %c0_458 = arith.constant 0 : index
    %c512_459 = arith.constant 512 : index
    %479 = vector.load %arg12[%c0_457, %c0_458, %c512_459] : memref<2x8x896xbf16, #tpu.memory_space<vmem>>, vector<2x8x128xbf16>
    tpu.vector_store %arg12[%c0_457, %c0_458, %c512_459], %478 {strides = array<i32>} : memref<2x8x896xbf16, #tpu.memory_space<vmem>>, vector<2x8x128xbf16>,
    %c0_460 = arith.constant 0 : index
    %c10_461 = arith.constant 10 : index
    %c0_462 = arith.constant 0 : index
    %480 = vector.load %arg10[%c0_460, %c10_461, %c0_462] : memref<2x19x128xf32, #tpu.memory_space<vmem>>, vector<2x8x128xf32>
    %481 = arith.truncf %480 : vector<2x8x128xf32> to vector<2x8x128xbf16>
    %c0_463 = arith.constant 0 : index
    %c0_464 = arith.constant 0 : index
    %c640_465 = arith.constant 640 : index
    %482 = vector.load %arg12[%c0_463, %c0_464, %c640_465] : memref<2x8x896xbf16, #tpu.memory_space<vmem>>, vector<2x8x128xbf16>
    tpu.vector_store %arg12[%c0_463, %c0_464, %c640_465], %481 {strides = array<i32>} : memref<2x8x896xbf16, #tpu.memory_space<vmem>>, vector<2x8x128xbf16>,
    %c0_466 = arith.constant 0 : index
    %c11_467 = arith.constant 11 : index
    %c0_468 = arith.constant 0 : index
    %483 = vector.load %arg10[%c0_466, %c11_467, %c0_468] : memref<2x19x128xf32, #tpu.memory_space<vmem>>, vector<2x8x128xf32>
    %484 = arith.truncf %483 : vector<2x8x128xf32> to vector<2x8x128xbf16>
    %c0_469 = arith.constant 0 : index
    %c0_470 = arith.constant 0 : index
    %c768_471 = arith.constant 768 : index
    %485 = vector.load %arg12[%c0_469, %c0_470, %c768_471] : memref<2x8x896xbf16, #tpu.memory_space<vmem>>, vector<2x8x128xbf16>
    tpu.vector_store %arg12[%c0_469, %c0_470, %c768_471], %484 {strides = array<i32>} : memref<2x8x896xbf16, #tpu.memory_space<vmem>>, vector<2x8x128xbf16>,
    %c0_472 = arith.constant 0 : index
    %c0_473 = arith.constant 0 : index
    %c0_474 = arith.constant 0 : index
    %486 = vector.load %arg12[%c0_472, %c0_473, %c0_474] : memref<2x8x896xbf16, #tpu.memory_space<vmem>>, vector<2x8x896xbf16>
    %487 = vector.shape_cast %486 : vector<2x8x896xbf16> to vector<16x896xbf16>
    %c0_475 = arith.constant 0 : index
    %c0_476 = arith.constant 0 : index
    %488 = vector.load %arg3[%c0_475, %c0_476] : memref<896x64xbf16, #tpu.memory_space<vmem>>, vector<896x64xbf16>
    %cst_477 = arith.constant dense<0.000000e+00> : vector<16x64xf32>
    %489 = tpu.matmul %487, %488, %cst_477 {dimension_numbers = #tpu.dot_dimension_numbers<[1], [0], [0], [1], [0, 0, 1, 1], [], []>} : vector<16x896xbf16>, vector<896x64xbf16>, vector<16x64xf32> -> vector<16x64xf32>
    %c0_478 = arith.constant 0 : index
    %c0_479 = arith.constant 0 : index
    %490 = vector.load %arg4[%c0_478, %c0_479] : memref<1x64xf32, #tpu.memory_space<vmem>>, vector<1x64xf32>
    %491 = vector.broadcast %490 : vector<1x64xf32> to vector<16x64xf32>
    %492 = arith.addf %489, %491 : vector<16x64xf32>
    %493 = vector.extract_strided_slice %492 {offsets = [0, 0], sizes = [16, 32], strides = [1, 1]} : vector<16x64xf32> to vector<16x32xf32>
    %494 = vector.extract_strided_slice %492 {offsets = [0, 32], sizes = [16, 32], strides = [1, 1]} : vector<16x64xf32> to vector<16x32xf32>
    %495 = arith.maximumf %493, %494 : vector<16x32xf32>
    %496 = vector.extract_strided_slice %495 {offsets = [0, 0], sizes = [16, 16], strides = [1, 1]} : vector<16x32xf32> to vector<16x16xf32>
    %497 = vector.extract_strided_slice %495 {offsets = [0, 16], sizes = [16, 16], strides = [1, 1]} : vector<16x32xf32> to vector<16x16xf32>
    %498 = arith.maximumf %496, %497 : vector<16x16xf32>
    %499 = vector.extract_strided_slice %498 {offsets = [0, 0], sizes = [16, 8], strides = [1, 1]} : vector<16x16xf32> to vector<16x8xf32>
    %500 = vector.extract_strided_slice %498 {offsets = [0, 8], sizes = [16, 8], strides = [1, 1]} : vector<16x16xf32> to vector<16x8xf32>
    %501 = arith.maximumf %499, %500 : vector<16x8xf32>
    %502 = vector.shape_cast %501 : vector<16x8xf32> to vector<2x8x8xf32>
    %cst_480 = arith.constant dense<0xFF800000> : vector<2x8xf32>
    %503 = vector.multi_reduction <maximumf>, %502, %cst_480 [1] : vector<2x8x8xf32> to vector<2x8xf32>
    %cst_481 = arith.constant 1.000000e+00 : f32
    %504 = vector.broadcast %cst_481 : f32 to vector<2x8xf32>
    %505 = arith.cmpf ogt, %378, %504 : vector<2x8xf32>
    %506 = arith.extui %505 : vector<2x8xi1> to vector<2x8xi32>
    %507 = arith.sitofp %506 : vector<2x8xi32> to vector<2x8xf32>
    %cst_482 = arith.constant 0.899999976 : f32
    %508 = vector.broadcast %cst_482 : f32 to vector<2x8xf32>
    %509 = arith.mulf %508, %378 : vector<2x8xf32>
    %510 = arith.addf %509, %503 : vector<2x8xf32>
    %511 = arith.subf %510, %507 : vector<2x8xf32>
    %cst_483 = arith.constant 1.000000e+00 : f32
    %512 = vector.broadcast %cst_483 : f32 to vector<2x8xf32>
    %513 = arith.cmpf ogt, %511, %512 : vector<2x8xf32>
    %514 = arith.extui %513 : vector<2x8xi1> to vector<2x8xi32>
    %515 = arith.sitofp %514 : vector<2x8xi32> to vector<2x8xf32>
    %516 = arith.truncf %515 : vector<2x8xf32> to vector<2x8xbf16>
    %c0_484 = arith.constant 0 : index
    %c0_485 = arith.constant 0 : index
    %517 = vector.load %arg5[%c0_484, %c0_485] : memref<8x32xbf16, #tpu.memory_space<vmem>>, vector<8x32xbf16>
    %cst_486 = arith.constant dense<0.000000e+00> : vector<2x32xf32>
    %518 = tpu.matmul %516, %517, %cst_486 {dimension_numbers = #tpu.dot_dimension_numbers<[1], [0], [0], [1], [0, 0, 1, 1], [], []>} : vector<2x8xbf16>, vector<8x32xbf16>, vector<2x32xf32> -> vector<2x32xf32>
    %c0_487 = arith.constant 0 : index
    %c0_488 = arith.constant 0 : index
    %519 = vector.load %arg6[%c0_487, %c0_488] : memref<1x32xf32, #tpu.memory_space<vmem>>, vector<1x32xf32>
    %520 = vector.broadcast %519 : vector<1x32xf32> to vector<2x32xf32>
    %521 = arith.addf %518, %520 : vector<2x32xf32>
    %cst_489 = arith.constant 1.000000e+00 : f32
    %522 = vector.broadcast %cst_489 : f32 to vector<2x32xf32>
    %523 = arith.cmpf ogt, %396, %522 : vector<2x32xf32>
    %524 = arith.extui %523 : vector<2x32xi1> to vector<2x32xi32>
    %525 = arith.sitofp %524 : vector<2x32xi32> to vector<2x32xf32>
    %cst_490 = arith.constant 0.899999976 : f32
    %526 = vector.broadcast %cst_490 : f32 to vector<2x32xf32>
    %527 = arith.mulf %526, %396 : vector<2x32xf32>
    %528 = arith.addf %527, %521 : vector<2x32xf32>
    %529 = arith.subf %528, %525 : vector<2x32xf32>
    %cst_491 = arith.constant 1.000000e+00 : f32
    %530 = vector.broadcast %cst_491 : f32 to vector<2x32xf32>
    %531 = arith.cmpf ogt, %529, %530 : vector<2x32xf32>
    %532 = arith.extui %531 : vector<2x32xi1> to vector<2x32xi32>
    %533 = arith.sitofp %532 : vector<2x32xi32> to vector<2x32xf32>
    %c3 = arith.constant 3 : index
    %c0_492 = arith.constant 0 : index
    %c0_493 = arith.constant 0 : index
    %534 = vector.load %arg7[%c3, %c0_492, %c0_493] : memref<4x2x32xf32, #tpu.memory_space<vmem>>, vector<1x2x32xf32>
    %535 = vector.shape_cast %534 : vector<1x2x32xf32> to vector<2x32xf32>
    %536 = vector.shape_cast %533 : vector<2x32xf32> to vector<1x2x32xf32>
    tpu.vector_store %arg7[%c3, %c0_492, %c0_493], %536 {strides = array<i32>} : memref<4x2x32xf32, #tpu.memory_space<vmem>>, vector<1x2x32xf32>,
    %c3_494 = arith.constant 3 : index
    %c0_495 = arith.constant 0 : index
    %c0_496 = arith.constant 0 : index
    %537 = vector.load %arg8[%c3_494, %c0_495, %c0_496] : memref<4x2x32xf32, #tpu.memory_space<vmem>>, vector<1x2x32xf32>
    %538 = vector.shape_cast %537 : vector<1x2x32xf32> to vector<2x32xf32>
    %539 = vector.shape_cast %529 : vector<2x32xf32> to vector<1x2x32xf32>
    tpu.vector_store %arg8[%c3_494, %c0_495, %c0_496], %539 {strides = array<i32>} : memref<4x2x32xf32, #tpu.memory_space<vmem>>, vector<1x2x32xf32>,
    return
  }
}

</mosaic_0001>

<bundles_post_ra>
// kernel: tpu_custom_call.1
= control target key start
LH: loop header
LB: loop body
LE: loop exit
PB: predicated region body
PF: predicated region fallthrough
CT: control target
= control target key end

     0   :  { %14 = vsyncpa [#allocation8], 0  ;;  %v10909_v2 = vmov 0.0   ;;  %vm140_vm4 = vcmask 1044480   ;;  %vm181_vm5 = vsmask.f32 4352  ;;  %s13618_s0 = inlined_call_operand.vmem [shape: f32[32,256], index: 0, kind: input, shape index: {}]   ;;  %s13619_s1 = inlined_call_operand.vmem [shape: bf16[1280,64], index: 1, kind: input, shape index: {}]   ;;  %s13620_s2 = inlined_call_operand.vmem [shape: f32[1,64], index: 2, kind: input, shape index: {}]   ;;  %s13621_s3 = inlined_call_operand.vmem [shape: bf16[896,64], index: 3, kind: input, shape index: {}]   ;;  %s13622_s4 = inlined_call_operand.vmem [shape: f32[1,64], index: 4, kind: input, shape index: {}]   ;;  %s13623_s5 = inlined_call_operand.vmem [shape: bf16[8,32], index: 5, kind: input, shape index: {}]   ;;  %s13624_s6 = inlined_call_operand.vmem [shape: f32[1,32], index: 6, kind: input, shape index: {}]   ;;  %s13625_s7 = inlined_call_operand.hbm [shape: f32[4,2,32], index: 7, kind: output, shape index: {0}]   ;;  %s13626_s8 = inlined_call_operand.hbm [shape: f32[4,2,32], index: 8, kind: output, shape index: {1}]  }
   0x1   :  { %v10254_v0 = vld [vmem:[%s13619_s1 + $0x40] sm:$0xff]   ;;  %32 = vst [vmem:[#allocation2 + $0x8] sm:$0xff] %v10909_v2  ;;  %31 = vst [vmem:[#allocation2] sm:$0xff] %v10909_v2  ;;  %v10258_v5 = vld [vmem:[%s13619_s1 + $0x48] sm:$0xff]   ;;  %vm294_vm11 = vsmask.f32 7424 }
   0x2   :  { %v10255_v1 = vld [vmem:[%s13619_s1] sm:$0xff]   ;;  %37 = vst [vmem:[#allocation2 + $0x30] sm:$0x3] %v10909_v2  ;;  %38 = vst [vmem:[#allocation2 + $0x38] sm:$0x3] %v10909_v2  ;;  %9273 = vmatprep.subr.bf16.mxu0 %v10254_v0  ;;  %v10259_v6 = vld [vmem:[%s13619_s1 + $0x8] sm:$0xff]  }
   0x3   :  { %39 = vst [vmem:[#allocation2 + $0x40] sm:$0xff] %v10909_v2  ;;  %40 = vst [vmem:[#allocation2 + $0x48] sm:$0xff] %v10909_v2  ;;  %v10256_v3 = vld [vmem:[%s13619_s1 + $0xc0] sm:$0xff]   ;;  %9274 = vmatpush3.bf16.msra.mxu0 %v10255_v1  ;;  %v10260_v7 = vld [vmem:[%s13619_s1 + $0xc8] sm:$0xff]   ;;  %s10911_s29 = smov 96  }
   0x4   :  { %45 = vst [vmem:[#allocation2 + $0x70] sm:$0x3] %v10909_v2  ;;  %46 = vst [vmem:[#allocation2 + $0x78] sm:$0x3] %v10909_v2  ;;  %v10257_v4 = vld [vmem:[%s13619_s1 + $0x80] sm:$0xff]   ;;  %9301 = vmatprep.subr.bf16.mxu1 %v10256_v3  ;;  %9275 = vmatprep.subr.bf16.mxu0 %v10258_v5  ;;  %v10261_v8 = vld [vmem:[%s13619_s1 + $0x88] sm:$0xff]  }
   0x5   :  { %47 = vst [vmem:[#allocation3] sm:$0xff] %v10909_v2  ;;  %48 = vst [vmem:[#allocation3 + $0x8] sm:$0xff] %v10909_v2  ;;  %9302 = vmatpush3.bf16.msra.mxu1 %v10257_v4  ;;  %v10262_v9 = vld [vmem:[%s13619_s1 + $0x50] sm:$0xff]   ;;  %v10266_v13 = vld [vmem:[%s13619_s1 + $0x58] sm:$0xff]  }
   0x6   :  { %49 = vst [vmem:[#allocation3 + $0x10] sm:$0x7] %v10909_v2  ;;  %50 = vst [vmem:[#allocation3 + $0x18] sm:$0xff] %v10909_v2  ;;  %9303 = vmatprep.subr.bf16.mxu1 %v10260_v7  ;;  %v10263_v10 = vld [vmem:[%s13619_s1 + $0x10] sm:$0xff]   ;;  %v10267_v14 = vld [vmem:[%s13619_s1 + $0x18] sm:$0xff]  }
   0x7   :  { %51 = vst [vmem:[#allocation3 + $0x20] sm:$0xff] %v10909_v2  ;;  %52 = vst [vmem:[#allocation3 + $0x28] sm:$0x7] %v10909_v2  ;;  %9276 = vmatpush3.bf16.msra.mxu0 %v10259_v6  ;;  %v10264_v11 = vld [vmem:[%s13619_s1 + $0xd0] sm:$0xff]   ;;  %v10268_v15 = vld [vmem:[%s13619_s1 + $0xd8] sm:$0xff]  }
   0x8   :  { %9277 = vmatprep.subr.bf16.mxu0 %v10262_v9  ;;  %v10265_v12 = vld [vmem:[%s13619_s1 + $0x90] sm:$0xff]   ;;  %v10269_v16 = vld [vmem:[%s13619_s1 + $0x98] sm:$0xff]   ;;  %v10270_v17 = vld [vmem:[%s13619_s1 + $0x60] sm:$0xff]  }
   0x9   :  { %9304 = vmatpush3.bf16.msra.mxu1 %v10261_v8  ;;  %v10271_v18 = vld [vmem:[%s13619_s1 + $0x20] sm:$0xff]   ;;  %v10274_v21 = vld [vmem:[%s13619_s1 + $0x68] sm:$0xff]   ;;  %v10278_v25 = vld [vmem:[%s13619_s1 + $0x70] sm:$0xff]  }
   0xa   :  { %9305 = vmatprep.subr.bf16.mxu1 %v10264_v11  ;;  %v10272_v19 = vld [vmem:[%s13619_s1 + $0xe0] sm:$0xff]   ;;  %v10275_v22 = vld [vmem:[%s13619_s1 + $0x28] sm:$0xff]   ;;  %v10279_v26 = vld [vmem:[%s13619_s1 + $0x30] sm:$0xff]  }
   0xb   :  { %9278 = vmatpush3.bf16.msra.mxu0 %v10263_v10  ;;  %v10273_v20 = vld [vmem:[%s13619_s1 + $0xa0] sm:$0xff]   ;;  %v10276_v23 = vld [vmem:[%s13619_s1 + $0xe8] sm:$0xff]   ;;  %v10280_v27 = vld [vmem:[%s13619_s1 + $0xf0] sm:$0xff]  }
   0xc   :  { %9279 = vmatprep.subr.bf16.mxu0 %v10266_v13  ;;  %v10277_v24 = vld [vmem:[%s13619_s1 + $0xa8] sm:$0xff]   ;;  %v10281_v28 = vld [vmem:[%s13619_s1 + $0xb0] sm:$0xff]   ;;  %v10282_v29 = vld [vmem:[%s13619_s1 + $0x78] sm:$0xff]  }
   0xd   :  { %9306 = vmatpush3.bf16.msra.mxu1 %v10265_v12  ;;  %v10283_v30 = vld [vmem:[%s13619_s1 + $0x38] sm:$0xff]   ;;  %v11074_v32 = vld [vmem:[%s13618_s0 + $0x8] sm:$0xff]  ;;  %v11099_v38 = vld [vmem:[%s13618_s0] sm:$0xff] }
   0xe   :  { %9307 = vmatprep.subr.bf16.mxu1 %v10268_v15  ;;  %v10284_v31 = vld [vmem:[%s13619_s1 + $0xf8] sm:$0xff]   ;;  %vm81_vm0 = vcmp.gt.f32.partialorder %v11074_v32, 1.0  ;;  %v113_v34 = vld [vmem:[#allocation2 + $0x8] sm:$0xc0]  ;;  %v11106_v39 = vld [vmem:[%s13618_s0 + $0x10] sm:$0xff]  ;;  %vm80_vm2 = vcmp.gt.f32.partialorder %v11099_v38, 1.0 }
   0xf   :  { %9280 = vmatpush3.bf16.msra.mxu0 %v10267_v14  ;;  %v11079_v33 = vld [vmem:[%s13618_s0 + $0x18] sm:$0xff]  ;;  %v11086_v35 = vsel %vm81_vm0, 1.0, %v10909_v2  ;;  %v2198_v40 = vmul.f32 0.9, %v11099_v38  ;;  %vm82_vm3 = vcmp.gt.f32.partialorder %v11106_v39, 1.0  ;;  %v8633_v41 = vsel %vm80_vm2, 1.0, %v10909_v2 }
  0x10   :  { %9281 = vmatprep.subr.bf16.mxu0 %v10270_v17  ;;  %vm83_vm1 = vcmp.gt.f32.partialorder %v11079_v33, 1.0  ;;  %v10285_v37 = vld [vmem:[%s13619_s1 + $0xb8] sm:$0xff]   ;;  %105 = vst [vmem:[#allocation2 + $0x18] sm:$0xff] %v11086_v35  ;;  %v125_v42 = vpack.c.bf16 %v11086_v35, %v113_v34  ;;  %v11118_v43 = vsel %vm82_vm3, 1.0, %v10909_v2  ;;  %104 = vst [vmem:[#allocation2 + $0x10] sm:$0xff] %v8633_v41  ;;  %v10286_v46 = vld [vmem:[%s13619_s1 + $0x140] sm:$0xff]  }
  0x11   :  { %9308 = vmatpush3.bf16.msra.mxu1 %v10269_v16  ;;  %v11091_v36 = vsel %vm83_vm1, 1.0, %v10909_v2  ;;  %v112_v44 = vld [vmem:[#allocation2] sm:$0xc0]  ;;  %v2206_v45 = vadd.f32 %v2198_v40, %v11099_v38  ;;  %v162_v47 = vld [vmem:[#allocation2 + $0x8] sm:$0x80]  ;;  %106 = vst [vmem:[#allocation2 + $0x20] sm:$0xff] %v11118_v43  ;;  %vm10853_vm12 = vmpackc.low %vm83_vm1, %vm81_vm0 }
  0x12   :  { %9309 = vmatprep.subr.bf16.mxu1 %v10272_v19  ;;  %107 = vst [vmem:[#allocation2 + $0x28] sm:$0xff] %v11091_v36  ;;  %v174_v48 = vpack.c.bf16 %v11086_v35, %v162_v47  ;;  %v161_v49 = vld [vmem:[#allocation2] sm:$0x80]  ;;  %v124_v52 = vpack.c.bf16 %v8633_v41, %v112_v44  ;;  %v144_v55 = vrot.slane %v125_v42, 3  ;;  %v10294_v34 = vld [vmem:[%s13619_s1 + $0x150] sm:$0xff]   ;;  %vm10855_vm13 = vmpackc.low %vm82_vm3, %vm80_vm2  ;;  %vm379_vm1 = vcmask 1046528  }
  0x13   :  { %9282 = vmatpush3.bf16.msra.mxu0 %v10271_v18  ;;  %v173_v50 = vpack.c.bf16 %v8633_v41, %v161_v49  ;;  %v10288_v51 = vld [vmem:[%s13619_s1 + $0x1c0] sm:$0xff]   ;;  %v2214_v56 = vsub.f32 %v2206_v45, %v8633_v41  ;;  %v10293_v41 = vld [vmem:[%s13619_s1 + $0x188] sm:$0xff]   ;;  %v10295_v44 = vld [vmem:[%s13619_s1 + $0x110] sm:$0xff]  }
  0x14   :  { %9283 = vmatprep.subr.bf16.mxu0 %v10274_v21  ;;  %v200_v53 = vshrl.u32 %v174_v48, 16  ;;  %v203_v54 = vshll.u32 %v174_v48, 16  ;;  %v141_v3 = vrot.slane %v124_v52, 3  ;;  %v10287_v18 = vld [vmem:[%s13619_s1 + $0x100] sm:$0xff]   ;;  %v10296_v47 = vld [vmem:[%s13619_s1 + $0x1d0] sm:$0xff]   ;;  %v10299_v49 = vld [vmem:[%s13619_s1 + $0x118] sm:$0xff]  }
  0x15   :  { %9310 = vmatpush3.bf16.msra.mxu1 %v10273_v20  ;;  %v183_v57 = vshrl.u32 %v173_v50, 16  ;;  %v186_v58 = vshll.u32 %v173_v50, 16  ;;  %v4335_v0 = vmul.f32 0.9, %v2214_v56  ;;  %vm2222_vm6 = vcmp.gt.f32.partialorder %v2214_v56, 1.0  ;;  %v10297_v48 = vld [vmem:[%s13619_s1 + $0x190] sm:$0xff]  }
  0x16   :  { %9311 = vmatprep.subr.bf16.mxu1 %v10276_v23  ;;  %v202_v61 = vrot.slane %v200_v53, 3  ;;  %v205_v62 = vrot.slane %v203_v54, 4  ;;  %v11156_v42 = vsel %vm2222_vm6, 1.0, %v10909_v2  ;;  %v10300_v50 = vld [vmem:[%s13619_s1 + $0x1d8] sm:$0xff]   ;;  %v10302_v52 = vld [vmem:[%s13619_s1 + $0x160] sm:$0xff]   ;;  %v11188_v53 = vld [vmem:[%s13618_s0 + $0x28] sm:$0xff] }
  0x17   :  { %9284 = vmatpush3.bf16.msra.mxu0 %v10275_v22  ;;  %v185_v4 = vrot.slane %v183_v57, 3  ;;  %v188_v9 = vrot.slane %v186_v58, 4  ;;  %v10290_v22 = vld [vmem:[%s13619_s1 + $0x148] sm:$0xff]   ;;  %v11193_v54 = vld [vmem:[%s13618_s0 + $0x38] sm:$0xff]  ;;  %vm85_vm7 = vcmp.gt.f32.partialorder %v11188_v53, 1.0  ;;  %v10303_v57 = vld [vmem:[%s13619_s1 + $0x120] sm:$0xff]  }
  0x18   :  { %9285 = vmatprep.subr.bf16.mxu0 %v10278_v25  ;;  %v116_v6 = vld [vmem:[#allocation2 + $0x20] sm:$0x3f]  ;;  %v206_v11 = vor.u32 %v205_v62, %v202_v61  ;;  %vm87_vm8 = vcmp.gt.f32.partialorder %v11193_v54, 1.0  ;;  %v10301_v56 = vld [vmem:[%s13619_s1 + $0x198] sm:$0xff]   ;;  %v11206_v58 = vsel %vm85_vm7, 1.0, %v10909_v2  ;;  %v10306_v62 = vld [vmem:[%s13619_s1 + $0x168] sm:$0xff]  }
  0x19   :  { %9312 = vmatpush3.bf16.msra.mxu1 %v10277_v24  ;;  %v117_v59 = vld [vmem:[#allocation2 + $0x28] sm:$0x3f]  ;;  %v126_v10 = vpack.c.bf16 %v116_v6, %v116_v6  ;;  %v165_v12 = vld [vmem:[#allocation2 + $0x20] sm:$0x7f]  ;;  %v189_v25 = vor.u32 %v188_v9, %v185_v4  ;;  %109 = vst [vmem:[#allocation2 + $0x58] sm:$0xff] %v11206_v58  ;;  %vm10857_vm14 = vmpackc.low %vm87_vm8, %vm85_vm7 }
  0x1a   :  { %9313 = vmatprep.subr.bf16.mxu1 %v10280_v27  ;;  %v166_v60 = vld [vmem:[#allocation2 + $0x28] sm:$0x7f]  ;;  %v127_v63 = vpack.c.bf16 %v117_v59, %v117_v59  ;;  %v175_v16 = vpack.c.bf16 %v165_v12, %v165_v12  ;;  %v11211_v59 = vsel %vm87_vm8, 1.0, %v10909_v2  ;;  %v10304_v61 = vld [vmem:[%s13619_s1 + $0x1e0] sm:$0xff]   ;;  %v168_v6 = vld [vmem:[#allocation2 + $0x48] sm:$0x80] }
  0x1b   :  { %9286 = vmatpush3.bf16.msra.mxu0 %v10279_v26  ;;  %v176_v1 = vpack.c.bf16 %v166_v60, %v166_v60  ;;  %v142_v17 = vrot.slane %v126_v10, 3  ;;  %v11216_v60 = vld [vmem:[%s13618_s0 + $0x20] sm:$0xff]  ;;  %111 = vst [vmem:[#allocation2 + $0x68] sm:$0xff] %v11211_v59  ;;  %v10307_v4 = vld [vmem:[%s13619_s1 + $0x128] sm:$0xff]  }
  0x1c   :  { %9287 = vmatprep.subr.bf16.mxu0 %v10282_v29  ;;  %v145_v5 = vrot.slane %v127_v63, 3  ;;  %v191_v20 = vshrl.u32 %v175_v16, 16  ;;  %v194_v21 = vshll.u32 %v175_v16, 16  ;;  %v10291_v29 = vld [vmem:[%s13619_s1 + $0x108] sm:$0xff]   ;;  %v11229_v63 = vld [vmem:[%s13618_s0 + $0x30] sm:$0xff]  ;;  %vm84_vm9 = vcmp.gt.f32.partialorder %v11216_v60, 1.0 }
  0x1d   :  { %9314 = vmatpush3.bf16.msra.mxu1 %v10281_v28  ;;  %v208_v7 = vshrl.u32 %v176_v1, 16  ;;  %v211_v8 = vshll.u32 %v176_v1, 16  ;;  %v143_v23 = vsel %vm140_vm4, %v141_v3, %v142_v17  ;;  %v10289_v28 = vld [vmem:[%s13619_s1 + $0x180] sm:$0xff]   ;;  %vm86_vm10 = vcmp.gt.f32.partialorder %v11229_v63, 1.0  ;;  %v10310_v16 = vld [vmem:[%s13619_s1 + $0x170] sm:$0xff]  }
  0x1e   :  { %9315 = vmatprep.subr.bf16.mxu1 %v10284_v31  ;;  %v146_v13 = vsel %vm140_vm4, %v144_v55, %v145_v5  ;;  %v193_v26 = vrot.slane %v191_v20, 3  ;;  %v196_v27 = vrot.slane %v194_v21, 4  ;;  %v119_v55 = vld [vmem:[#allocation2 + $0x48] sm:$0xc0]  ;;  %v11237_v1 = vsel %vm84_vm9, 1.0, %v10909_v2  ;;  %vm10859_vm0 = vmpackc.low %vm86_vm10, %vm84_vm9 }
  0x1f   :  { %9288 = vmatpush3.bf16.msra.mxu0 %v10283_v30  ;;  %v210_v14 = vrot.slane %v208_v7, 3  ;;  %v213_v15 = vrot.slane %v211_v8, 4  ;;  %1099 = vmatprep.mubr.bf16.mxu0 %v146_v13  ;;  %v4343_v30 = vadd.f32 %v4335_v0, %v11099_v38  ;;  %v129_v0 = vpack.c.bf16 %v11206_v58, %v119_v55  ;;  %v118_v3 = vld [vmem:[#allocation2 + $0x40] sm:$0xc0]  ;;  %108 = vst [vmem:[#allocation2 + $0x50] sm:$0xff] %v11237_v1  ;;  %v10313_v55 = vld [vmem:[%s13619_s1 + $0x1b0] sm:$0xff]  }
  0x20   :  { %9329 = vmatprep.subr.bf16.mxu0 %v10286_v46  ;;  %v197_v31 = vor.u32 %v196_v27, %v193_v26  ;;  %v10298_v46 = vld [vmem:[%s13619_s1 + $0x158] sm:$0xff]   ;;  %v11245_v5 = vsel %vm86_vm10, 1.0, %v10909_v2  ;;  %v10305_v7 = vld [vmem:[%s13619_s1 + $0x1a0] sm:$0xff]   ;;  %v178_v8 = vpack.c.bf16 %v11206_v58, %v168_v6  ;;  %v128_v10 = vpack.c.bf16 %v11237_v1, %v118_v3 }
  0x21   :  { %9316 = vmatpush3.bf16.msra.mxu1 %v10285_v37  ;;  %v214_v19 = vor.u32 %v213_v15, %v210_v14  ;;  %v10292_v37 = vld [vmem:[%s13619_s1 + $0x1c8] sm:$0xff]   ;;  %v11162_v45 = vsub.f32 %v4343_v30, %v11156_v42  ;;  %110 = vst [vmem:[#allocation2 + $0x60] sm:$0xff] %v11245_v5  ;;  %v167_v9 = vld [vmem:[#allocation2 + $0x40] sm:$0x80]  ;;  %v150_v13 = vrot.slane %v129_v0, 3  ;;  %vm1332_vm10 = vcmask 261120  }
  0x22   :  { %9357 = vmatprep.subr.bf16.mxu1 %v10288_v51  ;;  %1100 = vmatmul.mubr.bf16.vlgmr.msra.gmra.mrb[0].mxu0 %v143_v23  ;;  %v198_v40 = vsel %vm181_vm5, %v189_v25, %v197_v31  ;;  %v11180_v51 = vmul.f32 0.9, %v11074_v32  ;;  %v177_v12 = vpack.c.bf16 %v11237_v1, %v167_v9  ;;  %v234_v14 = vshrl.u32 %v178_v8, 16  ;;  %v123_v20 = vld [vmem:[#allocation2 + $0x68] sm:$0x3f] }
  0x23   :  { %v215_v24 = vsel %vm181_vm5, %v206_v11, %v214_v19  ;;  %9330 = vmatpush3.bf16.msra.mxu0 %v10287_v18  ;;  %v10308_v11 = vld [vmem:[%s13619_s1 + $0x1e8] sm:$0xff]   ;;  %v237_v15 = vshll.u32 %v178_v8, 16  ;;  %v10311_v19 = vld [vmem:[%s13619_s1 + $0x130] sm:$0xff]   ;;  %v131_v25 = vpack.c.bf16 %v123_v20, %v123_v20  ;;  %v147_v26 = vrot.slane %v128_v10, 3  ;;  %v275_v8 = vld [vmem:[#allocation2 + $0x18] sm:$0xfe] }
  0x24   :  { %1148 = vmatprep.mubr.bf16.mxu1 %v215_v24  ;;  %9331 = vmatprep.subr.bf16.mxu0 %v10290_v22  ;;  %v217_v17 = vshrl.u32 %v177_v12, 16  ;;  %v220_v18 = vshll.u32 %v177_v12, 16  ;;  %v172_v21 = vld [vmem:[#allocation2 + $0x68] sm:$0x7f]  ;;  %v236_v22 = vrot.slane %v234_v14, 3  ;;  %v10317_v14 = vld [vmem:[%s13619_s1 + $0x1b8] sm:$0xff]  }
  0x25   :  { %1149 = vmatmul.mubr.bf16.vlgmr.msra.gmra.mrb[0].mxu1 %v198_v40  ;;  %v239_v23 = vrot.slane %v237_v15, 4  ;;  %v10309_v24 = vld [vmem:[%s13619_s1 + $0x1a8] sm:$0xff]   ;;  %v180_v27 = vpack.c.bf16 %v172_v21, %v172_v21  ;;  %v151_v31 = vrot.slane %v131_v25, 3  ;;  %v279_v12 = vld [vmem:[#allocation2 + $0x38] sm:$0x1]  ;;  %v2207_v25 = vadd.f32 %v11180_v51, %v11074_v32 }
  0x26   :  { %9358 = vmatpush3.bf16.msra.mxu1 %v10289_v28  ;;  %v10312_v28 = vld [vmem:[%s13619_s1 + $0x1f0] sm:$0xff]   ;;  %v222_v30 = vrot.slane %v220_v18, 4  ;;  %v289_v15 = vpack.c.bf16 %v279_v12, %v279_v12  ;;  %v281_v51 = vld [vmem:[#allocation2 + $0x58] sm:$0xfe] }
  0x27   :  { %9332 = vmatpush3.bf16.msra.mxu0 %v10291_v29  ;;  %9359 = vmatprep.subr.bf16.mxu1 %v10292_v37  ;;  %v219_v29 = vrot.slane %v217_v17, 3  ;;  %v242_v37 = vshrl.u32 %v180_v27, 16  ;;  %v245_v40 = vshll.u32 %v180_v27, 16  ;;  %v278_v20 = vld [vmem:[#allocation2 + $0x30] sm:$0x1] }
  0x28   :  { %9333 = vmatprep.subr.bf16.mxu0 %v10294_v34  ;;  %v122_v34 = vld [vmem:[#allocation2 + $0x60] sm:$0x3f]  ;;  %v10323_v12 = vld [vmem:[%s13619_s1 + $0x210] sm:$0xff]  }
  0x29   :  { %v223_v6 = vor.u32 %v222_v30, %v219_v29 }
  0x2a   :  { %9360 = vmatpush3.bf16.msra.mxu1 %v10293_v41  ;;  %v10314_v41 = vld [vmem:[%s13619_s1 + $0x178] sm:$0xff]  }
  0x2b   :  { %9334 = vmatpush3.bf16.msra.mxu0 %v10295_v44  ;;  %9361 = vmatprep.subr.bf16.mxu1 %v10296_v47  ;;  %v130_v44 = vpack.c.bf16 %v122_v34, %v122_v34  ;;  %v171_v47 = vld [vmem:[#allocation2 + $0x60] sm:$0x7f] }
  0x2c   :  { %9335 = vmatprep.subr.bf16.mxu0 %v10298_v46  ;;  %v240_v46 = vor.u32 %v239_v23, %v236_v22  ;;  %v10910_v22 = vmov 1.0|1.0   ;;  %v315_v23 = vshll.u32 %v289_v15, 16  ;;  %v10324_v15 = vld [vmem:[%s13619_s1 + $0x258] sm:$0xff]  }
  0x2e   :  { %9362 = vmatpush3.bf16.msra.mxu1 %v10297_v48  ;;  %v152_v48 = vsel %vm140_vm4, %v150_v13, %v151_v31  ;;  %v287_v13 = vpack.c.bf16 %v11091_v36, %v275_v8  ;;  %v317_v31 = vrot.slane %v315_v23, 1  ;;  %v352_v23 = vld [vmem:[#allocation2 + $0x18] sm:$0xfc] }
  0x2f   :  { %9336 = vmatpush3.bf16.msra.mxu0 %v10299_v49  ;;  %9363 = vmatprep.subr.bf16.mxu1 %v10300_v50  ;;  %v244_v49 = vrot.slane %v242_v37, 3  ;;  %v247_v50 = vrot.slane %v245_v40, 4 }
  0x30   :  { %9337 = vmatprep.subr.bf16.mxu0 %v10302_v52  ;;  %v179_v52 = vpack.c.bf16 %v171_v47, %v171_v47  ;;  %1107 = vmatprep.mubr.bf16.mxu0 %v152_v48  ;;  %v308_v18 = vshrl.u32 %v287_v13, 16  ;;  %v291_v47 = vpack.c.bf16 %v11211_v59, %v281_v51 }
  0x32   :  { %9364 = vmatpush3.bf16.msra.mxu1 %v10301_v56  ;;  %v10315_v56 = vld [vmem:[%s13619_s1 + $0x138] sm:$0xff]   ;;  %v225_v0 = vshrl.u32 %v179_v52, 16  ;;  %v228_v3 = vshll.u32 %v179_v52, 16  ;;  %v280_v52 = vld [vmem:[#allocation2 + $0x50] sm:$0xfe] }
  0x33   :  { %9338 = vmatpush3.bf16.msra.mxu0 %v10303_v57  ;;  %9365 = vmatprep.subr.bf16.mxu1 %v10304_v61  ;;  %v148_v57 = vrot.slane %v130_v44, 3  ;;  %v10316_v61 = vld [vmem:[%s13619_s1 + $0x1f8] sm:$0xff]  }
  0x34   :  { %9339 = vmatprep.subr.bf16.mxu0 %v10306_v62  ;;  %v248_v62 = vor.u32 %v247_v50, %v244_v49  ;;  %v227_v10 = vrot.slane %v225_v0, 3  ;;  %v285_v44 = vld [vmem:[#allocation2 + $0x78] sm:$0x1]  ;;  %v290_v0 = vpack.c.bf16 %v11245_v5, %v280_v52  ;;  %v358_v52 = vld [vmem:[#allocation2 + $0x58] sm:$0xfc] }
  0x35   :  { %v293_v48 = vpack.c.bf16 %v285_v44, %v285_v44 }
  0x36   :  { %9366 = vmatpush3.bf16.msra.mxu1 %v10305_v7  ;;  %v10318_v7 = vld [vmem:[%s13619_s1 + $0x240] sm:$0xff]   ;;  %v249_v9 = vsel %vm181_vm5, %v240_v46, %v248_v62  ;;  %v334_v62 = vshll.u32 %v291_v47, 16  ;;  %v320_v8 = vshrl.u32 %v290_v0, 16 }
  0x37   :  { %9340 = vmatpush3.bf16.msra.mxu0 %v10307_v4  ;;  %9367 = vmatprep.subr.bf16.mxu1 %v10308_v11  ;;  %v149_v4 = vsel %vm140_vm4, %v147_v26, %v148_v57  ;;  %v230_v11 = vrot.slane %v228_v3, 4  ;;  %v10321_v57 = vld [vmem:[%s13619_s1 + $0x208] sm:$0xff]   ;;  %v339_v38 = vshll.u32 %v293_v48, 16 }
  0x38   :  { %9341 = vmatprep.subr.bf16.mxu0 %v10310_v16  ;;  %1108 = vmatmul.mubr.bf16.gmra.mrb[4].mxu0 %v149_v4  ;;  %v274_v16 = vld [vmem:[#allocation2 + $0x10] sm:$0xfe] }
  0x39   :  { %1156 = vmatprep.mubr.bf16.mxu1 %v249_v9  ;;  %v231_v17 = vor.u32 %v230_v11, %v227_v10  ;;  %v286_v21 = vpack.c.bf16 %v11118_v43, %v274_v16  ;;  %10854 = vmatprep.mubr.msk.bf16.mxu0 %vm10853_vm12, %v10910_v22  ;;  %v322_v9 = vshll.u32 %v290_v0, 16 }
  0x3a   :  { %9368 = vmatpush3.bf16.msra.mxu1 %v10309_v24  ;;  %v288_v24 = vpack.c.bf16 %v278_v20, %v278_v20 }
  0x3b   :  { %9342 = vmatpush3.bf16.msra.mxu0 %v10311_v19  ;;  %9369 = vmatprep.subr.bf16.mxu1 %v10312_v28  ;;  %v310_v19 = vshll.u32 %v287_v13, 16  ;;  %v232_v26 = vsel %vm181_vm5, %v223_v6, %v231_v17  ;;  %v10319_v28 = vld [vmem:[%s13619_s1 + $0x200] sm:$0xff]   ;;  %v296_v29 = vshrl.u32 %v286_v21, 16  ;;  %v298_v30 = vshll.u32 %v286_v21, 16 }
  0x3c   :  { %9343 = vmatprep.subr.bf16.mxu0 %v10314_v41  ;;  %1157 = vmatmul.mubr.bf16.gmra.mrb[4].mxu1 %v232_v26  ;;  %v303_v34 = vshll.u32 %v288_v24, 16  ;;  %v10320_v41 = vld [vmem:[%s13619_s1 + $0x248] sm:$0xff]   ;;  %v336_v6 = vrot.slane %v334_v62, 1  ;;  %v324_v13 = vrot.slane %v322_v9, 1  ;;  %v10326_v21 = vld [vmem:[%s13619_s1 + $0x260] sm:$0xff]  }
  0x3d   :  { %v312_v27 = vrot.slane %v310_v19, 1  ;;  %v300_v40 = vrot.slane %v298_v30, 1  ;;  %v356_v24 = vld [vmem:[#allocation2 + $0x38] sm:$0x3]  ;;  %v10328_v30 = vld [vmem:[%s13619_s1 + $0x268] sm:$0xff]  }
  0x3e   :  { %9370 = vmatpush3.bf16.msra.mxu1 %v10313_v55  ;;  %v305_v46 = vrot.slane %v303_v34, 1  ;;  %v284_v55 = vld [vmem:[#allocation2 + $0x70] sm:$0x1]  ;;  %v325_v17 = vor.u32 %v324_v13, %v320_v8  ;;  %v357_v13 = vld [vmem:[#allocation2 + $0x50] sm:$0xfc] }
  0x3f   :  { %9344 = vmatpush3.bf16.msra.mxu0 %v10315_v56  ;;  %9371 = vmatprep.subr.bf16.mxu1 %v10316_v61  ;;  %v313_v37 = vor.u32 %v312_v27, %v308_v18  ;;  %v301_v50 = vor.u32 %v300_v40, %v296_v29  ;;  %v2215_v56 = vsub.f32 %v2207_v25, %v11086_v35  ;;  %v332_v61 = vshrl.u32 %v291_v47, 16  ;;  %v10322_v35 = vld [vmem:[%s13619_s1 + $0x250] sm:$0xff]   ;;  %v10325_v18 = vld [vmem:[%s13619_s1 + $0x218] sm:$0xff]   ;;  %v10329_v47 = vld [vmem:[%s13619_s1 + $0x228] sm:$0xff]  }
  0x40   :  { %9385 = vmatprep.subr.bf16.mxu0 %v10318_v7  ;;  %v292_v4 = vpack.c.bf16 %v284_v55, %v284_v55  ;;  %v341_v7 = vrot.slane %v339_v38, 1  ;;  %v2201_v25 = vmul.f32 0.9, %v11079_v33  ;;  %v366_v27 = vpack.c.bf16 %v356_v24, %v356_v24  ;;  %v355_v40 = vld [vmem:[#allocation2 + $0x30] sm:$0x3] }
  0x41   :  { %v318_v49 = vsel %vm294_vm11, %v313_v37, %v317_v31  ;;  %v306_v3 = vsel %vm294_vm11, %v301_v50, %v305_v46  ;;  %vm2223_vm15 = vcmp.gt.f32.partialorder %v2215_v56, 1.0  ;;  %v337_v11 = vor.u32 %v336_v6, %v332_v61  ;;  %v10331_v55 = vld [vmem:[%s13619_s1 + $0x230] sm:$0xff]   ;;  %v362_v61 = vld [vmem:[#allocation2 + $0x78] sm:$0x3] }
  0x42   :  { %9372 = vmatpush3.bf16.msra.mxu1 %v10317_v14  ;;  %10856 = vmatmul.mubr.msk.bf16.vlgmr.msra.gmra.mrb[8].mxu0 %vm10855_vm13, %v10910_v22  ;;  %v327_v10 = vshll.u32 %v292_v4, 16  ;;  %v8794_v19 = vsel %vm2223_vm15, 1.0, %v10909_v2  ;;  %v4336_v26 = vmul.f32 0.9, %v2215_v56  ;;  %v10327_v2 = vld [vmem:[%s13619_s1 + $0x220] sm:$0xff]   ;;  %v2209_v34 = vadd.f32 %v2201_v25, %v11079_v33  ;;  %v11373_v56 = vld [vmem:[#allocation2 + $0x8] sm:$0xff] }
  0x43   :  { %1246 = vmatprep.mubr.bf16.mxu1 %v318_v49  ;;  %9386 = vmatpush3.bf16.msra.mxu0 %v10319_v28  ;;  %v342_v16 = vsel %vm294_vm11, %v337_v11, %v341_v7  ;;  %2247 = vst [vmem:[#allocation2 + $0x18] sm:$0xff] %v8794_v19  ;;  %v351_v28 = vld [vmem:[#allocation2 + $0x10] sm:$0xfc]  ;;  %v2200_v29 = vmul.f32 0.9, %v11106_v39  ;;  %v368_v4 = vpack.c.bf16 %v11211_v59, %v358_v52  ;;  %v10333_v11 = vld [vmem:[%s13619_s1 + $0x238] sm:$0xff]  }
  0x44   :  { %9387 = vmatprep.subr.bf16.mxu0 %v10320_v41  ;;  %10858 = vmatprep.mubr.msk.bf16.mxu0 %vm10857_vm14, %v10910_v22  ;;  %v329_v14 = vrot.slane %v327_v10, 1  ;;  %v4344_v37 = vadd.f32 %v4336_v26, %v11074_v32  ;;  %2246 = vst [vmem:[#allocation2 + $0x10] sm:$0xff] %v11156_v42  ;;  %v384_v41 = vrot.slane %v366_v27, 1  ;;  %v2217_v44 = vsub.f32 %v2209_v34, %v11091_v36  ;;  %v10330_v42 = vld [vmem:[%s13619_s1 + $0x270] sm:$0xff]   ;;  %v8641_v52 = vld [vmem:[%s13620_s2] ss:$0 sm:$0xff] }
  0x45   :  { %1247 = vmatmul.mubr.bf16.vlgmr.msra.gmra.mrb[8].mxu1 %v306_v3  ;;  %v2208_v51 = vadd.f32 %v2200_v29, %v11106_v39  ;;  %v363_v49 = vpack.c.bf16 %v11118_v43, %v351_v28  ;;  %v365_v32 = vpack.c.bf16 %v355_v40, %v355_v40  ;;  %v2203_v6 = vmul.f32 0.9, %v11188_v53 }
  0x46   :  { %1254 = vmatprep.mubr.bf16.mxu1 %v342_v16  ;;  %v330_v20 = vsel %vm294_vm11, %v325_v17, %v329_v14  ;;  %v11359_v46 = vsub.f32 %v4344_v37, %v8794_v19  ;;  %vm2225_vm2 = vcmp.gt.f32.partialorder %v2217_v44, 1.0  ;;  %v370_v9 = vpack.c.bf16 %v362_v61, %v362_v61  ;;  %v361_v16 = vld [vmem:[#allocation2 + $0x70] sm:$0x3] }
  0x47   :  { %9388 = vmatpush3.bf16.msra.mxu0 %v10321_v57  ;;  %v2216_v50 = vsub.f32 %v2208_v51, %v11118_v43  ;;  %v8796_v57 = vsel %vm2225_vm2, 1.0, %v11373_v56  ;;  %v10332_v43 = vld [vmem:[%s13619_s1 + $0x278] sm:$0xff]   ;;  %v380_v3 = vrot.slane %v363_v49, 1  ;;  %v2205_v10 = vmul.f32 0.9, %v11193_v54 }
  0x48   :  { %9389 = vmatprep.subr.bf16.mxu0 %v10322_v35  ;;  %2249 = vst [vmem:[#allocation2 + $0x28] sm:$0xff] %v8796_v57  ;;  %v381_v35 = vrot.slane %v365_v32, 1  ;;  %v389_v17 = vrot.slane %v368_v4, 1  ;;  %v2202_v19 = vmul.f32 0.9, %v11216_v60  ;;  %v369_v25 = vpack.c.bf16 %v361_v16, %v361_v16 }
  0x49   :  { %vm2224_vm3 = vcmp.gt.f32.partialorder %v2216_v50, 1.0  ;;  %v4337_v0 = vmul.f32 0.9, %v2216_v50  ;;  %v2213_v14 = vadd.f32 %v2205_v10, %v11193_v54 }
  0x4a   :  { %10860 = vmatmul.mubr.msk.bf16.gmra.mrb[12].mxu0 %vm10859_vm0, %v10910_v22  ;;  %v364_v22 = vpack.c.bf16 %v11091_v36, %v352_v23  ;;  %v4338_v36 = vmul.f32 0.9, %v2217_v44  ;;  %v8795_v38 = vsel %vm2224_vm3, 1.0, %v11373_v56  ;;  %v2204_v23 = vmul.f32 0.9, %v11229_v63 }
  0x4b   :  { %9390 = vmatpush3.bf16.msra.mxu0 %v10323_v12  ;;  %2248 = vst [vmem:[#allocation2 + $0x20] sm:$0xff] %v8795_v38  ;;  %v4345_v8 = vadd.f32 %v4337_v0, %v11106_v39  ;;  %v382_v39 = vsel %vm379_vm1, %v380_v3, %v381_v35  ;;  %v387_v44 = vrot.slane %v369_v25, 1 }
  0x4c   :  { %9391 = vmatprep.subr.bf16.mxu0 %v10324_v15  ;;  %v383_v31 = vrot.slane %v364_v22, 1  ;;  %v4346_v62 = vadd.f32 %v4338_v36, %v11079_v33  ;;  %v2211_v33 = vadd.f32 %v2203_v6, %v11188_v53  ;;  %v367_v22 = vpack.c.bf16 %v11245_v5, %v357_v13 }
  0x4d   :  { %1255 = vmatmul.mubr.bf16.gmra.mrb[12].mxu1 %v330_v20  ;;  %v11391_v12 = vsub.f32 %v4345_v8, %v8795_v38  ;;  %v2221_v20 = vsub.f32 %v2213_v14, %v11211_v59  ;;  %v2212_v27 = vadd.f32 %v2204_v23, %v11229_v63 }
  0x4e   :  { %v385_v48 = vsel %vm379_vm1, %v383_v31, %v384_v41  ;;  %v11383_v7 = vsub.f32 %v4346_v62, %v8796_v57  ;;  %v2219_v15 = vsub.f32 %v2211_v33, %v11206_v58  ;;  %v2210_v58 = vadd.f32 %v2202_v19, %v11216_v60 }
  0x4f   :  { %9392 = vmatpush3.bf16.msra.mxu0 %v10325_v18  ;;  %1295 = vmatprep.mubr.bf16.mxu0 %v385_v48  ;;  %v390_v18 = vrot.slane %v370_v9, 1  ;;  %vm2229_vm7 = vcmp.gt.f32.partialorder %v2221_v20, 1.0  ;;  %v4342_v26 = vmul.f32 0.9, %v2221_v20  ;;  %v2220_v34 = vsub.f32 %v2212_v27, %v11245_v5 }
  0x50   :  { %9393 = vmatprep.subr.bf16.mxu0 %v10326_v21  ;;  %vm2227_vm6 = vcmp.gt.f32.partialorder %v2219_v15, 1.0  ;;  %v4340_v21 = vmul.f32 0.9, %v2219_v15  ;;  %v8800_v28 = vsel %vm2229_vm7, 1.0, %v11373_v56  ;;  %v2218_v29 = vsub.f32 %v2210_v58, %v11237_v1 }
  0x51   :  { %v8798_v24 = vsel %vm2227_vm6, 1.0, %v11373_v56  ;;  %v391_v59 = vsel %vm379_vm1, %v389_v17, %v390_v18  ;;  %2253 = vst [vmem:[#allocation2 + $0x68] sm:$0xff] %v8800_v28  ;;  %v386_v37 = vrot.slane %v367_v22, 1  ;;  %vm2228_vm9 = vcmp.gt.f32.partialorder %v2220_v34, 1.0 }
  0x52   :  { %2251 = vst [vmem:[#allocation2 + $0x58] sm:$0xff] %v8798_v24  ;;  %vm2226_vm8 = vcmp.gt.f32.partialorder %v2218_v29, 1.0  ;;  %v4339_v40 = vmul.f32 0.9, %v2218_v29 }
  0x53   :  { %9394 = vmatpush3.bf16.msra.mxu0 %v10327_v2  ;;  %v4348_v2 = vadd.f32 %v4340_v21, %v11188_v53  ;;  %v8797_v1 = vsel %vm2226_vm8, 1.0, %v11373_v56  ;;  %v388_v32 = vsel %vm379_vm1, %v386_v37, %v387_v44 }
  0x54   :  { %9395 = vmatprep.subr.bf16.mxu0 %v10328_v30  ;;  %v4350_v30 = vadd.f32 %v4342_v26, %v11193_v54  ;;  %v4341_v54 = vmul.f32 0.9, %v2220_v34  ;;  %2250 = vst [vmem:[#allocation2 + $0x50] sm:$0xff] %v8797_v1  ;;  %v4347_v5 = vadd.f32 %v4339_v40, %v11216_v60 }
  0x55   :  { %v11408_v31 = vsub.f32 %v4348_v2, %v8798_v24 }
  0x56   :  { %v11411_v41 = vsub.f32 %v4350_v30, %v8800_v28  ;;  %v4349_v49 = vadd.f32 %v4341_v54, %v11229_v63  ;;  %v11422_v50 = vsub.f32 %v4347_v5, %v8797_v1 }
  0x57   :  { %9396 = vmatpush3.bf16.msra.mxu0 %v10329_v47  ;;  %v6477_v51 = vmul.f32 0.9, %v11408_v31  ;;  %v8799_v47 = vsel %vm2228_vm9, 1.0, %v11373_v56 }
  0x58   :  { %9397 = vmatprep.subr.bf16.mxu0 %v10330_v42  ;;  %2252 = vst [vmem:[#allocation2 + $0x60] sm:$0xff] %v8799_v47  ;;  %v11424_v42 = vsub.f32 %v4349_v49, %v8799_v47 }
  0x59   :  { %v11417_v48 = vadd.f32 %v6477_v51, %v11188_v53 }
  0x5b   :  { %9398 = vmatpush3.bf16.msra.mxu0 %v10331_v55 }
  0x5c   :  { %9399 = vmatprep.subr.bf16.mxu0 %v10332_v43 }
  0x5f   :  { %9400 = vmatpush3.bf16.msra.mxu0 %v10333_v11 }
  0x62   :  { %1296 = vmatmul.mubr.bf16.vlgmr.msra.gmra.mrb[16].mxu0 %v382_v39 }
  0x63   :  { %1303 = vmatprep.mubr.bf16.mxu0 %v391_v59 }
  0x6a   :  { %1304 = vmatmul.mubr.bf16.gmra.mrb[20].mxu0 %v388_v32 }
  0xf5   :  { %v9289_v36 = vpop.f32.mrb[0].mxu0 }
  0xf6   :  { %v9290_v53 = vpop.f32.mrb[1].mxu0 }
  0xf7   :  { %v9291_v55 = vadd.f32 %v9290_v53, %v9289_v36  ;;  %v9292_v56 = vpop.f32.mrb[2].mxu0 }
  0xf8   :  { %v9293_v57 = vpop.f32.mrb[3].mxu0  ;;  %v9317_v43 = vpop.f32.mrb[0].mxu1 }
  0xf9   :  { %v9294_v61 = vadd.f32 %v9293_v57, %v9292_v56  ;;  %v1102_v60 = vadd.f32 %v9291_v55, %v8641_v52  ;;  %v9318_v63 = vpop.f32.mrb[1].mxu1 }
  0xfa   :  { %v9319_v38 = vadd.f32 %v9318_v63, %v9317_v43  ;;  %v9320_v0 = vpop.f32.mrb[2].mxu1 }
  0xfb   :  { %v1105_v62 = vadd.f32 %v9294_v61, %v8641_v52  ;;  %v9321_v3 = vpop.f32.mrb[3].mxu1 }
  0xfc   :  { %v1151_v35 = vadd.f32 %v9319_v38, %v1102_v60  ;;  %v9322_v4 = vadd.f32 %v9321_v3, %v9320_v0 }
  0xfe   :  { %v1154_v6 = vadd.f32 %v9322_v4, %v1105_v62 }
 0x10b   :  { %v9295_v8 = vpop.f32.mrb[4].mxu0 }
 0x10c   :  { %v9296_v9 = vpop.f32.mrb[5].mxu0 }
 0x10d   :  { %v9297_v10 = vadd.f32 %v9296_v9, %v9295_v8  ;;  %v9298_v33 = vpop.f32.mrb[6].mxu0 }
 0x10e   :  { %v9299_v11 = vpop.f32.mrb[7].mxu0 }
 0x10f   :  { %v9300_v13 = vadd.f32 %v9299_v11, %v9298_v33  ;;  %v1110_v14 = vadd.f32 %v9297_v10, %v8641_v52  ;;  %v9323_v15 = vpop.f32.mrb[4].mxu1  ;;  %v10334_v33 = vld [vmem:[%s13621_s3 + $0x40] sm:$0xff]  }
 0x110   :  { %v9324_v16 = vpop.f32.mrb[5].mxu1  ;;  %v10335_v11 = vld [vmem:[%s13621_s3 + $0xc0] sm:$0xff]   ;;  %9413 = vmatprep.subr.bf16.mxu1 %v10334_v33 }
 0x111   :  { %v1113_v39 = vadd.f32 %v9300_v13, %v8641_v52  ;;  %v9325_v17 = vadd.f32 %v9324_v16, %v9323_v15  ;;  %v9326_v18 = vpop.f32.mrb[6].mxu1  ;;  %v10336_v15 = vld [vmem:[%s13621_s3] sm:$0xff]   ;;  %9435 = vmatprep.subr.bf16.mxu0 %v10335_v11 }
 0x112   :  { %v9327_v19 = vpop.f32.mrb[7].mxu1  ;;  %v10337_v16 = vld [vmem:[%s13621_s3 + $0x80] sm:$0xff]   ;;  %9414 = vmatpush3.bf16.msra.mxu1 %v10336_v15 }
 0x113   :  { %v1159_v21 = vadd.f32 %v9325_v17, %v1110_v14  ;;  %v9328_v23 = vadd.f32 %v9327_v19, %v9326_v18  ;;  %9436 = vmatpush3.bf16.msra.mxu0 %v10337_v16  ;;  %v10338_v19 = vld [vmem:[%s13621_s3 + $0x48] sm:$0xff]  }
 0x114   :  { %9415 = vmatprep.subr.bf16.mxu1 %v10338_v19 }
 0x115   :  { %v9345_v20 = vpop.f32.mrb[8].mxu0  ;;  %v1162_v58 = vadd.f32 %v9328_v23, %v1113_v39  ;;  %v10340_v23 = vld [vmem:[%s13621_s3 + $0x8] sm:$0xff]  }
 0x116   :  { %v9346_v24 = vpop.f32.mrb[9].mxu0  ;;  %9416 = vmatpush3.bf16.msra.mxu1 %v10340_v23 }
 0x117   :  { %v9347_v22 = vadd.f32 %v9346_v24, %v9345_v20  ;;  %v9348_v25 = vpop.f32.mrb[10].mxu0  ;;  %v10339_v20 = vld [vmem:[%s13621_s3 + $0xc8] sm:$0xff]  }
 0x118   :  { %v9349_v26 = vpop.f32.mrb[11].mxu0  ;;  %v9373_v59 = vpop.f32.mrb[8].mxu1  ;;  %v10341_v24 = vld [vmem:[%s13621_s3 + $0x88] sm:$0xff]   ;;  %9437 = vmatprep.subr.bf16.mxu0 %v10339_v20 }
 0x119   :  { %v1200_v2 = vadd.f32 %v9347_v22, %v1151_v35  ;;  %v9350_v27 = vadd.f32 %v9349_v26, %v9348_v25  ;;  %v9374_v29 = vpop.f32.mrb[9].mxu1  ;;  %9438 = vmatpush3.bf16.msra.mxu0 %v10341_v24  ;;  %v10342_v22 = vld [vmem:[%s13621_s3 + $0x50] sm:$0xff]  }
 0x11a   :  { %v9375_v30 = vadd.f32 %v9374_v29, %v9373_v59  ;;  %v9376_v34 = vpop.f32.mrb[10].mxu1  ;;  %v10343_v25 = vld [vmem:[%s13621_s3 + $0xd0] sm:$0xff]   ;;  %9417 = vmatprep.subr.bf16.mxu1 %v10342_v22  ;;  %v10348_v59 = vld [vmem:[%s13621_s3 + $0x18] sm:$0xff]   ;;  %v10350_v29 = vld [vmem:[%s13621_s3 + $0x60] sm:$0xff]  }
 0x11b   :  { %v1203_v28 = vadd.f32 %v9350_v27, %v1154_v6  ;;  %v9377_v37 = vpop.f32.mrb[11].mxu1  ;;  %v10345_v26 = vld [vmem:[%s13621_s3 + $0x90] sm:$0xff]   ;;  %9439 = vmatprep.subr.bf16.mxu0 %v10343_v25  ;;  %v10347_v27 = vld [vmem:[%s13621_s3 + $0xd8] sm:$0xff]  }
 0x11c   :  { %v1249_v51 = vadd.f32 %v9375_v30, %v1200_v2  ;;  %v9378_v44 = vadd.f32 %v9377_v37, %v9376_v34  ;;  %v10346_v2 = vld [vmem:[%s13621_s3 + $0x58] sm:$0xff]   ;;  %v10351_v30 = vld [vmem:[%s13621_s3 + $0xe0] sm:$0xff]  }
 0x11d   :  { %v9351_v40 = vpop.f32.mrb[12].mxu0  ;;  %9440 = vmatpush3.bf16.msra.mxu0 %v10345_v26  ;;  %v10352_v34 = vld [vmem:[%s13621_s3 + $0x20] sm:$0xff]  }
 0x11e   :  { %v9352_v1 = vpop.f32.mrb[13].mxu0  ;;  %v1252_v5 = vadd.f32 %v9378_v44, %v1203_v28  ;;  %v10349_v28 = vld [vmem:[%s13621_s3 + $0x98] sm:$0xff]   ;;  %9441 = vmatprep.subr.bf16.mxu0 %v10347_v27  ;;  %v10353_v37 = vld [vmem:[%s13621_s3 + $0xa0] sm:$0xff]   ;;  %v10356_v44 = vld [vmem:[%s13621_s3 + $0x28] sm:$0xff]  }
 0x11f   :  { %v9353_v47 = vadd.f32 %v9352_v1, %v9351_v40  ;;  %v9354_v54 = vpop.f32.mrb[14].mxu0  ;;  %v10354_v40 = vld [vmem:[%s13621_s3 + $0x68] sm:$0xff]  }
 0x120   :  { %v9355_v49 = vpop.f32.mrb[15].mxu0  ;;  %v9379_v52 = vpop.f32.mrb[12].mxu1  ;;  %v10357_v1 = vld [vmem:[%s13621_s3 + $0xa8] sm:$0xff]  }
 0x121   :  { %v1208_v32 = vadd.f32 %v9353_v47, %v1159_v21  ;;  %v9356_v36 = vadd.f32 %v9355_v49, %v9354_v54  ;;  %v9380_v55 = vpop.f32.mrb[13].mxu1  ;;  %9442 = vmatpush3.bf16.msra.mxu0 %v10349_v28  ;;  %v10358_v47 = vld [vmem:[%s13621_s3 + $0x70] sm:$0xff]  }
 0x122   :  { %v9381_v56 = vadd.f32 %v9380_v55, %v9379_v52  ;;  %v9382_v57 = vpop.f32.mrb[14].mxu1  ;;  %9443 = vmatprep.subr.bf16.mxu0 %v10351_v30  ;;  %v10359_v54 = vld [vmem:[%s13621_s3 + $0xf0] sm:$0xff]   ;;  %v10364_v52 = vld [vmem:[%s13621_s3 + $0x38] sm:$0xff]   ;;  %v10370_v55 = vld [vmem:[%s13621_s3 + $0x140] sm:$0xff]  }
 0x123   :  { %v1211_v53 = vadd.f32 %v9356_v36, %v1162_v58  ;;  %v9383_v61 = vpop.f32.mrb[15].mxu1  ;;  %v10344_v58 = vld [vmem:[%s13621_s3 + $0x10] sm:$0xff]   ;;  %v10363_v36 = vld [vmem:[%s13621_s3 + $0xf8] sm:$0xff]  }
 0x124   :  { %v1257_v60 = vadd.f32 %v9381_v56, %v1208_v32  ;;  %v9384_v43 = vadd.f32 %v9383_v61, %v9382_v57  ;;  %9418 = vmatpush3.bf16.msra.mxu1 %v10344_v58  ;;  %v10361_v49 = vld [vmem:[%s13621_s3 + $0xb0] sm:$0xff]   ;;  %v10362_v32 = vld [vmem:[%s13621_s3 + $0x78] sm:$0xff]   ;;  %v11544_v56 = vld [vmem:[#allocation2 + $0x8] sm:$0xff] }
 0x125   :  { %9419 = vmatprep.subr.bf16.mxu1 %v10346_v2  ;;  %9444 = vmatpush3.bf16.msra.mxu0 %v10353_v37 }
 0x126   :  { %v1260_v63 = vadd.f32 %v9384_v43, %v1211_v53  ;;  %v10365_v53 = vld [vmem:[%s13621_s3 + $0xb8] sm:$0xff]  }
 0x128   :  { %9420 = vmatpush3.bf16.msra.mxu1 %v10348_v59 }
 0x129   :  { %9421 = vmatprep.subr.bf16.mxu1 %v10350_v29 }
 0x12c   :  { %9422 = vmatpush3.bf16.msra.mxu1 %v10352_v34 }
 0x12d   :  { %9423 = vmatprep.subr.bf16.mxu1 %v10354_v40 }
 0x130   :  { %9424 = vmatpush3.bf16.msra.mxu1 %v10356_v44 }
 0x131   :  { %9425 = vmatprep.subr.bf16.mxu1 %v10358_v47 }
 0x135   :  { %v9401_v62 = vpop.f32.mrb[16].mxu0 }
 0x136   :  { %v9402_v38 = vpop.f32.mrb[17].mxu0 }
 0x137   :  { %v9403_v0 = vadd.f32 %v9402_v38, %v9401_v62  ;;  %v9404_v3 = vpop.f32.mrb[18].mxu0 }
 0x138   :  { %v9405_v35 = vpop.f32.mrb[19].mxu0 }
 0x139   :  { %v9406_v4 = vadd.f32 %v9405_v35, %v9404_v3  ;;  %v11429_v6 = vadd.f32 %v9403_v0, %v1249_v51  ;;  %v10355_v51 = vld [vmem:[%s13621_s3 + $0xe8] sm:$0xff]  }
 0x13a   :  { %9445 = vmatprep.subr.bf16.mxu0 %v10355_v51 }
 0x13b   :  { %v11431_v8 = vadd.f32 %v9406_v4, %v1252_v5  ;;  %1316 = vrot.lane.b32.xlu0 %v11429_v6, %s10911_s29  ;;  %v10360_v5 = vld [vmem:[%s13621_s3 + $0x30] sm:$0xff]   ;;  %9446 = vmatpush3.bf16.msra.mxu0 %v10357_v1 }
 0x13c   :  { %9447 = vmatprep.subr.bf16.mxu0 %v10359_v54  ;;  %9426 = vmatpush3.bf16.msra.mxu1 %v10360_v5 }
 0x13d   :  { %v9407_v9 = vpop.f32.mrb[20].mxu0  ;;  %9427 = vmatprep.subr.bf16.mxu1 %v10362_v32 }
 0x13e   :  { %v9408_v10 = vpop.f32.mrb[21].mxu0 }
 0x13f   :  { %v9409_v13 = vadd.f32 %v9408_v10, %v9407_v9  ;;  %v9410_v14 = vpop.f32.mrb[22].mxu0  ;;  %1318 = vrot.lane.b32.xlu0 %v11431_v8, %s10911_s29  ;;  %9448 = vmatpush3.bf16.msra.mxu0 %v10361_v49 }
 0x140   :  { %v9411_v39 = vpop.f32.mrb[23].mxu0  ;;  %9449 = vmatprep.subr.bf16.mxu0 %v10363_v36  ;;  %9428 = vmatpush3.bf16.msra.mxu1 %v10364_v52 }
 0x141   :  { %v9412_v17 = vadd.f32 %v9411_v39, %v9410_v14  ;;  %v11449_v18 = vadd.f32 %v9409_v13, %v1257_v60  ;;  %9457 = vmatprep.subr.bf16.mxu1 %v10370_v55 }
 0x143   :  { %v11457_v21 = vadd.f32 %v9412_v17, %v1260_v63  ;;  %1320 = vrot.lane.b32.xlu1 %v11449_v18, %s10911_s29  ;;  %9450 = vmatpush3.bf16.msra.mxu0 %v10365_v53 }
 0x144   :  { %10141 = vmatprep.subr.bf16.mxu0 %v11544_v56 }
 0x147   :  { %1322 = vrot.lane.b32.xlu1 %v11457_v21, %s10911_s29 }
 0x1ad   :  { %v1317_v57 = vpop.permute.xlu0 %1316 }
 0x1ae   :  { %v1328_v61 = vmax.f32 %v11429_v6, %v1317_v57 }
 0x1b0   :  { %1333 = vst.msk [vmem:[#allocation6] sm:$0xff] %vm1332_vm10, %v1328_v61 }
 0x1b1   :  { %v1319_v60 = vpop.permute.xlu0 %1318 }
 0x1b2   :  { %v1329_v43 = vmax.f32 %v11431_v8, %v1319_v60 }
 0x1b4   :  { %1334 = vst.msk [vmem:[#allocation6 + $0x8] sm:$0xff] %vm1332_vm10, %v1329_v43 }
 0x1b5   :  { %v1321_v63 = vpop.permute.xlu1 %1320 }
 0x1b6   :  { %15 = vsyncpa [#allocation10], 0  ;;  %v1330_v62 = vmax.f32 %v11449_v18, %v1321_v63  ;;  %v10372_v1 = vld [vmem:[%s13621_s3 + $0x100] sm:$0xff]   ;;  %v10376_v53 = vld [vmem:[%s13621_s3 + $0x148] sm:$0xff]   ;;  %vm10912_vm14 = vmmov 0   ;;  %s10913_s17 = smov 112  }
 0x1b7   :  { %v10373_v47 = vld [vmem:[%s13621_s3 + $0x180] sm:$0xff]   ;;  %v10377_v57 = vld [vmem:[%s13621_s3 + $0x108] sm:$0xff]   ;;  %v10379_v60 = vld [vmem:[%s13621_s3 + $0x150] sm:$0xff]   ;;  %s10914_s18 = smov 120   ;;  %vm2138_vm15 = vcmask 1043456   ;;  %vm4360_vm0 = vcmp.gt.f32.partialorder %v11359_v46, 1.0 }
 0x1b8   :  { %1335 = vst.msk [vmem:[#allocation6 + $0x10] sm:$0xff] %vm1332_vm10, %v1330_v62  ;;  %v10378_v61 = vld [vmem:[%s13621_s3 + $0x188] sm:$0xff]   ;;  %v10380_v43 = vld [vmem:[%s13621_s3 + $0x110] sm:$0xff]   ;;  %v10382_v62 = vld [vmem:[%s13621_s3 + $0x158] sm:$0xff]   ;;  %vm4359_vm2 = vcmp.gt.f32.partialorder %v11162_v45, 1.0  ;;  %vm4364_vm3 = vcmp.gt.f32.partialorder %v11408_v31, 1.0 }
 0x1b9   :  { %v1323_v38 = vpop.permute.xlu1 %1322  ;;  %v10381_v63 = vld [vmem:[%s13621_s3 + $0x190] sm:$0xff]   ;;  %vm4363_vm6 = vcmp.gt.f32.partialorder %v11422_v50, 1.0  ;;  %vm4362_vm7 = vcmp.gt.f32.partialorder %v11383_v7, 1.0  ;;  %vm4361_vm8 = vcmp.gt.f32.partialorder %v11391_v12, 1.0  ;;  %v11823_v31 = vld [vmem:[#allocation2 + $0x58] sm:$0xfc] }
 0x1ba   :  { %v1331_v0 = vmax.f32 %v11457_v21, %v1323_v38  ;;  %v10383_v38 = vld [vmem:[%s13621_s3 + $0x118] sm:$0xff]   ;;  %vm4366_vm9 = vcmp.gt.f32.partialorder %v11411_v41, 1.0 }
 0x1bb   :  { %v1337_v3 = vld [vmem:[#allocation6] ss:$2 sm:$0xff]  ;;  %v1341_v35 = vld [vmem:[#allocation6 + $0x1] ss:$2 sm:$0xff] }
 0x1bc   :  { %v11554_v4 = vmax.f32 %v1337_v3, %v1341_v35  ;;  %1336 = vst.msk [vmem:[#allocation6 + $0x18] sm:$0xff] %vm1332_vm10, %v1331_v0  ;;  %v10384_v0 = vld [vmem:[%s13621_s3 + $0x198] sm:$0xff]   ;;  %v10385_v3 = vld [vmem:[%s13621_s3 + $0x160] sm:$0xff]  }
 0x1bd   :  { %v10386_v35 = vld [vmem:[%s13621_s3 + $0x120] sm:$0xff]  }
 0x1be   :  { %vm1350_vm12 = vcmp.gt.f32.partialorder %v11554_v4, 1.0 }
 0x1bf   :  { %v11559_v6 = vsel %vm1350_vm12, 1.0, %v11544_v56  ;;  %vm2093_vm12 = vcmask 64512  }
 0x1c0   :  { %1356 = vst.msk [vmem:[#allocation3 + $0x8] sm:$0xff] %vm1332_vm10, %v11559_v6 }
 0x1c3   :  { %v1339_v8 = vld [vmem:[#allocation6 + $0x10] ss:$2 sm:$0xff]  ;;  %v1343_v9 = vld [vmem:[#allocation6 + $0x11] ss:$2 sm:$0xff] }
 0x1c4   :  { %v11563_v10 = vmax.f32 %v1339_v8, %v1343_v9  ;;  %v10387_v8 = vld [vmem:[%s13621_s3 + $0x1a0] sm:$0xff]   ;;  %v10388_v9 = vld [vmem:[%s13621_s3 + $0x168] sm:$0xff]  }
 0x1c6   :  { %vm1351_vm13 = vcmp.gt.f32.partialorder %v11563_v10, 1.0 }
 0x1c7   :  { %v11567_v33 = vsel %vm1351_vm13, 1.0, %v11544_v56  ;;  %v1358_v11 = vld [vmem:[#allocation3 + $0x5] sm:$0xff]  ;;  %vm4365_vm13 = vcmp.gt.f32.partialorder %v11424_v42, 1.0 }
 0x1c8   :  { %v1364_v13 = vld [vmem:[#allocation3 + $0x6] sm:$0xff]  ;;  %1357 = vst.msk [vmem:[#allocation3 + $0x20] sm:$0xff] %vm1332_vm10, %v11567_v33  ;;  %v1360_v15 = vpack.c.bf16 %v1358_v11, %v1358_v11 }
 0x1c9   :  { %v1370_v14 = vld [vmem:[#allocation3 + $0x7] sm:$0xff]  ;;  %v1366_v16 = vpack.c.bf16 %v1364_v13, %v1364_v13 }
 0x1ca   :  { %v1372_v39 = vpack.c.bf16 %v1370_v14, %v1370_v14  ;;  %v1376_v17 = vld [vmem:[#allocation3 + $0x8] sm:$0xff]  ;;  %1362 = vst [vmem:[#allocation5] sm:$0xf] %v1360_v15  ;;  %v10391_v14 = vld [vmem:[%s13621_s3 + $0x170] sm:$0xff]  }
 0x1cb   :  { %v1382_v18 = vld [vmem:[#allocation3 + $0x9] sm:$0xff]  ;;  %v1378_v20 = vpack.c.bf16 %v1376_v17, %v1376_v17  ;;  %1368 = vst [vmem:[#allocation5 + $0x4] sm:$0xf] %v1366_v16  ;;  %v10395_v17 = vld [vmem:[%s13621_s3 + $0x138] sm:$0xff]  }
 0x1cc   :  { %v1388_v19 = vld [vmem:[#allocation3 + $0xa] sm:$0xff]  ;;  %v1384_v21 = vpack.c.bf16 %v1382_v18, %v1382_v18  ;;  %1374 = vst [vmem:[#allocation5 + $0x8] sm:$0xf] %v1372_v39  ;;  %v10394_v39 = vld [vmem:[%s13621_s3 + $0x178] sm:$0xff]  }
 0x1cd   :  { %v1390_v23 = vpack.c.bf16 %v1388_v19, %v1388_v19  ;;  %v1394_v24 = vld [vmem:[#allocation3 + $0xb] sm:$0xff]  ;;  %1380 = vst [vmem:[#allocation5 + $0xc] sm:$0xf] %v1378_v20  ;;  %v10396_v18 = vld [vmem:[%s13621_s3 + $0x1b8] sm:$0xff]  }
 0x1ce   :  { %v1396_v22 = vpack.c.bf16 %v1394_v24, %v1394_v24  ;;  %1386 = vst [vmem:[#allocation5 + $0x10] sm:$0xf] %v1384_v21  ;;  %v10389_v11 = vld [vmem:[%s13621_s3 + $0x128] sm:$0xff]   ;;  %v10392_v15 = vld [vmem:[%s13621_s3 + $0x130] sm:$0xff]   ;;  %v8724_v24 = vld [vmem:[%s13622_s4] ss:$0 sm:$0xff] }
 0x1cf   :  { %1392 = vst [vmem:[#allocation5 + $0x14] sm:$0xf] %v1390_v23  ;;  %v1359_v25 = vld [vmem:[#allocation3 + $0x1d] sm:$0xff]  ;;  %v10390_v13 = vld [vmem:[%s13621_s3 + $0x1a8] sm:$0xff]   ;;  %v10393_v16 = vld [vmem:[%s13621_s3 + $0x1b0] sm:$0xff]  }
 0x1d0   :  { %1398 = vst [vmem:[#allocation5 + $0x18] sm:$0xf] %v1396_v22  ;;  %v1365_v58 = vld [vmem:[#allocation3 + $0x1e] sm:$0xff]  ;;  %v1361_v2 = vpack.c.bf16 %v1359_v25, %v1359_v25 }
 0x1d1   :  { %v1371_v26 = vld [vmem:[#allocation3 + $0x1f] sm:$0xff]  ;;  %v1367_v27 = vpack.c.bf16 %v1365_v58, %v1365_v58 }
 0x1d2   :  { %v1373_v59 = vpack.c.bf16 %v1371_v26, %v1371_v26  ;;  %v1377_v28 = vld [vmem:[#allocation3 + $0x20] sm:$0xff]  ;;  %1363 = vst [vmem:[#allocation5 + $0x1c] sm:$0xf] %v1361_v2  ;;  %v1400_v54 = vld [vmem:[#allocation5] sm:$0xff] }
 0x1d3   :  { %v1383_v29 = vld [vmem:[#allocation3 + $0x21] sm:$0xff]  ;;  %v1379_v34 = vpack.c.bf16 %v1377_v28, %v1377_v28  ;;  %1369 = vst [vmem:[#allocation5 + $0x20] sm:$0xf] %v1367_v27 }
 0x1d4   :  { %v1389_v30 = vld [vmem:[#allocation3 + $0x22] sm:$0xff]  ;;  %v1385_v37 = vpack.c.bf16 %v1383_v29, %v1383_v29  ;;  %1375 = vst [vmem:[#allocation5 + $0x24] sm:$0xf] %v1373_v59 }
 0x1d5   :  { %v1391_v40 = vpack.c.bf16 %v1389_v30, %v1389_v30  ;;  %v1395_v51 = vld [vmem:[#allocation3 + $0x23] sm:$0xff]  ;;  %1381 = vst [vmem:[#allocation5 + $0x28] sm:$0xf] %v1379_v34 }
 0x1d6   :  { %v1397_v44 = vpack.c.bf16 %v1395_v51, %v1395_v51  ;;  %1387 = vst [vmem:[#allocation5 + $0x2c] sm:$0xf] %v1385_v37 }
 0x1d7   :  { %1393 = vst [vmem:[#allocation5 + $0x30] sm:$0xf] %v1391_v40 }
 0x1d8   :  { %1399 = vst [vmem:[#allocation5 + $0x34] sm:$0xf] %v1397_v44 }
 0x1da   :  { %v1404_v5 = vld [vmem:[#allocation5 + $0x1c] sm:$0xff] }
 0x1db   :  { %v10366_v49 = vld [vmem:[#allocation5 + $0x4] ss:$28 sps:$4 sm:$0xff]   ;;  %v8725_v36 = vcombine.low %v1400_v54, %v1404_v5 }
 0x1dc   :  { %v10368_v32 = vld [vmem:[#allocation5 + $0xc] ss:$28 sps:$4 sm:$0xff]   ;;  %1931 = vmatprep.mubr.bf16.mxu1 %v10366_v49 }
 0x1dd   :  { %v10371_v52 = vld [vmem:[#allocation5 + $0x8] ss:$28 sps:$4 sm:$0xff]   ;;  %1972 = vmatprep.mubr.bf16.mxu0 %v10368_v32  ;;  %1932 = vmatmul.mubr.bf16.vlgmr.msra.gmra.mrb[16].mxu1 %v8725_v36  ;;  %v10397_v19 = vld [vmem:[#allocation5 + $0x10] ss:$28 sps:$4 sm:$0xff]  }
 0x1de   :  { %v10374_v55 = vld [vmem:[#allocation5 + $0x14] ss:$28 sps:$4 sm:$0xff]   ;;  %1973 = vmatmul.mubr.bf16.vlgmr.msra.gmra.mrb[24].mxu0 %v10371_v52  ;;  %9458 = vmatpush3.bf16.msra.mxu1 %v10372_v1 }
 0x1df   :  { %10142 = vmatpush3.bf16.msra.mxu0 %v10373_v47  ;;  %2013 = vmatprep.mubr.bf16.mxu1 %v10374_v55  ;;  %v10398_v20 = vld [vmem:[#allocation5 + $0x18] ss:$28 sps:$4 sm:$0xff]  }
 0x1e0   :  { %9459 = vmatprep.subr.bf16.mxu1 %v10376_v53  ;;  %10143 = vmatprep.subr.bf16.mxu0 %v11544_v56 }
 0x1e1   :  { %10157 = vmatprep.mubr.msk.bf16.mxu0 %vm10912_vm14, %v11544_v56 }
 0x1e2   :  { %9460 = vmatpush3.bf16.msra.mxu1 %v10377_v57 }
 0x1e3   :  { %10144 = vmatpush3.bf16.msra.mxu0 %v10378_v61  ;;  %9461 = vmatprep.subr.bf16.mxu1 %v10379_v60 }
 0x1e4   :  { %10145 = vmatprep.subr.bf16.mxu0 %v11544_v56 }
 0x1e6   :  { %9462 = vmatpush3.bf16.msra.mxu1 %v10380_v43 }
 0x1e7   :  { %10146 = vmatpush3.bf16.msra.mxu0 %v10381_v63  ;;  %9463 = vmatprep.subr.bf16.mxu1 %v10382_v62 }
 0x1e8   :  { %10147 = vmatprep.subr.bf16.mxu0 %v11544_v56 }
 0x1ea   :  { %9464 = vmatpush3.bf16.msra.mxu1 %v10383_v38 }
 0x1eb   :  { %10148 = vmatpush3.bf16.msra.mxu0 %v10384_v0  ;;  %9465 = vmatprep.subr.bf16.mxu1 %v10385_v3 }
 0x1ec   :  { %10149 = vmatprep.subr.bf16.mxu0 %v11544_v56 }
 0x1ee   :  { %9466 = vmatpush3.bf16.msra.mxu1 %v10386_v35 }
 0x1ef   :  { %10150 = vmatpush3.bf16.msra.mxu0 %v10387_v8  ;;  %9467 = vmatprep.subr.bf16.mxu1 %v10388_v9  ;;  %v2120_v8 = vld [vmem:[%s13623_s5] sm:$0xf] }
 0x1f0   :  { %10151 = vmatprep.subr.bf16.mxu0 %v11544_v56  ;;  %v10399_v9 = vld [vmem:[%s13619_s1 + $0x40] sm:$0xff]  }
 0x1f2   :  { %9468 = vmatpush3.bf16.msra.mxu1 %v10389_v11  ;;  %v2140_v11 = vsel %vm2138_vm15, %v2120_v8, 0 }
 0x1f3   :  { %10152 = vmatpush3.bf16.msra.mxu0 %v10390_v13  ;;  %9469 = vmatprep.subr.bf16.mxu1 %v10391_v14  ;;  %v10401_v13 = vld [vmem:[%s13619_s1 + $0xc0] sm:$0xff]  }
 0x1f4   :  { %10153 = vmatprep.subr.bf16.mxu0 %v11544_v56  ;;  %v10402_v14 = vld [vmem:[%s13619_s1 + $0x80] sm:$0xff]  }
 0x1f6   :  { %9470 = vmatpush3.bf16.msra.mxu1 %v10392_v15  ;;  %v10405_v15 = vld [vmem:[%s13619_s1 + $0xc8] sm:$0xff]  }
 0x1f7   :  { %10154 = vmatpush3.bf16.msra.mxu0 %v10393_v16  ;;  %9471 = vmatprep.subr.bf16.mxu1 %v10394_v39  ;;  %v10406_v16 = vld [vmem:[%s13619_s1 + $0x88] sm:$0xff]   ;;  %v10409_v39 = vld [vmem:[%s13619_s1 + $0xd0] sm:$0xff]  }
 0x1f8   :  { %10155 = vmatprep.subr.bf16.mxu0 %v11544_v56 }
 0x1fa   :  { %9472 = vmatpush3.bf16.msra.mxu1 %v10395_v17  ;;  %v10410_v17 = vld [vmem:[%s13619_s1 + $0x90] sm:$0xff]  }
 0x1fb   :  { %10156 = vmatpush3.bf16.msra.mxu0 %v10396_v18  ;;  %10161 = vmatprep.subr.bf16.mxu1 %v11544_v56  ;;  %v10413_v18 = vld [vmem:[%s13619_s1 + $0xd8] sm:$0xff]  }
 0x1fc   :  { %9518 = vmatprep.subr.bf16.mxu0 %v10401_v13  ;;  %v10437_v13 = vld [vmem:[%s13619_s1 + $0x1c8] sm:$0xff]  }
 0x1fd   :  { %2014 = vmatmul.mubr.bf16.vlgmr.msra.gmra.mrb[20].mxu1 %v10397_v19  ;;  %v10414_v19 = vld [vmem:[%s13619_s1 + $0x98] sm:$0xff]  }
 0x1fe   :  { %10158 = vmatmul.mubr.bf16.vlgmr.msra.gmra.mrb[28].mxu0 %v10398_v20  ;;  %10163 = vmatprep.mubr.msk.bf16.mxu1 %vm10912_vm14, %v11544_v56  ;;  %v10417_v20 = vld [vmem:[%s13619_s1 + $0xe0] sm:$0xff]  }
 0x1ff   :  { %10162 = vmatpush3.bf16.msra.mxu1 %v2140_v11  ;;  %9519 = vmatpush3.bf16.msra.mxu0 %v10402_v14  ;;  %v10434_v11 = vld [vmem:[%s13619_s1 + $0x180] sm:$0xff]  }
 0x200   :  { %9490 = vmatprep.subr.bf16.mxu1 %v10399_v9  ;;  %9520 = vmatprep.subr.bf16.mxu0 %v10405_v15  ;;  %v10438_v15 = vld [vmem:[%s13619_s1 + $0x188] sm:$0xff]  }
 0x203   :  { %9521 = vmatpush3.bf16.msra.mxu0 %v10406_v16  ;;  %v10441_v16 = vld [vmem:[%s13619_s1 + $0x1d0] sm:$0xff]  }
 0x204   :  { %9522 = vmatprep.subr.bf16.mxu0 %v10409_v39  ;;  %v10442_v39 = vld [vmem:[%s13619_s1 + $0x190] sm:$0xff]  }
 0x207   :  { %9523 = vmatpush3.bf16.msra.mxu0 %v10410_v17  ;;  %v10445_v17 = vld [vmem:[%s13619_s1 + $0x1d8] sm:$0xff]  }
 0x208   :  { %9524 = vmatprep.subr.bf16.mxu0 %v10413_v18  ;;  %v11751_v18 = vld [vmem:[#allocation2 + $0x58] sm:$0xff] }
 0x20b   :  { %9525 = vmatpush3.bf16.msra.mxu0 %v10414_v19  ;;  %v2309_v19 = vld [vmem:[#allocation2 + $0x48] sm:$0x80] }
 0x20c   :  { %9526 = vmatprep.subr.bf16.mxu0 %v10417_v20  ;;  %v2313_v20 = vld [vmem:[#allocation2 + $0x68] sm:$0x7f] }
 0x2b0   :  { %v9429_v21 = vpop.f32.mrb[16].mxu1 }
 0x2b1   :  { %v9451_v23 = vpop.f32.mrb[24].mxu0  ;;  %v9430_v22 = vpop.f32.mrb[17].mxu1 }
 0x2b2   :  { %v9431_v25 = vadd.f32 %v9430_v22, %v9429_v21  ;;  %v9452_v58 = vpop.f32.mrb[25].mxu0  ;;  %v9432_v26 = vpop.f32.mrb[18].mxu1  ;;  %v10418_v21 = vld [vmem:[%s13619_s1 + $0xa0] sm:$0xff]   ;;  %v10425_v22 = vld [vmem:[%s13619_s1 + $0xf0] sm:$0xff]  }
 0x2b3   :  { %v9453_v2 = vadd.f32 %v9452_v58, %v9451_v23  ;;  %v9454_v27 = vpop.f32.mrb[26].mxu0  ;;  %v9433_v59 = vpop.f32.mrb[19].mxu1  ;;  %9527 = vmatpush3.bf16.msra.mxu0 %v10418_v21  ;;  %v10421_v23 = vld [vmem:[%s13619_s1 + $0xe8] sm:$0xff]   ;;  %v11716_v58 = vld [vmem:[#allocation2 + $0x18] sm:$0xff]  ;;  %v2319_v21 = vpack.c.bf16 %v11751_v18, %v2309_v19 }
 0x2b4   :  { %v1934_v28 = vadd.f32 %v9431_v25, %v8724_v24  ;;  %v9434_v29 = vadd.f32 %v9433_v59, %v9432_v26  ;;  %v9455_v30 = vpop.f32.mrb[27].mxu0  ;;  %9528 = vmatprep.subr.bf16.mxu0 %v10421_v23  ;;  %v10426_v25 = vld [vmem:[%s13619_s1 + $0xb0] sm:$0xff]   ;;  %v2303_v26 = vld [vmem:[#allocation2 + $0x8] sm:$0x80]  ;;  %v2321_v23 = vpack.c.bf16 %v2313_v20, %v2313_v20 }
 0x2b5   :  { %v9456_v34 = vadd.f32 %v9455_v30, %v9454_v27  ;;  %v2307_v27 = vld [vmem:[#allocation2 + $0x28] sm:$0x7f]  ;;  %v2315_v59 = vpack.c.bf16 %v11716_v58, %v2303_v26  ;;  %v2306_v30 = vld [vmem:[#allocation2 + $0x20] sm:$0x7f]  ;;  %v2374_v26 = vshrl.u32 %v2319_v21, 16 }
 0x2b6   :  { %v1975_v37 = vadd.f32 %v9453_v2, %v1934_v28  ;;  %v1937_v40 = vadd.f32 %v9434_v29, %v8724_v24  ;;  %v10422_v24 = vld [vmem:[%s13619_s1 + $0xa8] sm:$0xff]   ;;  %v11718_v2 = vld [vmem:[#allocation2 + $0x10] sm:$0xff]  ;;  %v2302_v28 = vld [vmem:[#allocation2] sm:$0x80]  ;;  %v2317_v29 = vpack.c.bf16 %v2307_v27, %v2307_v27  ;;  %v2377_v27 = vshll.u32 %v2319_v21, 16 }
 0x2b7   :  { %9529 = vmatpush3.bf16.msra.mxu0 %v10422_v24  ;;  %v10446_v24 = vld [vmem:[%s13619_s1 + $0x198] sm:$0xff]  }
 0x2b8   :  { %v1978_v56 = vadd.f32 %v9456_v34, %v1937_v40  ;;  %9530 = vmatprep.subr.bf16.mxu0 %v10425_v22  ;;  %v10429_v34 = vld [vmem:[%s13619_s1 + $0xf8] sm:$0xff]   ;;  %v2340_v40 = vshrl.u32 %v2315_v59, 16  ;;  %v10449_v22 = vld [vmem:[%s13619_s1 + $0x1e0] sm:$0xff]  }
 0x2bb   :  { %9531 = vmatpush3.bf16.msra.mxu0 %v10426_v25  ;;  %v11760_v25 = vld [vmem:[#allocation2 + $0x50] sm:$0xff] }
 0x2bc   :  { %9532 = vmatprep.subr.bf16.mxu0 %v10429_v34  ;;  %v2385_v34 = vshll.u32 %v2321_v23, 16 }
 0x2d0   :  { %v9473_v51 = vpop.f32.mrb[20].mxu1 }
 0x2d1   :  { %v2056_v44 = vpop.f32.mrb[28].mxu0  ;;  %v9474_v1 = vpop.f32.mrb[21].mxu1 }
 0x2d2   :  { %v9475_v47 = vadd.f32 %v9474_v1, %v9473_v51  ;;  %v10159_v54 = vpop.f32.mrb[29].mxu0  ;;  %v9476_v5 = vpop.f32.mrb[22].mxu1  ;;  %v2314_v51 = vpack.c.bf16 %v11718_v2, %v2302_v28  ;;  %v2351_v1 = vshll.u32 %v2317_v29, 16  ;;  %v2308_v28 = vld [vmem:[#allocation2 + $0x40] sm:$0x80] }
 0x2d3   :  { %v2059_v49 = vpop.f32.mrb[30].mxu0  ;;  %v9477_v32 = vpop.f32.mrb[23].mxu1  ;;  %v2342_v54 = vrot.slane %v2340_v40, 3  ;;  %v2379_v40 = vrot.slane %v2377_v27, 4 }
 0x2d4   :  { %v2016_v36 = vadd.f32 %v9475_v47, %v1975_v37  ;;  %v9478_v52 = vadd.f32 %v9477_v32, %v9476_v5  ;;  %v10160_v53 = vpop.f32.mrb[31].mxu0  ;;  %v10430_v37 = vld [vmem:[%s13619_s1 + $0xb8] sm:$0xff]   ;;  %v2316_v47 = vpack.c.bf16 %v2306_v30, %v2306_v30  ;;  %v2353_v32 = vrot.slane %v2351_v1, 4 }
 0x2d5   :  { %9533 = vmatpush3.bf16.msra.mxu0 %v10430_v37  ;;  %v10433_v53 = vld [vmem:[%s13619_s1 + $0x1c0] sm:$0xff]   ;;  %v2376_v30 = vrot.slane %v2374_v26, 3  ;;  %v2318_v1 = vpack.c.bf16 %v11760_v25, %v2308_v28 }
 0x2d6   :  { %v2019_v55 = vadd.f32 %v9478_v52, %v1978_v56  ;;  %v2057_v57 = vadd.f32 %v2056_v44, %v2016_v36  ;;  %v2343_v56 = vshll.u32 %v2315_v59, 16  ;;  %v2348_v44 = vshrl.u32 %v2317_v29, 16  ;;  %9574 = vmatprep.subr.bf16.mxu0 %v10433_v53  ;;  %v2312_v29 = vld [vmem:[#allocation2 + $0x60] sm:$0x7f] }
 0x2d7   :  { %v2323_v36 = vshrl.u32 %v2314_v51, 16  ;;  %v2326_v52 = vshll.u32 %v2314_v51, 16  ;;  %v2382_v59 = vshrl.u32 %v2321_v23, 16  ;;  %v10450_v37 = vld [vmem:[%s13619_s1 + $0x1a0] sm:$0xff]   ;;  %v10453_v51 = vld [vmem:[%s13619_s1 + $0x1e8] sm:$0xff]   ;;  %v10461_v23 = vld [vmem:[%s13619_s1 + $0x1f8] sm:$0xff]  }
 0x2d8   :  { %2065 = vrot.lane.b32.xlu0 %v2057_v57, %s10911_s29  ;;  %v2060_v61 = vadd.f32 %v2059_v49, %v2019_v55  ;;  %v2345_v5 = vrot.slane %v2343_v56, 4  ;;  %v2350_v49 = vrot.slane %v2348_v44, 3  ;;  %v2387_v44 = vrot.slane %v2385_v34, 4  ;;  %v10462_v34 = vld [vmem:[%s13619_s1 + $0x1b8] sm:$0xff]  }
 0x2d9   :  { %v2384_v56 = vrot.slane %v2382_v59, 3 }
 0x2da   :  { %2067 = vrot.lane.b32.xlu1 %v2060_v61, %s10911_s29  ;;  %v2346_v55 = vor.u32 %v2345_v5, %v2342_v54  ;;  %v2380_v54 = vor.u32 %v2379_v40, %v2376_v30 }
 0x2db   :  { %v2388_v5 = vor.u32 %v2387_v44, %v2384_v56  ;;  %v11792_v56 = vld [vmem:[#allocation2 + $0x68] sm:$0xff] }
 0x34a   :  { %v2066_v60 = vpop.permute.xlu0 %2065 }
 0x34b   :  { %v2071_v43 = vmax.f32 %v2057_v57, %v2066_v60  ;;  %v2354_v57 = vor.u32 %v2353_v32, %v2350_v49  ;;  %v2334_v60 = vshll.u32 %v2316_v47, 16  ;;  %v10454_v49 = vld [vmem:[%s13619_s1 + $0x1a8] sm:$0xff]   ;;  %v2357_v32 = vshrl.u32 %v2318_v1, 16 }
 0x34c   :  { %v2068_v63 = vpop.permute.xlu1 %2067 }
 0x34d   :  { %v2072_v62 = vmax.f32 %v2060_v61, %v2068_v63  ;;  %2075 = vrot.lane.b32.xlu0 %v2071_v43, %s10913_s17  ;;  %v2331_v61 = vshrl.u32 %v2316_v47, 16  ;;  %v2328_v63 = vrot.slane %v2326_v52, 4  ;;  %v2320_v47 = vpack.c.bf16 %v2312_v29, %v2312_v29 }
 0x34f   :  { %2077 = vrot.lane.b32.xlu1 %v2072_v62, %s10913_s17  ;;  %v2365_v52 = vshrl.u32 %v2320_v47, 16  ;;  %v2368_v53 = vshll.u32 %v2320_v47, 16 }
 0x3bf   :  { %v2076_v38 = vpop.permute.xlu0 %2075 }
 0x3c0   :  { %v11659_v0 = vmax.f32 %v2071_v43, %v2076_v38  ;;  %v2325_v43 = vrot.slane %v2323_v36, 3  ;;  %v2333_v38 = vrot.slane %v2331_v61, 3  ;;  %v2360_v36 = vshll.u32 %v2318_v1, 16  ;;  %v2415_v61 = vld [vmem:[#allocation2 + $0x18] sm:$0xfe]  ;;  %v11794_v1 = vld [vmem:[#allocation2 + $0x60] sm:$0xff] }
 0x3c1   :  { %v2078_v3 = vpop.permute.xlu1 %2077 }
 0x3c2   :  { %v11661_v35 = vmax.f32 %v2072_v62, %v2078_v3  ;;  %2085 = vrot.lane.b32.xlu0 %v11659_v0, %s10914_s18  ;;  %v2355_v62 = vsel %vm181_vm5, %v2346_v55, %v2354_v57  ;;  %v2336_v3 = vrot.slane %v2334_v60, 4  ;;  %v2329_v8 = vor.u32 %v2328_v63, %v2325_v43  ;;  %v10457_v55 = vld [vmem:[%s13619_s1 + $0x1f0] sm:$0xff]   ;;  %v11775_v57 = vld [vmem:[#allocation2 + $0x28] sm:$0xff] }
 0x3c3   :  { %3286 = vmatprep.mubr.bf16.mxu0 %v2355_v62  ;;  %v2389_v60 = vsel %vm181_vm5, %v2380_v54, %v2388_v5  ;;  %v2359_v43 = vrot.slane %v2357_v32, 3  ;;  %v2362_v63 = vrot.slane %v2360_v36, 4  ;;  %v2367_v62 = vrot.slane %v2365_v52, 3  ;;  %v2420_v54 = vld [vmem:[#allocation2 + $0x50] sm:$0xfe] }
 0x3c4   :  { %2087 = vrot.lane.b32.xlu1 %v11661_v35, %s10914_s18  ;;  %v2337_v9 = vor.u32 %v2336_v3, %v2333_v38  ;;  %v11778_v38 = vld [vmem:[#allocation2 + $0x20] sm:$0xff]  ;;  %v2414_v3 = vld [vmem:[#allocation2 + $0x10] sm:$0xfe]  ;;  %v2430_v32 = vpack.c.bf16 %v11794_v1, %v2420_v54  ;;  %v2409_v36 = vpack.c.bf16 %v11792_v56, %v11751_v18  ;;  %v2408_v52 = vpack.c.bf16 %v11794_v1, %v11760_v25 }
 0x3c6   :  { %v2338_v14 = vsel %vm181_vm5, %v2329_v8, %v2337_v9  ;;  %v2370_v8 = vrot.slane %v2368_v53, 4  ;;  %v2419_v9 = vld [vmem:[#allocation2 + $0x38] sm:$0x1] }
 0x3c7   :  { %3287 = vmatmul.mubr.bf16.vlgmr.msra.gmra.mrb[32].mxu0 %v2338_v14  ;;  %v2363_v14 = vor.u32 %v2362_v63, %v2359_v43  ;;  %v2461_v63 = vshll.u32 %v2430_v32, 16 }
 0x3c8   :  { %9575 = vmatpush3.bf16.msra.mxu0 %v10434_v11  ;;  %3294 = vmatprep.mubr.bf16.mxu0 %v2389_v60  ;;  %v2427_v11 = vpack.c.bf16 %v11775_v57, %v2415_v61 }
 0x3c9   :  { %9576 = vmatprep.subr.bf16.mxu0 %v10437_v13  ;;  %v2426_v13 = vpack.c.bf16 %v11778_v38, %v2414_v3 }
 0x3ca   :  { %v2449_v19 = vshll.u32 %v2427_v11, 16 }
 0x3cb   :  { %v2437_v21 = vshll.u32 %v2426_v13, 16  ;;  %v2435_v59 = vshrl.u32 %v2426_v13, 16 }
 0x3cc   :  { %9577 = vmatpush3.bf16.msra.mxu0 %v10438_v15  ;;  %v2429_v15 = vpack.c.bf16 %v2419_v9, %v2419_v9  ;;  %v2451_v27 = vrot.slane %v2449_v19, 1  ;;  %v2459_v9 = vshrl.u32 %v2430_v32, 16  ;;  %v11838_v32 = vld [vmem:[#allocation2 + $0x60] sm:$0x3f] }
 0x3cd   :  { %9578 = vmatprep.subr.bf16.mxu0 %v10441_v16  ;;  %v2418_v16 = vld [vmem:[#allocation2 + $0x30] sm:$0x1]  ;;  %v2439_v28 = vrot.slane %v2437_v21, 1 }
 0x3ce   :  { %v2428_v20 = vpack.c.bf16 %v2418_v16, %v2418_v16 }
 0x3cf   :  { %v2440_v40 = vor.u32 %v2439_v28, %v2435_v59 }
 0x3d0   :  { %9579 = vmatpush3.bf16.msra.mxu0 %v10442_v39  ;;  %v2371_v39 = vor.u32 %v2370_v8, %v2367_v62  ;;  %v2442_v30 = vshll.u32 %v2428_v20, 16  ;;  %v11808_v20 = vld [vmem:[#allocation2 + $0x8] sm:$0xff] }
 0x3d1   :  { %9580 = vmatprep.subr.bf16.mxu0 %v10445_v17  ;;  %v10458_v17 = vld [vmem:[%s13619_s1 + $0x1b0] sm:$0xff]   ;;  %v8954_v21 = vsel %vm4360_vm0, 1.0, %v11808_v20  ;;  %v8956_v59 = vsel %vm4362_vm7, 1.0, %v11808_v20  ;;  %v8957_v28 = vsel %vm4363_vm6, 1.0, %v11808_v20  ;;  %vm2187_vm6 = vcmask 254976  }
 0x3d2   :  { %v2372_v26 = vsel %vm181_vm5, %v2363_v14, %v2371_v39  ;;  %v2444_v44 = vrot.slane %v2442_v30, 1  ;;  %v8955_v30 = vsel %vm4361_vm8, 1.0, %v11808_v20 }
 0x3d3   :  { %3295 = vmatmul.mubr.bf16.gmra.mrb[36].mxu0 %v2372_v26  ;;  %v8958_v26 = vsel %vm4364_vm3, 1.0, %v11808_v20  ;;  %vm2132_vm3 = vcmask 1041409  }
 0x3d4   :  { %9581 = vmatpush3.bf16.msra.mxu0 %v10446_v24  ;;  %v2447_v24 = vshrl.u32 %v2427_v11, 16  ;;  %v2445_v61 = vsel %vm294_vm11, %v2440_v40, %v2444_v44  ;;  %v2463_v11 = vrot.slane %v2461_v63, 1  ;;  %v8960_v40 = vsel %vm4366_vm9, 1.0, %v11808_v20 }
 0x3d5   :  { %9582 = vmatprep.subr.bf16.mxu0 %v10449_v22  ;;  %v2454_v22 = vshll.u32 %v2429_v15, 16 }
 0x3d6   :  { %v2464_v16 = vor.u32 %v2463_v11, %v2459_v9  ;;  %v2255_v11 = vld [vmem:[#allocation2 + $0x8] sm:$0xc0] }
 0x3d7   :  { %v2456_v29 = vrot.slane %v2454_v22, 1  ;;  %v11817_v22 = vld [vmem:[#allocation2 + $0x10] sm:$0xfc] }
 0x3d8   :  { %9583 = vmatpush3.bf16.msra.mxu0 %v10450_v37  ;;  %v2452_v37 = vor.u32 %v2451_v27, %v2447_v24  ;;  %v11814_v24 = vld [vmem:[#allocation2 + $0x18] sm:$0xfc]  ;;  %v2259_v27 = vld [vmem:[#allocation2 + $0x28] sm:$0x3f] }
 0x3d9   :  { %9584 = vmatprep.subr.bf16.mxu0 %v10453_v51  ;;  %v2421_v51 = vld [vmem:[#allocation2 + $0x58] sm:$0xfe]  ;;  %4384 = vst [vmem:[#allocation2 + $0x18] sm:$0xff] %v8954_v21  ;;  %4386 = vst [vmem:[#allocation2 + $0x28] sm:$0xff] %v8956_v59 }
 0x3da   :  { %v2431_v47 = vpack.c.bf16 %v11792_v56, %v2421_v51  ;;  %v2457_v5 = vsel %vm294_vm11, %v2452_v37, %v2456_v29  ;;  %v11825_v29 = vld [vmem:[#allocation2 + $0x20] sm:$0x3f]  ;;  %4388 = vst [vmem:[#allocation2 + $0x58] sm:$0xff] %v8958_v26  ;;  %v11831_v37 = vld [vmem:[#allocation2 + $0x68] sm:$0x3f] }
 0x3db   :  { %3384 = vmatprep.mubr.bf16.mxu0 %v2457_v5  ;;  %4385 = vst [vmem:[#allocation2 + $0x20] sm:$0xff] %v8955_v30  ;;  %4390 = vst [vmem:[#allocation2 + $0x68] sm:$0xff] %v8960_v40  ;;  %v10403_v40 = vld [vmem:[%s13619_s1 + $0x48] sm:$0xff]  }
 0x3dc   :  { %9585 = vmatpush3.bf16.msra.mxu0 %v10454_v49  ;;  %v2425_v49 = vld [vmem:[#allocation2 + $0x78] sm:$0x1]  ;;  %v2473_v60 = vshll.u32 %v2431_v47, 16  ;;  %v2471_v62 = vshrl.u32 %v2431_v47, 16 }
 0x3dd   :  { %9586 = vmatprep.subr.bf16.mxu0 %v10457_v55  ;;  %v2433_v53 = vpack.c.bf16 %v2425_v49, %v2425_v49  ;;  %v2424_v55 = vld [vmem:[#allocation2 + $0x70] sm:$0x1] }
 0x3de   :  { %v2432_v43 = vpack.c.bf16 %v2424_v55, %v2424_v55  ;;  %v2475_v8 = vrot.slane %v2473_v60, 1 }
 0x3df   :  { %v2478_v3 = vshll.u32 %v2433_v53, 16  ;;  %v8959_v53 = vsel %vm4365_vm13, 1.0, %v11808_v20 }
 0x3e0   :  { %9587 = vmatpush3.bf16.msra.mxu0 %v10458_v17  ;;  %v2466_v13 = vshll.u32 %v2432_v43, 16  ;;  %v2476_v15 = vor.u32 %v2475_v8, %v2471_v62  ;;  %4389 = vst [vmem:[#allocation2 + $0x60] sm:$0xff] %v8959_v53  ;;  %v10415_v53 = vld [vmem:[%s13619_s1 + $0x60] sm:$0xff]  }
 0x3e1   :  { %9588 = vmatprep.subr.bf16.mxu0 %v10461_v23  ;;  %v2480_v14 = vrot.slane %v2478_v3, 1  ;;  %v8953_v23 = vsel %vm4359_vm2, 1.0, %v11808_v20 }
 0x3e2   :  { %v2468_v39 = vrot.slane %v2466_v13, 1  ;;  %4383 = vst [vmem:[#allocation2 + $0x10] sm:$0xff] %v8953_v23 }
 0x3e3   :  { %v2481_v17 = vsel %vm294_vm11, %v2476_v15, %v2480_v14  ;;  %v2267_v15 = vpack.c.bf16 %v11716_v58, %v2255_v11 }
 0x3e4   :  { %9589 = vmatpush3.bf16.msra.mxu0 %v10462_v34  ;;  %v2469_v19 = vsel %vm294_vm11, %v2464_v16, %v2468_v39  ;;  %v11828_v34 = vld [vmem:[#allocation2 + $0x50] sm:$0xfc]  ;;  %v2269_v16 = vpack.c.bf16 %v2259_v27, %v2259_v27  ;;  %v10400_v27 = vld [vmem:[%s13619_s1] sm:$0xff]  }
 0x3e5   :  { %4387 = vst [vmem:[#allocation2 + $0x50] sm:$0xff] %v8957_v28  ;;  %v2285_v21 = vrot.slane %v2267_v15, 3  ;;  %v2273_v15 = vpack.c.bf16 %v11831_v37, %v11831_v37  ;;  %v10432_v37 = vld [vmem:[%s13619_s1 + $0x100] sm:$0xff]  }
 0x3e6   :  { %v2286_v23 = vrot.slane %v2269_v16, 3  ;;  %v10428_v16 = vld [vmem:[%s13619_s1 + $0x38] sm:$0xff]  }
 0x3e7   :  { %3385 = vmatmul.mubr.bf16.vlgmr.msra.gmra.mrb[40].mxu0 %v2445_v61 }
 0x3e8   :  { %3392 = vmatprep.mubr.bf16.mxu0 %v2481_v17 }
 0x3ef   :  { %3393 = vmatmul.mubr.bf16.gmra.mrb[44].mxu0 %v2469_v19 }
 0x434   :  { %v2086_v51 = vpop.permute.xlu0 %2085 }
 0x435   :  { %v2091_v44 = vmax.f32 %v11659_v0, %v2086_v51  ;;  %v2287_v51 = vsel %vm140_vm4, %v2285_v21, %v2286_v23  ;;  %v2292_v23 = vrot.slane %v2273_v15, 3  ;;  %v10464_v15 = vld [vmem:[%s13619_s1 + $0x200] sm:$0xff]  }
 0x436   :  { %v2088_v47 = vpop.permute.xlu1 %2087 }
 0x437   :  { %v2094_v54 = vsel %vm2093_vm12, %v2091_v44, -inf  ;;  %v2092_v5 = vmax.f32 %v11661_v35, %v2088_v47  ;;  %v10404_v44 = vld [vmem:[%s13619_s1 + $0x8] sm:$0xff]   ;;  %v10407_v47 = vld [vmem:[%s13619_s1 + $0x50] sm:$0xff]  }
 0x438   :  { %v2095_v49 = vrot.slane %v2094_v54, 4 }
 0x439   :  { %v2101_v55 = vsel %vm2093_vm12, %v2092_v5, -inf  ;;  %v10411_v5 = vld [vmem:[%s13619_s1 + $0x58] sm:$0xff]  }
 0x43a   :  { %v2096_v61 = vmax.f32 %v2094_v54, %v2095_v49  ;;  %v2102_v60 = vrot.slane %v2101_v55, 4  ;;  %v10408_v54 = vld [vmem:[%s13619_s1 + $0x10] sm:$0xff]   ;;  %v10412_v49 = vld [vmem:[%s13619_s1 + $0x18] sm:$0xff]  }
 0x43c   :  { %v2097_v43 = vrot.slane %v2096_v61, 2  ;;  %v2103_v63 = vmax.f32 %v2101_v55, %v2102_v60  ;;  %v10416_v55 = vld [vmem:[%s13619_s1 + $0x20] sm:$0xff]   ;;  %v10420_v60 = vld [vmem:[%s13619_s1 + $0x28] sm:$0xff]  }
 0x43e   :  { %v2098_v0 = vmax.f32 %v2096_v61, %v2097_v43  ;;  %v2104_v62 = vrot.slane %v2103_v63, 2  ;;  %v10419_v61 = vld [vmem:[%s13619_s1 + $0x68] sm:$0xff]   ;;  %v10423_v43 = vld [vmem:[%s13619_s1 + $0x70] sm:$0xff]  }
 0x440   :  { %v2099_v3 = vrot.slane %v2098_v0, 1  ;;  %v2105_v8 = vmax.f32 %v2103_v63, %v2104_v62  ;;  %v2254_v63 = vld [vmem:[#allocation2] sm:$0xc0]  ;;  %v10424_v62 = vld [vmem:[%s13619_s1 + $0x30] sm:$0xff]  }
 0x442   :  { %v11842_v9 = vmax.f32 %v2098_v0, %v2099_v3  ;;  %v2106_v35 = vrot.slane %v2105_v8, 1  ;;  %v2261_v0 = vld [vmem:[#allocation2 + $0x48] sm:$0xc0]  ;;  %v2266_v3 = vpack.c.bf16 %v11718_v2, %v2254_v63  ;;  %v10455_v63 = vld [vmem:[%s13619_s1 + $0x170] sm:$0xff]  }
 0x443   :  { %v2271_v11 = vpack.c.bf16 %v11751_v18, %v2261_v0  ;;  %v10456_v0 = vld [vmem:[%s13619_s1 + $0x130] sm:$0xff]  }
 0x444   :  { %vm2112_vm0 = vcmp.gt.f32.partialorder %v11842_v9, 1.0  ;;  %v11845_v13 = vmax.f32 %v2105_v8, %v2106_v35  ;;  %v2268_v8 = vpack.c.bf16 %v11825_v29, %v11825_v29  ;;  %v10427_v35 = vld [vmem:[%s13619_s1 + $0x78] sm:$0xff]   ;;  %v10431_v29 = vld [vmem:[%s13619_s1 + $0x140] sm:$0xff]  }
 0x445   :  { %v11848_v14 = vsel %vm2112_vm0, 1.0, %v11808_v20  ;;  %v2291_v21 = vrot.slane %v2271_v11, 3  ;;  %v2406_v11 = vpack.c.bf16 %v11778_v38, %v11718_v2  ;;  %v10466_v2 = vld [vmem:[%s13619_s1 + $0x208] sm:$0xff]  }
 0x446   :  { %v2118_v39 = vpack.c.bf16 %v11848_v14, %v11848_v14  ;;  %vm2113_vm2 = vcmp.gt.f32.partialorder %v11845_v13, 1.0 }
 0x447   :  { %v11855_v17 = vsel %vm2113_vm2, 1.0, %v11808_v20 }
 0x448   :  { %v2119_v19 = vpack.c.bf16 %v11855_v17, %v11855_v17  ;;  %v2130_v26 = vunpack.c.l.b16 %v2118_v39  ;;  %v2282_v39 = vrot.slane %v2266_v3, 3  ;;  %v10460_v3 = vld [vmem:[%s13619_s1 + $0x138] sm:$0xff]  }
 0x44a   :  { %v2131_v59 = vunpack.c.l.b16 %v2119_v19  ;;  %v2283_v19 = vrot.slane %v2268_v8, 3  ;;  %v10463_v8 = vld [vmem:[%s13619_s1 + $0x240] sm:$0xff]  }
 0x44c   :  { %v2133_v28 = vsel %vm2132_vm3, %v2131_v59, %v2130_v26  ;;  %v2260_v26 = vld [vmem:[#allocation2 + $0x40] sm:$0xc0]  ;;  %v2284_v59 = vsel %vm140_vm4, %v2282_v39, %v2283_v19  ;;  %v2503_v39 = vpack.c.bf16 %v11775_v57, %v11814_v24  ;;  %v10469_v24 = vld [vmem:[%s13619_s1 + $0x258] sm:$0xff]  }
 0x44d   :  { %v2134_v30 = vpack.c.b16 %v2133_v28, %v2133_v28  ;;  %v2270_v28 = vpack.c.bf16 %v11760_v25, %v2260_v26  ;;  %v10471_v26 = vld [vmem:[%s13619_s1 + $0x260] sm:$0xff]   ;;  %v10473_v25 = vld [vmem:[%s13619_s1 + $0x268] sm:$0xff]  }
 0x44f   :  { %10164 = vmatmul.mubr.msk.bf16.vlgmr.msra.gmra.mrb[24].mxu1 %vm2093_vm12, %v2134_v30  ;;  %v10435_v30 = vld [vmem:[%s13619_s1 + $0x148] sm:$0xff]  }
 0x450   :  { %9491 = vmatpush3.bf16.msra.mxu1 %v10400_v27  ;;  %3237 = vmatprep.mubr.bf16.mxu1 %v2287_v51  ;;  %v2272_v27 = vpack.c.bf16 %v11838_v32, %v11838_v32  ;;  %v10436_v51 = vld [vmem:[%s13619_s1 + $0x108] sm:$0xff]   ;;  %v10439_v32 = vld [vmem:[%s13619_s1 + $0x150] sm:$0xff]  }
 0x451   :  { %9492 = vmatprep.subr.bf16.mxu1 %v10403_v40  ;;  %v2293_v40 = vsel %vm140_vm4, %v2291_v21, %v2292_v23  ;;  %v2521_v21 = vrot.slane %v2503_v39, 1 }
 0x454   :  { %9493 = vmatpush3.bf16.msra.mxu1 %v10404_v44  ;;  %v2288_v44 = vrot.slane %v2270_v28, 3  ;;  %v2494_v28 = vld [vmem:[#allocation2 + $0x30] sm:$0x3] }
 0x455   :  { %9494 = vmatprep.subr.bf16.mxu1 %v10407_v47  ;;  %v2289_v47 = vrot.slane %v2272_v27, 3  ;;  %v2501_v27 = vld [vmem:[#allocation2 + $0x78] sm:$0x3] }
 0x458   :  { %9495 = vmatpush3.bf16.msra.mxu1 %v10408_v54  ;;  %v10440_v54 = vld [vmem:[%s13619_s1 + $0x110] sm:$0xff]  }
 0x459   :  { %9496 = vmatprep.subr.bf16.mxu1 %v10411_v5  ;;  %v2290_v5 = vsel %vm140_vm4, %v2288_v44, %v2289_v47  ;;  %v10477_v44 = vld [vmem:[%s13619_s1 + $0x278] sm:$0xff]   ;;  %v2507_v47 = vpack.c.bf16 %v11792_v56, %v11823_v31 }
 0x45c   :  { %9497 = vmatpush3.bf16.msra.mxu1 %v10412_v49  ;;  %v2407_v49 = vpack.c.bf16 %v11775_v57, %v11716_v58  ;;  %v10448_v58 = vld [vmem:[%s13619_s1 + $0x120] sm:$0xff]   ;;  %v10468_v57 = vld [vmem:[%s13619_s1 + $0x210] sm:$0xff]  }
 0x45d   :  { %9498 = vmatprep.subr.bf16.mxu1 %v10415_v53  ;;  %v10443_v53 = vld [vmem:[%s13619_s1 + $0x158] sm:$0xff]  }
 0x460   :  { %9499 = vmatpush3.bf16.msra.mxu1 %v10416_v55  ;;  %v10444_v55 = vld [vmem:[%s13619_s1 + $0x118] sm:$0xff]  }
 0x461   :  { %9500 = vmatprep.subr.bf16.mxu1 %v10419_v61  ;;  %v10447_v61 = vld [vmem:[%s13619_s1 + $0x160] sm:$0xff]  }
 0x464   :  { %9501 = vmatpush3.bf16.msra.mxu1 %v10420_v60  ;;  %v10451_v60 = vld [vmem:[%s13619_s1 + $0x168] sm:$0xff]  }
 0x465   :  { %9502 = vmatprep.subr.bf16.mxu1 %v10423_v43  ;;  %v10452_v43 = vld [vmem:[%s13619_s1 + $0x128] sm:$0xff]  }
 0x468   :  { %9503 = vmatpush3.bf16.msra.mxu1 %v10424_v62  ;;  %v10459_v62 = vld [vmem:[%s13619_s1 + $0x178] sm:$0xff]  }
 0x469   :  { %9504 = vmatprep.subr.bf16.mxu1 %v10427_v35  ;;  %v2495_v35 = vld [vmem:[#allocation2 + $0x38] sm:$0x3] }
 0x46a   :  { %v2505_v19 = vpack.c.bf16 %v2495_v35, %v2495_v35 }
 0x46c   :  { %9505 = vmatpush3.bf16.msra.mxu1 %v10428_v16  ;;  %v10465_v16 = vld [vmem:[%s13619_s1 + $0x248] sm:$0xff]   ;;  %v2522_v23 = vrot.slane %v2505_v19, 1 }
 0x46d   :  { %9546 = vmatprep.subr.bf16.mxu1 %v10431_v29  ;;  %v10467_v29 = vld [vmem:[%s13619_s1 + $0x250] sm:$0xff]  }
 0x46e   :  { %v2523_v18 = vsel %vm379_vm1, %v2521_v21, %v2522_v23 }
 0x46f   :  { %3238 = vmatmul.mubr.bf16.vlgmr.msra.gmra.mrb[28].mxu1 %v2284_v59  ;;  %v10472_v59 = vld [vmem:[%s13619_s1 + $0x220] sm:$0xff]  }
 0x470   :  { %9547 = vmatpush3.bf16.msra.mxu1 %v10432_v37  ;;  %3245 = vmatprep.mubr.bf16.mxu1 %v2293_v40  ;;  %v10475_v37 = vld [vmem:[%s13619_s1 + $0x270] sm:$0xff]   ;;  %v2502_v40 = vpack.c.bf16 %v11778_v38, %v11817_v22 }
 0x471   :  { %9548 = vmatprep.subr.bf16.mxu1 %v10435_v30  ;;  %v10476_v30 = vld [vmem:[%s13619_s1 + $0x230] sm:$0xff]  }
 0x472   :  { %v2500_v22 = vld [vmem:[#allocation2 + $0x70] sm:$0x3] }
 0x474   :  { %9549 = vmatpush3.bf16.msra.mxu1 %v10436_v51  ;;  %v2504_v51 = vpack.c.bf16 %v2494_v28, %v2494_v28 }
 0x475   :  { %9550 = vmatprep.subr.bf16.mxu1 %v10439_v32  ;;  %v2509_v32 = vpack.c.bf16 %v2501_v27, %v2501_v27 }
 0x477   :  { %3246 = vmatmul.mubr.bf16.gmra.mrb[32].mxu1 %v2290_v5  ;;  %v2518_v5 = vrot.slane %v2502_v40, 1  ;;  %v2528_v38 = vrot.slane %v2509_v32, 1 }
 0x478   :  { %9551 = vmatpush3.bf16.msra.mxu1 %v10440_v54  ;;  %3335 = vmatprep.mubr.bf16.mxu1 %v2407_v49  ;;  %v10478_v54 = vld [vmem:[%s13619_s1 + $0x238] sm:$0xff]   ;;  %v2519_v49 = vrot.slane %v2504_v51, 1 }
 0x479   :  { %9552 = vmatprep.subr.bf16.mxu1 %v10443_v53  ;;  %v2527_v53 = vrot.slane %v2507_v47, 1  ;;  %v8801_v47 = vld [vmem:[%s13620_s2] ss:$0 sm:$0xff] }
 0x47b   :  { %v2529_v56 = vsel %vm379_vm1, %v2527_v53, %v2528_v38 }
 0x47c   :  { %9553 = vmatpush3.bf16.msra.mxu1 %v10444_v55  ;;  %v2520_v55 = vsel %vm379_vm1, %v2518_v5, %v2519_v49 }
 0x47d   :  { %9554 = vmatprep.subr.bf16.mxu1 %v10447_v61  ;;  %v2506_v61 = vpack.c.bf16 %v11794_v1, %v11828_v34 }
 0x47f   :  { %v2524_v31 = vrot.slane %v2506_v61, 1 }
 0x480   :  { %9555 = vmatpush3.bf16.msra.mxu1 %v10448_v58  ;;  %v2508_v58 = vpack.c.bf16 %v2500_v22, %v2500_v22 }
 0x481   :  { %9556 = vmatprep.subr.bf16.mxu1 %v10451_v60 }
 0x482   :  { %v2525_v60 = vrot.slane %v2508_v58, 1 }
 0x484   :  { %9557 = vmatpush3.bf16.msra.mxu1 %v10452_v43  ;;  %v2526_v43 = vsel %vm379_vm1, %v2524_v31, %v2525_v60 }
 0x485   :  { %9558 = vmatprep.subr.bf16.mxu1 %v10455_v63 }
 0x488   :  { %9559 = vmatpush3.bf16.msra.mxu1 %v10456_v0 }
 0x489   :  { %9560 = vmatprep.subr.bf16.mxu1 %v10459_v62 }
 0x48c   :  { %9561 = vmatpush3.bf16.msra.mxu1 %v10460_v3 }
 0x48d   :  { %9602 = vmatprep.subr.bf16.mxu1 %v10463_v8 }
 0x48f   :  { %3336 = vmatmul.mubr.bf16.vlgmr.msra.gmra.mrb[36].mxu1 %v2406_v11 }
 0x490   :  { %9603 = vmatpush3.bf16.msra.mxu1 %v10464_v15  ;;  %3343 = vmatprep.mubr.bf16.mxu1 %v2409_v36  ;;  %v10470_v36 = vld [vmem:[%s13619_s1 + $0x218] sm:$0xff]  }
 0x491   :  { %9604 = vmatprep.subr.bf16.mxu1 %v10465_v16 }
 0x494   :  { %9605 = vmatpush3.bf16.msra.mxu1 %v10466_v2 }
 0x495   :  { %9606 = vmatprep.subr.bf16.mxu1 %v10467_v29 }
 0x497   :  { %3344 = vmatmul.mubr.bf16.gmra.mrb[40].mxu1 %v2408_v52  ;;  %v10474_v52 = vld [vmem:[%s13619_s1 + $0x228] sm:$0xff]  }
 0x498   :  { %9607 = vmatpush3.bf16.msra.mxu1 %v10468_v57  ;;  %3433 = vmatprep.mubr.bf16.mxu1 %v2523_v18 }
 0x499   :  { %9608 = vmatprep.subr.bf16.mxu1 %v10469_v24 }
 0x49a   :  { %v9534_v63 = vpop.f32.mrb[32].mxu0 }
 0x49b   :  { %v9535_v0 = vpop.f32.mrb[33].mxu0 }
 0x49c   :  { %9609 = vmatpush3.bf16.msra.mxu1 %v10470_v36  ;;  %v9536_v62 = vadd.f32 %v9535_v0, %v9534_v63  ;;  %v9537_v3 = vpop.f32.mrb[34].mxu0 }
 0x49d   :  { %9610 = vmatprep.subr.bf16.mxu1 %v10471_v26  ;;  %v9538_v8 = vpop.f32.mrb[35].mxu0 }
 0x49e   :  { %v9539_v35 = vadd.f32 %v9538_v8, %v9537_v3 }
 0x4a0   :  { %9611 = vmatpush3.bf16.msra.mxu1 %v10472_v59 }
 0x4a1   :  { %9612 = vmatprep.subr.bf16.mxu1 %v10473_v25 }
 0x4a4   :  { %9613 = vmatpush3.bf16.msra.mxu1 %v10474_v52  ;;  %v8790_v52 = vld [vmem:[%s13624_s6] ss:$0 sm:$0xff] }
 0x4a5   :  { %9614 = vmatprep.subr.bf16.mxu1 %v10475_v37 }
 0x4a6   :  { %v9540_v11 = vpop.f32.mrb[36].mxu0 }
 0x4a7   :  { %v9541_v15 = vpop.f32.mrb[37].mxu0 }
 0x4a8   :  { %9615 = vmatpush3.bf16.msra.mxu1 %v10476_v30  ;;  %v9542_v16 = vadd.f32 %v9541_v15, %v9540_v11  ;;  %v9543_v1 = vpop.f32.mrb[38].mxu0 }
 0x4a9   :  { %9616 = vmatprep.subr.bf16.mxu1 %v10477_v44  ;;  %v9544_v34 = vpop.f32.mrb[39].mxu0 }
 0x4aa   :  { %v9545_v39 = vadd.f32 %v9544_v34, %v9543_v1 }
 0x4ac   :  { %9617 = vmatpush3.bf16.msra.mxu1 %v10478_v54 }
 0x4af   :  { %3434 = vmatmul.mubr.bf16.vlgmr.msra.gmra.mrb[44].mxu1 %v2520_v55 }
 0x4b0   :  { %3441 = vmatprep.mubr.bf16.mxu1 %v2529_v56 }
 0x4b7   :  { %3442 = vmatmul.mubr.bf16.gmra.mrb[48].mxu1 %v2526_v43 }
 0x4ba   :  { %v9590_v19 = vpop.f32.mrb[40].mxu0 }
 0x4bb   :  { %v9591_v2 = vpop.f32.mrb[41].mxu0 }
 0x4bc   :  { %v9592_v29 = vadd.f32 %v9591_v2, %v9590_v19  ;;  %v9593_v21 = vpop.f32.mrb[42].mxu0 }
 0x4bd   :  { %v9594_v23 = vpop.f32.mrb[43].mxu0 }
 0x4be   :  { %v9595_v57 = vadd.f32 %v9594_v23, %v9593_v21 }
 0x4c2   :  { %v9596_v24 = vpop.f32.mrb[44].mxu0 }
 0x4c3   :  { %v9597_v18 = vpop.f32.mrb[45].mxu0 }
 0x4c4   :  { %v9598_v36 = vadd.f32 %v9597_v18, %v9596_v24  ;;  %v9599_v26 = vpop.f32.mrb[46].mxu0 }
 0x4c5   :  { %v9600_v59 = vpop.f32.mrb[47].mxu0 }
 0x4c6   :  { %v9601_v25 = vadd.f32 %v9600_v59, %v9599_v26 }
 0x522   :  { %v2176_v37 = vpop.f32.mrb[24].mxu1 }
 0x523   :  { %v12040_v28 = vadd.f32 %v8790_v52, %v2176_v37  ;;  %v10165_v27 = vpop.f32.mrb[25].mxu1 }
 0x524   :  { %v2179_v30 = vpop.f32.mrb[26].mxu1 }
 0x525   :  { %vm2184_vm7 = vcmp.gt.f32.partialorder %v12040_v28, 1.0  ;;  %2189 = vst.msk [vmem:[#allocation9] sm:$0x3] %vm2187_vm6, %v12040_v28  ;;  %v10166_v40 = vpop.f32.mrb[27].mxu1 }
 0x526   :  { %v12046_v51 = vsel %vm2184_vm7, 1.0, %v11808_v20 }
 0x527   :  { %2188 = vst.msk [vmem:[#allocation7] sm:$0x3] %vm2187_vm6, %v12046_v51 }
 0x542   :  { %v9506_v44 = vpop.f32.mrb[28].mxu1 }
 0x543   :  { %v9507_v32 = vpop.f32.mrb[29].mxu1 }
 0x544   :  { %v9508_v54 = vadd.f32 %v9507_v32, %v9506_v44  ;;  %v9509_v5 = vpop.f32.mrb[30].mxu1 }
 0x545   :  { %v9510_v49 = vpop.f32.mrb[31].mxu1 }
 0x546   :  { %v3240_v53 = vadd.f32 %v9508_v54, %v8801_v47  ;;  %v9511_v38 = vadd.f32 %v9510_v49, %v9509_v5 }
 0x548   :  { %v3243_v22 = vadd.f32 %v9511_v38, %v8801_v47  ;;  %v3289_v55 = vadd.f32 %v9536_v62, %v3240_v53 }
 0x54a   :  { %v3292_v61 = vadd.f32 %v9539_v35, %v3243_v22  ;;  %v9512_v58 = vpop.f32.mrb[32].mxu1 }
 0x54b   :  { %v9513_v56 = vpop.f32.mrb[33].mxu1 }
 0x54c   :  { %v9514_v31 = vadd.f32 %v9513_v56, %v9512_v58  ;;  %v9515_v60 = vpop.f32.mrb[34].mxu1  ;;  %v10482_v58 = vld [vmem:[%s13621_s3 + $0x80] sm:$0xff]  }
 0x54d   :  { %v9516_v43 = vpop.f32.mrb[35].mxu1 }
 0x54e   :  { %v3248_v63 = vadd.f32 %v9514_v31, %v8801_v47  ;;  %v9517_v0 = vadd.f32 %v9516_v43, %v9515_v60  ;;  %v10483_v43 = vld [vmem:[%s13621_s3 + $0x48] sm:$0xff]  }
 0x550   :  { %v3251_v3 = vadd.f32 %v9517_v0, %v8801_v47  ;;  %v3297_v8 = vadd.f32 %v9542_v16, %v3248_v63  ;;  %v10484_v63 = vld [vmem:[%s13621_s3 + $0xc8] sm:$0xff]  }
 0x552   :  { %v3300_v11 = vadd.f32 %v9545_v39, %v3251_v3  ;;  %v10485_v3 = vld [vmem:[%s13621_s3 + $0x8] sm:$0xff]  }
 0x562   :  { %v9562_v15 = vpop.f32.mrb[36].mxu1 }
 0x563   :  { %v9563_v1 = vpop.f32.mrb[37].mxu1 }
 0x564   :  { %v9564_v34 = vadd.f32 %v9563_v1, %v9562_v15  ;;  %v9565_v19 = vpop.f32.mrb[38].mxu1  ;;  %v10488_v15 = vld [vmem:[%s13621_s3 + $0xd0] sm:$0xff]  }
 0x565   :  { %v9566_v2 = vpop.f32.mrb[39].mxu1  ;;  %v10489_v1 = vld [vmem:[%s13621_s3 + $0x10] sm:$0xff]  }
 0x566   :  { %v3338_v21 = vadd.f32 %v9564_v34, %v3289_v55  ;;  %v9567_v23 = vadd.f32 %v9566_v2, %v9565_v19  ;;  %v10490_v34 = vld [vmem:[%s13621_s3 + $0x90] sm:$0xff]   ;;  %v10491_v19 = vld [vmem:[%s13621_s3 + $0x58] sm:$0xff]  }
 0x567   :  { %v10492_v2 = vld [vmem:[%s13621_s3 + $0xd8] sm:$0xff]  }
 0x568   :  { %v3341_v24 = vadd.f32 %v9567_v23, %v3292_v61  ;;  %v3387_v62 = vadd.f32 %v9592_v29, %v3338_v21  ;;  %v10481_v61 = vld [vmem:[%s13621_s3] sm:$0xff]   ;;  %v10493_v21 = vld [vmem:[%s13621_s3 + $0x18] sm:$0xff]  }
 0x569   :  { %v10494_v23 = vld [vmem:[%s13621_s3 + $0x98] sm:$0xff]  }
 0x56a   :  { %v3390_v35 = vadd.f32 %v9595_v57, %v3341_v24  ;;  %v9568_v18 = vpop.f32.mrb[40].mxu1  ;;  %v10495_v24 = vld [vmem:[%s13621_s3 + $0x60] sm:$0xff]  }
 0x56b   :  { %v9569_v26 = vpop.f32.mrb[41].mxu1 }
 0x56c   :  { %v9570_v59 = vadd.f32 %v9569_v26, %v9568_v18  ;;  %v9571_v52 = vpop.f32.mrb[42].mxu1  ;;  %v10498_v18 = vld [vmem:[%s13621_s3 + $0xa0] sm:$0xff]   ;;  %v10499_v26 = vld [vmem:[%s13621_s3 + $0x68] sm:$0xff]  }
 0x56d   :  { %v9572_v37 = vpop.f32.mrb[43].mxu1 }
 0x56e   :  { %v3346_v27 = vadd.f32 %v9570_v59, %v3297_v8  ;;  %v9573_v30 = vadd.f32 %v9572_v37, %v9571_v52  ;;  %v10486_v8 = vld [vmem:[%s13621_s3 + $0x88] sm:$0xff]  }
 0x56f   :  { %v10500_v59 = vld [vmem:[%s13621_s3 + $0xe8] sm:$0xff]  }
 0x570   :  { %v3349_v40 = vadd.f32 %v9573_v30, %v3300_v11  ;;  %v3395_v16 = vadd.f32 %v9598_v36, %v3346_v27  ;;  %v10479_v36 = vld [vmem:[%s13621_s3 + $0x40] sm:$0xff]   ;;  %v10487_v11 = vld [vmem:[%s13621_s3 + $0x50] sm:$0xff]   ;;  %v10501_v52 = vld [vmem:[%s13621_s3 + $0x28] sm:$0xff]  }
 0x571   :  { %9630 = vmatprep.subr.bf16.mxu0 %v10479_v36  ;;  %v10502_v37 = vld [vmem:[%s13621_s3 + $0xa8] sm:$0xff]   ;;  %v10503_v27 = vld [vmem:[%s13621_s3 + $0x70] sm:$0xff]  }
 0x572   :  { %v3398_v39 = vadd.f32 %v9601_v25, %v3349_v40  ;;  %v10480_v25 = vld [vmem:[%s13621_s3 + $0xc0] sm:$0xff]   ;;  %9631 = vmatpush3.bf16.msra.mxu0 %v10481_v61  ;;  %v10504_v30 = vld [vmem:[%s13621_s3 + $0xf0] sm:$0xff]  }
 0x573   :  { %9652 = vmatprep.subr.bf16.mxu1 %v10480_v25  ;;  %9632 = vmatprep.subr.bf16.mxu0 %v10483_v43  ;;  %v10505_v40 = vld [vmem:[%s13621_s3 + $0x30] sm:$0xff]  }
 0x574   :  { %9653 = vmatpush3.bf16.msra.mxu1 %v10482_v58 }
 0x575   :  { %9654 = vmatprep.subr.bf16.mxu1 %v10484_v63 }
 0x576   :  { %9633 = vmatpush3.bf16.msra.mxu0 %v10485_v3 }
 0x577   :  { %9634 = vmatprep.subr.bf16.mxu0 %v10487_v11 }
 0x578   :  { %9655 = vmatpush3.bf16.msra.mxu1 %v10486_v8 }
 0x579   :  { %9656 = vmatprep.subr.bf16.mxu1 %v10488_v15 }
 0x57a   :  { %9635 = vmatpush3.bf16.msra.mxu0 %v10489_v1 }
 0x57b   :  { %9636 = vmatprep.subr.bf16.mxu0 %v10491_v19 }
 0x57c   :  { %9657 = vmatpush3.bf16.msra.mxu1 %v10490_v34 }
 0x57d   :  { %9658 = vmatprep.subr.bf16.mxu1 %v10492_v2 }
 0x57e   :  { %9637 = vmatpush3.bf16.msra.mxu0 %v10493_v21 }
 0x57f   :  { %9638 = vmatprep.subr.bf16.mxu0 %v10495_v24 }
 0x580   :  { %9659 = vmatpush3.bf16.msra.mxu1 %v10494_v23 }
 0x582   :  { %v9618_v44 = vpop.f32.mrb[44].mxu1 }
 0x583   :  { %v9619_v47 = vpop.f32.mrb[45].mxu1 }
 0x584   :  { %v9620_v32 = vadd.f32 %v9619_v47, %v9618_v44  ;;  %v9621_v54 = vpop.f32.mrb[46].mxu1  ;;  %v10508_v44 = vld [vmem:[%s13621_s3 + $0xf8] sm:$0xff]  }
 0x585   :  { %v9622_v5 = vpop.f32.mrb[47].mxu1  ;;  %v10509_v47 = vld [vmem:[%s13621_s3 + $0x38] sm:$0xff]  }
 0x586   :  { %v12053_v49 = vadd.f32 %v9620_v32, %v3387_v62  ;;  %v9623_v53 = vadd.f32 %v9622_v5, %v9621_v54  ;;  %v10496_v62 = vld [vmem:[%s13621_s3 + $0xe0] sm:$0xff]   ;;  %v10510_v32 = vld [vmem:[%s13621_s3 + $0xb8] sm:$0xff]  }
 0x587   :  { %9660 = vmatprep.subr.bf16.mxu1 %v10496_v62  ;;  %v10515_v54 = vld [vmem:[%s13621_s3 + $0x140] sm:$0xff]  }
 0x588   :  { %v12055_v29 = vadd.f32 %v9623_v53, %v3390_v35  ;;  %3454 = vrot.lane.b32.xlu0 %v12053_v49, %s10911_s29  ;;  %v10497_v35 = vld [vmem:[%s13621_s3 + $0x20] sm:$0xff]   ;;  %9661 = vmatpush3.bf16.msra.mxu1 %v10498_v18 }
 0x589   :  { %9639 = vmatpush3.bf16.msra.mxu0 %v10497_v35  ;;  %9662 = vmatprep.subr.bf16.mxu1 %v10500_v59 }
 0x58a   :  { %v9624_v57 = vpop.f32.mrb[48].mxu1  ;;  %3456 = vrot.lane.b32.xlu1 %v12055_v29, %s10911_s29  ;;  %9640 = vmatprep.subr.bf16.mxu0 %v10499_v26 }
 0x58b   :  { %v9625_v38 = vpop.f32.mrb[49].mxu1 }
 0x58c   :  { %v9626_v22 = vadd.f32 %v9625_v38, %v9624_v57  ;;  %v9627_v55 = vpop.f32.mrb[50].mxu1  ;;  %9663 = vmatpush3.bf16.msra.mxu1 %v10502_v37 }
 0x58d   :  { %v9628_v56 = vpop.f32.mrb[51].mxu1  ;;  %9641 = vmatpush3.bf16.msra.mxu0 %v10501_v52  ;;  %9664 = vmatprep.subr.bf16.mxu1 %v10504_v30 }
 0x58e   :  { %v12073_v31 = vadd.f32 %v9626_v22, %v3395_v16  ;;  %v9629_v60 = vadd.f32 %v9628_v56, %v9627_v55  ;;  %9642 = vmatprep.subr.bf16.mxu0 %v10503_v27  ;;  %v10506_v16 = vld [vmem:[%s13621_s3 + $0xb0] sm:$0xff]   ;;  %v3480_v56 = vmul.f32 0.9, %v11554_v4 }
 0x590   :  { %v12081_v0 = vadd.f32 %v9629_v60, %v3398_v39  ;;  %3458 = vrot.lane.b32.xlu0 %v12073_v31, %s10911_s29  ;;  %v10507_v39 = vld [vmem:[%s13621_s3 + $0x78] sm:$0xff]   ;;  %9665 = vmatpush3.bf16.msra.mxu1 %v10506_v16 }
 0x591   :  { %9643 = vmatpush3.bf16.msra.mxu0 %v10505_v40  ;;  %9666 = vmatprep.subr.bf16.mxu1 %v10508_v44 }
 0x592   :  { %3460 = vrot.lane.b32.xlu1 %v12081_v0, %s10911_s29  ;;  %9644 = vmatprep.subr.bf16.mxu0 %v10507_v39 }
 0x594   :  { %9667 = vmatpush3.bf16.msra.mxu1 %v10510_v32 }
 0x595   :  { %9645 = vmatpush3.bf16.msra.mxu0 %v10509_v47  ;;  %10167 = vmatprep.subr.bf16.mxu1 %v11808_v20 }
 0x596   :  { %9674 = vmatprep.subr.bf16.mxu0 %v10515_v54 }
 0x5fa   :  { %v3455_v5 = vpop.permute.xlu0 %3454 }
 0x5fb   :  { %v3466_v53 = vmax.f32 %v12053_v49, %v3455_v5 }
 0x5fc   :  { %v3457_v57 = vpop.permute.xlu1 %3456 }
 0x5fd   :  { %3470 = vst.msk [vmem:[#allocation6] sm:$0xff] %vm1332_vm10, %v3466_v53  ;;  %v3467_v38 = vmax.f32 %v12055_v29, %v3457_v57  ;;  %v10517_v53 = vld [vmem:[%s13621_s3 + $0x100] sm:$0xff]  }
 0x5fe   :  { %v10518_v57 = vld [vmem:[%s13621_s3 + $0x180] sm:$0xff]  }
 0x5ff   :  { %3471 = vst.msk [vmem:[#allocation6 + $0x8] sm:$0xff] %vm1332_vm10, %v3467_v38 }
 0x602   :  { %v3459_v36 = vpop.permute.xlu0 %3458 }
 0x603   :  { %v3468_v25 = vmax.f32 %v12073_v31, %v3459_v36 }
 0x604   :  { %v3461_v22 = vpop.permute.xlu1 %3460 }
 0x605   :  { %3472 = vst.msk [vmem:[#allocation6 + $0x10] sm:$0xff] %vm1332_vm10, %v3468_v25  ;;  %v3469_v55 = vmax.f32 %v12081_v0, %v3461_v22  ;;  %v3481_v0 = vmul.f32 0.9, %v11563_v10 }
 0x606   :  { %v3474_v61 = vld [vmem:[#allocation6] ss:$2 sm:$0xff]  ;;  %v3476_v58 = vld [vmem:[#allocation6 + $0x1] ss:$2 sm:$0xff] }
 0x607   :  { %v3478_v49 = vmax.f32 %v3474_v61, %v3476_v58  ;;  %3473 = vst.msk [vmem:[#allocation6 + $0x18] sm:$0xff] %vm1332_vm10, %v3469_v55  ;;  %v10521_v58 = vld [vmem:[%s13621_s3 + $0x148] sm:$0xff]  }
 0x609   :  { %v3482_v60 = vadd.f32 %v3480_v56, %v3478_v49  ;;  %v10522_v49 = vld [vmem:[%s13621_s3 + $0x108] sm:$0xff]  }
 0x60b   :  { %v12179_v29 = vsub.f32 %v3482_v60, %v11559_v6  ;;  %v10523_v60 = vld [vmem:[%s13621_s3 + $0x188] sm:$0xff]  }
 0x60d   :  { %vm3486_vm8 = vcmp.gt.f32.partialorder %v12179_v29, 1.0 }
 0x60e   :  { %v12183_v31 = vsel %vm3486_vm8, 1.0, %v11808_v20  ;;  %v3475_v43 = vld [vmem:[#allocation6 + $0x10] ss:$2 sm:$0xff]  ;;  %v3477_v63 = vld [vmem:[#allocation6 + $0x11] ss:$2 sm:$0xff] }
 0x60f   :  { %3492 = vst.msk [vmem:[#allocation3 + $0x8] sm:$0xff] %vm1332_vm10, %v12183_v31  ;;  %v3479_v4 = vmax.f32 %v3475_v43, %v3477_v63  ;;  %v10524_v43 = vld [vmem:[%s13621_s3 + $0x150] sm:$0xff]  }
 0x610   :  { %v10525_v63 = vld [vmem:[%s13621_s3 + $0x110] sm:$0xff]  }
 0x611   :  { %v3483_v3 = vadd.f32 %v3481_v0, %v3479_v4  ;;  %v10526_v0 = vld [vmem:[%s13621_s3 + $0x190] sm:$0xff]   ;;  %v10527_v4 = vld [vmem:[%s13621_s3 + $0x158] sm:$0xff]  }
 0x613   :  { %v12189_v8 = vsub.f32 %v3483_v3, %v11567_v33  ;;  %v10528_v3 = vld [vmem:[%s13621_s3 + $0x118] sm:$0xff]  }
 0x615   :  { %vm3487_vm9 = vcmp.gt.f32.partialorder %v12189_v8, 1.0 }
 0x616   :  { %v12193_v6 = vsel %vm3487_vm9, 1.0, %v11808_v20  ;;  %v3494_v11 = vld [vmem:[#allocation3 + $0x5] sm:$0xff] }
 0x617   :  { %v3500_v15 = vld [vmem:[#allocation3 + $0x6] sm:$0xff]  ;;  %3493 = vst.msk [vmem:[#allocation3 + $0x20] sm:$0xff] %vm1332_vm10, %v12193_v6  ;;  %v3496_v10 = vpack.c.bf16 %v3494_v11, %v3494_v11  ;;  %v10529_v11 = vld [vmem:[%s13621_s3 + $0x198] sm:$0xff]  }
 0x618   :  { %v3506_v1 = vld [vmem:[#allocation3 + $0x7] sm:$0xff]  ;;  %v3502_v34 = vpack.c.bf16 %v3500_v15, %v3500_v15 }
 0x619   :  { %v3508_v19 = vpack.c.bf16 %v3506_v1, %v3506_v1  ;;  %v3512_v2 = vld [vmem:[#allocation3 + $0x8] sm:$0xff]  ;;  %3498 = vst [vmem:[#allocation5] sm:$0xf] %v3496_v10  ;;  %v10530_v15 = vld [vmem:[%s13621_s3 + $0x160] sm:$0xff]  }
 0x61a   :  { %v3518_v21 = vld [vmem:[#allocation3 + $0x9] sm:$0xff]  ;;  %v3514_v24 = vpack.c.bf16 %v3512_v2, %v3512_v2  ;;  %3504 = vst [vmem:[#allocation5 + $0x4] sm:$0xf] %v3502_v34  ;;  %v10531_v1 = vld [vmem:[%s13621_s3 + $0x120] sm:$0xff]  }
 0x61b   :  { %v3524_v23 = vld [vmem:[#allocation3 + $0xa] sm:$0xff]  ;;  %v3520_v33 = vpack.c.bf16 %v3518_v21, %v3518_v21  ;;  %3510 = vst [vmem:[#allocation5 + $0x8] sm:$0xf] %v3508_v19  ;;  %v10532_v10 = vld [vmem:[%s13621_s3 + $0x1a0] sm:$0xff]  }
 0x61c   :  { %v3526_v62 = vpack.c.bf16 %v3524_v23, %v3524_v23  ;;  %v3530_v35 = vld [vmem:[#allocation3 + $0xb] sm:$0xff]  ;;  %3516 = vst [vmem:[#allocation5 + $0xc] sm:$0xf] %v3514_v24 }
 0x61d   :  { %v3532_v18 = vpack.c.bf16 %v3530_v35, %v3530_v35  ;;  %3522 = vst [vmem:[#allocation5 + $0x10] sm:$0xf] %v3520_v33  ;;  %v10533_v34 = vld [vmem:[%s13621_s3 + $0x168] sm:$0xff]   ;;  %v10536_v21 = vld [vmem:[%s13621_s3 + $0x170] sm:$0xff]   ;;  %v10539_v33 = vld [vmem:[%s13621_s3 + $0x178] sm:$0xff]  }
 0x61e   :  { %3528 = vst [vmem:[#allocation5 + $0x14] sm:$0xf] %v3526_v62  ;;  %v3495_v26 = vld [vmem:[#allocation3 + $0x1d] sm:$0xff]  ;;  %v10534_v19 = vld [vmem:[%s13621_s3 + $0x128] sm:$0xff]   ;;  %v10537_v23 = vld [vmem:[%s13621_s3 + $0x130] sm:$0xff]  }
 0x61f   :  { %3534 = vst [vmem:[#allocation5 + $0x18] sm:$0xf] %v3532_v18  ;;  %v3501_v59 = vld [vmem:[#allocation3 + $0x1e] sm:$0xff]  ;;  %v3497_v37 = vpack.c.bf16 %v3495_v26, %v3495_v26  ;;  %v10535_v2 = vld [vmem:[%s13621_s3 + $0x1a8] sm:$0xff]   ;;  %v10538_v24 = vld [vmem:[%s13621_s3 + $0x1b0] sm:$0xff]  }
 0x620   :  { %v3507_v52 = vld [vmem:[#allocation3 + $0x1f] sm:$0xff]  ;;  %v3503_v27 = vpack.c.bf16 %v3501_v59, %v3501_v59  ;;  %v12267_v62 = vld [vmem:[#allocation2 + $0x8] sm:$0xff] }
 0x621   :  { %v3509_v30 = vpack.c.bf16 %v3507_v52, %v3507_v52  ;;  %v3513_v40 = vld [vmem:[#allocation3 + $0x20] sm:$0xff]  ;;  %3499 = vst [vmem:[#allocation5 + $0x1c] sm:$0xf] %v3497_v37  ;;  %v3536_v38 = vld [vmem:[#allocation5] sm:$0xff]  ;;  %v10541_v35 = vld [vmem:[%s13621_s3 + $0x1b8] sm:$0xff]  }
 0x622   :  { %v3519_v16 = vld [vmem:[#allocation3 + $0x21] sm:$0xff]  ;;  %v3515_v44 = vpack.c.bf16 %v3513_v40, %v3513_v40  ;;  %3505 = vst [vmem:[#allocation5 + $0x20] sm:$0xf] %v3503_v27  ;;  %v8884_v37 = vld [vmem:[%s13622_s4] ss:$0 sm:$0xff] }
 0x623   :  { %v3525_v39 = vld [vmem:[#allocation3 + $0x22] sm:$0xff]  ;;  %v3521_v47 = vpack.c.bf16 %v3519_v16, %v3519_v16  ;;  %3511 = vst [vmem:[#allocation5 + $0x24] sm:$0xf] %v3509_v30 }
 0x624   :  { %v3527_v32 = vpack.c.bf16 %v3525_v39, %v3525_v39  ;;  %v3531_v54 = vld [vmem:[#allocation3 + $0x23] sm:$0xff]  ;;  %3517 = vst [vmem:[#allocation5 + $0x28] sm:$0xf] %v3515_v44 }
 0x625   :  { %v3533_v5 = vpack.c.bf16 %v3531_v54, %v3531_v54  ;;  %3523 = vst [vmem:[#allocation5 + $0x2c] sm:$0xf] %v3521_v47 }
 0x626   :  { %3529 = vst [vmem:[#allocation5 + $0x30] sm:$0xf] %v3527_v32 }
 0x627   :  { %3535 = vst [vmem:[#allocation5 + $0x34] sm:$0xf] %v3533_v5 }
 0x629   :  { %v3540_v36 = vld [vmem:[#allocation5 + $0x1c] sm:$0xff] }
 0x62a   :  { %v10511_v25 = vld [vmem:[#allocation5 + $0x4] ss:$28 sps:$4 sm:$0xff]   ;;  %v8885_v55 = vcombine.low %v3536_v38, %v3540_v36 }
 0x62b   :  { %v10513_v22 = vld [vmem:[#allocation5 + $0xc] ss:$28 sps:$4 sm:$0xff]   ;;  %4067 = vmatprep.mubr.bf16.mxu0 %v10511_v25 }
 0x62c   :  { %v10516_v61 = vld [vmem:[#allocation5 + $0x8] ss:$28 sps:$4 sm:$0xff]   ;;  %4108 = vmatprep.mubr.bf16.mxu1 %v10513_v22  ;;  %4068 = vmatmul.mubr.bf16.vlgmr.msra.gmra.mrb[48].mxu0 %v8885_v55  ;;  %v10542_v18 = vld [vmem:[#allocation5 + $0x10] ss:$28 sps:$4 sm:$0xff]  }
 0x62d   :  { %v10519_v56 = vld [vmem:[#allocation5 + $0x14] ss:$28 sps:$4 sm:$0xff]   ;;  %4109 = vmatmul.mubr.bf16.vlgmr.msra.gmra.mrb[52].mxu1 %v10516_v61  ;;  %9675 = vmatpush3.bf16.msra.mxu0 %v10517_v53 }
 0x62e   :  { %10168 = vmatpush3.bf16.msra.mxu1 %v10518_v57  ;;  %4149 = vmatprep.mubr.bf16.mxu0 %v10519_v56  ;;  %v10543_v26 = vld [vmem:[#allocation5 + $0x18] ss:$28 sps:$4 sm:$0xff]  }
 0x62f   :  { %9676 = vmatprep.subr.bf16.mxu0 %v10521_v58  ;;  %10169 = vmatprep.subr.bf16.mxu1 %v11808_v20 }
 0x630   :  { %10183 = vmatprep.mubr.msk.bf16.mxu1 %vm10912_vm14, %v11808_v20 }
 0x631   :  { %9677 = vmatpush3.bf16.msra.mxu0 %v10522_v49 }
 0x632   :  { %10170 = vmatpush3.bf16.msra.mxu1 %v10523_v60  ;;  %9678 = vmatprep.subr.bf16.mxu0 %v10524_v43 }
 0x633   :  { %10171 = vmatprep.subr.bf16.mxu1 %v11808_v20 }
 0x635   :  { %9679 = vmatpush3.bf16.msra.mxu0 %v10525_v63 }
 0x636   :  { %10172 = vmatpush3.bf16.msra.mxu1 %v10526_v0  ;;  %9680 = vmatprep.subr.bf16.mxu0 %v10527_v4 }
 0x637   :  { %10173 = vmatprep.subr.bf16.mxu1 %v11808_v20 }
 0x639   :  { %9681 = vmatpush3.bf16.msra.mxu0 %v10528_v3 }
 0x63a   :  { %10174 = vmatpush3.bf16.msra.mxu1 %v10529_v11  ;;  %9682 = vmatprep.subr.bf16.mxu0 %v10530_v15 }
 0x63b   :  { %10175 = vmatprep.subr.bf16.mxu1 %v11808_v20 }
 0x63d   :  { %9683 = vmatpush3.bf16.msra.mxu0 %v10531_v1 }
 0x63e   :  { %10176 = vmatpush3.bf16.msra.mxu1 %v10532_v10  ;;  %9684 = vmatprep.subr.bf16.mxu0 %v10533_v34 }
 0x63f   :  { %10177 = vmatprep.subr.bf16.mxu1 %v11808_v20  ;;  %v10540_v20 = vld [vmem:[%s13621_s3 + $0x138] sm:$0xff]  }
 0x641   :  { %9685 = vmatpush3.bf16.msra.mxu0 %v10534_v19 }
 0x642   :  { %10178 = vmatpush3.bf16.msra.mxu1 %v10535_v2  ;;  %9686 = vmatprep.subr.bf16.mxu0 %v10536_v21 }
 0x643   :  { %10179 = vmatprep.subr.bf16.mxu1 %v12267_v62 }
 0x645   :  { %9687 = vmatpush3.bf16.msra.mxu0 %v10537_v23 }
 0x646   :  { %10180 = vmatpush3.bf16.msra.mxu1 %v10538_v24  ;;  %9688 = vmatprep.subr.bf16.mxu0 %v10539_v33  ;;  %v4257_v24 = vld [vmem:[%s13623_s5] sm:$0xf] }
 0x647   :  { %10181 = vmatprep.subr.bf16.mxu1 %v12267_v62  ;;  %v10544_v33 = vld [vmem:[%s13619_s1 + $0x40] sm:$0xff]  }
 0x649   :  { %9689 = vmatpush3.bf16.msra.mxu0 %v10540_v20  ;;  %v4275_v20 = vsel %vm2138_vm15, %v4257_v24, 0 }
 0x64a   :  { %10182 = vmatpush3.bf16.msra.mxu1 %v10541_v35  ;;  %10187 = vmatprep.subr.bf16.mxu0 %v12267_v62  ;;  %v10546_v35 = vld [vmem:[%s13619_s1 + $0xc0] sm:$0xff]  }
 0x64b   :  { %9735 = vmatprep.subr.bf16.mxu1 %v10546_v35 }
 0x64c   :  { %4150 = vmatmul.mubr.bf16.vlgmr.msra.gmra.mrb[52].mxu0 %v10542_v18  ;;  %v10547_v18 = vld [vmem:[%s13619_s1 + $0x80] sm:$0xff]  }
 0x64d   :  { %10184 = vmatmul.mubr.bf16.vlgmr.msra.gmra.mrb[56].mxu1 %v10543_v26  ;;  %10189 = vmatprep.mubr.msk.bf16.mxu0 %vm10912_vm14, %v12267_v62  ;;  %v10550_v26 = vld [vmem:[%s13619_s1 + $0xc8] sm:$0xff]  }
 0x64e   :  { %10188 = vmatpush3.bf16.msra.mxu0 %v4275_v20  ;;  %9736 = vmatpush3.bf16.msra.mxu1 %v10547_v18 }
 0x64f   :  { %9707 = vmatprep.subr.bf16.mxu0 %v10544_v33  ;;  %9737 = vmatprep.subr.bf16.mxu1 %v10550_v26 }
 0x6ff   :  { %v9646_v59 = vpop.f32.mrb[48].mxu0 }
 0x700   :  { %v9668_v52 = vpop.f32.mrb[52].mxu1  ;;  %v9647_v27 = vpop.f32.mrb[49].mxu0 }
 0x701   :  { %v9648_v30 = vadd.f32 %v9647_v27, %v9646_v59  ;;  %v9669_v40 = vpop.f32.mrb[53].mxu1  ;;  %v9649_v16 = vpop.f32.mrb[50].mxu0  ;;  %v10551_v59 = vld [vmem:[%s13619_s1 + $0x88] sm:$0xff]   ;;  %v10558_v27 = vld [vmem:[%s13619_s1 + $0xd8] sm:$0xff]  }
 0x702   :  { %v9670_v39 = vadd.f32 %v9669_v40, %v9668_v52  ;;  %v9671_v44 = vpop.f32.mrb[54].mxu1  ;;  %v9650_v47 = vpop.f32.mrb[51].mxu0  ;;  %9738 = vmatpush3.bf16.msra.mxu1 %v10551_v59  ;;  %v10554_v52 = vld [vmem:[%s13619_s1 + $0xd0] sm:$0xff]   ;;  %v10562_v40 = vld [vmem:[%s13619_s1 + $0xe0] sm:$0xff]  }
 0x703   :  { %v4070_v32 = vadd.f32 %v9648_v30, %v8884_v37  ;;  %v9651_v54 = vadd.f32 %v9650_v47, %v9649_v16  ;;  %v9672_v5 = vpop.f32.mrb[55].mxu1  ;;  %9739 = vmatprep.subr.bf16.mxu1 %v10554_v52  ;;  %v10559_v30 = vld [vmem:[%s13619_s1 + $0x98] sm:$0xff]   ;;  %v10563_v16 = vld [vmem:[%s13619_s1 + $0xa0] sm:$0xff]  }
 0x704   :  { %v9673_v53 = vadd.f32 %v9672_v5, %v9671_v44  ;;  %v10567_v44 = vld [vmem:[%s13619_s1 + $0xa8] sm:$0xff]   ;;  %v12338_v47 = vld [vmem:[#allocation2 + $0x18] sm:$0xff]  ;;  %v10570_v5 = vld [vmem:[%s13619_s1 + $0xf0] sm:$0xff]  }
 0x705   :  { %v4111_v57 = vadd.f32 %v9670_v39, %v4070_v32  ;;  %v4073_v38 = vadd.f32 %v9651_v54, %v8884_v37  ;;  %v10555_v37 = vld [vmem:[%s13619_s1 + $0x90] sm:$0xff]   ;;  %v10566_v39 = vld [vmem:[%s13619_s1 + $0xe8] sm:$0xff]  }
 0x706   :  { %9740 = vmatpush3.bf16.msra.mxu1 %v10555_v37  ;;  %v4440_v32 = vld [vmem:[#allocation2 + $0x8] sm:$0x80]  ;;  %v4444_v54 = vld [vmem:[#allocation2 + $0x28] sm:$0x7f]  ;;  %v10579_v37 = vld [vmem:[%s13619_s1 + $0x180] sm:$0xff]  }
 0x707   :  { %v4114_v36 = vadd.f32 %v9673_v53, %v4073_v38  ;;  %9741 = vmatprep.subr.bf16.mxu1 %v10558_v27  ;;  %v10571_v53 = vld [vmem:[%s13619_s1 + $0xb0] sm:$0xff]   ;;  %v4454_v38 = vpack.c.bf16 %v4444_v54, %v4444_v54  ;;  %v10582_v27 = vld [vmem:[%s13619_s1 + $0x1c8] sm:$0xff]  }
 0x708   :  { %v4446_v54 = vld [vmem:[#allocation2 + $0x48] sm:$0x80] }
 0x70a   :  { %9742 = vmatpush3.bf16.msra.mxu1 %v10559_v30 }
 0x70b   :  { %9743 = vmatprep.subr.bf16.mxu1 %v10562_v40  ;;  %v10583_v40 = vld [vmem:[%s13619_s1 + $0x188] sm:$0xff]  }
 0x70e   :  { %9744 = vmatpush3.bf16.msra.mxu1 %v10563_v16  ;;  %v10586_v16 = vld [vmem:[%s13619_s1 + $0x1d0] sm:$0xff]  }
 0x70f   :  { %9745 = vmatprep.subr.bf16.mxu1 %v10566_v39  ;;  %v10587_v39 = vld [vmem:[%s13619_s1 + $0x190] sm:$0xff]  }
 0x712   :  { %9746 = vmatpush3.bf16.msra.mxu1 %v10567_v44  ;;  %v10590_v44 = vld [vmem:[%s13619_s1 + $0x1d8] sm:$0xff]  }
 0x713   :  { %9747 = vmatprep.subr.bf16.mxu1 %v10570_v5  ;;  %v12381_v5 = vld [vmem:[#allocation2 + $0x50] sm:$0xff] }
 0x716   :  { %9748 = vmatpush3.bf16.msra.mxu1 %v10571_v53  ;;  %v4450_v53 = vld [vmem:[#allocation2 + $0x68] sm:$0x7f] }
 0x71f   :  { %v9690_v25 = vpop.f32.mrb[52].mxu0 }
 0x720   :  { %v4192_v22 = vpop.f32.mrb[56].mxu1  ;;  %v9691_v55 = vpop.f32.mrb[53].mxu0 }
 0x721   :  { %v9692_v61 = vadd.f32 %v9691_v55, %v9690_v25  ;;  %v10185_v58 = vpop.f32.mrb[57].mxu1  ;;  %v9693_v56 = vpop.f32.mrb[54].mxu0  ;;  %v4485_v55 = vshrl.u32 %v4454_v38, 16 }
 0x722   :  { %v4195_v49 = vpop.f32.mrb[58].mxu1  ;;  %v9694_v60 = vpop.f32.mrb[55].mxu0  ;;  %v4443_v58 = vld [vmem:[#allocation2 + $0x20] sm:$0x7f] }
 0x723   :  { %v4152_v43 = vadd.f32 %v9692_v61, %v4111_v57  ;;  %v9695_v63 = vadd.f32 %v9694_v60, %v9693_v56  ;;  %v10186_v0 = vpop.f32.mrb[59].mxu1  ;;  %v4452_v57 = vpack.c.bf16 %v12338_v47, %v4440_v32  ;;  %v4439_v61 = vld [vmem:[#allocation2] sm:$0x80]  ;;  %v10574_v56 = vld [vmem:[%s13619_s1 + $0xf8] sm:$0xff]  }
 0x724   :  { %v4487_v0 = vrot.slane %v4485_v55, 3  ;;  %9749 = vmatprep.subr.bf16.mxu1 %v10574_v56  ;;  %v12379_v32 = vld [vmem:[#allocation2 + $0x58] sm:$0xff] }
 0x725   :  { %v4155_v4 = vadd.f32 %v9695_v63, %v4114_v36  ;;  %v4193_v3 = vadd.f32 %v4192_v22, %v4152_v43  ;;  %v12347_v36 = vld [vmem:[#allocation2 + $0x10] sm:$0xff]  ;;  %v4477_v25 = vshrl.u32 %v4452_v57, 16  ;;  %v4480_v22 = vshll.u32 %v4452_v57, 16  ;;  %v10591_v56 = vld [vmem:[%s13619_s1 + $0x198] sm:$0xff]  }
 0x726   :  { %v4488_v43 = vshll.u32 %v4454_v38, 16  ;;  %v4456_v57 = vpack.c.bf16 %v12379_v32, %v4446_v54  ;;  %v4445_v38 = vld [vmem:[#allocation2 + $0x40] sm:$0x80]  ;;  %v10602_v54 = vld [vmem:[%s13619_s1 + $0x1f0] sm:$0xff]  }
 0x727   :  { %4201 = vrot.lane.b32.xlu0 %v4193_v3, %s10911_s29  ;;  %v4196_v11 = vadd.f32 %v4195_v49, %v4155_v4  ;;  %v10575_v49 = vld [vmem:[%s13619_s1 + $0xb8] sm:$0xff]   ;;  %v4479_v60 = vrot.slane %v4477_v25, 3  ;;  %v4482_v63 = vrot.slane %v4480_v22, 4  ;;  %v4458_v25 = vpack.c.bf16 %v4450_v53, %v4450_v53  ;;  %v4449_v22 = vld [vmem:[#allocation2 + $0x60] sm:$0x7f] }
 0x728   :  { %v4490_v4 = vrot.slane %v4488_v43, 4  ;;  %9750 = vmatpush3.bf16.msra.mxu1 %v10575_v49  ;;  %v4511_v55 = vshrl.u32 %v4456_v57, 16  ;;  %v10594_v43 = vld [vmem:[%s13619_s1 + $0x1e0] sm:$0xff]  }
 0x729   :  { %4203 = vrot.lane.b32.xlu1 %v4196_v11, %s10911_s29  ;;  %v4519_v49 = vshrl.u32 %v4458_v25, 16 }
 0x799   :  { %v4202_v15 = vpop.permute.xlu0 %4201 }
 0x79a   :  { %v4207_v1 = vmax.f32 %v4193_v3, %v4202_v15  ;;  %v4451_v3 = vpack.c.bf16 %v12347_v36, %v4439_v61  ;;  %v4483_v15 = vor.u32 %v4482_v63, %v4479_v60  ;;  %v4514_v61 = vshll.u32 %v4456_v57, 16 }
 0x79b   :  { %v4204_v10 = vpop.permute.xlu1 %4203  ;;  %v4457_v60 = vpack.c.bf16 %v4449_v22, %v4449_v22  ;;  %v4513_v63 = vrot.slane %v4511_v55, 3 }
 0x79c   :  { %v4208_v34 = vmax.f32 %v4196_v11, %v4204_v10  ;;  %4211 = vrot.lane.b32.xlu0 %v4207_v1, %s10913_s17  ;;  %v4453_v11 = vpack.c.bf16 %v4443_v58, %v4443_v58  ;;  %v4460_v10 = vshrl.u32 %v4451_v3, 16  ;;  %v4455_v58 = vpack.c.bf16 %v12381_v5, %v4445_v38  ;;  %v4551_v38 = vld [vmem:[#allocation2 + $0x10] sm:$0xfe] }
 0x79e   :  { %4213 = vrot.lane.b32.xlu1 %v4208_v34, %s10913_s17  ;;  %v4471_v24 = vshll.u32 %v4453_v11, 16  ;;  %v4462_v20 = vrot.slane %v4460_v10, 3 }
 0x7a0   :  { %v4473_v26 = vrot.slane %v4471_v24, 4 }
 0x80e   :  { %v4212_v19 = vpop.permute.xlu0 %4211 }
 0x80f   :  { %v12287_v2 = vmax.f32 %v4207_v1, %v4212_v19  ;;  %v4491_v1 = vor.u32 %v4490_v4, %v4487_v0  ;;  %v4468_v19 = vshrl.u32 %v4453_v11, 16  ;;  %v4516_v0 = vrot.slane %v4514_v61, 4 }
 0x810   :  { %v4214_v21 = vpop.permute.xlu1 %4213  ;;  %v4521_v4 = vrot.slane %v4519_v49, 3  ;;  %v4494_v11 = vshrl.u32 %v4455_v58, 16  ;;  %v10603_v49 = vld [vmem:[%s13619_s1 + $0x1b0] sm:$0xff]  }
 0x811   :  { %v12289_v23 = vmax.f32 %v4208_v34, %v4214_v21  ;;  %4221 = vrot.lane.b32.xlu0 %v12287_v2, %s10914_s18  ;;  %v4463_v34 = vshll.u32 %v4451_v3, 16  ;;  %v10578_v21 = vld [vmem:[%s13619_s1 + $0x1c0] sm:$0xff]   ;;  %v4492_v33 = vsel %vm181_vm5, %v4483_v15, %v4491_v1  ;;  %v4470_v18 = vrot.slane %v4468_v19, 3 }
 0x812   :  { %9791 = vmatprep.subr.bf16.mxu1 %v10578_v21  ;;  %5423 = vmatprep.mubr.bf16.mxu1 %v4492_v33  ;;  %v4522_v3 = vshll.u32 %v4458_v25, 16  ;;  %v10595_v15 = vld [vmem:[%s13619_s1 + $0x1a0] sm:$0xff]   ;;  %v4517_v1 = vor.u32 %v4516_v0, %v4513_v63  ;;  %v4502_v19 = vshrl.u32 %v4457_v60, 16  ;;  %v10598_v21 = vld [vmem:[%s13619_s1 + $0x1e8] sm:$0xff]   ;;  %v4496_v24 = vrot.slane %v4494_v11, 3 }
 0x813   :  { %4223 = vrot.lane.b32.xlu1 %v12289_v23, %s10914_s18  ;;  %v4465_v35 = vrot.slane %v4463_v34, 4  ;;  %v4474_v52 = vor.u32 %v4473_v26, %v4470_v18  ;;  %v4497_v34 = vshll.u32 %v4455_v58, 16  ;;  %v4505_v33 = vshll.u32 %v4457_v60, 16  ;;  %v12397_v26 = vld [vmem:[#allocation2 + $0x28] sm:$0xff]  ;;  %v4555_v25 = vld [vmem:[#allocation2 + $0x30] sm:$0x1] }
 0x814   :  { %v4524_v10 = vrot.slane %v4522_v3, 4  ;;  %v4504_v18 = vrot.slane %v4502_v19, 3  ;;  %v4565_v55 = vpack.c.bf16 %v4555_v25, %v4555_v25 }
 0x815   :  { %v4466_v59 = vor.u32 %v4465_v35, %v4462_v20  ;;  %v4499_v35 = vrot.slane %v4497_v34, 4  ;;  %v4558_v34 = vld [vmem:[#allocation2 + $0x58] sm:$0xfe] }
 0x816   :  { %v4525_v20 = vor.u32 %v4524_v10, %v4521_v4  ;;  %v10606_v4 = vld [vmem:[%s13619_s1 + $0x1f8] sm:$0xff]   ;;  %v4579_v3 = vshll.u32 %v4565_v55, 16  ;;  %v12419_v10 = vld [vmem:[#allocation2 + $0x68] sm:$0xff] }
 0x817   :  { %v4475_v30 = vsel %vm181_vm5, %v4466_v59, %v4474_v52  ;;  %v4552_v59 = vld [vmem:[#allocation2 + $0x18] sm:$0xfe]  ;;  %v4507_v52 = vrot.slane %v4505_v33, 4  ;;  %v4557_v33 = vld [vmem:[#allocation2 + $0x50] sm:$0xfe] }
 0x818   :  { %5424 = vmatmul.mubr.bf16.vlgmr.msra.gmra.mrb[60].mxu1 %v4475_v30  ;;  %v10599_v30 = vld [vmem:[%s13619_s1 + $0x1a8] sm:$0xff]   ;;  %v4581_v19 = vrot.slane %v4579_v3, 1 }
 0x819   :  { %9792 = vmatpush3.bf16.msra.mxu1 %v10579_v37  ;;  %v4564_v37 = vpack.c.bf16 %v12397_v26, %v4552_v59  ;;  %v4562_v59 = vld [vmem:[#allocation2 + $0x78] sm:$0x1]  ;;  %v10839_v3 = vld [vmem:[%s13618_s0 + $0x8] sm:$0xff] }
 0x81a   :  { %9793 = vmatprep.subr.bf16.mxu1 %v10582_v27  ;;  %v4526_v27 = vsel %vm181_vm5, %v4517_v1, %v4525_v20  ;;  %v10607_v20 = vld [vmem:[%s13619_s1 + $0x1b8] sm:$0xff]  }
 0x81b   :  { %5431 = vmatprep.mubr.bf16.mxu1 %v4526_v27  ;;  %v4586_v57 = vshll.u32 %v4564_v37, 16 }
 0x81d   :  { %9794 = vmatpush3.bf16.msra.mxu1 %v10583_v40  ;;  %v4500_v40 = vor.u32 %v4499_v35, %v4496_v24  ;;  %v4588_v60 = vrot.slane %v4586_v57, 1  ;;  %v4568_v24 = vpack.c.bf16 %v12419_v10, %v4558_v34  ;;  %v6476_v34 = vmul.f32 0.9, %v11422_v50  ;;  %v12512_v50 = vld [vmem:[#allocation2 + $0x68] sm:$0x3f] }
 0x81e   :  { %9795 = vmatprep.subr.bf16.mxu1 %v10586_v16  ;;  %v12404_v16 = vld [vmem:[#allocation2 + $0x20] sm:$0xff] }
 0x81f   :  { %v4563_v22 = vpack.c.bf16 %v12404_v16, %v4551_v38  ;;  %v4543_v58 = vpack.c.bf16 %v12404_v16, %v12347_v36  ;;  %v4610_v27 = vshll.u32 %v4568_v24, 16  ;;  %v4608_v57 = vshrl.u32 %v4568_v24, 16 }
 0x821   :  { %9796 = vmatpush3.bf16.msra.mxu1 %v10587_v39  ;;  %v4556_v39 = vld [vmem:[#allocation2 + $0x38] sm:$0x1]  ;;  %v4572_v63 = vshrl.u32 %v4563_v22, 16  ;;  %v4574_v0 = vshll.u32 %v4563_v22, 16  ;;  %v4612_v38 = vrot.slane %v4610_v27, 1  ;;  %v6466_v27 = vld [vmem:[%s13618_s0 + $0x10] sm:$0xff] }
 0x822   :  { %9797 = vmatprep.subr.bf16.mxu1 %v10590_v44  ;;  %v4508_v44 = vor.u32 %v4507_v52, %v4504_v18  ;;  %v4566_v53 = vpack.c.bf16 %v4556_v39, %v4556_v39 }
 0x823   :  { %v4576_v1 = vrot.slane %v4574_v0, 1 }
 0x824   :  { %v4509_v61 = vsel %vm181_vm5, %v4500_v40, %v4508_v44 }
 0x825   :  { %9798 = vmatpush3.bf16.msra.mxu1 %v10591_v56  ;;  %v4584_v56 = vshrl.u32 %v4564_v37, 16  ;;  %v4577_v18 = vor.u32 %v4576_v1, %v4572_v63  ;;  %v4570_v37 = vpack.c.bf16 %v4562_v59, %v4562_v59  ;;  %v10843_v59 = vld [vmem:[%s13618_s0 + $0x20] sm:$0xff] }
 0x826   :  { %9799 = vmatprep.subr.bf16.mxu1 %v10594_v43  ;;  %v4591_v43 = vshll.u32 %v4566_v53, 16  ;;  %5432 = vmatmul.mubr.bf16.gmra.mrb[64].mxu1 %v4509_v61 }
 0x827   :  { %v4589_v11 = vor.u32 %v4588_v60, %v4584_v56  ;;  %v4582_v40 = vsel %vm294_vm11, %v4577_v18, %v4581_v19  ;;  %v4615_v25 = vshll.u32 %v4570_v37, 16  ;;  %v4613_v56 = vor.u32 %v4612_v38, %v4608_v57  ;;  %v10841_v19 = vld [vmem:[#allocation2 + $0x18] sm:$0xff] }
 0x828   :  { %v6473_v60 = vmul.f32 0.9, %v11359_v46  ;;  %v6474_v18 = vmul.f32 0.9, %v11391_v12  ;;  %v6471_v12 = vld [vmem:[%s13618_s0 + $0x38] sm:$0xff] }
 0x829   :  { %9800 = vmatpush3.bf16.msra.mxu1 %v10595_v15  ;;  %v4593_v15 = vrot.slane %v4591_v43, 1  ;;  %v6472_v43 = vmul.f32 0.9, %v11162_v45  ;;  %v6475_v45 = vmul.f32 0.9, %v11383_v7 }
 0x82a   :  { %9801 = vmatprep.subr.bf16.mxu1 %v10598_v21  ;;  %v12421_v21 = vld [vmem:[#allocation2 + $0x60] sm:$0xff]  ;;  %v6479_v7 = vmul.f32 0.9, %v11411_v41  ;;  %v6482_v38 = vadd.f32 %v6474_v18, %v6466_v27 }
 0x82b   :  { %v4594_v35 = vsel %vm294_vm11, %v4589_v11, %v4593_v15  ;;  %v4567_v52 = vpack.c.bf16 %v12421_v21, %v4557_v33  ;;  %v4545_v53 = vpack.c.bf16 %v12421_v21, %v12381_v5  ;;  %v6481_v11 = vadd.f32 %v10839_v3, %v6473_v60  ;;  %v10840_v15 = vld [vmem:[%s13618_s0] sm:$0xff]  ;;  %v10842_v33 = vld [vmem:[#allocation2 + $0x10] sm:$0xff] }
 0x82c   :  { %5521 = vmatprep.mubr.bf16.mxu1 %v4594_v35  ;;  %v6480_v1 = vadd.f32 %v10840_v15, %v6472_v43  ;;  %v6467_v35 = vld [vmem:[%s13618_s0 + $0x18] sm:$0xff]  ;;  %v12483_v60 = vld [vmem:[#allocation2 + $0x10] sm:$0xfc]  ;;  %v6478_v43 = vmul.f32 0.9, %v11424_v42 }
 0x82d   :  { %9802 = vmatpush3.bf16.msra.mxu1 %v10599_v30  ;;  %v4561_v30 = vld [vmem:[#allocation2 + $0x70] sm:$0x1]  ;;  %v4598_v44 = vshll.u32 %v4567_v52, 16  ;;  %v4596_v22 = vshrl.u32 %v4567_v52, 16  ;;  %v6489_v24 = vsub.f32 %v6481_v11, %v10841_v19  ;;  %v6484_v52 = vadd.f32 %v10843_v59, %v6476_v34  ;;  %v10848_v11 = vld [vmem:[#allocation2 + $0x68] sm:$0xff] }
 0x82e   :  { %9803 = vmatprep.subr.bf16.mxu1 %v10602_v54  ;;  %v4569_v39 = vpack.c.bf16 %v4561_v30, %v4561_v30  ;;  %v4546_v54 = vpack.c.bf16 %v12419_v10, %v12379_v32  ;;  %v6483_v37 = vadd.f32 %v6475_v45, %v6467_v35  ;;  %v4639_v3 = vpack.c.bf16 %v12404_v16, %v12483_v60  ;;  %v12509_v59 = vld [vmem:[#allocation2 + $0x50] sm:$0xfc]  ;;  %v10849_v30 = vld [vmem:[#allocation2 + $0x60] sm:$0xff] }
 0x82f   :  { %v4600_v55 = vrot.slane %v4598_v44, 1  ;;  %vm12453_vm13 = vcmp.gt.f32.partialorder %v6489_v24, 1.0  ;;  %v10845_v44 = vld [vmem:[#allocation2 + $0x50] sm:$0xff]  ;;  %v12502_v24 = vld [vmem:[#allocation2 + $0x58] sm:$0xfc] }
 0x830   :  { %v4603_v61 = vshll.u32 %v4569_v39, 16  ;;  %v9114_v41 = vsel %vm12453_vm13, 1.0, %v12267_v62  ;;  %v6492_v57 = vsub.f32 %v6484_v52, %v10845_v44  ;;  %v4644_v18 = vpack.c.bf16 %v12419_v10, %v12502_v24 }
 0x831   :  { %9804 = vmatpush3.bf16.msra.mxu1 %v10603_v49  ;;  %v4617_v49 = vrot.slane %v4615_v25, 1  ;;  %v4601_v0 = vor.u32 %v4600_v55, %v4596_v22  ;;  %v10846_v22 = vld [vmem:[#allocation2 + $0x28] sm:$0xff] }
 0x832   :  { %9805 = vmatprep.subr.bf16.mxu1 %v10606_v4  ;;  %v4605_v4 = vrot.slane %v4603_v61, 1  ;;  %v6491_v55 = vsub.f32 %v6483_v37, %v10846_v22  ;;  %v6487_v61 = vadd.f32 %v6479_v7, %v6471_v12  ;;  %vm12486_vm7 = vcmp.gt.f32.partialorder %v6492_v57, 1.0  ;;  %v12520_v22 = vld [vmem:[#allocation2 + $0x60] sm:$0x3f] }
 0x833   :  { %v4618_v63 = vsel %vm294_vm11, %v4613_v56, %v4617_v49  ;;  %v12475_v56 = vld [vmem:[#allocation2 + $0x18] sm:$0xfc]  ;;  %v9117_v45 = vsel %vm12486_vm7, 1.0, %v12267_v62  ;;  %v4643_v37 = vpack.c.bf16 %v12421_v21, %v12509_v59 }
 0x834   :  { %v4606_v46 = vsel %vm294_vm11, %v4601_v0, %v4605_v4  ;;  %6521 = vst [vmem:[#allocation2 + $0x18] sm:$0xff] %v9114_v41  ;;  %v10847_v0 = vld [vmem:[#allocation2 + $0x20] sm:$0xff]  ;;  %v6495_v15 = vsub.f32 %v6487_v61, %v10848_v11  ;;  %vm6499_vm8 = vcmp.gt.f32.partialorder %v6491_v55, 1.0  ;;  %6524 = vst [vmem:[#allocation2 + $0x50] sm:$0xff] %v9117_v45  ;;  %v4244_v11 = vmul.f32 0.9, %v11845_v13 }
 0x835   :  { %9806 = vmatpush3.bf16.msra.mxu1 %v10607_v20  ;;  %v6488_v20 = vsub.f32 %v6480_v1, %v10842_v33  ;;  %v6490_v4 = vsub.f32 %v6482_v38, %v10847_v0  ;;  %v6470_v1 = vld [vmem:[%s13618_s0 + $0x30] sm:$0xff]  ;;  %v9116_v34 = vsel %vm6499_vm8, 1.0, %v12267_v62  ;;  %v4243_v0 = vmul.f32 0.9, %v11842_v9  ;;  %v4392_v45 = vld [vmem:[#allocation2 + $0x8] sm:$0xc0] }
 0x836   :  { %v6486_v19 = vadd.f32 %v6478_v43, %v6470_v1  ;;  %vm6503_vm13 = vcmp.gt.f32.partialorder %v6495_v15, 1.0  ;;  %v4404_v9 = vpack.c.bf16 %v12338_v47, %v4392_v45  ;;  %v10573_v45 = vld [vmem:[%s13619_s1 + $0x38] sm:$0xff]   ;;  %v4661_v16 = vrot.slane %v4643_v37, 1 }
 0x837   :  { %vm12461_vm0 = vcmp.gt.f32.partialorder %v6488_v20, 1.0  ;;  %vm6498_vm9 = vcmp.gt.f32.partialorder %v6490_v4, 1.0  ;;  %v12504_v20 = vld [vmem:[#allocation2 + $0x20] sm:$0x3f]  ;;  %v9120_v7 = vsel %vm6503_vm13, 1.0, %v12267_v62 }
 0x838   :  { %5522 = vmatmul.mubr.bf16.vlgmr.msra.gmra.mrb[68].mxu1 %v4582_v40  ;;  %v10844_v40 = vld [vmem:[#allocation2 + $0x58] sm:$0xff]  ;;  %v9113_v25 = vsel %vm12461_vm0, 1.0, %v12267_v62  ;;  %v9115_v35 = vsel %vm6498_vm9, 1.0, %v12267_v62  ;;  %6527 = vst [vmem:[#allocation2 + $0x68] sm:$0xff] %v9120_v7  ;;  %v6494_v12 = vsub.f32 %v6486_v19, %v10849_v30  ;;  %v4422_v7 = vrot.slane %v4404_v9, 3 }
 0x839   :  { %5529 = vmatprep.mubr.bf16.mxu1 %v4618_v63  ;;  %v6493_v39 = vsub.f32 %v11417_v48, %v10844_v40  ;;  %v4640_v48 = vpack.c.bf16 %v12397_v26, %v12475_v56  ;;  %6520 = vst [vmem:[#allocation2 + $0x10] sm:$0xff] %v9113_v25  ;;  %6522 = vst [vmem:[#allocation2 + $0x20] sm:$0xff] %v9115_v35  ;;  %v10616_v56 = vld [vmem:[%s13619_s1 + $0x260] sm:$0xff]  }
 0x83a   :  { %vm6502_vm0 = vcmp.gt.f32.partialorder %v6494_v12, 1.0 }
 0x83b   :  { %vm12477_vm2 = vcmp.gt.f32.partialorder %v6493_v39, 1.0  ;;  %v9119_v55 = vsel %vm6502_vm0, 1.0, %v12267_v62 }
 0x83c   :  { %v9118_v42 = vsel %vm12477_vm2, 1.0, %v12267_v62  ;;  %6526 = vst [vmem:[#allocation2 + $0x60] sm:$0xff] %v9119_v55  ;;  %v10561_v55 = vld [vmem:[%s13619_s1 + $0x20] sm:$0xff]  }
 0x83d   :  { %6525 = vst [vmem:[#allocation2 + $0x58] sm:$0xff] %v9118_v42 }
 0x840   :  { %5530 = vmatmul.mubr.bf16.gmra.mrb[72].mxu1 %v4606_v46  ;;  %v4396_v46 = vld [vmem:[#allocation2 + $0x28] sm:$0x3f] }
 0x841   :  { %6523 = vst [vmem:[#allocation2 + $0x28] sm:$0xff] %v9116_v34  ;;  %v4406_v35 = vpack.c.bf16 %v4396_v46, %v4396_v46  ;;  %v10545_v46 = vld [vmem:[%s13619_s1] sm:$0xff]  }
 0x883   :  { %v4222_v33 = vpop.permute.xlu0 %4221 }
 0x884   :  { %v4227_v52 = vmax.f32 %v12287_v2, %v4222_v33 }
 0x885   :  { %v4224_v27 = vpop.permute.xlu1 %4223 }
 0x886   :  { %v4229_v40 = vsel %vm2093_vm12, %v4227_v52, -inf  ;;  %v4228_v39 = vmax.f32 %v12289_v23, %v4224_v27 }
 0x887   :  { %v4230_v41 = vrot.slane %v4229_v40, 4 }
 0x888   :  { %v4236_v2 = vsel %vm2093_vm12, %v4228_v39, -inf  ;;  %v10548_v39 = vld [vmem:[%s13619_s1 + $0x48] sm:$0xff]  }
 0x889   :  { %v4231_v44 = vmax.f32 %v4229_v40, %v4230_v41  ;;  %v4237_v57 = vrot.slane %v4236_v2, 4  ;;  %v10549_v41 = vld [vmem:[%s13619_s1 + $0x8] sm:$0xff]  }
 0x88b   :  { %v4232_v38 = vrot.slane %v4231_v44, 2  ;;  %v4238_v25 = vmax.f32 %v4236_v2, %v4237_v57  ;;  %v10552_v2 = vld [vmem:[%s13619_s1 + $0x50] sm:$0xff]   ;;  %v10556_v57 = vld [vmem:[%s13619_s1 + $0x58] sm:$0xff]  }
 0x88d   :  { %v4233_v61 = vmax.f32 %v4231_v44, %v4232_v38  ;;  %v4239_v49 = vrot.slane %v4238_v25, 2  ;;  %v10553_v44 = vld [vmem:[%s13619_s1 + $0x10] sm:$0xff]   ;;  %v10557_v38 = vld [vmem:[%s13619_s1 + $0x18] sm:$0xff]  }
 0x88f   :  { %v4234_v43 = vrot.slane %v4233_v61, 1  ;;  %v4240_v63 = vmax.f32 %v4238_v25, %v4239_v49  ;;  %v10560_v25 = vld [vmem:[%s13619_s1 + $0x60] sm:$0xff]   ;;  %v10565_v49 = vld [vmem:[%s13619_s1 + $0x28] sm:$0xff]  }
 0x891   :  { %v4235_v23 = vmax.f32 %v4233_v61, %v4234_v43  ;;  %v4241_v4 = vrot.slane %v4240_v63, 1  ;;  %v10564_v61 = vld [vmem:[%s13619_s1 + $0x68] sm:$0xff]   ;;  %v10568_v43 = vld [vmem:[%s13619_s1 + $0x70] sm:$0xff]  }
 0x893   :  { %v4245_v15 = vadd.f32 %v4243_v0, %v4235_v23  ;;  %v4242_v1 = vmax.f32 %v4240_v63, %v4241_v4  ;;  %v4391_v63 = vld [vmem:[#allocation2] sm:$0xc0]  ;;  %v4398_v0 = vld [vmem:[#allocation2 + $0x48] sm:$0xc0]  ;;  %v10569_v23 = vld [vmem:[%s13619_s1 + $0x30] sm:$0xff]  }
 0x894   :  { %v4403_v4 = vpack.c.bf16 %v12347_v36, %v4391_v63  ;;  %v10604_v63 = vld [vmem:[%s13619_s1 + $0x178] sm:$0xff]  }
 0x895   :  { %v12526_v42 = vsub.f32 %v4245_v15, %v11848_v14  ;;  %v4246_v34 = vadd.f32 %v4244_v11, %v4242_v1  ;;  %v4405_v11 = vpack.c.bf16 %v12504_v20, %v12504_v20  ;;  %v10572_v15 = vld [vmem:[%s13619_s1 + $0x78] sm:$0xff]   ;;  %v4408_v1 = vpack.c.bf16 %v12379_v32, %v4398_v0  ;;  %v10576_v20 = vld [vmem:[%s13619_s1 + $0x140] sm:$0xff]  }
 0x896   :  { %v4419_v9 = vrot.slane %v4403_v4, 3  ;;  %v10605_v0 = vld [vmem:[%s13619_s1 + $0x138] sm:$0xff]  }
 0x897   :  { %vm4249_vm2 = vcmp.gt.f32.partialorder %v12526_v42, 1.0  ;;  %v12530_v19 = vsub.f32 %v4246_v34, %v11855_v17  ;;  %v4423_v17 = vrot.slane %v4406_v35, 3  ;;  %v4410_v34 = vpack.c.bf16 %v12512_v50, %v12512_v50  ;;  %v10577_v50 = vld [vmem:[%s13619_s1 + $0x100] sm:$0xff]   ;;  %v4632_v4 = vld [vmem:[#allocation2 + $0x38] sm:$0x3] }
 0x898   :  { %v12533_v33 = vsel %vm4249_vm2, 1.0, %v12267_v62  ;;  %v4420_v35 = vrot.slane %v4405_v11, 3  ;;  %v10609_v11 = vld [vmem:[%s13619_s1 + $0x200] sm:$0xff]   ;;  %v10614_v32 = vld [vmem:[%s13619_s1 + $0x258] sm:$0xff]  }
 0x899   :  { %v4255_v13 = vpack.c.bf16 %v12533_v33, %v12533_v33  ;;  %vm4250_vm7 = vcmp.gt.f32.partialorder %v12530_v19, 1.0 }
 0x89a   :  { %v12540_v14 = vsel %vm4250_vm7, 1.0, %v12267_v62  ;;  %v4424_v62 = vsel %vm140_vm4, %v4422_v7, %v4423_v17  ;;  %v4397_v7 = vld [vmem:[#allocation2 + $0x40] sm:$0xc0]  ;;  %v4421_v17 = vsel %vm140_vm4, %v4419_v9, %v4420_v35  ;;  %v4658_v9 = vrot.slane %v4640_v48, 1  ;;  %v10620_v35 = vld [vmem:[%s13619_s1 + $0x270] sm:$0xff]  }
 0x89b   :  { %v4256_v52 = vpack.c.bf16 %v12540_v14, %v12540_v14  ;;  %v4267_v27 = vunpack.c.l.b16 %v4255_v13  ;;  %v4428_v13 = vrot.slane %v4408_v1, 3  ;;  %v4642_v1 = vpack.c.bf16 %v4632_v4, %v4632_v4  ;;  %v10617_v48 = vld [vmem:[%s13619_s1 + $0x220] sm:$0xff]  }
 0x89d   :  { %v4268_v30 = vunpack.c.l.b16 %v4256_v52  ;;  %v4429_v52 = vrot.slane %v4410_v34, 3  ;;  %v10611_v34 = vld [vmem:[%s13619_s1 + $0x208] sm:$0xff]   ;;  %v4659_v36 = vrot.slane %v4642_v1, 1 }
 0x89f   :  { %v4269_v12 = vsel %vm2132_vm3, %v4268_v30, %v4267_v27  ;;  %v4407_v27 = vpack.c.bf16 %v12381_v5, %v4397_v7  ;;  %v4409_v30 = vpack.c.bf16 %v12520_v22, %v12520_v22  ;;  %v10584_v22 = vld [vmem:[%s13619_s1 + $0x150] sm:$0xff]   ;;  %v10618_v5 = vld [vmem:[%s13619_s1 + $0x268] sm:$0xff]  }
 0x8a0   :  { %v4270_v40 = vpack.c.b16 %v4269_v12, %v4269_v12  ;;  %v10580_v12 = vld [vmem:[%s13619_s1 + $0x148] sm:$0xff]  }
 0x8a2   :  { %10190 = vmatmul.mubr.msk.bf16.vlgmr.msra.gmra.mrb[56].mxu0 %vm2093_vm12, %v4270_v40  ;;  %v10581_v40 = vld [vmem:[%s13619_s1 + $0x108] sm:$0xff]  }
 0x8a3   :  { %9708 = vmatpush3.bf16.msra.mxu0 %v10545_v46  ;;  %5374 = vmatprep.mubr.bf16.mxu0 %v4424_v62  ;;  %v4430_v46 = vsel %vm140_vm4, %v4428_v13, %v4429_v52  ;;  %v4426_v62 = vrot.slane %v4409_v30, 3  ;;  %v4638_v13 = vld [vmem:[#allocation2 + $0x78] sm:$0x3]  ;;  %v10621_v52 = vld [vmem:[%s13619_s1 + $0x230] sm:$0xff]   ;;  %v4655_v30 = vrot.slane %v4639_v3, 1 }
 0x8a4   :  { %9709 = vmatprep.subr.bf16.mxu0 %v10548_v39  ;;  %v4425_v39 = vrot.slane %v4407_v27, 3  ;;  %v10623_v27 = vld [vmem:[%s13619_s1 + $0x238] sm:$0xff]  }
 0x8a7   :  { %9710 = vmatpush3.bf16.msra.mxu0 %v10549_v41  ;;  %v10585_v41 = vld [vmem:[%s13619_s1 + $0x110] sm:$0xff]  }
 0x8a8   :  { %9711 = vmatprep.subr.bf16.mxu0 %v10552_v2  ;;  %v4427_v2 = vsel %vm140_vm4, %v4425_v39, %v4426_v62  ;;  %v4637_v39 = vld [vmem:[#allocation2 + $0x70] sm:$0x3] }
 0x8ab   :  { %9712 = vmatpush3.bf16.msra.mxu0 %v10553_v44  ;;  %v4544_v44 = vpack.c.bf16 %v12397_v26, %v12338_v47  ;;  %v10593_v47 = vld [vmem:[%s13619_s1 + $0x120] sm:$0xff]   ;;  %v10615_v26 = vld [vmem:[%s13619_s1 + $0x218] sm:$0xff]  }
 0x8ac   :  { %9713 = vmatprep.subr.bf16.mxu0 %v10556_v57  ;;  %v10588_v57 = vld [vmem:[%s13619_s1 + $0x158] sm:$0xff]  }
 0x8af   :  { %9714 = vmatpush3.bf16.msra.mxu0 %v10557_v38  ;;  %v10589_v38 = vld [vmem:[%s13619_s1 + $0x118] sm:$0xff]  }
 0x8b0   :  { %9715 = vmatprep.subr.bf16.mxu0 %v10560_v25  ;;  %v10592_v25 = vld [vmem:[%s13619_s1 + $0x160] sm:$0xff]  }
 0x8b3   :  { %9716 = vmatpush3.bf16.msra.mxu0 %v10561_v55  ;;  %v10596_v55 = vld [vmem:[%s13619_s1 + $0x168] sm:$0xff]  }
 0x8b4   :  { %9717 = vmatprep.subr.bf16.mxu0 %v10564_v61  ;;  %v10597_v61 = vld [vmem:[%s13619_s1 + $0x128] sm:$0xff]  }
 0x8b7   :  { %9718 = vmatpush3.bf16.msra.mxu0 %v10565_v49  ;;  %v10600_v49 = vld [vmem:[%s13619_s1 + $0x170] sm:$0xff]  }
 0x8b8   :  { %9719 = vmatprep.subr.bf16.mxu0 %v10568_v43  ;;  %v10601_v43 = vld [vmem:[%s13619_s1 + $0x130] sm:$0xff]  }
 0x8bb   :  { %9720 = vmatpush3.bf16.msra.mxu0 %v10569_v23  ;;  %v10608_v23 = vld [vmem:[%s13619_s1 + $0x240] sm:$0xff]  }
 0x8bc   :  { %9721 = vmatprep.subr.bf16.mxu0 %v10572_v15  ;;  %v10610_v15 = vld [vmem:[%s13619_s1 + $0x248] sm:$0xff]  }
 0x8bf   :  { %9722 = vmatpush3.bf16.msra.mxu0 %v10573_v45  ;;  %v10612_v45 = vld [vmem:[%s13619_s1 + $0x250] sm:$0xff]  }
 0x8c0   :  { %9763 = vmatprep.subr.bf16.mxu0 %v10576_v20  ;;  %v4631_v20 = vld [vmem:[#allocation2 + $0x30] sm:$0x3] }
 0x8c1   :  { %v4641_v7 = vpack.c.bf16 %v4631_v20, %v4631_v20 }
 0x8c2   :  { %5375 = vmatmul.mubr.bf16.vlgmr.msra.gmra.mrb[60].mxu0 %v4421_v17  ;;  %v10622_v17 = vld [vmem:[%s13619_s1 + $0x278] sm:$0xff]  }
 0x8c3   :  { %9764 = vmatpush3.bf16.msra.mxu0 %v10577_v50  ;;  %5382 = vmatprep.mubr.bf16.mxu0 %v4430_v46  ;;  %v4646_v50 = vpack.c.bf16 %v4638_v13, %v4638_v13  ;;  %v4664_v46 = vrot.slane %v4644_v18, 1 }
 0x8c4   :  { %9765 = vmatprep.subr.bf16.mxu0 %v10580_v12  ;;  %v4656_v12 = vrot.slane %v4641_v7, 1 }
 0x8c6   :  { %v4657_v62 = vsel %vm379_vm1, %v4655_v30, %v4656_v12 }
 0x8c7   :  { %9766 = vmatpush3.bf16.msra.mxu0 %v10581_v40  ;;  %v4665_v40 = vrot.slane %v4646_v50, 1 }
 0x8c8   :  { %9767 = vmatprep.subr.bf16.mxu0 %v10584_v22  ;;  %v4645_v22 = vpack.c.bf16 %v4637_v39, %v4637_v39 }
 0x8ca   :  { %5383 = vmatmul.mubr.bf16.gmra.mrb[64].mxu0 %v4427_v2  ;;  %v4662_v60 = vrot.slane %v4645_v22, 1 }
 0x8cb   :  { %9768 = vmatpush3.bf16.msra.mxu0 %v10585_v41  ;;  %5472 = vmatprep.mubr.bf16.mxu0 %v4544_v44  ;;  %v4666_v41 = vsel %vm379_vm1, %v4664_v46, %v4665_v40 }
 0x8cc   :  { %9769 = vmatprep.subr.bf16.mxu0 %v10588_v57  ;;  %v4663_v3 = vsel %vm379_vm1, %v4661_v16, %v4662_v60 }
 0x8cf   :  { %9770 = vmatpush3.bf16.msra.mxu0 %v10589_v38 }
 0x8d0   :  { %9771 = vmatprep.subr.bf16.mxu0 %v10592_v25 }
 0x8d3   :  { %9772 = vmatpush3.bf16.msra.mxu0 %v10593_v47 }
 0x8d4   :  { %9773 = vmatprep.subr.bf16.mxu0 %v10596_v55 }
 0x8d7   :  { %9774 = vmatpush3.bf16.msra.mxu0 %v10597_v61 }
 0x8d8   :  { %9775 = vmatprep.subr.bf16.mxu0 %v10600_v49 }
 0x8db   :  { %9776 = vmatpush3.bf16.msra.mxu0 %v10601_v43 }
 0x8dc   :  { %9777 = vmatprep.subr.bf16.mxu0 %v10604_v63 }
 0x8df   :  { %9778 = vmatpush3.bf16.msra.mxu0 %v10605_v0 }
 0x8e0   :  { %9819 = vmatprep.subr.bf16.mxu0 %v10608_v23 }
 0x8e2   :  { %5473 = vmatmul.mubr.bf16.vlgmr.msra.gmra.mrb[68].mxu0 %v4543_v58  ;;  %v10613_v58 = vld [vmem:[%s13619_s1 + $0x210] sm:$0xff]  }
 0x8e3   :  { %9820 = vmatpush3.bf16.msra.mxu0 %v10609_v11  ;;  %5480 = vmatprep.mubr.bf16.mxu0 %v4546_v54  ;;  %v4660_v54 = vsel %vm379_vm1, %v4658_v9, %v4659_v36 }
 0x8e4   :  { %9821 = vmatprep.subr.bf16.mxu0 %v10610_v15 }
 0x8e7   :  { %9822 = vmatpush3.bf16.msra.mxu0 %v10611_v34 }
 0x8e8   :  { %9823 = vmatprep.subr.bf16.mxu0 %v10612_v45  ;;  %v8950_v45 = vld [vmem:[%s13624_s6] ss:$0 sm:$0xff] }
 0x8ea   :  { %5481 = vmatmul.mubr.bf16.gmra.mrb[72].mxu0 %v4545_v53  ;;  %v10619_v53 = vld [vmem:[%s13619_s1 + $0x228] sm:$0xff]  }
 0x8eb   :  { %9824 = vmatpush3.bf16.msra.mxu0 %v10613_v58  ;;  %5570 = vmatprep.mubr.bf16.mxu0 %v4660_v54  ;;  %v9751_v10 = vpop.f32.mrb[60].mxu1  ;;  %v4317_v58 = vmul.f32 0.9, %v12040_v28 }
 0x8ec   :  { %9825 = vmatprep.subr.bf16.mxu0 %v10614_v32  ;;  %v9752_v24 = vpop.f32.mrb[61].mxu1 }
 0x8ed   :  { %v9753_v18 = vadd.f32 %v9752_v24, %v9751_v10  ;;  %v9754_v2 = vpop.f32.mrb[62].mxu1 }
 0x8ee   :  { %v9755_v44 = vpop.f32.mrb[63].mxu1 }
 0x8ef   :  { %9826 = vmatpush3.bf16.msra.mxu0 %v10615_v26  ;;  %v9756_v57 = vadd.f32 %v9755_v44, %v9754_v2 }
 0x8f0   :  { %9827 = vmatprep.subr.bf16.mxu0 %v10616_v56 }
 0x8f3   :  { %9828 = vmatpush3.bf16.msra.mxu0 %v10617_v48 }
 0x8f4   :  { %9829 = vmatprep.subr.bf16.mxu0 %v10618_v5  ;;  %v12737_v5 = vld [vmem:[#allocation2 + $0x8] sm:$0xff] }
 0x8f7   :  { %9830 = vmatpush3.bf16.msra.mxu0 %v10619_v53 }
 0x8f8   :  { %9831 = vmatprep.subr.bf16.mxu0 %v10620_v35  ;;  %v8961_v35 = vld [vmem:[%s13620_s2] ss:$0 sm:$0xff] }
 0x8f9   :  { %v9757_v38 = vpop.f32.mrb[64].mxu1 }
 0x8fa   :  { %v9758_v25 = vpop.f32.mrb[65].mxu1 }
 0x8fb   :  { %9832 = vmatpush3.bf16.msra.mxu0 %v10621_v52  ;;  %v9759_v47 = vadd.f32 %v9758_v25, %v9757_v38  ;;  %v9760_v55 = vpop.f32.mrb[66].mxu1 }
 0x8fc   :  { %9833 = vmatprep.subr.bf16.mxu0 %v10622_v17  ;;  %v9761_v61 = vpop.f32.mrb[67].mxu1 }
 0x8fd   :  { %v9762_v49 = vadd.f32 %v9761_v61, %v9760_v55 }
 0x8ff   :  { %9834 = vmatpush3.bf16.msra.mxu0 %v10623_v27 }
 0x902   :  { %5571 = vmatmul.mubr.bf16.vlgmr.msra.gmra.mrb[76].mxu0 %v4657_v62 }
 0x903   :  { %5578 = vmatprep.mubr.bf16.mxu0 %v4666_v41 }
 0x90a   :  { %5579 = vmatmul.mubr.bf16.gmra.mrb[80].mxu0 %v4663_v3 }
 0x90b   :  { %v9807_v43 = vpop.f32.mrb[68].mxu1 }
 0x90c   :  { %v9808_v63 = vpop.f32.mrb[69].mxu1 }
 0x90d   :  { %v9809_v21 = vadd.f32 %v9808_v63, %v9807_v43  ;;  %v9810_v59 = vpop.f32.mrb[70].mxu1 }
 0x90e   :  { %v9811_v37 = vpop.f32.mrb[71].mxu1 }
 0x90f   :  { %v9812_v0 = vadd.f32 %v9811_v37, %v9810_v59 }
 0x913   :  { %v9813_v23 = vpop.f32.mrb[72].mxu1 }
 0x914   :  { %v9814_v4 = vpop.f32.mrb[73].mxu1 }
 0x915   :  { %v9815_v11 = vadd.f32 %v9814_v4, %v9813_v23  ;;  %v9816_v15 = vpop.f32.mrb[74].mxu1 }
 0x916   :  { %v9817_v1 = vpop.f32.mrb[75].mxu1 }
 0x917   :  { %v9818_v34 = vadd.f32 %v9817_v1, %v9816_v15 }
 0x975   :  { %v4311_v9 = vpop.f32.mrb[56].mxu0 }
 0x976   :  { %v4312_v36 = vadd.f32 %v8950_v45, %v4311_v9  ;;  %v10191_v32 = vpop.f32.mrb[57].mxu0 }
 0x977   :  { %v4314_v54 = vpop.f32.mrb[58].mxu0 }
 0x978   :  { %v4318_v26 = vadd.f32 %v4317_v58, %v4312_v36  ;;  %v10192_v56 = vpop.f32.mrb[59].mxu0 }
 0x979   :  { %v10626_v56 = vld [vmem:[%s13621_s3] sm:$0xff]  }
 0x97a   :  { %v12732_v48 = vsub.f32 %v4318_v26, %v12046_v51 }
 0x97c   :  { %4326 = vst.msk [vmem:[#allocation9 + $0x2] sm:$0x3] %vm2187_vm6, %v12732_v48  ;;  %vm4320_vm8 = vcmp.gt.f32.partialorder %v12732_v48, 1.0 }
 0x97d   :  { %v12740_v53 = vsel %vm4320_vm8, 1.0, %v12737_v5 }
 0x97e   :  { %4324 = vst.msk [vmem:[#allocation7 + $0x2] sm:$0x3] %vm2187_vm6, %v12740_v53 }
 0x995   :  { %v9723_v28 = vpop.f32.mrb[60].mxu0 }
 0x996   :  { %v9724_v51 = vpop.f32.mrb[61].mxu0 }
 0x997   :  { %v9725_v20 = vadd.f32 %v9724_v51, %v9723_v28  ;;  %v9726_v13 = vpop.f32.mrb[62].mxu0  ;;  %v10627_v28 = vld [vmem:[%s13621_s3 + $0x80] sm:$0xff]  }
 0x998   :  { %v9727_v52 = vpop.f32.mrb[63].mxu0 }
 0x999   :  { %v5377_v7 = vadd.f32 %v9725_v20, %v8961_v35  ;;  %v9728_v17 = vadd.f32 %v9727_v52, %v9726_v13  ;;  %v10628_v52 = vld [vmem:[%s13621_s3 + $0x48] sm:$0xff]  }
 0x99b   :  { %v5380_v50 = vadd.f32 %v9728_v17, %v8961_v35  ;;  %v5426_v27 = vadd.f32 %v9753_v18, %v5377_v7  ;;  %v10629_v7 = vld [vmem:[%s13621_s3 + $0xc8] sm:$0xff]  }
 0x99d   :  { %v5429_v30 = vadd.f32 %v9756_v57, %v5380_v50  ;;  %v9729_v12 = vpop.f32.mrb[64].mxu0 }
 0x99e   :  { %v9730_v46 = vpop.f32.mrb[65].mxu0 }
 0x99f   :  { %v9731_v40 = vadd.f32 %v9730_v46, %v9729_v12  ;;  %v9732_v39 = vpop.f32.mrb[66].mxu0  ;;  %v10632_v46 = vld [vmem:[%s13621_s3 + $0x50] sm:$0xff]  }
 0x9a0   :  { %v9733_v62 = vpop.f32.mrb[67].mxu0 }
 0x9a1   :  { %v5385_v22 = vadd.f32 %v9731_v40, %v8961_v35  ;;  %v9734_v41 = vadd.f32 %v9733_v62, %v9732_v39  ;;  %v10633_v40 = vld [vmem:[%s13621_s3 + $0xd0] sm:$0xff]  }
 0x9a2   :  { %v10634_v39 = vld [vmem:[%s13621_s3 + $0x10] sm:$0xff]  }
 0x9a3   :  { %v5388_v16 = vadd.f32 %v9734_v41, %v8961_v35  ;;  %v5434_v60 = vadd.f32 %v9759_v47, %v5385_v22  ;;  %v10635_v62 = vld [vmem:[%s13621_s3 + $0x90] sm:$0xff]   ;;  %v10636_v22 = vld [vmem:[%s13621_s3 + $0x58] sm:$0xff]  }
 0x9a4   :  { %v10637_v41 = vld [vmem:[%s13621_s3 + $0xd8] sm:$0xff]  }
 0x9a5   :  { %v5437_v3 = vadd.f32 %v9762_v49, %v5388_v16  ;;  %v10638_v16 = vld [vmem:[%s13621_s3 + $0x18] sm:$0xff]  }
 0x9b5   :  { %v9779_v10 = vpop.f32.mrb[68].mxu0 }
 0x9b6   :  { %v9780_v24 = vpop.f32.mrb[69].mxu0 }
 0x9b7   :  { %v9781_v2 = vadd.f32 %v9780_v24, %v9779_v10  ;;  %v9782_v44 = vpop.f32.mrb[70].mxu0  ;;  %v10641_v10 = vld [vmem:[%s13621_s3 + $0xe0] sm:$0xff]  }
 0x9b8   :  { %v9783_v38 = vpop.f32.mrb[71].mxu0  ;;  %v10642_v24 = vld [vmem:[%s13621_s3 + $0x20] sm:$0xff]  }
 0x9b9   :  { %v5475_v25 = vadd.f32 %v9781_v2, %v5426_v27  ;;  %v9784_v55 = vadd.f32 %v9783_v38, %v9782_v44  ;;  %v10630_v27 = vld [vmem:[%s13621_s3 + $0x8] sm:$0xff]   ;;  %v10643_v2 = vld [vmem:[%s13621_s3 + $0xa0] sm:$0xff]  }
 0x9ba   :  { %v10644_v44 = vld [vmem:[%s13621_s3 + $0x68] sm:$0xff]  }
 0x9bb   :  { %v5478_v61 = vadd.f32 %v9784_v55, %v5429_v30  ;;  %v5524_v18 = vadd.f32 %v9809_v21, %v5475_v25  ;;  %v10631_v30 = vld [vmem:[%s13621_s3 + $0x88] sm:$0xff]  }
 0x9bc   :  { %v10645_v38 = vld [vmem:[%s13621_s3 + $0xe8] sm:$0xff]  }
 0x9bd   :  { %v5527_v57 = vadd.f32 %v9812_v0, %v5478_v61  ;;  %v9785_v43 = vpop.f32.mrb[72].mxu0  ;;  %v10624_v0 = vld [vmem:[%s13621_s3 + $0x40] sm:$0xff]   ;;  %v10646_v25 = vld [vmem:[%s13621_s3 + $0x28] sm:$0xff]   ;;  %v10648_v61 = vld [vmem:[%s13621_s3 + $0x70] sm:$0xff]  }
 0x9be   :  { %v9786_v63 = vpop.f32.mrb[73].mxu0  ;;  %9847 = vmatprep.subr.bf16.mxu1 %v10624_v0  ;;  %v10647_v55 = vld [vmem:[%s13621_s3 + $0xa8] sm:$0xff]   ;;  %v5617_v0 = vmul.f32 0.9, %v12179_v29 }
 0x9bf   :  { %v9787_v59 = vadd.f32 %v9786_v63, %v9785_v43  ;;  %v9788_v37 = vpop.f32.mrb[74].mxu0  ;;  %9848 = vmatpush3.bf16.msra.mxu1 %v10626_v56  ;;  %v10651_v43 = vld [vmem:[%s13621_s3 + $0xb0] sm:$0xff]   ;;  %v10652_v63 = vld [vmem:[%s13621_s3 + $0x78] sm:$0xff]  }
 0x9c0   :  { %v9789_v23 = vpop.f32.mrb[75].mxu0  ;;  %9849 = vmatprep.subr.bf16.mxu1 %v10628_v52 }
 0x9c1   :  { %v5483_v4 = vadd.f32 %v9787_v59, %v5434_v60  ;;  %v9790_v15 = vadd.f32 %v9789_v23, %v9788_v37  ;;  %v10639_v60 = vld [vmem:[%s13621_s3 + $0x98] sm:$0xff]  }
 0x9c2   :  { %v10653_v59 = vld [vmem:[%s13621_s3 + $0xf8] sm:$0xff]  }
 0x9c3   :  { %v5486_v1 = vadd.f32 %v9790_v15, %v5437_v3  ;;  %v5532_v47 = vadd.f32 %v9815_v11, %v5483_v4  ;;  %v10625_v11 = vld [vmem:[%s13621_s3 + $0xc0] sm:$0xff]   ;;  %9850 = vmatpush3.bf16.msra.mxu1 %v10630_v27  ;;  %v10654_v37 = vld [vmem:[%s13621_s3 + $0x38] sm:$0xff]  }
 0x9c4   :  { %9869 = vmatprep.subr.bf16.mxu0 %v10625_v11  ;;  %9851 = vmatprep.subr.bf16.mxu1 %v10632_v46  ;;  %v10640_v3 = vld [vmem:[%s13621_s3 + $0x60] sm:$0xff]   ;;  %v10655_v23 = vld [vmem:[%s13621_s3 + $0xb8] sm:$0xff]  }
 0x9c5   :  { %v5535_v49 = vadd.f32 %v9818_v34, %v5486_v1  ;;  %9870 = vmatpush3.bf16.msra.mxu0 %v10627_v28  ;;  %v10660_v4 = vld [vmem:[%s13621_s3 + $0x140] sm:$0xff]  }
 0x9c6   :  { %9871 = vmatprep.subr.bf16.mxu0 %v10629_v7 }
 0x9c7   :  { %9852 = vmatpush3.bf16.msra.mxu1 %v10634_v39 }
 0x9c8   :  { %9853 = vmatprep.subr.bf16.mxu1 %v10636_v22 }
 0x9c9   :  { %9872 = vmatpush3.bf16.msra.mxu0 %v10631_v30 }
 0x9ca   :  { %9873 = vmatprep.subr.bf16.mxu0 %v10633_v40 }
 0x9cb   :  { %9854 = vmatpush3.bf16.msra.mxu1 %v10638_v16 }
 0x9cc   :  { %9855 = vmatprep.subr.bf16.mxu1 %v10640_v3 }
 0x9cd   :  { %9874 = vmatpush3.bf16.msra.mxu0 %v10635_v62 }
 0x9ce   :  { %9875 = vmatprep.subr.bf16.mxu0 %v10637_v41 }
 0x9cf   :  { %9856 = vmatpush3.bf16.msra.mxu1 %v10642_v24 }
 0x9d0   :  { %9857 = vmatprep.subr.bf16.mxu1 %v10644_v44 }
 0x9d1   :  { %9876 = vmatpush3.bf16.msra.mxu0 %v10639_v60 }
 0x9d2   :  { %9877 = vmatprep.subr.bf16.mxu0 %v10641_v10 }
 0x9d3   :  { %9858 = vmatpush3.bf16.msra.mxu1 %v10646_v25 }
 0x9d4   :  { %9859 = vmatprep.subr.bf16.mxu1 %v10648_v61 }
 0x9d5   :  { %v9835_v45 = vpop.f32.mrb[76].mxu0  ;;  %9878 = vmatpush3.bf16.msra.mxu0 %v10643_v2 }
 0x9d6   :  { %v9836_v9 = vpop.f32.mrb[77].mxu0  ;;  %9879 = vmatprep.subr.bf16.mxu0 %v10645_v38 }
 0x9d7   :  { %v9837_v36 = vadd.f32 %v9836_v9, %v9835_v45  ;;  %v9838_v58 = vpop.f32.mrb[78].mxu0 }
 0x9d8   :  { %v9839_v32 = vpop.f32.mrb[79].mxu0 }
 0x9d9   :  { %v12747_v54 = vadd.f32 %v9837_v36, %v5524_v18  ;;  %v9840_v26 = vadd.f32 %v9839_v32, %v9838_v58  ;;  %v10649_v18 = vld [vmem:[%s13621_s3 + $0xf0] sm:$0xff]   ;;  %9880 = vmatpush3.bf16.msra.mxu0 %v10647_v55 }
 0x9da   :  { %9881 = vmatprep.subr.bf16.mxu0 %v10649_v18 }
 0x9db   :  { %v12749_v21 = vadd.f32 %v9840_v26, %v5527_v57  ;;  %5591 = vrot.lane.b32.xlu0 %v12747_v54, %s10911_s29  ;;  %v10650_v57 = vld [vmem:[%s13621_s3 + $0x30] sm:$0xff]  }
 0x9dc   :  { %9860 = vmatpush3.bf16.msra.mxu1 %v10650_v57  ;;  %v10662_v57 = vld [vmem:[%s13621_s3 + $0x100] sm:$0xff]  }
 0x9dd   :  { %v9841_v34 = vpop.f32.mrb[80].mxu0  ;;  %5593 = vrot.lane.b32.xlu1 %v12749_v21, %s10911_s29  ;;  %9882 = vmatpush3.bf16.msra.mxu0 %v10651_v43  ;;  %v10663_v43 = vld [vmem:[%s13621_s3 + $0x180] sm:$0xff]  }
 0x9de   :  { %v9842_v35 = vpop.f32.mrb[81].mxu0  ;;  %9861 = vmatprep.subr.bf16.mxu1 %v10652_v63  ;;  %9883 = vmatprep.subr.bf16.mxu0 %v10653_v59 }
 0x9df   :  { %v9843_v51 = vadd.f32 %v9842_v35, %v9841_v34  ;;  %v9844_v20 = vpop.f32.mrb[82].mxu0  ;;  %v5618_v35 = vmul.f32 0.9, %v12189_v8 }
 0x9e0   :  { %v9845_v13 = vpop.f32.mrb[83].mxu0  ;;  %9862 = vmatpush3.bf16.msra.mxu1 %v10654_v37 }
 0x9e1   :  { %v12773_v17 = vadd.f32 %v9843_v51, %v5532_v47  ;;  %v9846_v50 = vadd.f32 %v9845_v13, %v9844_v20  ;;  %9884 = vmatpush3.bf16.msra.mxu0 %v10655_v23  ;;  %9891 = vmatprep.subr.bf16.mxu1 %v10660_v4 }
 0x9e2   :  { %10193 = vmatprep.subr.bf16.mxu0 %v12737_v5 }
 0x9e3   :  { %v12781_v12 = vadd.f32 %v9846_v50, %v5535_v49  ;;  %5595 = vrot.lane.b32.xlu0 %v12773_v17, %s10911_s29 }
 0x9e5   :  { %5597 = vrot.lane.b32.xlu1 %v12781_v12, %s10911_s29 }
 0xa4d   :  { %v5592_v15 = vpop.permute.xlu0 %5591 }
 0xa4e   :  { %v5603_v1 = vmax.f32 %v12747_v54, %v5592_v15 }
 0xa4f   :  { %v5594_v47 = vpop.permute.xlu1 %5593 }
 0xa50   :  { %5607 = vst.msk [vmem:[#allocation6] sm:$0xff] %vm1332_vm10, %v5603_v1  ;;  %v5604_v49 = vmax.f32 %v12749_v21, %v5594_v47  ;;  %v10666_v1 = vld [vmem:[%s13621_s3 + $0x148] sm:$0xff]  }
 0xa52   :  { %5608 = vst.msk [vmem:[#allocation6 + $0x8] sm:$0xff] %vm1332_vm10, %v5604_v49  ;;  %v10667_v49 = vld [vmem:[%s13621_s3 + $0x108] sm:$0xff]  }
 0xa55   :  { %v5596_v45 = vpop.permute.xlu0 %5595 }
 0xa56   :  { %v5605_v9 = vmax.f32 %v12773_v17, %v5596_v45  ;;  %v10668_v45 = vld [vmem:[%s13621_s3 + $0x188] sm:$0xff]  }
 0xa57   :  { %v5598_v36 = vpop.permute.xlu1 %5597 }
 0xa58   :  { %5609 = vst.msk [vmem:[#allocation6 + $0x10] sm:$0xff] %vm1332_vm10, %v5605_v9  ;;  %v5606_v58 = vmax.f32 %v12781_v12, %v5598_v36  ;;  %v10669_v9 = vld [vmem:[%s13621_s3 + $0x150] sm:$0xff]  }
 0xa59   :  { %v5611_v32 = vld [vmem:[#allocation6] ss:$2 sm:$0xff]  ;;  %v5613_v26 = vld [vmem:[#allocation6 + $0x1] ss:$2 sm:$0xff] }
 0xa5a   :  { %v5615_v54 = vmax.f32 %v5611_v32, %v5613_v26  ;;  %5610 = vst.msk [vmem:[#allocation6 + $0x18] sm:$0xff] %vm1332_vm10, %v5606_v58  ;;  %v10670_v36 = vld [vmem:[%s13621_s3 + $0x110] sm:$0xff]   ;;  %v10672_v32 = vld [vmem:[%s13621_s3 + $0x158] sm:$0xff]  }
 0xa5b   :  { %v10671_v58 = vld [vmem:[%s13621_s3 + $0x190] sm:$0xff]   ;;  %v10673_v26 = vld [vmem:[%s13621_s3 + $0x118] sm:$0xff]  }
 0xa5c   :  { %v5619_v11 = vadd.f32 %v5617_v0, %v5615_v54  ;;  %v10674_v0 = vld [vmem:[%s13621_s3 + $0x198] sm:$0xff]   ;;  %v10675_v54 = vld [vmem:[%s13621_s3 + $0x160] sm:$0xff]  }
 0xa5e   :  { %v12873_v21 = vsub.f32 %v5619_v11, %v12183_v31  ;;  %v10676_v11 = vld [vmem:[%s13621_s3 + $0x120] sm:$0xff]  }
 0xa60   :  { %vm5623_vm9 = vcmp.gt.f32.partialorder %v12873_v21, 1.0 }
 0xa61   :  { %v12877_v34 = vsel %vm5623_vm9, 1.0, %v12737_v5  ;;  %v5612_v56 = vld [vmem:[#allocation6 + $0x10] ss:$2 sm:$0xff]  ;;  %v5614_v28 = vld [vmem:[#allocation6 + $0x11] ss:$2 sm:$0xff] }
 0xa62   :  { %5629 = vst.msk [vmem:[#allocation3 + $0x8] sm:$0xff] %vm1332_vm10, %v12877_v34  ;;  %v5616_v29 = vmax.f32 %v5612_v56, %v5614_v28  ;;  %v10677_v56 = vld [vmem:[%s13621_s3 + $0x1a0] sm:$0xff]   ;;  %v10678_v28 = vld [vmem:[%s13621_s3 + $0x168] sm:$0xff]  }
 0xa64   :  { %v5620_v51 = vadd.f32 %v5618_v35, %v5616_v29  ;;  %v10679_v35 = vld [vmem:[%s13621_s3 + $0x128] sm:$0xff]  }
 0xa65   :  { %v10680_v29 = vld [vmem:[%s13621_s3 + $0x1a8] sm:$0xff]  }
 0xa66   :  { %v12883_v20 = vsub.f32 %v5620_v51, %v12193_v6  ;;  %v10681_v51 = vld [vmem:[%s13621_s3 + $0x170] sm:$0xff]  }
 0xa68   :  { %vm5624_vm13 = vcmp.gt.f32.partialorder %v12883_v20, 1.0 }
 0xa69   :  { %v12887_v31 = vsel %vm5624_vm13, 1.0, %v12737_v5  ;;  %v5631_v13 = vld [vmem:[#allocation3 + $0x5] sm:$0xff] }
 0xa6a   :  { %v5637_v52 = vld [vmem:[#allocation3 + $0x6] sm:$0xff]  ;;  %5630 = vst.msk [vmem:[#allocation3 + $0x20] sm:$0xff] %vm1332_vm10, %v12887_v31  ;;  %v5633_v8 = vpack.c.bf16 %v5631_v13, %v5631_v13  ;;  %v10682_v13 = vld [vmem:[%s13621_s3 + $0x130] sm:$0xff]  }
 0xa6b   :  { %v5643_v7 = vld [vmem:[#allocation3 + $0x7] sm:$0xff]  ;;  %v5639_v17 = vpack.c.bf16 %v5637_v52, %v5637_v52  ;;  %v10683_v52 = vld [vmem:[%s13621_s3 + $0x1b0] sm:$0xff]  }
 0xa6c   :  { %v5645_v50 = vpack.c.bf16 %v5643_v7, %v5643_v7  ;;  %v5649_v27 = vld [vmem:[#allocation3 + $0x8] sm:$0xff]  ;;  %5635 = vst [vmem:[#allocation5] sm:$0xf] %v5633_v8  ;;  %v10684_v7 = vld [vmem:[%s13621_s3 + $0x178] sm:$0xff]  }
 0xa6d   :  { %v5655_v30 = vld [vmem:[#allocation3 + $0x9] sm:$0xff]  ;;  %v5651_v46 = vpack.c.bf16 %v5649_v27, %v5649_v27  ;;  %5641 = vst [vmem:[#allocation5 + $0x4] sm:$0xf] %v5639_v17  ;;  %v10685_v8 = vld [vmem:[%s13621_s3 + $0x138] sm:$0xff]  }
 0xa6e   :  { %v5661_v12 = vld [vmem:[#allocation3 + $0xa] sm:$0xff]  ;;  %v5657_v6 = vpack.c.bf16 %v5655_v30, %v5655_v30  ;;  %5647 = vst [vmem:[#allocation5 + $0x8] sm:$0xf] %v5645_v50  ;;  %v10686_v17 = vld [vmem:[%s13621_s3 + $0x1b8] sm:$0xff]  }
 0xa6f   :  { %v5663_v40 = vpack.c.bf16 %v5661_v12, %v5661_v12  ;;  %v5667_v39 = vld [vmem:[#allocation3 + $0xb] sm:$0xff]  ;;  %5653 = vst [vmem:[#allocation5 + $0xc] sm:$0xf] %v5651_v46  ;;  %v9044_v46 = vld [vmem:[%s13622_s4] ss:$0 sm:$0xff] }
 0xa70   :  { %v5669_v62 = vpack.c.bf16 %v5667_v39, %v5667_v39  ;;  %5659 = vst [vmem:[#allocation5 + $0x10] sm:$0xf] %v5657_v6 }
 0xa71   :  { %5665 = vst [vmem:[#allocation5 + $0x14] sm:$0xf] %v5663_v40  ;;  %v5632_v22 = vld [vmem:[#allocation3 + $0x1d] sm:$0xff] }
 0xa72   :  { %5671 = vst [vmem:[#allocation5 + $0x18] sm:$0xf] %v5669_v62  ;;  %v5638_v41 = vld [vmem:[#allocation3 + $0x1e] sm:$0xff]  ;;  %v5634_v60 = vpack.c.bf16 %v5632_v22, %v5632_v22 }
 0xa73   :  { %v5644_v16 = vld [vmem:[#allocation3 + $0x1f] sm:$0xff]  ;;  %v5640_v3 = vpack.c.bf16 %v5638_v41, %v5638_v41 }
 0xa74   :  { %v5646_v10 = vpack.c.bf16 %v5644_v16, %v5644_v16  ;;  %v5650_v24 = vld [vmem:[#allocation3 + $0x20] sm:$0xff]  ;;  %5636 = vst [vmem:[#allocation5 + $0x1c] sm:$0xf] %v5634_v60  ;;  %v5673_v63 = vld [vmem:[#allocation5] sm:$0xff] }
 0xa75   :  { %v5656_v2 = vld [vmem:[#allocation3 + $0x21] sm:$0xff]  ;;  %v5652_v38 = vpack.c.bf16 %v5650_v24, %v5650_v24  ;;  %5642 = vst [vmem:[#allocation5 + $0x20] sm:$0xf] %v5640_v3 }
 0xa76   :  { %v5662_v44 = vld [vmem:[#allocation3 + $0x22] sm:$0xff]  ;;  %v5658_v25 = vpack.c.bf16 %v5656_v2, %v5656_v2  ;;  %5648 = vst [vmem:[#allocation5 + $0x24] sm:$0xf] %v5646_v10 }
 0xa77   :  { %v5664_v55 = vpack.c.bf16 %v5662_v44, %v5662_v44  ;;  %v5668_v61 = vld [vmem:[#allocation3 + $0x23] sm:$0xff]  ;;  %5654 = vst [vmem:[#allocation5 + $0x28] sm:$0xf] %v5652_v38 }
 0xa78   :  { %v5670_v18 = vpack.c.bf16 %v5668_v61, %v5668_v61  ;;  %5660 = vst [vmem:[#allocation5 + $0x2c] sm:$0xf] %v5658_v25 }
 0xa79   :  { %5666 = vst [vmem:[#allocation5 + $0x30] sm:$0xf] %v5664_v55 }
 0xa7a   :  { %5672 = vst [vmem:[#allocation5 + $0x34] sm:$0xf] %v5670_v18 }
 0xa7c   :  { %v5677_v59 = vld [vmem:[#allocation5 + $0x1c] sm:$0xff] }
 0xa7d   :  { %v10656_v37 = vld [vmem:[#allocation5 + $0x4] ss:$28 sps:$4 sm:$0xff]   ;;  %v9045_v4 = vcombine.low %v5673_v63, %v5677_v59 }
 0xa7e   :  { %v10658_v23 = vld [vmem:[#allocation5 + $0xc] ss:$28 sps:$4 sm:$0xff]   ;;  %6204 = vmatprep.mubr.bf16.mxu1 %v10656_v37 }
 0xa7f   :  { %v10661_v15 = vld [vmem:[#allocation5 + $0x8] ss:$28 sps:$4 sm:$0xff]   ;;  %6245 = vmatprep.mubr.bf16.mxu0 %v10658_v23  ;;  %6205 = vmatmul.mubr.bf16.vlgmr.msra.gmra.mrb[76].mxu1 %v9045_v4  ;;  %v10687_v50 = vld [vmem:[#allocation5 + $0x10] ss:$28 sps:$4 sm:$0xff]  }
 0xa80   :  { %v10664_v47 = vld [vmem:[#allocation5 + $0x14] ss:$28 sps:$4 sm:$0xff]   ;;  %6246 = vmatmul.mubr.bf16.vlgmr.msra.gmra.mrb[84].mxu0 %v10661_v15  ;;  %9892 = vmatpush3.bf16.msra.mxu1 %v10662_v57 }
 0xa81   :  { %10194 = vmatpush3.bf16.msra.mxu0 %v10663_v43  ;;  %6286 = vmatprep.mubr.bf16.mxu1 %v10664_v47  ;;  %v10688_v27 = vld [vmem:[#allocation5 + $0x18] ss:$28 sps:$4 sm:$0xff]  }
 0xa82   :  { %9893 = vmatprep.subr.bf16.mxu1 %v10666_v1  ;;  %10195 = vmatprep.subr.bf16.mxu0 %v12737_v5 }
 0xa83   :  { %10209 = vmatprep.mubr.msk.bf16.mxu0 %vm10912_vm14, %v12737_v5 }
 0xa84   :  { %9894 = vmatpush3.bf16.msra.mxu1 %v10667_v49 }
 0xa85   :  { %10196 = vmatpush3.bf16.msra.mxu0 %v10668_v45  ;;  %9895 = vmatprep.subr.bf16.mxu1 %v10669_v9 }
 0xa86   :  { %10197 = vmatprep.subr.bf16.mxu0 %v12737_v5 }
 0xa88   :  { %9896 = vmatpush3.bf16.msra.mxu1 %v10670_v36 }
 0xa89   :  { %10198 = vmatpush3.bf16.msra.mxu0 %v10671_v58  ;;  %9897 = vmatprep.subr.bf16.mxu1 %v10672_v32 }
 0xa8a   :  { %10199 = vmatprep.subr.bf16.mxu0 %v12737_v5 }
 0xa8c   :  { %9898 = vmatpush3.bf16.msra.mxu1 %v10673_v26 }
 0xa8d   :  { %10200 = vmatpush3.bf16.msra.mxu0 %v10674_v0  ;;  %9899 = vmatprep.subr.bf16.mxu1 %v10675_v54  ;;  %v6394_v0 = vld [vmem:[%s13623_s5] sm:$0xf] }
 0xa8e   :  { %10201 = vmatprep.subr.bf16.mxu0 %v12737_v5  ;;  %v10689_v54 = vld [vmem:[%s13619_s1 + $0x40] sm:$0xff]  }
 0xa90   :  { %9900 = vmatpush3.bf16.msra.mxu1 %v10676_v11  ;;  %v6412_v11 = vsel %vm2138_vm15, %v6394_v0, 0  ;;  %v10727_v0 = vld [vmem:[%s13619_s1 + $0x1c8] sm:$0xff]  }
 0xa91   :  { %10202 = vmatpush3.bf16.msra.mxu0 %v10677_v56  ;;  %9901 = vmatprep.subr.bf16.mxu1 %v10678_v28  ;;  %v10691_v56 = vld [vmem:[%s13619_s1 + $0xc0] sm:$0xff]  }
 0xa92   :  { %10203 = vmatprep.subr.bf16.mxu0 %v12737_v5  ;;  %v10692_v28 = vld [vmem:[%s13619_s1 + $0x80] sm:$0xff]  }
 0xa94   :  { %9902 = vmatpush3.bf16.msra.mxu1 %v10679_v35  ;;  %v10695_v35 = vld [vmem:[%s13619_s1 + $0xc8] sm:$0xff]  }
 0xa95   :  { %10204 = vmatpush3.bf16.msra.mxu0 %v10680_v29  ;;  %9903 = vmatprep.subr.bf16.mxu1 %v10681_v51  ;;  %v10696_v29 = vld [vmem:[%s13619_s1 + $0x88] sm:$0xff]   ;;  %v10699_v51 = vld [vmem:[%s13619_s1 + $0xd0] sm:$0xff]  }
 0xa96   :  { %10205 = vmatprep.subr.bf16.mxu0 %v12737_v5 }
 0xa98   :  { %9904 = vmatpush3.bf16.msra.mxu1 %v10682_v13  ;;  %v10700_v13 = vld [vmem:[%s13619_s1 + $0x90] sm:$0xff]  }
 0xa99   :  { %10206 = vmatpush3.bf16.msra.mxu0 %v10683_v52  ;;  %9905 = vmatprep.subr.bf16.mxu1 %v10684_v7  ;;  %v10703_v52 = vld [vmem:[%s13619_s1 + $0xd8] sm:$0xff]  }
 0xa9a   :  { %10207 = vmatprep.subr.bf16.mxu0 %v12737_v5  ;;  %v10704_v7 = vld [vmem:[%s13619_s1 + $0x98] sm:$0xff]  }
 0xa9c   :  { %9906 = vmatpush3.bf16.msra.mxu1 %v10685_v8  ;;  %v10707_v8 = vld [vmem:[%s13619_s1 + $0xe0] sm:$0xff]  }
 0xa9d   :  { %10208 = vmatpush3.bf16.msra.mxu0 %v10686_v17  ;;  %10213 = vmatprep.subr.bf16.mxu1 %v12737_v5  ;;  %v10708_v17 = vld [vmem:[%s13619_s1 + $0xa0] sm:$0xff]  }
 0xa9e   :  { %9952 = vmatprep.subr.bf16.mxu0 %v10691_v56  ;;  %v10731_v56 = vld [vmem:[%s13619_s1 + $0x1d0] sm:$0xff]  }
 0xa9f   :  { %6287 = vmatmul.mubr.bf16.vlgmr.msra.gmra.mrb[80].mxu1 %v10687_v50  ;;  %v10711_v50 = vld [vmem:[%s13619_s1 + $0xe8] sm:$0xff]  }
 0xaa0   :  { %10210 = vmatmul.mubr.bf16.vlgmr.msra.gmra.mrb[88].mxu0 %v10688_v27  ;;  %10215 = vmatprep.mubr.msk.bf16.mxu1 %vm10912_vm14, %v12737_v5  ;;  %v10712_v27 = vld [vmem:[%s13619_s1 + $0xa8] sm:$0xff]  }
 0xaa1   :  { %10214 = vmatpush3.bf16.msra.mxu1 %v6412_v11  ;;  %9953 = vmatpush3.bf16.msra.mxu0 %v10692_v28  ;;  %v10728_v11 = vld [vmem:[%s13619_s1 + $0x188] sm:$0xff]   ;;  %v10732_v28 = vld [vmem:[%s13619_s1 + $0x190] sm:$0xff]  }
 0xaa2   :  { %9924 = vmatprep.subr.bf16.mxu1 %v10689_v54  ;;  %9954 = vmatprep.subr.bf16.mxu0 %v10695_v35  ;;  %v10735_v35 = vld [vmem:[%s13619_s1 + $0x1d8] sm:$0xff]  }
 0xaa5   :  { %9955 = vmatpush3.bf16.msra.mxu0 %v10696_v29  ;;  %v13071_v29 = vld [vmem:[#allocation2 + $0x58] sm:$0xff] }
 0xaa6   :  { %9956 = vmatprep.subr.bf16.mxu0 %v10699_v51  ;;  %v6583_v51 = vld [vmem:[#allocation2 + $0x48] sm:$0x80] }
 0xaa9   :  { %9957 = vmatpush3.bf16.msra.mxu0 %v10700_v13  ;;  %v13073_v13 = vld [vmem:[#allocation2 + $0x50] sm:$0xff] }
 0xaaa   :  { %9958 = vmatprep.subr.bf16.mxu0 %v10703_v52  ;;  %v6587_v52 = vld [vmem:[#allocation2 + $0x68] sm:$0x7f] }
 0xaad   :  { %9959 = vmatpush3.bf16.msra.mxu0 %v10704_v7  ;;  %v6593_v7 = vpack.c.bf16 %v13071_v29, %v6583_v51 }
 0xaae   :  { %9960 = vmatprep.subr.bf16.mxu0 %v10707_v8  ;;  %v6582_v8 = vld [vmem:[#allocation2 + $0x40] sm:$0x80] }
 0xab1   :  { %9961 = vmatpush3.bf16.msra.mxu0 %v10708_v17  ;;  %v6595_v17 = vpack.c.bf16 %v6587_v52, %v6587_v52 }
 0xab2   :  { %9962 = vmatprep.subr.bf16.mxu0 %v10711_v50  ;;  %v6586_v50 = vld [vmem:[#allocation2 + $0x60] sm:$0x7f] }
 0xab5   :  { %9963 = vmatpush3.bf16.msra.mxu0 %v10712_v27  ;;  %v6648_v27 = vshrl.u32 %v6593_v7, 16 }
 0xb52   :  { %v9863_v30 = vpop.f32.mrb[76].mxu1 }
 0xb53   :  { %v9885_v12 = vpop.f32.mrb[84].mxu0  ;;  %v9864_v6 = vpop.f32.mrb[77].mxu1 }
 0xb54   :  { %v9865_v40 = vadd.f32 %v9864_v6, %v9863_v30  ;;  %v9886_v39 = vpop.f32.mrb[85].mxu0  ;;  %v9866_v62 = vpop.f32.mrb[78].mxu1  ;;  %v13030_v30 = vld [vmem:[#allocation2 + $0x18] sm:$0xff]  ;;  %v10715_v6 = vld [vmem:[%s13619_s1 + $0xf0] sm:$0xff]  }
 0xb55   :  { %v9887_v22 = vadd.f32 %v9886_v39, %v9885_v12  ;;  %v9888_v41 = vpop.f32.mrb[86].mxu0  ;;  %v9867_v16 = vpop.f32.mrb[79].mxu1  ;;  %v6577_v12 = vld [vmem:[#allocation2 + $0x8] sm:$0x80]  ;;  %9964 = vmatprep.subr.bf16.mxu0 %v10715_v6  ;;  %v10736_v6 = vld [vmem:[%s13619_s1 + $0x198] sm:$0xff]  }
 0xb56   :  { %v6207_v60 = vadd.f32 %v9865_v40, %v9044_v46  ;;  %v9868_v3 = vadd.f32 %v9867_v16, %v9866_v62  ;;  %v9889_v10 = vpop.f32.mrb[87].mxu0  ;;  %v10716_v40 = vld [vmem:[%s13619_s1 + $0xb0] sm:$0xff]   ;;  %v6589_v39 = vpack.c.bf16 %v13030_v30, %v6577_v12  ;;  %v6651_v12 = vshll.u32 %v6593_v7, 16 }
 0xb57   :  { %v9890_v24 = vadd.f32 %v9889_v10, %v9888_v41  ;;  %9965 = vmatpush3.bf16.msra.mxu0 %v10716_v40  ;;  %v6580_v10 = vld [vmem:[#allocation2 + $0x20] sm:$0x7f]  ;;  %v6656_v40 = vshrl.u32 %v6595_v17, 16  ;;  %v10748_v7 = vld [vmem:[%s13619_s1 + $0x1b0] sm:$0xff]  }
 0xb58   :  { %v6248_v2 = vadd.f32 %v9887_v22, %v6207_v60  ;;  %v6210_v44 = vadd.f32 %v9868_v3, %v9044_v46  ;;  %v6581_v46 = vld [vmem:[#allocation2 + $0x28] sm:$0x7f]  ;;  %v13039_v22 = vld [vmem:[#allocation2 + $0x10] sm:$0xff]  ;;  %v6614_v41 = vshrl.u32 %v6589_v39, 16  ;;  %v6617_v16 = vshll.u32 %v6589_v39, 16 }
 0xb59   :  { %v6591_v62 = vpack.c.bf16 %v6581_v46, %v6581_v46  ;;  %v6576_v3 = vld [vmem:[#allocation2] sm:$0x80]  ;;  %v6592_v46 = vpack.c.bf16 %v13073_v13, %v6582_v8  ;;  %v6594_v39 = vpack.c.bf16 %v6586_v50, %v6586_v50 }
 0xb5a   :  { %v6251_v5 = vadd.f32 %v9890_v24, %v6210_v44  ;;  %v10719_v24 = vld [vmem:[%s13619_s1 + $0xf8] sm:$0xff]   ;;  %v6616_v44 = vrot.slane %v6614_v41, 3  ;;  %v6650_v41 = vrot.slane %v6648_v27, 3 }
 0xb5b   :  { %v6622_v60 = vshrl.u32 %v6591_v62, 16  ;;  %9966 = vmatprep.subr.bf16.mxu0 %v10719_v24  ;;  %v10740_v24 = vld [vmem:[%s13619_s1 + $0x1a0] sm:$0xff]  }
 0xb72   :  { %v9907_v38 = vpop.f32.mrb[80].mxu1 }
 0xb73   :  { %v6329_v25 = vpop.f32.mrb[88].mxu0  ;;  %v9908_v55 = vpop.f32.mrb[81].mxu1 }
 0xb74   :  { %v9909_v61 = vadd.f32 %v9908_v55, %v9907_v38  ;;  %v10211_v18 = vpop.f32.mrb[89].mxu0  ;;  %v9910_v57 = vpop.f32.mrb[82].mxu1  ;;  %v6619_v38 = vrot.slane %v6617_v16, 4  ;;  %v6653_v16 = vrot.slane %v6651_v12, 4  ;;  %v10751_v12 = vld [vmem:[%s13619_s1 + $0x1f8] sm:$0xff]  }
 0xb75   :  { %v6332_v43 = vpop.f32.mrb[90].mxu0  ;;  %v9911_v63 = vpop.f32.mrb[83].mxu1  ;;  %v6590_v18 = vpack.c.bf16 %v6580_v10, %v6580_v10  ;;  %v6631_v10 = vshrl.u32 %v6592_v46, 16 }
 0xb76   :  { %v6289_v59 = vadd.f32 %v9909_v61, %v6248_v2  ;;  %v9912_v37 = vadd.f32 %v9911_v63, %v9910_v57  ;;  %v10212_v23 = vpop.f32.mrb[91].mxu0  ;;  %v10720_v2 = vld [vmem:[%s13619_s1 + $0xb8] sm:$0xff]   ;;  %v6588_v61 = vpack.c.bf16 %v13039_v22, %v6576_v3  ;;  %v6620_v57 = vor.u32 %v6619_v38, %v6616_v44 }
 0xb77   :  { %9967 = vmatpush3.bf16.msra.mxu0 %v10720_v2  ;;  %v10723_v23 = vld [vmem:[%s13619_s1 + $0x1c0] sm:$0xff]   ;;  %v6659_v3 = vshll.u32 %v6595_v17, 16  ;;  %v6654_v2 = vor.u32 %v6653_v16, %v6650_v41  ;;  %v6639_v38 = vshrl.u32 %v6594_v39, 16  ;;  %v6695_v41 = vld [vmem:[#allocation2 + $0x58] sm:$0xfe] }
 0xb78   :  { %v6292_v4 = vadd.f32 %v9912_v37, %v6251_v5  ;;  %v6330_v15 = vadd.f32 %v6329_v25, %v6289_v59  ;;  %v6625_v5 = vshll.u32 %v6591_v62, 16  ;;  %v6624_v25 = vrot.slane %v6622_v60, 3  ;;  %10008 = vmatprep.subr.bf16.mxu0 %v10723_v23  ;;  %v10739_v62 = vld [vmem:[%s13619_s1 + $0x1e0] sm:$0xff]  }
 0xb79   :  { %v6597_v63 = vshrl.u32 %v6588_v61, 16  ;;  %v6600_v59 = vshll.u32 %v6588_v61, 16  ;;  %v6605_v37 = vshrl.u32 %v6590_v18, 16  ;;  %v6658_v60 = vrot.slane %v6656_v40, 3 }
 0xb7a   :  { %6338 = vrot.lane.b32.xlu0 %v6330_v15, %s10911_s29  ;;  %v6333_v1 = vadd.f32 %v6332_v43, %v6292_v4  ;;  %v6627_v55 = vrot.slane %v6625_v5, 4  ;;  %v6608_v4 = vshll.u32 %v6590_v18, 16  ;;  %v6661_v44 = vrot.slane %v6659_v3, 4 }
 0xb7b   :  { %v6634_v5 = vshll.u32 %v6592_v46, 16  ;;  %v6642_v61 = vshll.u32 %v6594_v39, 16 }
 0xb7c   :  { %6340 = vrot.lane.b32.xlu1 %v6333_v1, %s10911_s29  ;;  %v6628_v43 = vor.u32 %v6627_v55, %v6624_v25  ;;  %v10743_v25 = vld [vmem:[%s13619_s1 + $0x1e8] sm:$0xff]   ;;  %v6633_v55 = vrot.slane %v6631_v10, 3  ;;  %v6662_v18 = vor.u32 %v6661_v44, %v6658_v60  ;;  %v13115_v60 = vld [vmem:[#allocation2 + $0x60] sm:$0xff]  ;;  %v6694_v10 = vld [vmem:[#allocation2 + $0x50] sm:$0xfe] }
 0xbec   :  { %v6339_v47 = vpop.permute.xlu0 %6338 }
 0xbed   :  { %v6344_v49 = vmax.f32 %v6330_v15, %v6339_v47  ;;  %v6629_v15 = vsel %vm181_vm5, %v6620_v57, %v6628_v43  ;;  %v6602_v47 = vrot.slane %v6600_v59, 4  ;;  %v6636_v57 = vrot.slane %v6634_v5, 4  ;;  %v6689_v59 = vld [vmem:[#allocation2 + $0x18] sm:$0xfe]  ;;  %v6699_v5 = vld [vmem:[#allocation2 + $0x78] sm:$0x1] }
 0xbee   :  { %v6341_v45 = vpop.permute.xlu1 %6340  ;;  %7560 = vmatprep.mubr.bf16.mxu0 %v6629_v15  ;;  %v6641_v43 = vrot.slane %v6639_v38, 3  ;;  %v10744_v15 = vld [vmem:[%s13619_s1 + $0x1a8] sm:$0xff]   ;;  %v6704_v38 = vpack.c.bf16 %v13115_v60, %v6694_v10 }
 0xbef   :  { %v6345_v9 = vmax.f32 %v6333_v1, %v6341_v45  ;;  %6348 = vrot.lane.b32.xlu0 %v6344_v49, %s10913_s17  ;;  %v6599_v1 = vrot.slane %v6597_v63, 3  ;;  %v6610_v45 = vrot.slane %v6608_v4, 4  ;;  %v13089_v63 = vld [vmem:[#allocation2 + $0x28] sm:$0xff]  ;;  %v6663_v4 = vsel %vm181_vm5, %v6654_v2, %v6662_v18 }
 0xbf0   :  { %v6701_v23 = vpack.c.bf16 %v13089_v63, %v6689_v59 }
 0xbf1   :  { %6350 = vrot.lane.b32.xlu1 %v6345_v9, %s10913_s17 }
 0xbf2   :  { %v6721_v52 = vshrl.u32 %v6701_v23, 16 }
 0xc61   :  { %v6349_v36 = vpop.permute.xlu0 %6348 }
 0xc62   :  { %v12979_v58 = vmax.f32 %v6344_v49, %v6349_v36  ;;  %v6607_v49 = vrot.slane %v6605_v37, 3  ;;  %v6644_v37 = vrot.slane %v6642_v61, 4  ;;  %v6698_v61 = vld [vmem:[#allocation2 + $0x70] sm:$0x1] }
 0xc63   :  { %v6351_v32 = vpop.permute.xlu1 %6350 }
 0xc64   :  { %v12981_v26 = vmax.f32 %v6345_v9, %v6351_v32  ;;  %6358 = vrot.lane.b32.xlu0 %v12979_v58, %s10914_s18  ;;  %v6603_v9 = vor.u32 %v6602_v47, %v6599_v1  ;;  %v6611_v36 = vor.u32 %v6610_v45, %v6607_v49  ;;  %v10724_v32 = vld [vmem:[%s13619_s1 + $0x180] sm:$0xff]   ;;  %v6637_v1 = vor.u32 %v6636_v57, %v6633_v55  ;;  %v6693_v49 = vld [vmem:[#allocation2 + $0x38] sm:$0x1] }
 0xc65   :  { %v13096_v47 = vld [vmem:[#allocation2 + $0x20] sm:$0xff]  ;;  %v6645_v45 = vor.u32 %v6644_v37, %v6641_v43  ;;  %v6706_v57 = vpack.c.bf16 %v6698_v61, %v6698_v61  ;;  %v6735_v43 = vshll.u32 %v6704_v38, 16  ;;  %v6682_v37 = vpack.c.bf16 %v13115_v60, %v13073_v13  ;;  %v13143_v61 = vld [vmem:[#allocation2 + $0x8] sm:$0xff] }
 0xc66   :  { %6360 = vrot.lane.b32.xlu1 %v12981_v26, %s10914_s18  ;;  %v6612_v54 = vsel %vm181_vm5, %v6603_v9, %v6611_v36  ;;  %v10747_v9 = vld [vmem:[%s13619_s1 + $0x1f0] sm:$0xff]   ;;  %v6703_v36 = vpack.c.bf16 %v6693_v49, %v6693_v49  ;;  %v6680_v51 = vpack.c.bf16 %v13096_v47, %v13039_v22 }
 0xc67   :  { %7561 = vmatmul.mubr.bf16.vlgmr.msra.gmra.mrb[92].mxu0 %v6612_v54  ;;  %v6692_v54 = vld [vmem:[#allocation2 + $0x30] sm:$0x1]  ;;  %v6737_v49 = vrot.slane %v6735_v43, 1 }
 0xc68   :  { %10009 = vmatpush3.bf16.msra.mxu0 %v10724_v32  ;;  %7568 = vmatprep.mubr.bf16.mxu0 %v6663_v4  ;;  %v6723_v32 = vshll.u32 %v6701_v23, 16  ;;  %v6728_v17 = vshll.u32 %v6703_v36, 16 }
 0xc69   :  { %10010 = vmatprep.subr.bf16.mxu0 %v10727_v0  ;;  %v6688_v0 = vld [vmem:[#allocation2 + $0x10] sm:$0xfe] }
 0xc6a   :  { %v6725_v8 = vrot.slane %v6723_v32, 1  ;;  %v6730_v40 = vrot.slane %v6728_v17, 1 }
 0xc6c   :  { %10011 = vmatpush3.bf16.msra.mxu0 %v10728_v11  ;;  %v6700_v11 = vpack.c.bf16 %v13096_v47, %v6688_v0 }
 0xc6d   :  { %10012 = vmatprep.subr.bf16.mxu0 %v10731_v56  ;;  %v6702_v56 = vpack.c.bf16 %v6692_v54, %v6692_v54 }
 0xc6e   :  { %v6709_v50 = vshrl.u32 %v6700_v11, 16  ;;  %v6711_v27 = vshll.u32 %v6700_v11, 16 }
 0xc6f   :  { %v6716_v46 = vshll.u32 %v6702_v56, 16 }
 0xc70   :  { %10013 = vmatpush3.bf16.msra.mxu0 %v10732_v28  ;;  %v6646_v28 = vsel %vm181_vm5, %v6637_v1, %v6645_v45  ;;  %v6713_v39 = vrot.slane %v6711_v27, 1  ;;  %v6733_v1 = vshrl.u32 %v6704_v38, 16  ;;  %v6740_v45 = vshll.u32 %v6706_v57, 16  ;;  %v6529_v38 = vld [vmem:[#allocation2 + $0x8] sm:$0xc0] }
 0xc71   :  { %10014 = vmatprep.subr.bf16.mxu0 %v10735_v35  ;;  %v6681_v35 = vpack.c.bf16 %v13089_v63, %v13030_v30  ;;  %7569 = vmatmul.mubr.bf16.gmra.mrb[96].mxu0 %v6646_v28  ;;  %v6718_v16 = vrot.slane %v6716_v46, 1 }
 0xc72   :  { %v6714_v44 = vor.u32 %v6713_v39, %v6709_v50  ;;  %v6738_v0 = vor.u32 %v6737_v49, %v6733_v1  ;;  %v6742_v54 = vrot.slane %v6740_v45, 1  ;;  %v10690_v49 = vld [vmem:[%s13619_s1] sm:$0xff]  }
 0xc74   :  { %10015 = vmatpush3.bf16.msra.mxu0 %v10736_v6  ;;  %v6726_v6 = vor.u32 %v6725_v8, %v6721_v52  ;;  %v6719_v18 = vsel %vm294_vm11, %v6714_v44, %v6718_v16  ;;  %v6743_v11 = vsel %vm294_vm11, %v6738_v0, %v6742_v54  ;;  %v10697_v0 = vld [vmem:[%s13619_s1 + $0x50] sm:$0xff]  }
 0xc75   :  { %10016 = vmatprep.subr.bf16.mxu0 %v10739_v62  ;;  %v13113_v62 = vld [vmem:[#allocation2 + $0x68] sm:$0xff]  ;;  %v10698_v54 = vld [vmem:[%s13619_s1 + $0x10] sm:$0xff]  }
 0xc76   :  { %v6705_v3 = vpack.c.bf16 %v13113_v62, %v6695_v41  ;;  %v6731_v2 = vsel %vm294_vm11, %v6726_v6, %v6730_v40  ;;  %v6683_v59 = vpack.c.bf16 %v13113_v62, %v13071_v29 }
 0xc77   :  { %7658 = vmatprep.mubr.bf16.mxu0 %v6731_v2  ;;  %v6381_v2 = vmul.f32 0.9, %v12530_v19 }
 0xc78   :  { %10017 = vmatpush3.bf16.msra.mxu0 %v10740_v24  ;;  %v10752_v24 = vld [vmem:[%s13619_s1 + $0x1b8] sm:$0xff]   ;;  %v6747_v55 = vshll.u32 %v6705_v3, 16  ;;  %v6745_v23 = vshrl.u32 %v6705_v3, 16  ;;  %v6380_v3 = vmul.f32 0.9, %v12526_v42 }
 0xc79   :  { %10018 = vmatprep.subr.bf16.mxu0 %v10743_v25  ;;  %v6707_v25 = vpack.c.bf16 %v6699_v5, %v6699_v5 }
 0xc7a   :  { %v6749_v4 = vrot.slane %v6747_v55, 1 }
 0xc7c   :  { %10019 = vmatpush3.bf16.msra.mxu0 %v10744_v15  ;;  %v6752_v15 = vshll.u32 %v6707_v25, 16  ;;  %v6533_v25 = vld [vmem:[#allocation2 + $0x28] sm:$0x3f] }
 0xc7d   :  { %10020 = vmatprep.subr.bf16.mxu0 %v10747_v9  ;;  %v6750_v9 = vor.u32 %v6749_v4, %v6745_v23  ;;  %v6543_v19 = vpack.c.bf16 %v6533_v25, %v6533_v25  ;;  %v6538_v25 = vld [vmem:[#allocation2 + $0x60] sm:$0x3f] }
 0xc7e   :  { %v6754_v36 = vrot.slane %v6752_v15, 1 }
 0xc7f   :  { %v6560_v23 = vrot.slane %v6543_v19, 3  ;;  %v10722_v19 = vld [vmem:[%s13619_s1 + $0x100] sm:$0xff]  }
 0xc80   :  { %10021 = vmatpush3.bf16.msra.mxu0 %v10748_v7  ;;  %v6755_v32 = vsel %vm294_vm11, %v6750_v9, %v6754_v36  ;;  %v10693_v9 = vld [vmem:[%s13619_s1 + $0x48] sm:$0xff]  }
 0xc81   :  { %10022 = vmatprep.subr.bf16.mxu0 %v10751_v12 }
 0xc84   :  { %10023 = vmatpush3.bf16.msra.mxu0 %v10752_v24 }
 0xc87   :  { %7659 = vmatmul.mubr.bf16.vlgmr.msra.gmra.mrb[100].mxu0 %v6719_v18  ;;  %v6541_v18 = vpack.c.bf16 %v13030_v30, %v6529_v38  ;;  %v6534_v38 = vld [vmem:[#allocation2 + $0x40] sm:$0xc0]  ;;  %v10742_v30 = vld [vmem:[%s13619_s1 + $0x128] sm:$0xff]  }
 0xc88   :  { %7666 = vmatprep.mubr.bf16.mxu0 %v6755_v32  ;;  %v10694_v32 = vld [vmem:[%s13619_s1 + $0x8] sm:$0xff]  }
 0xc89   :  { %v6559_v43 = vrot.slane %v6541_v18, 3 }
 0xc8b   :  { %v6561_v36 = vsel %vm140_vm4, %v6559_v43, %v6560_v23  ;;  %v10725_v43 = vld [vmem:[%s13619_s1 + $0x148] sm:$0xff]  }
 0xc8f   :  { %7667 = vmatmul.mubr.bf16.gmra.mrb[104].mxu0 %v6743_v11  ;;  %v10701_v11 = vld [vmem:[%s13619_s1 + $0x58] sm:$0xff]  }
 0xcd6   :  { %v6359_v56 = vpop.permute.xlu0 %6358 }
 0xcd7   :  { %v6364_v28 = vmax.f32 %v12979_v58, %v6359_v56  ;;  %v10702_v56 = vld [vmem:[%s13619_s1 + $0x18] sm:$0xff]  }
 0xcd8   :  { %v6361_v52 = vpop.permute.xlu1 %6360 }
 0xcd9   :  { %v6366_v7 = vsel %vm2093_vm12, %v6364_v28, -inf  ;;  %v6365_v8 = vmax.f32 %v12981_v26, %v6361_v52  ;;  %v10705_v28 = vld [vmem:[%s13619_s1 + $0x60] sm:$0xff]  }
 0xcda   :  { %v6367_v17 = vrot.slane %v6366_v7, 4  ;;  %v10706_v52 = vld [vmem:[%s13619_s1 + $0x20] sm:$0xff]  }
 0xcdb   :  { %v6373_v50 = vsel %vm2093_vm12, %v6365_v8, -inf  ;;  %v10710_v8 = vld [vmem:[%s13619_s1 + $0x28] sm:$0xff]  }
 0xcdc   :  { %v6368_v27 = vmax.f32 %v6366_v7, %v6367_v17  ;;  %v6374_v12 = vrot.slane %v6373_v50, 4  ;;  %v10709_v7 = vld [vmem:[%s13619_s1 + $0x68] sm:$0xff]   ;;  %v10713_v17 = vld [vmem:[%s13619_s1 + $0x70] sm:$0xff]  }
 0xcde   :  { %v6369_v46 = vrot.slane %v6368_v27, 2  ;;  %v6375_v6 = vmax.f32 %v6373_v50, %v6374_v12  ;;  %v6528_v50 = vld [vmem:[#allocation2] sm:$0xc0]  ;;  %v6535_v12 = vld [vmem:[#allocation2 + $0x48] sm:$0xc0] }
 0xce0   :  { %v6370_v40 = vmax.f32 %v6368_v27, %v6369_v46  ;;  %v6376_v39 = vrot.slane %v6375_v6, 2  ;;  %v6532_v27 = vld [vmem:[#allocation2 + $0x20] sm:$0x3f]  ;;  %v6539_v46 = vld [vmem:[#allocation2 + $0x68] sm:$0x3f] }
 0xce2   :  { %v6371_v41 = vrot.slane %v6370_v40, 1  ;;  %v6377_v16 = vmax.f32 %v6375_v6, %v6376_v39  ;;  %v10714_v6 = vld [vmem:[%s13619_s1 + $0x30] sm:$0xff]   ;;  %v6542_v39 = vpack.c.bf16 %v6532_v27, %v6532_v27  ;;  %v10755_v27 = vld [vmem:[%s13619_s1 + $0x248] sm:$0xff]  }
 0xce4   :  { %v6372_v10 = vmax.f32 %v6370_v40, %v6371_v41  ;;  %v6378_v58 = vrot.slane %v6377_v16, 1  ;;  %v6540_v40 = vpack.c.bf16 %v13039_v22, %v6528_v50  ;;  %v10717_v41 = vld [vmem:[%s13619_s1 + $0x78] sm:$0xff]   ;;  %v10754_v50 = vld [vmem:[%s13619_s1 + $0x200] sm:$0xff]   ;;  %v10758_v22 = vld [vmem:[%s13619_s1 + $0x210] sm:$0xff]  }
 0xce6   :  { %v6382_v24 = vadd.f32 %v6380_v3, %v6372_v10  ;;  %v6379_v44 = vmax.f32 %v6377_v16, %v6378_v58  ;;  %v6545_v16 = vpack.c.bf16 %v13071_v29, %v6535_v12  ;;  %v6547_v3 = vpack.c.bf16 %v6539_v46, %v6539_v46  ;;  %v10718_v10 = vld [vmem:[%s13619_s1 + $0x38] sm:$0xff]  }
 0xce7   :  { %v6556_v58 = vrot.slane %v6540_v40, 3  ;;  %v10757_v40 = vld [vmem:[%s13619_s1 + $0x250] sm:$0xff]  }
 0xce8   :  { %v13137_v26 = vsub.f32 %v6382_v24, %v12533_v33  ;;  %v6383_v5 = vadd.f32 %v6381_v2, %v6379_v44  ;;  %v6557_v24 = vrot.slane %v6542_v39, 3  ;;  %v10721_v2 = vld [vmem:[%s13619_s1 + $0x140] sm:$0xff]   ;;  %v6565_v44 = vrot.slane %v6545_v16, 3 }
 0xce9   :  { %v10762_v16 = vld [vmem:[%s13619_s1 + $0x220] sm:$0xff]  }
 0xcea   :  { %vm6386_vm5 = vcmp.gt.f32.partialorder %v13137_v26, 1.0  ;;  %v13141_v55 = vsub.f32 %v6383_v5, %v12540_v14  ;;  %v6566_v5 = vrot.slane %v6547_v3, 3  ;;  %v6558_v18 = vsel %vm140_vm4, %v6556_v58, %v6557_v24  ;;  %v10765_v3 = vld [vmem:[%s13619_s1 + $0x270] sm:$0xff]   ;;  %v6771_v24 = vld [vmem:[#allocation2 + $0x58] sm:$0xfc] }
 0xceb   :  { %v13146_v42 = vsel %vm6386_vm5, 1.0, %v13143_v61  ;;  %v6768_v58 = vld [vmem:[#allocation2 + $0x30] sm:$0x3] }
 0xcec   :  { %v6392_v33 = vpack.c.bf16 %v13146_v42, %v13146_v42  ;;  %vm6387_vm11 = vcmp.gt.f32.partialorder %v13141_v55, 1.0  ;;  %v6567_v23 = vsel %vm140_vm4, %v6565_v44, %v6566_v5  ;;  %v10766_v44 = vld [vmem:[%s13619_s1 + $0x230] sm:$0xff]  }
 0xced   :  { %v13153_v57 = vsel %vm6387_vm11, 1.0, %v13143_v61 }
 0xcee   :  { %v6393_v14 = vpack.c.bf16 %v13153_v57, %v13153_v57  ;;  %v6404_v4 = vunpack.c.l.b16 %v6392_v33  ;;  %v6544_v33 = vpack.c.bf16 %v13073_v13, %v6534_v38  ;;  %v10763_v13 = vld [vmem:[%s13619_s1 + $0x268] sm:$0xff]   ;;  %v6778_v38 = vpack.c.bf16 %v6768_v58, %v6768_v58 }
 0xcf0   :  { %v6405_v15 = vunpack.c.l.b16 %v6393_v14  ;;  %v6546_v14 = vpack.c.bf16 %v6538_v25, %v6538_v25  ;;  %v10767_v25 = vld [vmem:[%s13619_s1 + $0x278] sm:$0xff]  }
 0xcf2   :  { %v6406_v1 = vsel %vm2132_vm3, %v6405_v15, %v6404_v4  ;;  %v10726_v4 = vld [vmem:[%s13619_s1 + $0x108] sm:$0xff]   ;;  %v6562_v15 = vrot.slane %v6544_v33, 3  ;;  %v10768_v33 = vld [vmem:[%s13619_s1 + $0x238] sm:$0xff]  }
 0xcf3   :  { %v6407_v45 = vpack.c.b16 %v6406_v1, %v6406_v1  ;;  %v6563_v1 = vrot.slane %v6546_v14, 3 }
 0xcf5   :  { %10216 = vmatmul.mubr.msk.bf16.vlgmr.msra.gmra.mrb[84].mxu1 %vm2093_vm12, %v6407_v45  ;;  %v10730_v45 = vld [vmem:[%s13619_s1 + $0x110] sm:$0xff]  }
 0xcf6   :  { %9925 = vmatpush3.bf16.msra.mxu1 %v10690_v49  ;;  %7511 = vmatprep.mubr.bf16.mxu1 %v6561_v36  ;;  %v10729_v49 = vld [vmem:[%s13619_s1 + $0x150] sm:$0xff]   ;;  %v10733_v36 = vld [vmem:[%s13619_s1 + $0x158] sm:$0xff]  }
 0xcf7   :  { %9926 = vmatprep.subr.bf16.mxu1 %v10693_v9  ;;  %v6564_v9 = vsel %vm140_vm4, %v6562_v15, %v6563_v1  ;;  %v6774_v15 = vld [vmem:[#allocation2 + $0x70] sm:$0x3] }
 0xcfa   :  { %9927 = vmatpush3.bf16.msra.mxu1 %v10694_v32  ;;  %v10734_v32 = vld [vmem:[%s13619_s1 + $0x118] sm:$0xff]  }
 0xcfb   :  { %9928 = vmatprep.subr.bf16.mxu1 %v10697_v0  ;;  %v10737_v0 = vld [vmem:[%s13619_s1 + $0x160] sm:$0xff]  }
 0xcfe   :  { %9929 = vmatpush3.bf16.msra.mxu1 %v10698_v54  ;;  %v10738_v54 = vld [vmem:[%s13619_s1 + $0x120] sm:$0xff]  }
 0xcff   :  { %9930 = vmatprep.subr.bf16.mxu1 %v10701_v11  ;;  %v10741_v11 = vld [vmem:[%s13619_s1 + $0x168] sm:$0xff]  }
 0xd02   :  { %9931 = vmatpush3.bf16.msra.mxu1 %v10702_v56  ;;  %v10746_v56 = vld [vmem:[%s13619_s1 + $0x130] sm:$0xff]  }
 0xd03   :  { %9932 = vmatprep.subr.bf16.mxu1 %v10705_v28  ;;  %v10749_v28 = vld [vmem:[%s13619_s1 + $0x178] sm:$0xff]  }
 0xd06   :  { %9933 = vmatpush3.bf16.msra.mxu1 %v10706_v52  ;;  %v10750_v52 = vld [vmem:[%s13619_s1 + $0x138] sm:$0xff]  }
 0xd07   :  { %9934 = vmatprep.subr.bf16.mxu1 %v10709_v7  ;;  %v10753_v7 = vld [vmem:[%s13619_s1 + $0x240] sm:$0xff]  }
 0xd0a   :  { %9935 = vmatpush3.bf16.msra.mxu1 %v10710_v8  ;;  %v6765_v8 = vld [vmem:[#allocation2 + $0x18] sm:$0xfc] }
 0xd0b   :  { %9936 = vmatprep.subr.bf16.mxu1 %v10713_v17  ;;  %v6769_v17 = vld [vmem:[#allocation2 + $0x38] sm:$0x3]  ;;  %v6777_v12 = vpack.c.bf16 %v13089_v63, %v6765_v8 }
 0xd0c   :  { %v6779_v46 = vpack.c.bf16 %v6769_v17, %v6769_v17 }
 0xd0d   :  { %v6795_v63 = vrot.slane %v6777_v12, 1 }
 0xd0e   :  { %9937 = vmatpush3.bf16.msra.mxu1 %v10714_v6  ;;  %v10756_v6 = vld [vmem:[%s13619_s1 + $0x208] sm:$0xff]   ;;  %v6796_v39 = vrot.slane %v6779_v46, 1 }
 0xd0f   :  { %9938 = vmatprep.subr.bf16.mxu1 %v10717_v41  ;;  %v10761_v41 = vld [vmem:[%s13619_s1 + $0x260] sm:$0xff]  }
 0xd10   :  { %v6797_v29 = vsel %vm379_vm1, %v6795_v63, %v6796_v39 }
 0xd12   :  { %9939 = vmatpush3.bf16.msra.mxu1 %v10718_v10  ;;  %v6764_v10 = vld [vmem:[#allocation2 + $0x10] sm:$0xfc] }
 0xd13   :  { %9980 = vmatprep.subr.bf16.mxu1 %v10721_v2  ;;  %v6775_v2 = vld [vmem:[#allocation2 + $0x78] sm:$0x3]  ;;  %v6776_v5 = vpack.c.bf16 %v13096_v47, %v6764_v10  ;;  %v6770_v47 = vld [vmem:[#allocation2 + $0x50] sm:$0xfc] }
 0xd15   :  { %7512 = vmatmul.mubr.bf16.vlgmr.msra.gmra.mrb[88].mxu1 %v6558_v18  ;;  %v6781_v18 = vpack.c.bf16 %v13113_v62, %v6771_v24  ;;  %v6792_v14 = vrot.slane %v6776_v5, 1 }
 0xd16   :  { %9981 = vmatpush3.bf16.msra.mxu1 %v10722_v19  ;;  %7519 = vmatprep.mubr.bf16.mxu1 %v6567_v23  ;;  %v6783_v19 = vpack.c.bf16 %v6775_v2, %v6775_v2 }
 0xd17   :  { %9982 = vmatprep.subr.bf16.mxu1 %v10725_v43  ;;  %v6793_v43 = vrot.slane %v6778_v38, 1  ;;  %v6801_v23 = vrot.slane %v6781_v18, 1 }
 0xd19   :  { %v6794_v1 = vsel %vm379_vm1, %v6792_v14, %v6793_v43 }
 0xd1a   :  { %9983 = vmatpush3.bf16.msra.mxu1 %v10726_v4  ;;  %v6802_v4 = vrot.slane %v6783_v19, 1 }
 0xd1b   :  { %9984 = vmatprep.subr.bf16.mxu1 %v10729_v49  ;;  %v6780_v49 = vpack.c.bf16 %v13115_v60, %v6770_v47 }
 0xd1c   :  { %v6803_v62 = vsel %vm379_vm1, %v6801_v23, %v6802_v4 }
 0xd1d   :  { %7520 = vmatmul.mubr.bf16.gmra.mrb[92].mxu1 %v6564_v9  ;;  %v6798_v9 = vrot.slane %v6780_v49, 1 }
 0xd1e   :  { %9985 = vmatpush3.bf16.msra.mxu1 %v10730_v45  ;;  %7609 = vmatprep.mubr.bf16.mxu1 %v6681_v35  ;;  %v10745_v35 = vld [vmem:[%s13619_s1 + $0x170] sm:$0xff]   ;;  %v6782_v45 = vpack.c.bf16 %v6774_v15, %v6774_v15 }
 0xd1f   :  { %9986 = vmatprep.subr.bf16.mxu1 %v10733_v36 }
 0xd20   :  { %v6799_v36 = vrot.slane %v6782_v45, 1 }
 0xd22   :  { %9987 = vmatpush3.bf16.msra.mxu1 %v10734_v32  ;;  %v6800_v32 = vsel %vm379_vm1, %v6798_v9, %v6799_v36 }
 0xd23   :  { %9988 = vmatprep.subr.bf16.mxu1 %v10737_v0 }
 0xd26   :  { %9989 = vmatpush3.bf16.msra.mxu1 %v10738_v54 }
 0xd27   :  { %9990 = vmatprep.subr.bf16.mxu1 %v10741_v11 }
 0xd2a   :  { %9991 = vmatpush3.bf16.msra.mxu1 %v10742_v30 }
 0xd2b   :  { %9992 = vmatprep.subr.bf16.mxu1 %v10745_v35 }
 0xd2e   :  { %9993 = vmatpush3.bf16.msra.mxu1 %v10746_v56 }
 0xd2f   :  { %9994 = vmatprep.subr.bf16.mxu1 %v10749_v28 }
 0xd32   :  { %9995 = vmatpush3.bf16.msra.mxu1 %v10750_v52 }
 0xd33   :  { %10036 = vmatprep.subr.bf16.mxu1 %v10753_v7 }
 0xd35   :  { %7610 = vmatmul.mubr.bf16.vlgmr.msra.gmra.mrb[96].mxu1 %v6680_v51  ;;  %v10759_v51 = vld [vmem:[%s13619_s1 + $0x258] sm:$0xff]  }
 0xd36   :  { %10037 = vmatpush3.bf16.msra.mxu1 %v10754_v50  ;;  %7617 = vmatprep.mubr.bf16.mxu1 %v6683_v59  ;;  %v10760_v59 = vld [vmem:[%s13619_s1 + $0x218] sm:$0xff]  }
 0xd37   :  { %10038 = vmatprep.subr.bf16.mxu1 %v10755_v27 }
 0xd3a   :  { %10039 = vmatpush3.bf16.msra.mxu1 %v10756_v6  ;;  %v9968_v0 = vpop.f32.mrb[92].mxu0 }
 0xd3b   :  { %10040 = vmatprep.subr.bf16.mxu1 %v10757_v40  ;;  %v9969_v54 = vpop.f32.mrb[93].mxu0 }
 0xd3c   :  { %v9970_v11 = vadd.f32 %v9969_v54, %v9968_v0  ;;  %v9971_v30 = vpop.f32.mrb[94].mxu0 }
 0xd3d   :  { %7618 = vmatmul.mubr.bf16.gmra.mrb[100].mxu1 %v6682_v37  ;;  %v10764_v37 = vld [vmem:[%s13619_s1 + $0x228] sm:$0xff]   ;;  %v9972_v35 = vpop.f32.mrb[95].mxu0 }
 0xd3e   :  { %10041 = vmatpush3.bf16.msra.mxu1 %v10758_v22  ;;  %7707 = vmatprep.mubr.bf16.mxu1 %v6797_v29  ;;  %v9973_v56 = vadd.f32 %v9972_v35, %v9971_v30 }
 0xd3f   :  { %10042 = vmatprep.subr.bf16.mxu1 %v10759_v51 }
 0xd42   :  { %10043 = vmatpush3.bf16.msra.mxu1 %v10760_v59 }
 0xd43   :  { %10044 = vmatprep.subr.bf16.mxu1 %v10761_v41  ;;  %v13330_v41 = vld [vmem:[%s13624_s6] ss:$0 sm:$0xff] }
 0xd44   :  { %v9974_v28 = vpop.f32.mrb[96].mxu0 }
 0xd45   :  { %v9975_v52 = vpop.f32.mrb[97].mxu0 }
 0xd46   :  { %10045 = vmatpush3.bf16.msra.mxu1 %v10762_v16  ;;  %v9976_v7 = vadd.f32 %v9975_v52, %v9974_v28  ;;  %v9977_v60 = vpop.f32.mrb[98].mxu0 }
 0xd47   :  { %10046 = vmatprep.subr.bf16.mxu1 %v10763_v13  ;;  %v9978_v8 = vpop.f32.mrb[99].mxu0 }
 0xd48   :  { %v9979_v17 = vadd.f32 %v9978_v8, %v9977_v60 }
 0xd4a   :  { %10047 = vmatpush3.bf16.msra.mxu1 %v10764_v37  ;;  %v6454_v37 = vmul.f32 0.9, %v12732_v48  ;;  %v9121_v48 = vld [vmem:[%s13620_s2] ss:$0 sm:$0xff] }
 0xd4b   :  { %10048 = vmatprep.subr.bf16.mxu1 %v10765_v3 }
 0xd4e   :  { %10049 = vmatpush3.bf16.msra.mxu1 %v10766_v44 }
 0xd4f   :  { %10050 = vmatprep.subr.bf16.mxu1 %v10767_v25 }
 0xd52   :  { %10051 = vmatpush3.bf16.msra.mxu1 %v10768_v33 }
 0xd55   :  { %7708 = vmatmul.mubr.bf16.vlgmr.msra.gmra.mrb[104].mxu1 %v6794_v1 }
 0xd56   :  { %7715 = vmatprep.mubr.bf16.mxu1 %v6803_v62 }
 0xd5a   :  { %v10024_v50 = vpop.f32.mrb[100].mxu0 }
 0xd5b   :  { %v10025_v27 = vpop.f32.mrb[101].mxu0 }
 0xd5c   :  { %v10026_v12 = vadd.f32 %v10025_v27, %v10024_v50  ;;  %v10027_v46 = vpop.f32.mrb[102].mxu0 }
 0xd5d   :  { %7716 = vmatmul.mubr.bf16.gmra.mrb[108].mxu1 %v6800_v32  ;;  %v10028_v6 = vpop.f32.mrb[103].mxu0 }
 0xd5e   :  { %v10029_v40 = vadd.f32 %v10028_v6, %v10027_v46 }
 0xd62   :  { %v10030_v63 = vpop.f32.mrb[104].mxu0 }
 0xd63   :  { %v10031_v39 = vpop.f32.mrb[105].mxu0 }
 0xd64   :  { %v10032_v22 = vadd.f32 %v10031_v39, %v10030_v63  ;;  %v10033_v51 = vpop.f32.mrb[106].mxu0 }
 0xd65   :  { %v10034_v29 = vpop.f32.mrb[107].mxu0 }
 0xd66   :  { %v10035_v59 = vadd.f32 %v10034_v29, %v10033_v51 }
 0xdc8   :  { %v6448_v16 = vpop.f32.mrb[84].mxu1 }
 0xdc9   :  { %v6449_v13 = vadd.f32 %v13330_v41, %v6448_v16  ;;  %v10217_v3 = vpop.f32.mrb[85].mxu1 }
 0xdca   :  { %v6451_v10 = vpop.f32.mrb[86].mxu1 }
 0xdcb   :  { %v6455_v58 = vadd.f32 %v6454_v37, %v6449_v13  ;;  %v10218_v24 = vpop.f32.mrb[87].mxu1 }
 0xdcd   :  { %v13335_v2 = vsub.f32 %v6455_v58, %v12740_v53 }
 0xdcf   :  { %6463 = vst.msk [vmem:[#allocation9 + $0x4] sm:$0x3] %vm2187_vm6, %v13335_v2  ;;  %vm6457_vm4 = vcmp.gt.f32.partialorder %v13335_v2, 1.0 }
 0xdd0   :  { %v13341_v44 = vsel %vm6457_vm4, 1.0, %v13143_v61 }
 0xdd1   :  { %6461 = vst.msk [vmem:[#allocation7 + $0x4] sm:$0x3] %vm2187_vm6, %v13341_v44 }
 0xde8   :  { %v9940_v5 = vpop.f32.mrb[88].mxu1 }
 0xde9   :  { %v9941_v38 = vpop.f32.mrb[89].mxu1 }
 0xdea   :  { %v9942_v25 = vadd.f32 %v9941_v38, %v9940_v5  ;;  %v9943_v53 = vpop.f32.mrb[90].mxu1  ;;  %v10771_v5 = vld [vmem:[%s13621_s3] sm:$0xff]  }
 0xdeb   :  { %v9944_v18 = vpop.f32.mrb[91].mxu1 }
 0xdec   :  { %v7514_v19 = vadd.f32 %v9942_v25, %v9121_v48  ;;  %v9945_v33 = vadd.f32 %v9944_v18, %v9943_v53 }
 0xdee   :  { %v7517_v14 = vadd.f32 %v9945_v33, %v9121_v48  ;;  %v7563_v43 = vadd.f32 %v9970_v11, %v7514_v19  ;;  %v10773_v19 = vld [vmem:[%s13621_s3 + $0x48] sm:$0xff]  }
 0xdef   :  { %v10774_v33 = vld [vmem:[%s13621_s3 + $0xc8] sm:$0xff]  }
 0xdf0   :  { %v7566_v23 = vadd.f32 %v9973_v56, %v7517_v14  ;;  %v9946_v4 = vpop.f32.mrb[92].mxu1 }
 0xdf1   :  { %v9947_v47 = vpop.f32.mrb[93].mxu1 }
 0xdf2   :  { %v9948_v15 = vadd.f32 %v9947_v47, %v9946_v4  ;;  %v9949_v1 = vpop.f32.mrb[94].mxu1  ;;  %v10776_v4 = vld [vmem:[%s13621_s3 + $0x88] sm:$0xff]  }
 0xdf3   :  { %v9950_v49 = vpop.f32.mrb[95].mxu1 }
 0xdf4   :  { %v7522_v45 = vadd.f32 %v9948_v15, %v9121_v48  ;;  %v9951_v62 = vadd.f32 %v9950_v49, %v9949_v1  ;;  %v10777_v15 = vld [vmem:[%s13621_s3 + $0x50] sm:$0xff]  }
 0xdf5   :  { %v10778_v1 = vld [vmem:[%s13621_s3 + $0xd0] sm:$0xff]  }
 0xdf6   :  { %v7525_v9 = vadd.f32 %v9951_v62, %v9121_v48  ;;  %v7571_v36 = vadd.f32 %v9976_v7, %v7522_v45  ;;  %v10772_v48 = vld [vmem:[%s13621_s3 + $0x80] sm:$0xff]   ;;  %v10779_v49 = vld [vmem:[%s13621_s3 + $0x10] sm:$0xff]   ;;  %v10781_v62 = vld [vmem:[%s13621_s3 + $0x58] sm:$0xff]  }
 0xdf7   :  { %v10780_v45 = vld [vmem:[%s13621_s3 + $0x90] sm:$0xff]  }
 0xdf8   :  { %v7574_v32 = vadd.f32 %v9979_v17, %v7525_v9  ;;  %v10782_v9 = vld [vmem:[%s13621_s3 + $0xd8] sm:$0xff]  }
 0xe08   :  { %v9996_v0 = vpop.f32.mrb[96].mxu1 }
 0xe09   :  { %v9997_v54 = vpop.f32.mrb[97].mxu1 }
 0xe0a   :  { %v9998_v30 = vadd.f32 %v9997_v54, %v9996_v0  ;;  %v9999_v35 = vpop.f32.mrb[98].mxu1  ;;  %v10785_v0 = vld [vmem:[%s13621_s3 + $0x60] sm:$0xff]  }
 0xe0b   :  { %v10000_v28 = vpop.f32.mrb[99].mxu1  ;;  %v10786_v54 = vld [vmem:[%s13621_s3 + $0xe0] sm:$0xff]  }
 0xe0c   :  { %v7612_v52 = vadd.f32 %v9998_v30, %v7563_v43  ;;  %v10001_v60 = vadd.f32 %v10000_v28, %v9999_v35  ;;  %v10787_v30 = vld [vmem:[%s13621_s3 + $0x20] sm:$0xff]   ;;  %v10789_v28 = vld [vmem:[%s13621_s3 + $0x68] sm:$0xff]  }
 0xe0d   :  { %v10788_v35 = vld [vmem:[%s13621_s3 + $0xa0] sm:$0xff]  }
 0xe0e   :  { %v7615_v8 = vadd.f32 %v10001_v60, %v7566_v23  ;;  %v7661_v11 = vadd.f32 %v10026_v12, %v7612_v52  ;;  %v10775_v23 = vld [vmem:[%s13621_s3 + $0x8] sm:$0xff]  }
 0xe0f   :  { %v10790_v52 = vld [vmem:[%s13621_s3 + $0xe8] sm:$0xff]  }
 0xe10   :  { %v7664_v56 = vadd.f32 %v10029_v40, %v7615_v8  ;;  %v10002_v50 = vpop.f32.mrb[100].mxu1  ;;  %v10769_v40 = vld [vmem:[%s13621_s3 + $0x40] sm:$0xff]   ;;  %v10791_v60 = vld [vmem:[%s13621_s3 + $0x28] sm:$0xff]  }
 0xe11   :  { %v10003_v27 = vpop.f32.mrb[101].mxu1  ;;  %10064 = vmatprep.subr.bf16.mxu0 %v10769_v40  ;;  %v10792_v8 = vld [vmem:[%s13621_s3 + $0xa8] sm:$0xff]  }
 0xe12   :  { %v10004_v46 = vadd.f32 %v10003_v27, %v10002_v50  ;;  %v10005_v6 = vpop.f32.mrb[102].mxu1  ;;  %10065 = vmatpush3.bf16.msra.mxu0 %v10771_v5  ;;  %v10795_v50 = vld [vmem:[%s13621_s3 + $0x30] sm:$0xff]  }
 0xe13   :  { %v10006_v63 = vpop.f32.mrb[103].mxu1  ;;  %10066 = vmatprep.subr.bf16.mxu0 %v10773_v19  ;;  %v10796_v27 = vld [vmem:[%s13621_s3 + $0xb0] sm:$0xff]  }
 0xe14   :  { %v7620_v39 = vadd.f32 %v10004_v46, %v7571_v36  ;;  %v10007_v51 = vadd.f32 %v10006_v63, %v10005_v6  ;;  %v10783_v36 = vld [vmem:[%s13621_s3 + $0x18] sm:$0xff]  }
 0xe15   :  { %v10797_v46 = vld [vmem:[%s13621_s3 + $0x78] sm:$0xff]  }
 0xe16   :  { %v7623_v29 = vadd.f32 %v10007_v51, %v7574_v32  ;;  %v7669_v7 = vadd.f32 %v10032_v22, %v7620_v39  ;;  %v10770_v22 = vld [vmem:[%s13621_s3 + $0xc0] sm:$0xff]   ;;  %10067 = vmatpush3.bf16.msra.mxu0 %v10775_v23  ;;  %v10784_v32 = vld [vmem:[%s13621_s3 + $0x98] sm:$0xff]  }
 0xe17   :  { %10086 = vmatprep.subr.bf16.mxu1 %v10770_v22  ;;  %10068 = vmatprep.subr.bf16.mxu0 %v10777_v15  ;;  %v10798_v6 = vld [vmem:[%s13621_s3 + $0xf8] sm:$0xff]   ;;  %v10807_v51 = vld [vmem:[%s13621_s3 + $0x140] sm:$0xff]   ;;  %v7754_v22 = vmul.f32 0.9, %v12873_v21 }
 0xe18   :  { %v7672_v17 = vadd.f32 %v10035_v59, %v7623_v29  ;;  %10087 = vmatpush3.bf16.msra.mxu1 %v10772_v48  ;;  %v10799_v63 = vld [vmem:[%s13621_s3 + $0x38] sm:$0xff]  }
 0xe19   :  { %10088 = vmatprep.subr.bf16.mxu1 %v10774_v33  ;;  %v10800_v39 = vld [vmem:[%s13621_s3 + $0xb8] sm:$0xff]  }
 0xe1a   :  { %10069 = vmatpush3.bf16.msra.mxu0 %v10779_v49 }
 0xe1b   :  { %10070 = vmatprep.subr.bf16.mxu0 %v10781_v62 }
 0xe1c   :  { %10089 = vmatpush3.bf16.msra.mxu1 %v10776_v4 }
 0xe1d   :  { %10090 = vmatprep.subr.bf16.mxu1 %v10778_v1 }
 0xe1e   :  { %10071 = vmatpush3.bf16.msra.mxu0 %v10783_v36 }
 0xe1f   :  { %10072 = vmatprep.subr.bf16.mxu0 %v10785_v0 }
 0xe20   :  { %10091 = vmatpush3.bf16.msra.mxu1 %v10780_v45 }
 0xe21   :  { %10092 = vmatprep.subr.bf16.mxu1 %v10782_v9 }
 0xe22   :  { %10073 = vmatpush3.bf16.msra.mxu0 %v10787_v30 }
 0xe23   :  { %10074 = vmatprep.subr.bf16.mxu0 %v10789_v28 }
 0xe24   :  { %10093 = vmatpush3.bf16.msra.mxu1 %v10784_v32 }
 0xe25   :  { %10094 = vmatprep.subr.bf16.mxu1 %v10786_v54 }
 0xe26   :  { %10075 = vmatpush3.bf16.msra.mxu0 %v10791_v60 }
 0xe28   :  { %v10052_v16 = vpop.f32.mrb[104].mxu1  ;;  %10095 = vmatpush3.bf16.msra.mxu1 %v10788_v35 }
 0xe29   :  { %v10053_v13 = vpop.f32.mrb[105].mxu1  ;;  %10096 = vmatprep.subr.bf16.mxu1 %v10790_v52 }
 0xe2a   :  { %v10054_v37 = vadd.f32 %v10053_v13, %v10052_v16  ;;  %v10055_v3 = vpop.f32.mrb[106].mxu1 }
 0xe2b   :  { %v10056_v10 = vpop.f32.mrb[107].mxu1 }
 0xe2c   :  { %v13348_v58 = vadd.f32 %v10054_v37, %v7661_v11  ;;  %v10057_v24 = vadd.f32 %v10056_v10, %v10055_v3  ;;  %v10793_v11 = vld [vmem:[%s13621_s3 + $0x70] sm:$0xff]   ;;  %10097 = vmatpush3.bf16.msra.mxu1 %v10792_v8 }
 0xe2d   :  { %10076 = vmatprep.subr.bf16.mxu0 %v10793_v11 }
 0xe2e   :  { %v13350_v12 = vadd.f32 %v10057_v24, %v7664_v56  ;;  %7728 = vrot.lane.b32.xlu0 %v13348_v58, %s10911_s29  ;;  %v10794_v56 = vld [vmem:[%s13621_s3 + $0xf0] sm:$0xff]   ;;  %10077 = vmatpush3.bf16.msra.mxu0 %v10795_v50 }
 0xe2f   :  { %10098 = vmatprep.subr.bf16.mxu1 %v10794_v56  ;;  %10078 = vmatprep.subr.bf16.mxu0 %v10797_v46  ;;  %v10809_v46 = vld [vmem:[%s13621_s3 + $0x180] sm:$0xff]  }
 0xe30   :  { %v10058_v59 = vpop.f32.mrb[108].mxu1  ;;  %7730 = vrot.lane.b32.xlu1 %v13350_v12, %s10911_s29  ;;  %10099 = vmatpush3.bf16.msra.mxu1 %v10796_v27  ;;  %v10808_v27 = vld [vmem:[%s13621_s3 + $0x100] sm:$0xff]  }
 0xe31   :  { %v10059_v38 = vpop.f32.mrb[109].mxu1  ;;  %10100 = vmatprep.subr.bf16.mxu1 %v10798_v6 }
 0xe32   :  { %v10060_v25 = vadd.f32 %v10059_v38, %v10058_v59  ;;  %v10061_v53 = vpop.f32.mrb[110].mxu1  ;;  %10079 = vmatpush3.bf16.msra.mxu0 %v10799_v63 }
 0xe33   :  { %v10062_v18 = vpop.f32.mrb[111].mxu1  ;;  %10108 = vmatprep.subr.bf16.mxu0 %v10807_v51 }
 0xe34   :  { %v13374_v14 = vadd.f32 %v10060_v25, %v7669_v7  ;;  %v10063_v43 = vadd.f32 %v10062_v18, %v10061_v53  ;;  %10101 = vmatpush3.bf16.msra.mxu1 %v10800_v39  ;;  %v7755_v25 = vmul.f32 0.9, %v12883_v20 }
 0xe35   :  { %10219 = vmatprep.subr.bf16.mxu1 %v13143_v61 }
 0xe36   :  { %v13382_v47 = vadd.f32 %v10063_v43, %v7672_v17  ;;  %7732 = vrot.lane.b32.xlu0 %v13374_v14, %s10911_s29 }
 0xe38   :  { %7734 = vrot.lane.b32.xlu1 %v13382_v47, %s10911_s29 }
 0xea0   :  { %v7729_v29 = vpop.permute.xlu0 %7728 }
 0xea1   :  { %v7740_v7 = vmax.f32 %v13348_v58, %v7729_v29  ;;  %v10813_v29 = vld [vmem:[%s13621_s3 + $0x148] sm:$0xff]  }
 0xea2   :  { %v7731_v17 = vpop.permute.xlu1 %7730 }
 0xea3   :  { %7744 = vst.msk [vmem:[#allocation6] sm:$0xff] %vm1332_vm10, %v7740_v7  ;;  %v7741_v16 = vmax.f32 %v13350_v12, %v7731_v17  ;;  %v10814_v17 = vld [vmem:[%s13621_s3 + $0x108] sm:$0xff]  }
 0xea5   :  { %7745 = vst.msk [vmem:[#allocation6 + $0x8] sm:$0xff] %vm1332_vm10, %v7741_v16  ;;  %v10815_v16 = vld [vmem:[%s13621_s3 + $0x188] sm:$0xff]  }
 0xea8   :  { %v7733_v13 = vpop.permute.xlu0 %7732 }
 0xea9   :  { %v7742_v37 = vmax.f32 %v13374_v14, %v7733_v13  ;;  %v10816_v13 = vld [vmem:[%s13621_s3 + $0x150] sm:$0xff]  }
 0xeaa   :  { %v7735_v3 = vpop.permute.xlu1 %7734 }
 0xeab   :  { %7746 = vst.msk [vmem:[#allocation6 + $0x10] sm:$0xff] %vm1332_vm10, %v7742_v37  ;;  %v7743_v10 = vmax.f32 %v13382_v47, %v7735_v3  ;;  %v10817_v37 = vld [vmem:[%s13621_s3 + $0x110] sm:$0xff]  }
 0xeac   :  { %v7748_v24 = vld [vmem:[#allocation6] ss:$2 sm:$0xff]  ;;  %v7750_v40 = vld [vmem:[#allocation6 + $0x1] ss:$2 sm:$0xff] }
 0xead   :  { %v7752_v58 = vmax.f32 %v7748_v24, %v7750_v40  ;;  %7747 = vst.msk [vmem:[#allocation6 + $0x18] sm:$0xff] %vm1332_vm10, %v7743_v10  ;;  %v10818_v3 = vld [vmem:[%s13621_s3 + $0x190] sm:$0xff]   ;;  %v10819_v10 = vld [vmem:[%s13621_s3 + $0x158] sm:$0xff]  }
 0xeae   :  { %v10820_v24 = vld [vmem:[%s13621_s3 + $0x118] sm:$0xff]  }
 0xeaf   :  { %v7756_v59 = vadd.f32 %v7754_v22, %v7752_v58  ;;  %v10821_v40 = vld [vmem:[%s13621_s3 + $0x198] sm:$0xff]   ;;  %v10822_v22 = vld [vmem:[%s13621_s3 + $0x160] sm:$0xff]  }
 0xeb0   :  { %v10823_v58 = vld [vmem:[%s13621_s3 + $0x120] sm:$0xff]  }
 0xeb1   :  { %v7758_v12 = vsub.f32 %v7756_v59, %v12877_v34  ;;  %v10824_v59 = vld [vmem:[%s13621_s3 + $0x1a0] sm:$0xff]  }
 0xeb3   :  { %vm7760_vm1 = vcmp.gt.f32.partialorder %v7758_v12, 1.0  ;;  %v10825_v12 = vld [vmem:[%s13621_s3 + $0x168] sm:$0xff]  }
 0xeb4   :  { %v9202_v5 = vsel %vm7760_vm1, 1.0, %v13143_v61  ;;  %v7749_v48 = vld [vmem:[#allocation6 + $0x10] ss:$2 sm:$0xff]  ;;  %v7751_v38 = vld [vmem:[#allocation6 + $0x11] ss:$2 sm:$0xff] }
 0xeb5   :  { %7766 = vst.msk [vmem:[#allocation3 + $0x8] sm:$0xff] %vm1332_vm10, %v9202_v5  ;;  %v7753_v53 = vmax.f32 %v7749_v48, %v7751_v38  ;;  %v10826_v5 = vld [vmem:[%s13621_s3 + $0x128] sm:$0xff]   ;;  %v10828_v38 = vld [vmem:[%s13621_s3 + $0x170] sm:$0xff]  }
 0xeb6   :  { %v10827_v48 = vld [vmem:[%s13621_s3 + $0x1a8] sm:$0xff]  }
 0xeb7   :  { %v7757_v18 = vadd.f32 %v7755_v25, %v7753_v53  ;;  %v10829_v25 = vld [vmem:[%s13621_s3 + $0x130] sm:$0xff]  }
 0xeb8   :  { %v10830_v53 = vld [vmem:[%s13621_s3 + $0x1b0] sm:$0xff]  }
 0xeb9   :  { %v7759_v19 = vsub.f32 %v7757_v18, %v12887_v31  ;;  %v10831_v18 = vld [vmem:[%s13621_s3 + $0x178] sm:$0xff]  }
 0xebb   :  { %vm7761_vm0 = vcmp.gt.f32.partialorder %v7759_v19, 1.0  ;;  %v10832_v19 = vld [vmem:[%s13621_s3 + $0x138] sm:$0xff]  }
 0xebc   :  { %v9203_v21 = vsel %vm7761_vm0, 1.0, %v13143_v61  ;;  %v7768_v33 = vld [vmem:[#allocation3 + $0x5] sm:$0xff] }
 0xebd   :  { %v7774_v14 = vld [vmem:[#allocation3 + $0x6] sm:$0xff]  ;;  %7767 = vst.msk [vmem:[#allocation3 + $0x20] sm:$0xff] %vm1332_vm10, %v9203_v21  ;;  %v7770_v34 = vpack.c.bf16 %v7768_v33, %v7768_v33  ;;  %v10833_v21 = vld [vmem:[%s13621_s3 + $0x1b8] sm:$0xff]  }
 0xebe   :  { %v7780_v43 = vld [vmem:[#allocation3 + $0x7] sm:$0xff]  ;;  %v7776_v23 = vpack.c.bf16 %v7774_v14, %v7774_v14 }
 0xebf   :  { %v7782_v4 = vpack.c.bf16 %v7780_v43, %v7780_v43  ;;  %v7786_v47 = vld [vmem:[#allocation3 + $0x8] sm:$0xff]  ;;  %7772 = vst [vmem:[#allocation5] sm:$0xf] %v7770_v34 }
 0xec0   :  { %v7792_v15 = vld [vmem:[#allocation3 + $0x9] sm:$0xff]  ;;  %v7788_v1 = vpack.c.bf16 %v7786_v47, %v7786_v47  ;;  %7778 = vst [vmem:[#allocation5 + $0x4] sm:$0xf] %v7776_v23  ;;  %v9204_v23 = vld [vmem:[%s13622_s4] ss:$0 sm:$0xff] }
 0xec1   :  { %v7798_v20 = vld [vmem:[#allocation3 + $0xa] sm:$0xff]  ;;  %v7794_v49 = vpack.c.bf16 %v7792_v15, %v7792_v15  ;;  %7784 = vst [vmem:[#allocation5 + $0x8] sm:$0xf] %v7782_v4 }
 0xec2   :  { %v7800_v45 = vpack.c.bf16 %v7798_v20, %v7798_v20  ;;  %v7804_v62 = vld [vmem:[#allocation3 + $0xb] sm:$0xff]  ;;  %7790 = vst [vmem:[#allocation5 + $0xc] sm:$0xf] %v7788_v1 }
 0xec3   :  { %v7806_v31 = vpack.c.bf16 %v7804_v62, %v7804_v62  ;;  %7796 = vst [vmem:[#allocation5 + $0x10] sm:$0xf] %v7794_v49 }
 0xec4   :  { %7802 = vst [vmem:[#allocation5 + $0x14] sm:$0xf] %v7800_v45  ;;  %v7769_v9 = vld [vmem:[#allocation3 + $0x1d] sm:$0xff] }
 0xec5   :  { %7808 = vst [vmem:[#allocation5 + $0x18] sm:$0xf] %v7806_v31  ;;  %v7775_v36 = vld [vmem:[#allocation3 + $0x1e] sm:$0xff]  ;;  %v7771_v0 = vpack.c.bf16 %v7769_v9, %v7769_v9 }
 0xec6   :  { %v7781_v32 = vld [vmem:[#allocation3 + $0x1f] sm:$0xff]  ;;  %v7777_v54 = vpack.c.bf16 %v7775_v36, %v7775_v36 }
 0xec7   :  { %v7783_v30 = vpack.c.bf16 %v7781_v32, %v7781_v32  ;;  %v7787_v35 = vld [vmem:[#allocation3 + $0x20] sm:$0xff]  ;;  %7773 = vst [vmem:[#allocation5 + $0x1c] sm:$0xf] %v7771_v0 }
 0xec8   :  { %v7793_v28 = vld [vmem:[#allocation3 + $0x21] sm:$0xff]  ;;  %v7789_v60 = vpack.c.bf16 %v7787_v35, %v7787_v35  ;;  %7779 = vst [vmem:[#allocation5 + $0x20] sm:$0xf] %v7777_v54 }
 0xec9   :  { %v7799_v52 = vld [vmem:[#allocation3 + $0x22] sm:$0xff]  ;;  %v7795_v8 = vpack.c.bf16 %v7793_v28, %v7793_v28  ;;  %7785 = vst [vmem:[#allocation5 + $0x24] sm:$0xf] %v7783_v30 }
 0xeca   :  { %v7801_v11 = vpack.c.bf16 %v7799_v52, %v7799_v52  ;;  %v7805_v56 = vld [vmem:[#allocation3 + $0x23] sm:$0xff]  ;;  %7791 = vst [vmem:[#allocation5 + $0x28] sm:$0xf] %v7789_v60 }
 0xecb   :  { %v7807_v50 = vpack.c.bf16 %v7805_v56, %v7805_v56  ;;  %7797 = vst [vmem:[#allocation5 + $0x2c] sm:$0xf] %v7795_v8 }
 0xecc   :  { %7803 = vst [vmem:[#allocation5 + $0x30] sm:$0xf] %v7801_v11 }
 0xecd   :  { %7809 = vst [vmem:[#allocation5 + $0x34] sm:$0xf] %v7807_v50 }
 0xece   :  { %v10801_v6 = vld [vmem:[#allocation5] ss:$28 sps:$4 sm:$0xff]  }
 0xecf   :  { %v10803_v63 = vld [vmem:[#allocation5 + $0x4] ss:$28 sps:$4 sm:$0xff]  }
 0xed0   :  { %v10804_v39 = vld [vmem:[#allocation5 + $0x8] ss:$28 sps:$4 sm:$0xff]   ;;  %8341 = vmatprep.mubr.bf16.mxu0 %v10803_v63 }
 0xed1   :  { %v10806_v51 = vld [vmem:[#allocation5 + $0xc] ss:$28 sps:$4 sm:$0xff]   ;;  %8342 = vmatmul.mubr.bf16.vlgmr.msra.gmra.mrb[108].mxu0 %v10801_v6 }
 0xed2   :  { %8382 = vmatprep.mubr.bf16.mxu1 %v10806_v51  ;;  %10109 = vmatpush3.bf16.msra.mxu0 %v10808_v27  ;;  %v10810_v33 = vld [vmem:[#allocation5 + $0x10] ss:$28 sps:$4 sm:$0xff]  }
 0xed3   :  { %v10812_v7 = vld [vmem:[#allocation5 + $0x14] ss:$28 sps:$4 sm:$0xff]   ;;  %8383 = vmatmul.mubr.bf16.vlgmr.msra.gmra.mrb[112].mxu1 %v10804_v39  ;;  %10110 = vmatprep.subr.bf16.mxu0 %v10813_v29 }
 0xed4   :  { %10220 = vmatpush3.bf16.msra.mxu1 %v10809_v46  ;;  %8423 = vmatprep.mubr.bf16.mxu0 %v10812_v7  ;;  %v10834_v14 = vld [vmem:[#allocation5 + $0x18] ss:$28 sps:$4 sm:$0xff]  }
 0xed5   :  { %10221 = vmatprep.subr.bf16.mxu1 %v13143_v61  ;;  %10235 = vmatprep.mubr.msk.bf16.mxu1 %vm10912_vm14, %v13143_v61 }
 0xed6   :  { %10111 = vmatpush3.bf16.msra.mxu0 %v10814_v17 }
 0xed7   :  { %10112 = vmatprep.subr.bf16.mxu0 %v10816_v13 }
 0xed8   :  { %10222 = vmatpush3.bf16.msra.mxu1 %v10815_v16 }
 0xed9   :  { %10223 = vmatprep.subr.bf16.mxu1 %v13143_v61 }
 0xeda   :  { %10113 = vmatpush3.bf16.msra.mxu0 %v10817_v37 }
 0xedb   :  { %10114 = vmatprep.subr.bf16.mxu0 %v10819_v10 }
 0xedc   :  { %10224 = vmatpush3.bf16.msra.mxu1 %v10818_v3  ;;  %v8531_v3 = vld [vmem:[%s13623_s5] sm:$0xf]  ;;  %s10915_s5 = smov [#allocation9]  }
 0xedd   :  { %10225 = vmatprep.subr.bf16.mxu1 %v13143_v61  ;;  %v8549_v10 = vsel %vm2138_vm15, %v8531_v3, 0 }
 0xede   :  { %10115 = vmatpush3.bf16.msra.mxu0 %v10820_v24 }
 0xedf   :  { %10116 = vmatprep.subr.bf16.mxu0 %v10822_v22 }
 0xee0   :  { %10226 = vmatpush3.bf16.msra.mxu1 %v10821_v40 }
 0xee1   :  { %10227 = vmatprep.subr.bf16.mxu1 %v13143_v61 }
 0xee2   :  { %10117 = vmatpush3.bf16.msra.mxu0 %v10823_v58 }
 0xee3   :  { %10118 = vmatprep.subr.bf16.mxu0 %v10825_v12 }
 0xee4   :  { %10228 = vmatpush3.bf16.msra.mxu1 %v10824_v59 }
 0xee5   :  { %10229 = vmatprep.subr.bf16.mxu1 %v13143_v61 }
 0xee6   :  { %10119 = vmatpush3.bf16.msra.mxu0 %v10826_v5 }
 0xee7   :  { %10120 = vmatprep.subr.bf16.mxu0 %v10828_v38 }
 0xee8   :  { %10230 = vmatpush3.bf16.msra.mxu1 %v10827_v48 }
 0xee9   :  { %10231 = vmatprep.subr.bf16.mxu1 %v13143_v61 }
 0xeea   :  { %10121 = vmatpush3.bf16.msra.mxu0 %v10829_v25 }
 0xeeb   :  { %10122 = vmatprep.subr.bf16.mxu0 %v10831_v18 }
 0xeec   :  { %10232 = vmatpush3.bf16.msra.mxu1 %v10830_v53 }
 0xeed   :  { %10233 = vmatprep.subr.bf16.mxu1 %v13143_v61 }
 0xeee   :  { %10123 = vmatpush3.bf16.msra.mxu0 %v10832_v19 }
 0xeef   :  { %10239 = vmatprep.subr.bf16.mxu0 %v13143_v61 }
 0xef0   :  { %10234 = vmatpush3.bf16.msra.mxu1 %v10833_v21 }
 0xef1   :  { %8424 = vmatmul.mubr.bf16.vlgmr.msra.gmra.mrb[112].mxu0 %v10810_v33 }
 0xef2   :  { %10241 = vmatprep.mubr.msk.bf16.mxu0 %vm10912_vm14, %v13143_v61  ;;  %10240 = vmatpush3.bf16.msra.mxu0 %v8549_v10 }
 0xef3   :  { %10236 = vmatmul.mubr.bf16.vlgmr.msra.gmra.mrb[116].mxu1 %v10834_v14  ;;  %v8517_v14 = vmul.f32 0.9, %v13137_v26 }
 0xfa4   :  { %v10080_v43 = vpop.f32.mrb[108].mxu0 }
 0xfa5   :  { %v10081_v4 = vpop.f32.mrb[109].mxu0 }
 0xfa6   :  { %v10102_v34 = vpop.f32.mrb[112].mxu1  ;;  %v10082_v47 = vadd.f32 %v10081_v4, %v10080_v43  ;;  %v10083_v20 = vpop.f32.mrb[110].mxu0  ;;  %v8518_v4 = vmul.f32 0.9, %v13141_v55 }
 0xfa7   :  { %v10103_v15 = vpop.f32.mrb[113].mxu1  ;;  %v10084_v45 = vpop.f32.mrb[111].mxu0 }
 0xfa8   :  { %v10104_v1 = vadd.f32 %v10103_v15, %v10102_v34  ;;  %v10105_v49 = vpop.f32.mrb[114].mxu1  ;;  %v8344_v62 = vadd.f32 %v10082_v47, %v9204_v23  ;;  %v10085_v31 = vadd.f32 %v10084_v45, %v10083_v20 }
 0xfa9   :  { %v10106_v9 = vpop.f32.mrb[115].mxu1 }
 0xfaa   :  { %v10107_v36 = vadd.f32 %v10106_v9, %v10105_v49  ;;  %v8385_v32 = vadd.f32 %v10104_v1, %v8344_v62  ;;  %v8347_v0 = vadd.f32 %v10085_v31, %v9204_v23  ;;  %v10852_v49 = vld [vmem:[#allocation2 + $0x8] sm:$0xff] }
 0xfac   :  { %v8388_v61 = vadd.f32 %v10107_v36, %v8347_v0 }
 0xfc4   :  { %v10124_v54 = vpop.f32.mrb[112].mxu0 }
 0xfc5   :  { %v10125_v35 = vpop.f32.mrb[113].mxu0 }
 0xfc6   :  { %v8466_v30 = vpop.f32.mrb[116].mxu1  ;;  %v10126_v28 = vadd.f32 %v10125_v35, %v10124_v54  ;;  %v10127_v60 = vpop.f32.mrb[114].mxu0 }
 0xfc7   :  { %v10237_v52 = vpop.f32.mrb[117].mxu1  ;;  %v10128_v11 = vpop.f32.mrb[115].mxu0 }
 0xfc8   :  { %v8469_v8 = vpop.f32.mrb[118].mxu1  ;;  %v8426_v56 = vadd.f32 %v10126_v28, %v8385_v32  ;;  %v10129_v50 = vadd.f32 %v10128_v11, %v10127_v60 }
 0xfc9   :  { %v10238_v27 = vpop.f32.mrb[119].mxu1 }
 0xfca   :  { %v8429_v46 = vadd.f32 %v10129_v50, %v8388_v61  ;;  %v8467_v6 = vadd.f32 %v8466_v30, %v8426_v56  ;;  %v8591_v61 = vmul.f32 0.9, %v13335_v2 }
 0xfcc   :  { %8475 = vrot.lane.b32.xlu0 %v8467_v6, %s10911_s29  ;;  %v8470_v63 = vadd.f32 %v8469_v8, %v8429_v46 }
 0xfce   :  { %8477 = vrot.lane.b32.xlu1 %v8470_v63, %s10911_s29  ;;  %s8618_s29 = sshll.u32 %s10915_s5, 4  ;;  %s8619_s29 = int_to_ptr.vmem [resolvable:$true] %s8618_s29 }
 0xfcf   :  { %s10861_s13 = scalar_lea.vmem %s8619_s29, 128  ;;  %p10866_p1 = scmp.lt.s32.totalorder %s8619_s29, %s8619_s29 }
 0xfd0   :  { %p10862_p0 = scmp.ne.s32.totalorder %s8619_s29, %s10861_s13  ;;  %p10867_p2 = scmp.lt.s32.totalorder %s10861_s13, %s10861_s13 }
 0xfd2   :  { %p10868_p3 = por %p10867_p2, %p10866_p1 }
 0xfd4   :  { %p10869_p4 = pnand %p10868_p3, %p10862_p0 }
0x103e   :  { %v8476_v39 = vpop.permute.xlu0 %8475 }
0x103f   :  { %v8481_v51 = vmax.f32 %v8467_v6, %v8476_v39 }
0x1040   :  { %v8478_v29 = vpop.permute.xlu1 %8477 }
0x1041   :  { %v8482_v7 = vmax.f32 %v8470_v63, %v8478_v29  ;;  %8485 = vrot.lane.b32.xlu0 %v8481_v51, %s10913_s17 }
0x1043   :  { %8487 = vrot.lane.b32.xlu1 %v8482_v7, %s10913_s17  ;;  %s10916_s17 = smov [#allocation7]  }
0x10b3   :  { %v8486_v17 = vpop.permute.xlu0 %8485 }
0x10b4   :  { %v8491_v16 = vmax.f32 %v8481_v51, %v8486_v17 }
0x10b5   :  { %v8488_v13 = vpop.permute.xlu1 %8487 }
0x10b6   :  { %v8492_v37 = vmax.f32 %v8482_v7, %v8488_v13  ;;  %8495 = vrot.lane.b32.xlu0 %v8491_v16, %s10914_s18 }
0x10b8   :  { %8497 = vrot.lane.b32.xlu1 %v8492_v37, %s10914_s18  ;;  %s8606_s18 = sshll.u32 %s10916_s17, 4  ;;  %s13586_s18 = int_to_ptr.vmem [resolvable:$true] %s8606_s18 }
0x1128   :  { %v8496_v24 = vpop.permute.xlu0 %8495 }
0x1129   :  { %v8501_v40 = vmax.f32 %v8491_v16, %v8496_v24 }
0x112a   :  { %v8498_v22 = vpop.permute.xlu1 %8497 }
0x112b   :  { %v8503_v58 = vsel %vm2093_vm12, %v8501_v40, -inf  ;;  %v8502_v59 = vmax.f32 %v8492_v37, %v8498_v22 }
0x112c   :  { %v8504_v12 = vrot.slane %v8503_v58, 4 }
0x112d   :  { %v8510_v5 = vsel %vm2093_vm12, %v8502_v59, -inf }
0x112e   :  { %v8505_v48 = vmax.f32 %v8503_v58, %v8504_v12  ;;  %v8511_v38 = vrot.slane %v8510_v5, 4 }
0x1130   :  { %v8506_v25 = vrot.slane %v8505_v48, 2  ;;  %v8512_v53 = vmax.f32 %v8510_v5, %v8511_v38 }
0x1132   :  { %v8507_v18 = vmax.f32 %v8505_v48, %v8506_v25  ;;  %v8513_v19 = vrot.slane %v8512_v53, 2 }
0x1134   :  { %v8508_v21 = vrot.slane %v8507_v18, 1  ;;  %v8514_v33 = vmax.f32 %v8512_v53, %v8513_v19 }
0x1136   :  { %v8509_v43 = vmax.f32 %v8507_v18, %v8508_v21  ;;  %v8515_v34 = vrot.slane %v8514_v33, 1 }
0x1138   :  { %v8519_v23 = vadd.f32 %v8517_v14, %v8509_v43  ;;  %v8516_v47 = vmax.f32 %v8514_v33, %v8515_v34 }
0x113a   :  { %v8521_v15 = vsub.f32 %v8519_v23, %v13146_v42  ;;  %v8520_v20 = vadd.f32 %v8518_v4, %v8516_v47 }
0x113c   :  { %vm8523_vm10 = vcmp.gt.f32.partialorder %v8521_v15, 1.0  ;;  %v8522_v1 = vsub.f32 %v8520_v20, %v13153_v57 }
0x113d   :  { %v9268_v45 = vsel %vm8523_vm10, 1.0, %v10852_v49 }
0x113e   :  { %v8529_v62 = vpack.c.bf16 %v9268_v45, %v9268_v45  ;;  %vm8524_vm14 = vcmp.gt.f32.partialorder %v8522_v1, 1.0 }
0x113f   :  { %v9269_v31 = vsel %vm8524_vm14, 1.0, %v10852_v49 }
0x1140   :  { %v8530_v9 = vpack.c.bf16 %v9269_v31, %v9269_v31  ;;  %v8541_v36 = vunpack.c.l.b16 %v8529_v62 }
0x1142   :  { %v8542_v26 = vunpack.c.l.b16 %v8530_v9 }
0x1144   :  { %v8543_v32 = vsel %vm2132_vm3, %v8542_v26, %v8541_v36 }
0x1145   :  { %v8544_v0 = vpack.c.b16 %v8543_v32, %v8543_v32 }
0x1147   :  { %10242 = vmatmul.mubr.msk.bf16.vlgmr.msra.gmra.mrb[116].mxu0 %vm2093_vm12, %v8544_v0 }
0x121a   :  { %v8585_v55 = vpop.f32.mrb[116].mxu0 }
0x121b   :  { %v8586_v42 = vadd.f32 %v13330_v41, %v8585_v55  ;;  %v10243_v54 = vpop.f32.mrb[117].mxu0 }
0x121c   :  { %v8588_v57 = vpop.f32.mrb[118].mxu0 }
0x121d   :  { %v8592_v30 = vadd.f32 %v8591_v61, %v8586_v42  ;;  %v10244_v35 = vpop.f32.mrb[119].mxu0 }
0x121f   :  { %v8593_v28 = vsub.f32 %v8592_v30, %v13341_v44 }
0x1221   :  { %vm8594_vm15 = vcmp.gt.f32.partialorder %v8593_v28, 1.0  ;;  %8600 = vst.msk [vmem:[#allocation9 + $0x6] sm:$0x3] %vm2187_vm6, %v8593_v28 }
0x1222   :  { %v9272_v52 = vsel %vm8594_vm15, 1.0, %v10852_v49 }
0x1223   :  { %10872 = shalt.err (!%p10869_p4)
}
0x1224   :  { %s10873_s15 = scalar_lea.hbm %s13626_s8, 128 }
0x1225   :  { %p10874_p5 = scmp.ne.s32.totalorder %s13626_s8, %s10873_s15  ;;  %p10877_p6 = scmp.lt.u32.totalorder %s10873_s15, %s13626_s8 }
0x1227   :  { %p10879_p7 = pnand %p10877_p6, %p10874_p5 }
0x1229   :  { %10882 = shalt.err (!%p10879_p7)
}
0x122a   :  { %s10917_s21 = smov 32   ;;  %s10918_s22 = smov 2   ;;  %8598 = vst.msk [vmem:[#allocation7 + $0x6] sm:$0x3] %vm2187_vm6, %v9272_v52 }
0x122b   :  { %8624 = dma.vmem_to_hbm [thread:$0]  %s8619_s29, 128, %s13626_s8, [#allocation10], %s10917_s21, %s10917_s21, %s10918_s22  }
0x122c   :  { %s10883_s25 = scalar_lea.vmem %s13586_s18, 128  ;;  %p10888_p9 = scmp.lt.s32.totalorder %s13586_s18, %s13586_s18 }
0x122d   :  { %p10884_p8 = scmp.ne.s32.totalorder %s13586_s18, %s10883_s25  ;;  %p10889_p10 = scmp.lt.s32.totalorder %s10883_s25, %s10883_s25 }
0x122f   :  { %p10890_p11 = por %p10889_p10, %p10888_p9 }
0x1231   :  { %p10891_p12 = pnand %p10890_p11, %p10884_p8 }
0x1233   :  { %10894 = shalt.err (!%p10891_p12)
}
0x1234   :  { %s10895_s28 = scalar_lea.hbm %s13625_s7, 128 }
0x1235   :  { %p10896_p13 = scmp.ne.s32.totalorder %s13625_s7, %s10895_s28  ;;  %p10899_p0 = scmp.lt.u32.totalorder %s10895_s28, %s13625_s7 }
0x1237   :  { %p10901_p1 = pnand %p10899_p0, %p10896_p13 }
0x1239   :  { %10904 = shalt.err (!%p10901_p1)
}
0x123a   :  { %8612 = dma.vmem_to_hbm [thread:$0]  %s13586_s18, 128, %s13625_s7, [#allocation8], %s10917_s21, %s10917_s21, %s10918_s22  }
0x123b   :  { %10905 = dma.done.wait [#allocation8], 128  }
0x123c   :  { %10906 = vsyncadd [#allocation8], 4294967168 }
0x123d   :  { %10907 = dma.done.wait [#allocation10], 128  }
0x123e   :  { %10908 = vsyncadd [#allocation10], 4294967168 }
0x123f   :  { %8631 = vsyncpa [#allocation8], 1 }
0x1240   :  { %8632 = vsyncpa [#allocation10], 1 }

</bundles_post_ra>
